<compile_context>
chip_gen: v7x
topology: tpu7x:2x2x1
jax: 0.10.0
libtpu: 0.0.40
codegen_flags: <defaults>
</compile_context>

<pallas_src>
import jax
import jax.numpy as jnp
import numpy as np
from jax.experimental import pallas as pl
from jax.experimental.pallas import tpu as pltpu


# ---------------------------------------------------------------------------
# One-time weight preparation (host side, hoisted out of the per-call path).
# ---------------------------------------------------------------------------
def _conv1_toeplitz(w1):
    """w1 (6,1,5,5) f32 -> (784, 3584) Toeplitz for conv1, quadrant layout.

    Input rows: 28*ih + iw (plain row-major 28x28 image, no spatial padding).
    Output cols: q*896 + co*144 + (12*r + c), where the conv output pixel is
    (oh, ow) = (2*r + dr, 2*c + dc) and q = 2*dr + dc is the 2x2 pool quadrant
    (each 864-wide quadrant block is zero-padded to 896 lanes for alignment).
    """
    oh, ow = np.meshgrid(np.arange(24), np.arange(24), indexing="ij")
    r, dr = oh // 2, oh % 2
    c, dc = ow // 2, ow % 2
    q = 2 * dr + dc
    pix = 12 * r + c
    t = np.zeros((784, 4, 6, 144), np.float32)          # (s_in, q, co, pix)
    for co in range(6):
        for kh in range(5):
            for kw in range(5):
                s_in = 28 * (oh + kh) + (ow + kw)
                t[s_in, q, co, pix] += w1[co, 0, kh, kw]
    t = np.pad(t.reshape(784, 4, 864), ((0, 0), (0, 0), (0, 32)))
    return t.reshape(784, 3584)


def _conv2_toeplitz(w2):
    """w2 (16,6,5,5) f32 -> (896, 1024) Toeplitz for conv2, quadrant layout.

    Input rows match the pooled conv1 activations: ci*144 + 12*ih + iw
    (zero rows 864..895 absorb the lane padding of the previous stage).
    Output cols: q*256 + co*16 + (4*r + c)  ->  quadrant-max gives PyTorch's
    (C,H,W) flatten order directly.
    """
    oh, ow = np.meshgrid(np.arange(8), np.arange(8), indexing="ij")
    r, dr = oh // 2, oh % 2
    c, dc = ow // 2, ow % 2
    q = 2 * dr + dc
    pix = 4 * r + c
    t = np.zeros((6, 144, 4, 16, 16), np.float32)       # (ci, s_in, q, co, pix)
    for co in range(16):
        for ci in range(6):
            for kh in range(5):
                for kw in range(5):
                    s_in = 12 * (oh + kh) + (ow + kw)
                    t[ci, s_in, q, co, pix] += w2[co, ci, kh, kw]
    return np.pad(t.reshape(864, 1024), ((0, 32), (0, 0)))


def prepare_params(params):
    """One-time conversion of PyTorch-layout weights into lane-dense bf16
    kernel operands (biases stay f32; they add onto f32 accumulators)."""
    g = lambda k: np.asarray(params[k], np.float32)
    return {
        "t1": jnp.asarray(_conv1_toeplitz(g("w_conv1")), jnp.bfloat16),      # (784,3584)
        "b1": jnp.asarray(np.pad(np.repeat(g("b_conv1"), 144), (0, 32))[None, :]),  # (1,896)
        "t2": jnp.asarray(_conv2_toeplitz(g("w_conv2")), jnp.bfloat16),      # (896,1024)
        "b2": jnp.asarray(np.repeat(g("b_conv2"), 16)[None, :]),             # (1,256)
        "wf1": jnp.asarray(np.pad(g("w_fc1").T, ((0, 0), (0, 8))), jnp.bfloat16),    # (256,128)
        "bf1": jnp.asarray(np.pad(g("b_fc1"), (0, 8))[None, :]),
        "wf2": jnp.asarray(np.pad(g("w_fc2").T, ((0, 8), (0, 44))), jnp.bfloat16),   # (128,128)
        "bf2": jnp.asarray(np.pad(g("b_fc2"), (0, 44))[None, :]),
        "wf3": jnp.asarray(np.pad(g("w_fc3").T, ((0, 44), (0, 118))), jnp.bfloat16), # (128,128)
        "bf3": jnp.asarray(np.pad(g("b_fc3"), (0, 118))[None, :]),
    }


# ---------------------------------------------------------------------------
# Fused kernel: one batch tile (TB images) per grid step, all stages on MXU.
# ---------------------------------------------------------------------------
def _lenet5_kernel(x_ref, t1_ref, b1_ref, t2_ref, b2_ref,
                   wf1_ref, bf1_ref, wf2_ref, bf2_ref, wf3_ref, bf3_ref,
                   o_ref):
    f32 = jnp.float32
    bf16 = jnp.bfloat16

    # ---- conv1 (1->6, 5x5 valid): one Toeplitz matmul (MXU) ----------------
    x = x_ref[...].astype(bf16)                                     # (TB, 784)
    c1 = jnp.dot(x, t1_ref[...], preferred_element_type=f32)        # (TB, 3584)

    # ---- pool1: elementwise max over the 4 lane-aligned quadrant blocks ----
    # bias+ReLU commute with max, so apply them once on the pooled result.
    m1 = jnp.maximum(jnp.maximum(c1[:, 0:896], c1[:, 896:1792]),
                     jnp.maximum(c1[:, 1792:2688], c1[:, 2688:3584]))
    p1 = jnp.maximum(m1 + b1_ref[...], 0.0).astype(bf16)            # (TB, 896)

    # ---- conv2 (6->16, 5x5 valid): all 6 input channels in one K=896 dot ---
    c2 = jnp.dot(p1, t2_ref[...], preferred_element_type=f32)       # (TB, 1024)

    # ---- pool2 + flatten: quadrant max -> PyTorch (C,H,W) flatten order ----
    m2 = jnp.maximum(jnp.maximum(c2[:, 0:256], c2[:, 256:512]),
                     jnp.maximum(c2[:, 512:768], c2[:, 768:1024]))
    p2 = jnp.maximum(m2 + b2_ref[...], 0.0).astype(bf16)            # (TB, 256)

    # ---- fc1/fc2/fc3, each followed by ReLU (relu5 after fc3, per module) --
    h1 = jnp.maximum(jnp.dot(p2, wf1_ref[...], preferred_element_type=f32)
                     + bf1_ref[...], 0.0).astype(bf16)
    h2 = jnp.maximum(jnp.dot(h1, wf2_ref[...], preferred_element_type=f32)
                     + bf2_ref[...], 0.0).astype(bf16)
    o_ref[...] = jnp.maximum(
        jnp.dot(h2, wf3_ref[...], preferred_element_type=f32) + bf3_ref[...], 0.0)


# ---------------------------------------------------------------------------
# Wrapper
# ---------------------------------------------------------------------------
def _round_up(n, m):
    return (n + m - 1) // m * m


def _choose_tiles(batch):
    # Up to 256 rows per tile (fills the 256-row MXU on v6e/v7x; 2 pushes on
    # v5e's 128-row MXU), but always >= 2 grid steps so ("parallel",) shards
    # across both TensorCores on v7x.
    tb = min(256, max(8, _round_up((batch + 1) // 2, 8)))
    b_pad = _round_up(batch, tb)
    if b_pad // tb < 2:
        b_pad = 2 * tb
    return tb, b_pad


def lenet5_forward(x, prep):
    """x: (B, 1, 28, 28) float32 NCHW -> (B, 10) float32 (post relu5)."""
    B = x.shape[0]
    TB, B_pad = _choose_tiles(B)
    grid = (B_pad // TB,)

    xs = x.reshape(B, 784)                  # free reshape, no spatial padding
    if B_pad != B:
        xs = jnp.pad(xs, ((0, B_pad - B), (0, 0)))

    def const(shape):                       # VMEM-resident across grid steps
        return pl.BlockSpec(shape, lambda i: (0, 0))

    out = pl.pallas_call(
        _lenet5_kernel,
        out_shape=jax.ShapeDtypeStruct((B_pad, 128), jnp.float32),
        grid=grid,
        in_specs=[
            pl.BlockSpec((TB, 784), lambda i: (i, 0)),   # pipelined input tile
            const(prep["t1"].shape), const(prep["b1"].shape),
            const(prep["t2"].shape), const(prep["b2"].shape),
            const(prep["wf1"].shape), const(prep["bf1"].shape),
            const(prep["wf2"].shape), const(prep["bf2"].shape),
            const(prep["wf3"].shape), const(prep["bf3"].shape),
        ],
        out_specs=pl.BlockSpec((TB, 128), lambda i: (i, 0)),   # lane-dense store
        compiler_params=pltpu.CompilerParams(
            dimension_semantics=("parallel",),
            vmem_limit_bytes=48 * 1024 * 1024,
        ),
    )(xs, prep["t1"], prep["b1"], prep["t2"], prep["b2"],
      prep["wf1"], prep["bf1"], prep["wf2"], prep["bf2"],
      prep["wf3"], prep["bf3"])

    return out[:B, :10]


# ---------------------------------------------------------------------------
# Pure-JAX reference (mirrors the PyTorch module) + params
# ---------------------------------------------------------------------------
def lenet5_reference(x, params):
    dn = ("NCHW", "OIHW", "NCHW")
    y = jax.lax.conv_general_dilated(x, params["w_conv1"], (1, 1), "VALID",
                                     dimension_numbers=dn)
    y = jax.nn.relu(y + params["b_conv1"][None, :, None, None])
    y = jax.lax.reduce_window(y, -jnp.inf, jax.lax.max, (1, 1, 2, 2), (1, 1, 2, 2), "VALID")
    y = jax.lax.conv_general_dilated(y, params["w_conv2"], (1, 1), "VALID",
                                     dimension_numbers=dn)
    y = jax.nn.relu(y + params["b_conv2"][None, :, None, None])
    y = jax.lax.reduce_window(y, -jnp.inf, jax.lax.max, (1, 1, 2, 2), (1, 1, 2, 2), "VALID")
    y = y.reshape(y.shape[0], -1)
    y = jax.nn.relu(y @ params["w_fc1"].T + params["b_fc1"])
    y = jax.nn.relu(y @ params["w_fc2"].T + params["b_fc2"])
    y = jax.nn.relu(y @ params["w_fc3"].T + params["b_fc3"])
    return y


def init_params(key):
    ks = jax.random.split(key, 10)
    f = lambda k, shape, scale: (scale * jax.random.normal(k, shape)).astype(jnp.float32)
    return {
        "w_conv1": f(ks[0], (6, 1, 5, 5), 0.2),
        "b_conv1": f(ks[1], (6,), 0.1),
        "w_conv2": f(ks[2], (16, 6, 5, 5), 0.08),
        "b_conv2": f(ks[3], (16,), 0.1),
        "w_fc1":   f(ks[4], (120, 256), 0.06),
        "b_fc1":   f(ks[5], (120,), 0.1),
        "w_fc2":   f(ks[6], (84, 120), 0.09),
        "b_fc2":   f(ks[7], (84,), 0.1),
        "w_fc3":   f(ks[8], (10, 84), 0.1),
        "b_fc3":   f(ks[9], (10,), 0.1),
    }


if __name__ == "__main__":
    key = jax.random.PRNGKey(0)
    kx, kp = jax.random.split(key)
    params = init_params(kp)
    prep = prepare_params(params)          # one-time weight prep (hoisted)

    fwd = jax.jit(lenet5_forward)
    ref_fn = jax.jit(lenet5_reference)

    # batch=2 exercises the small-tile path (TB=8, grid=2);
    # batch=80 exercises an even multi-tile split with no batch padding
    # (TB=40, grid=2).
    for batch in (2, 80):
        x = jax.random.normal(jax.random.fold_in(kx, batch),
                              (batch, 1, 28, 28), dtype=jnp.float32)
        out = jax.block_until_ready(fwd(x, prep))
        assert out.shape == (batch, 10) and out.dtype == jnp.float32
        ref = jax.block_until_ready(ref_fn(x, params))
        err = float(jnp.max(jnp.abs(out - ref)))
        # Tolerance reflects bf16 MXU operands (f32 accumulation).
        assert err <= 1e-1, f"mismatch vs reference: max abs err {err}"
    print("KERNEL_OK")
</pallas_src>

<mosaic_0001>
module attributes {stable_mosaic.version = 11 : i64} {
  func.func @_lenet5_kernel(%arg0: i32, %arg1: memref<8x784xf32, #tpu.memory_space<vmem>>, %arg2: memref<784x3584xbf16, #tpu.memory_space<vmem>>, %arg3: memref<1x896xf32, #tpu.memory_space<vmem>>, %arg4: memref<896x1024xbf16, #tpu.memory_space<vmem>>, %arg5: memref<1x256xf32, #tpu.memory_space<vmem>>, %arg6: memref<256x128xbf16, #tpu.memory_space<vmem>>, %arg7: memref<1x128xf32, #tpu.memory_space<vmem>>, %arg8: memref<128x128xbf16, #tpu.memory_space<vmem>>, %arg9: memref<1x128xf32, #tpu.memory_space<vmem>>, %arg10: memref<128x128xbf16, #tpu.memory_space<vmem>>, %arg11: memref<1x128xf32, #tpu.memory_space<vmem>>, %arg12: memref<8x128xf32, #tpu.memory_space<vmem>>) attributes {dimension_semantics = [#tpu.dimension_semantics<parallel>], iteration_bounds = array<i64: 2>, scalar_prefetch = 0 : i64, scratch_operands = 0 : i64, tpu.core_type = #tpu.core_type<tc>, window_params = [{transform_indices = @transform_0, window_bounds = array<i64: 8, 784>}, {pipeline_mode = #tpu.pipeline_mode<synchronous>, transform_indices = @transform_1, window_bounds = array<i64: 784, 3584>}, {pipeline_mode = #tpu.pipeline_mode<synchronous>, transform_indices = @transform_2, window_bounds = array<i64: 1, 896>}, {pipeline_mode = #tpu.pipeline_mode<synchronous>, transform_indices = @transform_3, window_bounds = array<i64: 896, 1024>}, {pipeline_mode = #tpu.pipeline_mode<synchronous>, transform_indices = @transform_4, window_bounds = array<i64: 1, 256>}, {pipeline_mode = #tpu.pipeline_mode<synchronous>, transform_indices = @transform_5, window_bounds = array<i64: 256, 128>}, {pipeline_mode = #tpu.pipeline_mode<synchronous>, transform_indices = @transform_6, window_bounds = array<i64: 1, 128>}, {pipeline_mode = #tpu.pipeline_mode<synchronous>, transform_indices = @transform_7, window_bounds = array<i64: 128, 128>}, {pipeline_mode = #tpu.pipeline_mode<synchronous>, transform_indices = @transform_8, window_bounds = array<i64: 1, 128>}, {pipeline_mode = #tpu.pipeline_mode<synchronous>, transform_indices = @transform_9, window_bounds = array<i64: 128, 128>}, {pipeline_mode = #tpu.pipeline_mode<synchronous>, transform_indices = @transform_10, window_bounds = array<i64: 1, 128>}, {transform_indices = @transform_11, window_bounds = array<i64: 8, 128>}]} {
    %c0 = arith.constant 0 : index
    %c0_0 = arith.constant 0 : index
    %0 = vector.load %arg1[%c0, %c0_0] : memref<8x784xf32, #tpu.memory_space<vmem>>, vector<8x784xf32>
    %1 = arith.truncf %0 : vector<8x784xf32> to vector<8x784xbf16>
    %c0_1 = arith.constant 0 : index
    %c0_2 = arith.constant 0 : index
    %2 = vector.load %arg2[%c0_1, %c0_2] : memref<784x3584xbf16, #tpu.memory_space<vmem>>, vector<784x3584xbf16>
    %cst = arith.constant dense<0.000000e+00> : vector<8x3584xf32>
    %3 = tpu.matmul %1, %2, %cst {dimension_numbers = #tpu.dot_dimension_numbers<[1], [0], [0], [1], [0, 0, 1, 1], [], []>} : vector<8x784xbf16>, vector<784x3584xbf16>, vector<8x3584xf32> -> vector<8x3584xf32>
    %4 = vector.extract_strided_slice %3 {offsets = [0, 0], sizes = [8, 896], strides = [1, 1]} : vector<8x3584xf32> to vector<8x896xf32>
    %5 = vector.extract_strided_slice %3 {offsets = [0, 896], sizes = [8, 896], strides = [1, 1]} : vector<8x3584xf32> to vector<8x896xf32>
    %6 = arith.maximumf %4, %5 : vector<8x896xf32>
    %7 = vector.extract_strided_slice %3 {offsets = [0, 1792], sizes = [8, 896], strides = [1, 1]} : vector<8x3584xf32> to vector<8x896xf32>
    %8 = vector.extract_strided_slice %3 {offsets = [0, 2688], sizes = [8, 896], strides = [1, 1]} : vector<8x3584xf32> to vector<8x896xf32>
    %9 = arith.maximumf %7, %8 : vector<8x896xf32>
    %10 = arith.maximumf %6, %9 : vector<8x896xf32>
    %c0_3 = arith.constant 0 : index
    %c0_4 = arith.constant 0 : index
    %11 = vector.load %arg3[%c0_3, %c0_4] : memref<1x896xf32, #tpu.memory_space<vmem>>, vector<1x896xf32>
    %12 = vector.broadcast %11 : vector<1x896xf32> to vector<8x896xf32>
    %13 = arith.addf %10, %12 : vector<8x896xf32>
    %cst_5 = arith.constant 0.000000e+00 : f32
    %14 = vector.broadcast %cst_5 : f32 to vector<8x896xf32>
    %15 = arith.maximumf %13, %14 : vector<8x896xf32>
    %16 = arith.truncf %15 : vector<8x896xf32> to vector<8x896xbf16>
    %c0_6 = arith.constant 0 : index
    %c0_7 = arith.constant 0 : index
    %17 = vector.load %arg4[%c0_6, %c0_7] : memref<896x1024xbf16, #tpu.memory_space<vmem>>, vector<896x1024xbf16>
    %cst_8 = arith.constant dense<0.000000e+00> : vector<8x1024xf32>
    %18 = tpu.matmul %16, %17, %cst_8 {dimension_numbers = #tpu.dot_dimension_numbers<[1], [0], [0], [1], [0, 0, 1, 1], [], []>} : vector<8x896xbf16>, vector<896x1024xbf16>, vector<8x1024xf32> -> vector<8x1024xf32>
    %19 = vector.extract_strided_slice %18 {offsets = [0, 0], sizes = [8, 256], strides = [1, 1]} : vector<8x1024xf32> to vector<8x256xf32>
    %20 = vector.extract_strided_slice %18 {offsets = [0, 256], sizes = [8, 256], strides = [1, 1]} : vector<8x1024xf32> to vector<8x256xf32>
    %21 = arith.maximumf %19, %20 : vector<8x256xf32>
    %22 = vector.extract_strided_slice %18 {offsets = [0, 512], sizes = [8, 256], strides = [1, 1]} : vector<8x1024xf32> to vector<8x256xf32>
    %23 = vector.extract_strided_slice %18 {offsets = [0, 768], sizes = [8, 256], strides = [1, 1]} : vector<8x1024xf32> to vector<8x256xf32>
    %24 = arith.maximumf %22, %23 : vector<8x256xf32>
    %25 = arith.maximumf %21, %24 : vector<8x256xf32>
    %c0_9 = arith.constant 0 : index
    %c0_10 = arith.constant 0 : index
    %26 = vector.load %arg5[%c0_9, %c0_10] : memref<1x256xf32, #tpu.memory_space<vmem>>, vector<1x256xf32>
    %27 = vector.broadcast %26 : vector<1x256xf32> to vector<8x256xf32>
    %28 = arith.addf %25, %27 : vector<8x256xf32>
    %cst_11 = arith.constant 0.000000e+00 : f32
    %29 = vector.broadcast %cst_11 : f32 to vector<8x256xf32>
    %30 = arith.maximumf %28, %29 : vector<8x256xf32>
    %31 = arith.truncf %30 : vector<8x256xf32> to vector<8x256xbf16>
    %c0_12 = arith.constant 0 : index
    %c0_13 = arith.constant 0 : index
    %32 = vector.load %arg6[%c0_12, %c0_13] : memref<256x128xbf16, #tpu.memory_space<vmem>>, vector<256x128xbf16>
    %cst_14 = arith.constant dense<0.000000e+00> : vector<8x128xf32>
    %33 = tpu.matmul %31, %32, %cst_14 {dimension_numbers = #tpu.dot_dimension_numbers<[1], [0], [0], [1], [0, 0, 1, 1], [], []>} : vector<8x256xbf16>, vector<256x128xbf16>, vector<8x128xf32> -> vector<8x128xf32>
    %c0_15 = arith.constant 0 : index
    %c0_16 = arith.constant 0 : index
    %34 = vector.load %arg7[%c0_15, %c0_16] : memref<1x128xf32, #tpu.memory_space<vmem>>, vector<1x128xf32>
    %35 = vector.broadcast %34 : vector<1x128xf32> to vector<8x128xf32>
    %36 = arith.addf %33, %35 : vector<8x128xf32>
    %cst_17 = arith.constant 0.000000e+00 : f32
    %37 = vector.broadcast %cst_17 : f32 to vector<8x128xf32>
    %38 = arith.maximumf %36, %37 : vector<8x128xf32>
    %39 = arith.truncf %38 : vector<8x128xf32> to vector<8x128xbf16>
    %c0_18 = arith.constant 0 : index
    %c0_19 = arith.constant 0 : index
    %40 = vector.load %arg8[%c0_18, %c0_19] : memref<128x128xbf16, #tpu.memory_space<vmem>>, vector<128x128xbf16>
    %cst_20 = arith.constant dense<0.000000e+00> : vector<8x128xf32>
    %41 = tpu.matmul %39, %40, %cst_20 {dimension_numbers = #tpu.dot_dimension_numbers<[1], [0], [0], [1], [0, 0, 1, 1], [], []>} : vector<8x128xbf16>, vector<128x128xbf16>, vector<8x128xf32> -> vector<8x128xf32>
    %c0_21 = arith.constant 0 : index
    %c0_22 = arith.constant 0 : index
    %42 = vector.load %arg9[%c0_21, %c0_22] : memref<1x128xf32, #tpu.memory_space<vmem>>, vector<1x128xf32>
    %43 = vector.broadcast %42 : vector<1x128xf32> to vector<8x128xf32>
    %44 = arith.addf %41, %43 : vector<8x128xf32>
    %cst_23 = arith.constant 0.000000e+00 : f32
    %45 = vector.broadcast %cst_23 : f32 to vector<8x128xf32>
    %46 = arith.maximumf %44, %45 : vector<8x128xf32>
    %47 = arith.truncf %46 : vector<8x128xf32> to vector<8x128xbf16>
    %c0_24 = arith.constant 0 : index
    %c0_25 = arith.constant 0 : index
    %48 = vector.load %arg10[%c0_24, %c0_25] : memref<128x128xbf16, #tpu.memory_space<vmem>>, vector<128x128xbf16>
    %cst_26 = arith.constant dense<0.000000e+00> : vector<8x128xf32>
    %49 = tpu.matmul %47, %48, %cst_26 {dimension_numbers = #tpu.dot_dimension_numbers<[1], [0], [0], [1], [0, 0, 1, 1], [], []>} : vector<8x128xbf16>, vector<128x128xbf16>, vector<8x128xf32> -> vector<8x128xf32>
    %c0_27 = arith.constant 0 : index
    %c0_28 = arith.constant 0 : index
    %50 = vector.load %arg11[%c0_27, %c0_28] : memref<1x128xf32, #tpu.memory_space<vmem>>, vector<1x128xf32>
    %51 = vector.broadcast %50 : vector<1x128xf32> to vector<8x128xf32>
    %52 = arith.addf %49, %51 : vector<8x128xf32>
    %cst_29 = arith.constant 0.000000e+00 : f32
    %53 = vector.broadcast %cst_29 : f32 to vector<8x128xf32>
    %54 = arith.maximumf %52, %53 : vector<8x128xf32>
    %c0_30 = arith.constant 0 : index
    %c0_31 = arith.constant 0 : index
    %55 = vector.load %arg12[%c0_30, %c0_31] : memref<8x128xf32, #tpu.memory_space<vmem>>, vector<8x128xf32>
    tpu.vector_store %arg12[%c0_30, %c0_31], %54 {strides = array<i32>} : memref<8x128xf32, #tpu.memory_space<vmem>>, vector<8x128xf32>,
    return
  }
  func.func @transform_0(%arg0: i32) -> (i32, i32) {
    %c0_i32 = arith.constant 0 : i32
    %c0_i32_0 = arith.constant 0 : i32
    return %arg0, %c0_i32 : i32, i32
  }
  func.func @transform_1(%arg0: i32) -> (i32, i32) {
    %c0_i32 = arith.constant 0 : i32
    %c0_i32_0 = arith.constant 0 : i32
    %c0_i32_1 = arith.constant 0 : i32
    return %c0_i32, %c0_i32_0 : i32, i32
  }
  func.func @transform_2(%arg0: i32) -> (i32, i32) {
    %c0_i32 = arith.constant 0 : i32
    %c0_i32_0 = arith.constant 0 : i32
    %c0_i32_1 = arith.constant 0 : i32
    return %c0_i32, %c0_i32_0 : i32, i32
  }
  func.func @transform_3(%arg0: i32) -> (i32, i32) {
    %c0_i32 = arith.constant 0 : i32
    %c0_i32_0 = arith.constant 0 : i32
    %c0_i32_1 = arith.constant 0 : i32
    return %c0_i32, %c0_i32_0 : i32, i32
  }
  func.func @transform_4(%arg0: i32) -> (i32, i32) {
    %c0_i32 = arith.constant 0 : i32
    %c0_i32_0 = arith.constant 0 : i32
    %c0_i32_1 = arith.constant 0 : i32
    return %c0_i32, %c0_i32_0 : i32, i32
  }
  func.func @transform_5(%arg0: i32) -> (i32, i32) {
    %c0_i32 = arith.constant 0 : i32
    %c0_i32_0 = arith.constant 0 : i32
    %c0_i32_1 = arith.constant 0 : i32
    return %c0_i32, %c0_i32_0 : i32, i32
  }
  func.func @transform_6(%arg0: i32) -> (i32, i32) {
    %c0_i32 = arith.constant 0 : i32
    %c0_i32_0 = arith.constant 0 : i32
    %c0_i32_1 = arith.constant 0 : i32
    return %c0_i32, %c0_i32_0 : i32, i32
  }
  func.func @transform_7(%arg0: i32) -> (i32, i32) {
    %c0_i32 = arith.constant 0 : i32
    %c0_i32_0 = arith.constant 0 : i32
    %c0_i32_1 = arith.constant 0 : i32
    return %c0_i32, %c0_i32_0 : i32, i32
  }
  func.func @transform_8(%arg0: i32) -> (i32, i32) {
    %c0_i32 = arith.constant 0 : i32
    %c0_i32_0 = arith.constant 0 : i32
    %c0_i32_1 = arith.constant 0 : i32
    return %c0_i32, %c0_i32_0 : i32, i32
  }
  func.func @transform_9(%arg0: i32) -> (i32, i32) {
    %c0_i32 = arith.constant 0 : i32
    %c0_i32_0 = arith.constant 0 : i32
    %c0_i32_1 = arith.constant 0 : i32
    return %c0_i32, %c0_i32_0 : i32, i32
  }
  func.func @transform_10(%arg0: i32) -> (i32, i32) {
    %c0_i32 = arith.constant 0 : i32
    %c0_i32_0 = arith.constant 0 : i32
    %c0_i32_1 = arith.constant 0 : i32
    return %c0_i32, %c0_i32_0 : i32, i32
  }
  func.func @transform_11(%arg0: i32) -> (i32, i32) {
    %c0_i32 = arith.constant 0 : i32
    %c0_i32_0 = arith.constant 0 : i32
    return %arg0, %c0_i32 : i32, i32
  }
}

</mosaic_0001>

<bundles_post_ra>
// kernel: lenet5_forward.1
= control target key start
LH: loop header
LB: loop body
LE: loop exit
PB: predicated region body
PF: predicated region fallthrough
CT: control target
= control target key end

     0   :  { %16 = vsyncpa [#allocation3], 0  ;;  %s20535_s0 = inlined_call_operand.vmem [shape: f32[16,784], index: 0, kind: input, shape index: {}]   ;;  %s20536_s1 = inlined_call_operand.hbm [shape: bf16[784,3584], index: 1, kind: input, shape index: {}]   ;;  %s20537_s2 = inlined_call_operand.hbm [shape: f32[1,896], index: 2, kind: input, shape index: {}]   ;;  %s20538_s3 = inlined_call_operand.hbm [shape: bf16[896,1024], index: 3, kind: input, shape index: {}]   ;;  %s20539_s4 = inlined_call_operand.hbm [shape: f32[1,256], index: 4, kind: input, shape index: {}]   ;;  %s20540_s5 = inlined_call_operand.hbm [shape: bf16[256,128], index: 5, kind: input, shape index: {}]   ;;  %s20541_s6 = inlined_call_operand.hbm [shape: f32[1,128], index: 6, kind: input, shape index: {}]   ;;  %s20542_s7 = inlined_call_operand.hbm [shape: bf16[128,128], index: 7, kind: input, shape index: {}]   ;;  %s20543_s8 = inlined_call_operand.hbm [shape: f32[1,128], index: 8, kind: input, shape index: {}]   ;;  %s20544_s9 = inlined_call_operand.hbm [shape: bf16[128,128], index: 9, kind: input, shape index: {}]   ;;  %s20545_s10 = inlined_call_operand.hbm [shape: f32[1,128], index: 10, kind: input, shape index: {}]   ;;  %s20546_s11 = inlined_call_operand.vmem [shape: f32[16,128], index: 11, kind: output, shape index: {}]  }
   0x1   :  { %17 = vsyncpa [#allocation5], 0 }
   0x2   :  { %18 = vsyncpa [#allocation8], 0 }
   0x3   :  { %19 = vsyncpa [#allocation11], 0 }
   0x4   :  { %20 = vsyncpa [#allocation14], 0 }
   0x5   :  { %21 = vsyncpa [#allocation17], 0  ;;  %s19860_s17 = smov 0  }
   0x6 LB: > { %s19781_s18 = smov [#allocation4]   ;;  %s19866_s20 = sadd.s32 4294967295, %s19779_s17   ;;  %s19779_s17 = sphi %s19860_s17, %s27_s17  }
   0x7   : > { %s320_s19 = sshll.u32 %s19781_s18, 4  ;;  %p15071_p0 = scmp.ge.s32.totalorder %s19779_s17, 1  ;;  %s19871_s19 = int_to_ptr.vmem [resolvable:$true] %s320_s19 }
   0x8   : > { %p294_p1 = scmp.lt.s32.totalorder %s19779_s17, 3  ;;  %p20547_p2 = scmp.eq.s32.totalorder %s19866_s20, 0 }
   0x9   : > { %s19782_s22 = smov [#allocation7]   ;;  %s19783_s24 = smov [#allocation10]  }
   0xa   : > { %p19873_p3 = pnand %p15071_p0, %p294_p1  ;;  %s344_s23 = sshll.u32 %s19782_s22, 4  ;;  %s19879_s23 = int_to_ptr.vmem [resolvable:$true] %s344_s23 }
   0xb   : > { %s368_s25 = sshll.u32 %s19783_s24, 4  ;;  %s19784_s27 = smov [#allocation13]   ;;  %s19887_s25 = int_to_ptr.vmem [resolvable:$true] %s368_s25 }
   0xc   : > { %s20549_s21 = scalar_select %p19873_p3, 1, 0 }
   0xd   : > { %p17300_p4 = pneg %p19873_p3  ;;  %s392_s28 = sshll.u32 %s19784_s27, 4  ;;  %s19889_s28 = int_to_ptr.vmem [resolvable:$true] %s392_s28 }
   0xe   : > { %s19469_s12 = scalar_lea.hbm %s20537_s2, 112 }
   0xf   : > { %p19883_p5 = pnand %p20547_p2, %p17300_p4  ;;  %p19470_p6 = scmp.ne.s32.totalorder %s20537_s2, %s19469_s12 }
  0x10   : > { %p19476_p10 = scmp.lt.u32.totalorder %s19469_s12, %s20537_s2 }
  0x11   : > { %p19899_p7 = pneg %p19883_p5 }
  0x13   : > { %p19472_p8 = pnand %p19899_p7, %p19470_p6 }
  0x15   : > { %p19473_p9 = pneg %p19472_p8 }
  0x17   : > { %p19478_p11 = pnand %p19476_p10, %p19473_p9 }
  0x19   : > { %19481 = shalt.err (!%p19478_p11)
}
  0x1a   : > { %s19482_s22 = scalar_lea.vmem %s19871_s19, 112  ;;  %s19489_s24 = scalar_lea.vmem %s19871_s19, 128 }
  0x1b   : > { %p19483_p12 = scmp.ne.s32.totalorder %s19871_s19, %s19482_s22  ;;  %p19490_p1 = scmp.lt.s32.totalorder %s19871_s19, %s19871_s19 }
  0x1c   : > { %p19491_p4 = scmp.lt.s32.totalorder %s19489_s24, %s19482_s22 }
  0x1d   : > { %p19485_p13 = pnand %p19483_p12, %p19899_p7 }
  0x1e   : > { %p19492_p6 = por %p19491_p4, %p19490_p1 }
  0x1f   : > { %p19486_p0 = pneg %p19485_p13 }
  0x21   : > { %p19493_p8 = pnand %p19492_p6, %p19486_p0 }
  0x23   : > { %19496 = shalt.err (!%p19493_p8)
}
  0x24   : > { %17306 = dma.hbm_to_vmem [thread:$0]  (!%p19883_p5), %s20537_s2, 112, %s19871_s19, [#allocation5]  }
  0x25   : > { %s19497_s13 = scalar_lea.hbm %s20539_s4, 32 }
  0x26   : > { %p19498_p9 = scmp.ne.s32.totalorder %s20539_s4, %s19497_s13  ;;  %p19504_p12 = scmp.lt.u32.totalorder %s19497_s13, %s20539_s4 }
  0x28   : > { %p19500_p10 = pnand %p19498_p9, %p19899_p7 }
  0x2a   : > { %p19501_p11 = pneg %p19500_p10 }
  0x2c   : > { %p19506_p13 = pnand %p19504_p12, %p19501_p11 }
  0x2e   : > { %19509 = shalt.err (!%p19506_p13)
}
  0x2f   : > { %s19510_s19 = scalar_lea.vmem %s19879_s23, 32  ;;  %p19518_p6 = scmp.lt.s32.totalorder %s19879_s23, %s19879_s23 }
  0x30   : > { %p19511_p0 = scmp.ne.s32.totalorder %s19879_s23, %s19510_s19  ;;  %p19519_p8 = scmp.lt.s32.totalorder %s19510_s19, %s19510_s19 }
  0x32   : > { %p19513_p1 = pnand %p19511_p0, %p19899_p7  ;;  %p19520_p9 = por %p19519_p8, %p19518_p6 }
  0x34   : > { %p19514_p4 = pneg %p19513_p1 }
  0x36   : > { %p19521_p10 = pnand %p19520_p9, %p19514_p4 }
  0x38   : > { %19524 = shalt.err (!%p19521_p10)
}
  0x39   : > { %17312 = dma.hbm_to_vmem [thread:$0]  (!%p19883_p5), %s20539_s4, 32, %s19879_s23, [#allocation8]  }
  0x3a   : > { %s19525_s12 = scalar_lea.hbm %s20541_s6, 16 }
  0x3b   : > { %p19526_p11 = scmp.ne.s32.totalorder %s20541_s6, %s19525_s12  ;;  %p19532_p0 = scmp.lt.u32.totalorder %s19525_s12, %s20541_s6 }
  0x3d   : > { %p19528_p12 = pnand %p19526_p11, %p19899_p7 }
  0x3f   : > { %p19529_p13 = pneg %p19528_p12 }
  0x41   : > { %p19534_p1 = pnand %p19532_p0, %p19529_p13 }
  0x43   : > { %19537 = shalt.err (!%p19534_p1)
}
  0x44   : > { %s19538_s23 = scalar_lea.vmem %s19887_s25, 16  ;;  %s19545_s22 = scalar_lea.vmem %s19887_s25, 32 }
  0x45   : > { %p19539_p4 = scmp.ne.s32.totalorder %s19887_s25, %s19538_s23  ;;  %p19546_p9 = scmp.lt.s32.totalorder %s19887_s25, %s19887_s25 }
  0x46   : > { %p19547_p10 = scmp.lt.s32.totalorder %s19545_s22, %s19538_s23 }
  0x47   : > { %p19541_p6 = pnand %p19539_p4, %p19899_p7 }
  0x48   : > { %p19548_p11 = por %p19547_p10, %p19546_p9 }
  0x49   : > { %p19542_p8 = pneg %p19541_p6 }
  0x4b   : > { %p19549_p12 = pnand %p19548_p11, %p19542_p8 }
  0x4d   : > { %19552 = shalt.err (!%p19549_p12)
}
  0x4e   : > { %17318 = dma.hbm_to_vmem [thread:$0]  (!%p19883_p5), %s20541_s6, 16, %s19887_s25, [#allocation11]  }
  0x4f   : > { %s19553_s30 = scalar_lea.hbm %s20543_s8, 16 }
  0x50   : > { %p19554_p13 = scmp.ne.s32.totalorder %s20543_s8, %s19553_s30  ;;  %p19560_p4 = scmp.lt.u32.totalorder %s19553_s30, %s20543_s8 }
  0x52   : > { %p19556_p0 = pnand %p19554_p13, %p19899_p7 }
  0x54   : > { %p19557_p1 = pneg %p19556_p0 }
  0x56   : > { %p19562_p6 = pnand %p19560_p4, %p19557_p1 }
  0x58   : > { %19565 = shalt.err (!%p19562_p6)
}
  0x59   : > { %s19566_s25 = scalar_lea.vmem %s19889_s28, 16  ;;  %s19573_s18 = scalar_lea.vmem %s19889_s28, 32 }
  0x5a   : > { %p19567_p8 = scmp.ne.s32.totalorder %s19889_s28, %s19566_s25  ;;  %p19574_p11 = scmp.lt.s32.totalorder %s19889_s28, %s19889_s28 }
  0x5b   : > { %p19575_p12 = scmp.lt.s32.totalorder %s19573_s18, %s19566_s25 }
  0x5c   : > { %p19569_p9 = pnand %p19567_p8, %p19899_p7 }
  0x5d   : > { %p19576_p13 = por %p19575_p12, %p19574_p11 }
  0x5e   : > { %p19570_p10 = pneg %p19569_p9 }
  0x60   : > { %p19577_p0 = pnand %p19576_p13, %p19570_p10 }
  0x62   : > { %19580 = shalt.err (!%p19577_p0)
}
  0x63   : > { %17324 = dma.hbm_to_vmem [thread:$0]  (!%p19883_p5), %s20543_s8, 16, %s19889_s28, [#allocation14]  }
  0x64   : > { %s19785_s19 = smov [#allocation2]   ;;  %s19581_s30 = scalar_lea.hbm %s20536_s1, 175616 }
  0x65   : > { %s306_s24 = sshll.u32 %s19785_s19, 4  ;;  %p19582_p1 = scmp.ne.s32.totalorder %s20536_s1, %s19581_s30  ;;  %s307_s24 = int_to_ptr.vmem [resolvable:$true] %s306_s24 }
  0x66   : > { %p19588_p8 = scmp.lt.u32.totalorder %s19581_s30, %s20536_s1 }
  0x67   : > { %p19584_p4 = pnand %p19582_p1, %p19899_p7 }
  0x69   : > { %p19585_p6 = pneg %p19584_p4 }
  0x6b   : > { %p19590_p9 = pnand %p19588_p8, %p19585_p6 }
  0x6d   : > { %19593 = shalt.err (!%p19590_p9)
}
  0x6e   : > { %s19594_s28 = scalar_lea.vmem %s307_s24, 175616  ;;  %p19602_p13 = scmp.lt.s32.totalorder %s307_s24, %s307_s24 }
  0x6f   : > { %p19595_p10 = scmp.ne.s32.totalorder %s307_s24, %s19594_s28  ;;  %p19603_p0 = scmp.lt.s32.totalorder %s19594_s28, %s19594_s28 }
  0x71   : > { %p19597_p11 = pnand %p19595_p10, %p19899_p7  ;;  %p19604_p2 = por %p19603_p0, %p19602_p13 }
  0x73   : > { %p19598_p12 = pneg %p19597_p11 }
  0x75   : > { %p19605_p3 = pnand %p19604_p2, %p19598_p12 }
  0x77   : > { %19608 = shalt.err (!%p19605_p3)
}
  0x78   : > { %s19786_s25 = smov 1792   ;;  %s19787_s18 = smov 112  }
  0x79   : > { %17303 = dma.hbm_to_vmem [thread:$0]  (!%p19883_p5), %s20536_s1, 175616, %s307_s24, [#allocation3], %s19786_s25, %s19786_s25, %s19787_s18  }
  0x7a   : > { %s19788_s19 = smov [#allocation6]   ;;  %s19609_s12 = scalar_lea.hbm %s20538_s3, 57344 }
  0x7b   : > { %s330_s27 = sshll.u32 %s19788_s19, 4  ;;  %p19610_p2 = scmp.ne.s32.totalorder %s20538_s3, %s19609_s12  ;;  %s331_s27 = int_to_ptr.vmem [resolvable:$true] %s330_s27 }
  0x7c   : > { %p19616_p4 = scmp.lt.u32.totalorder %s19609_s12, %s20538_s3 }
  0x7d   : > { %p19612_p3 = pnand %p19610_p2, %p19899_p7 }
  0x7f   : > { %p19613_p1 = pneg %p19612_p3 }
  0x81   : > { %p19618_p6 = pnand %p19616_p4, %p19613_p1 }
  0x83   : > { %19621 = shalt.err (!%p19618_p6)
}
  0x84   : > { %s19622_s24 = scalar_lea.vmem %s331_s27, 57344  ;;  %p19630_p11 = scmp.lt.s32.totalorder %s331_s27, %s331_s27 }
  0x85   : > { %p19623_p8 = scmp.ne.s32.totalorder %s331_s27, %s19622_s24  ;;  %p19631_p12 = scmp.lt.s32.totalorder %s19622_s24, %s19622_s24 }
  0x87   : > { %p19625_p9 = pnand %p19623_p8, %p19899_p7  ;;  %p19632_p13 = por %p19631_p12, %p19630_p11 }
  0x89   : > { %p19626_p10 = pneg %p19625_p9 }
  0x8b   : > { %p19633_p0 = pnand %p19632_p13, %p19626_p10 }
  0x8d   : > { %19636 = shalt.err (!%p19633_p0)
}
  0x8e   : > { %s19789_s25 = smov 512   ;;  %s19790_s18 = smov 32  }
  0x8f   : > { %17309 = dma.hbm_to_vmem [thread:$0]  (!%p19883_p5), %s20538_s3, 57344, %s331_s27, [#allocation5], %s19789_s25, %s19789_s25, %s19790_s18  }
  0x90   : > { %s19791_s19 = smov [#allocation9]   ;;  %s19637_s13 = scalar_lea.hbm %s20540_s5, 2048 }
  0x91   : > { %s354_s29 = sshll.u32 %s19791_s19, 4  ;;  %p19638_p2 = scmp.ne.s32.totalorder %s20540_s5, %s19637_s13  ;;  %s355_s29 = int_to_ptr.vmem [resolvable:$true] %s354_s29 }
  0x92   : > { %p19644_p4 = scmp.lt.u32.totalorder %s19637_s13, %s20540_s5 }
  0x93   : > { %p19640_p3 = pnand %p19638_p2, %p19899_p7 }
  0x95   : > { %p19641_p1 = pneg %p19640_p3 }
  0x97   : > { %p19646_p6 = pnand %p19644_p4, %p19641_p1 }
  0x99   : > { %19649 = shalt.err (!%p19646_p6)
}
  0x9a   : > { %s19650_s27 = scalar_lea.vmem %s355_s29, 2048  ;;  %p19658_p11 = scmp.lt.s32.totalorder %s355_s29, %s355_s29 }
  0x9b   : > { %p19651_p8 = scmp.ne.s32.totalorder %s355_s29, %s19650_s27  ;;  %p19659_p12 = scmp.lt.s32.totalorder %s19650_s27, %s19650_s27 }
  0x9d   : > { %p19653_p9 = pnand %p19651_p8, %p19899_p7  ;;  %p19660_p13 = por %p19659_p12, %p19658_p11 }
  0x9f   : > { %p19654_p10 = pneg %p19653_p9 }
  0xa1   : > { %p19661_p0 = pnand %p19660_p13, %p19654_p10 }
  0xa3   : > { %19664 = shalt.err (!%p19661_p0)
}
  0xa4   : > { %s19792_s25 = smov 64   ;;  %s19793_s18 = smov 4  }
  0xa5   : > { %17315 = dma.hbm_to_vmem [thread:$0]  (!%p19883_p5), %s20540_s5, 2048, %s355_s29, [#allocation8], %s19792_s25, %s19792_s25, %s19793_s18  }
  0xa6   : > { %s19794_s19 = smov [#allocation12]   ;;  %s19795_s12 = smov [#allocation15]  }
  0xa7   : > { %s378_s30 = sshll.u32 %s19794_s19, 4  ;;  %s402_s13 = sshll.u32 %s19795_s12, 4  ;;  %s379_s30 = int_to_ptr.vmem [resolvable:$true] %s378_s30  ;;  %s20049_s13 = int_to_ptr.vmem [resolvable:$true] %s402_s13 }
  0xa8   : > { %s19665_s28 = scalar_lea.hbm %s20542_s7, 1024 }
  0xa9   : > { %p19666_p2 = scmp.ne.s32.totalorder %s20542_s7, %s19665_s28  ;;  %p19672_p4 = scmp.lt.u32.totalorder %s19665_s28, %s20542_s7 }
  0xab   : > { %p19668_p3 = pnand %p19666_p2, %p19899_p7 }
  0xad   : > { %p19669_p1 = pneg %p19668_p3 }
  0xaf   : > { %p19674_p6 = pnand %p19672_p4, %p19669_p1 }
  0xb1   : > { %19677 = shalt.err (!%p19674_p6)
}
  0xb2   : > { %s19678_s22 = scalar_lea.vmem %s379_s30, 1024  ;;  %p19686_p11 = scmp.lt.s32.totalorder %s379_s30, %s379_s30 }
  0xb3   : > { %p19679_p8 = scmp.ne.s32.totalorder %s379_s30, %s19678_s22  ;;  %p19687_p12 = scmp.lt.s32.totalorder %s19678_s22, %s19678_s22 }
  0xb5   : > { %p19681_p9 = pnand %p19679_p8, %p19899_p7  ;;  %p19688_p13 = por %p19687_p12, %p19686_p11 }
  0xb7   : > { %p19682_p10 = pneg %p19681_p9 }
  0xb9   : > { %p19689_p0 = pnand %p19688_p13, %p19682_p10 }
  0xbb   : > { %19692 = shalt.err (!%p19689_p0)
}
  0xbc   : > { %17321 = dma.hbm_to_vmem [thread:$0]  (!%p19883_p5), %s20542_s7, 1024, %s379_s30, [#allocation11], %s19792_s25, %s19792_s25, %s19793_s18  }
  0xbd   : > { %s19693_s28 = scalar_lea.hbm %s20544_s9, 1024 }
  0xbe   : > { %p19694_p2 = scmp.ne.s32.totalorder %s20544_s9, %s19693_s28  ;;  %p19700_p4 = scmp.lt.u32.totalorder %s19693_s28, %s20544_s9 }
  0xc0   : > { %p19696_p3 = pnand %p19694_p2, %p19899_p7 }
  0xc2   : > { %p19697_p1 = pneg %p19696_p3 }
  0xc4   : > { %p19702_p6 = pnand %p19700_p4, %p19697_p1 }
  0xc6   : > { %19705 = shalt.err (!%p19702_p6)
}
  0xc7   : > { %s19706_s30 = scalar_lea.vmem %s20049_s13, 1024  ;;  %p19714_p11 = scmp.lt.s32.totalorder %s20049_s13, %s20049_s13 }
  0xc8   : > { %p19707_p8 = scmp.ne.s32.totalorder %s20049_s13, %s19706_s30  ;;  %p19715_p12 = scmp.lt.s32.totalorder %s19706_s30, %s19706_s30 }
  0xca   : > { %p19709_p9 = pnand %p19707_p8, %p19899_p7  ;;  %p19716_p13 = por %p19715_p12, %p19714_p11 }
  0xcc   : > { %p19710_p10 = pneg %p19709_p9 }
  0xce   : > { %p19717_p0 = pnand %p19716_p13, %p19710_p10 }
  0xd0   : > { %19720 = shalt.err (!%p19717_p0)
}
  0xd1   : > { %17327 = dma.hbm_to_vmem [thread:$0]  (!%p19883_p5), %s20544_s9, 1024, %s20049_s13, [#allocation14], %s19792_s25, %s19792_s25, %s19793_s18  }
  0xd2   : > { %s19796_s12 = smov [#allocation16]   ;;  %s19721_s24 = scalar_lea.hbm %s20545_s10, 16 }
  0xd3   : > { %s416_s14 = sshll.u32 %s19796_s12, 4  ;;  %p19722_p2 = scmp.ne.s32.totalorder %s20545_s10, %s19721_s24  ;;  %s417_s14 = int_to_ptr.vmem [resolvable:$true] %s416_s14 }
  0xd4   : > { %p19728_p4 = scmp.lt.u32.totalorder %s19721_s24, %s20545_s10 }
  0xd5   : > { %p19724_p3 = pnand %p19722_p2, %p19899_p7 }
  0xd7   : > { %p19725_p1 = pneg %p19724_p3 }
  0xd9   : > { %p19730_p6 = pnand %p19728_p4, %p19725_p1 }
  0xdb   : > { %19733 = shalt.err (!%p19730_p6)
}
  0xdc   : > { %s19734_s25 = scalar_lea.vmem %s417_s14, 16  ;;  %s19741_s18 = scalar_lea.vmem %s417_s14, 32 }
  0xdd   : > { %p19735_p8 = scmp.ne.s32.totalorder %s417_s14, %s19734_s25  ;;  %p19742_p11 = scmp.lt.s32.totalorder %s417_s14, %s417_s14 }
  0xde   : > { %p19743_p12 = scmp.lt.s32.totalorder %s19741_s18, %s19734_s25 }
  0xdf   : > { %p19737_p9 = pnand %p19735_p8, %p19899_p7 }
  0xe0   : > { %p19744_p13 = por %p19743_p12, %p19742_p11 }
  0xe1   : > { %p19738_p10 = pneg %p19737_p9 }
  0xe3   : > { %p19745_p0 = pnand %p19744_p13, %p19738_p10 }
  0xe5   : > { %19748 = shalt.err (!%p19745_p0)
}
  0xe6   : > { %17330 = dma.hbm_to_vmem [thread:$0]  (!%p19883_p5), %s20545_s10, 16, %s417_s14, [#allocation17]  }
  0xe7   : > { %p20552_p2 = scmp.ne.s32.totalorder %s20549_s21, 0 }
  0xe8   : > { %p20553_p3 = scmp.eq.s32.totalorder (!%p20552_p2), %s19866_s20, 0 }
  0xe9   : > { %437 = sbr.rel (%p20552_p2) target bundleno = 3086 (0xc0e), region = 64 }
  0xf0   : > { %19754 = dma.done.wait (%p20553_p3), [#allocation3], 175616   ;;  %p20554_p7 = pmov %p20553_p3 }
  0xf1   : > { %p20555_p1 = pmov %p20553_p3 }
  0xf2   : > { %19756 = vsyncadd (%p20554_p7), [#allocation3], 4294791680 }
  0xf3   : > { %19758 = dma.done.wait (%p20555_p1), [#allocation5], 57456   ;;  %p20556_p4 = pmov %p20555_p1 }
  0xf4   : > { %p20557_p6 = pmov %p20555_p1 }
  0xf5   : > { %19760 = vsyncadd (%p20556_p4), [#allocation5], 4294909840 }
  0xf6   : > { %19762 = dma.done.wait (%p20557_p6), [#allocation8], 2080   ;;  %p20558_p5 = pmov %p20555_p1 }
  0xf7   : > { %p20559_p8 = pmov %p20555_p1 }
  0xf8   : > { %19764 = vsyncadd (%p20558_p5), [#allocation8], 4294965216 }
  0xf9   : > { %19766 = dma.done.wait (%p20559_p8), [#allocation11], 1040   ;;  %p20560_p9 = pmov %p20555_p1 }
  0xfa   : > { %p20561_p10 = pmov %p20555_p1 }
  0xfb   : > { %19768 = vsyncadd (%p20560_p9), [#allocation11], 4294966256 }
  0xfc   : > { %19770 = dma.done.wait (%p20561_p10), [#allocation14], 1040   ;;  %p20562_p11 = pmov %p20555_p1 }
  0xfd   : > { %p20563_p12 = pmov %p20555_p1 }
  0xfe   : > { %19772 = vsyncadd (%p20562_p11), [#allocation14], 4294966256 }
  0xff   : > { %19774 = dma.done.wait (%p20563_p12), [#allocation17], 16   ;;  %p20564_p13 = pmov %p20555_p1 }
 0x100   : > { %p512_p0 = scmp.lt.s32.totalorder %s19866_s20, 1  ;;  %v19797_v0 = vmov 0   ;;  %v17378_v1 = vld [vmem:[#allocation2 + $0x4] ss:$112 sps:$4 sm:$0xff]   ;;  %v17382_v3 = vld [vmem:[#allocation2] ss:$112 sps:$4 sm:$0xff]  }
 0x101   : > { %19776 = vsyncadd (%p20564_p13), [#allocation17], 4294967280  ;;  %8927 = vmatprep.mubr.bf16.mxu1 %v19797_v0  ;;  %v17380_v2 = vld [vmem:[#allocation2 + $0x2a04] ss:$112 sps:$4 sm:$0xff]   ;;  %8772 = vmatprep.subr.bf16.mxu0 %v17378_v1  ;;  %v17383_v4 = vld [vmem:[#allocation2 + $0x2a00] ss:$112 sps:$4 sm:$0xff]  }
 0x102   : > { %s20566_s20 = smov (!%p512_p0, %s19866_s20), 1  ;;  %8895 = vmatprep.subr.bf16.mxu1 %v17380_v2  ;;  %v17384_v5 = vld [vmem:[#allocation2 + $0xe4] ss:$112 sps:$4 sm:$0xff]   ;;  %8773 = vmatpush1.bf16.msra.mxu0 %v17382_v3  ;;  %v17386_v6 = vld [vmem:[#allocation2 + $0x8] ss:$112 sps:$4 sm:$0xff]   ;;  %vm8768_vm0 = vcmask 130048  }
 0x103   : > { %s17259_s21 = smul.u32 56, %s20566_s20  ;;  %8896 = vmatpush1.bf16.msra.mxu1 %v17383_v4  ;;  %v17388_v7 = vld [vmem:[#allocation2 + $0xc] ss:$112 sps:$4 sm:$0xff]   ;;  %8774 = vmatprep.subr.bf16.mxu0 %v17384_v5  ;;  %v17389_v8 = vld [vmem:[#allocation2 + $0xe0] ss:$112 sps:$4 sm:$0xff]   ;;  %vm19799_vm1 = vmmov 0  }
 0x104   : > { %8936 = vmatprep.subr.bf16.mxu1 %v17388_v7  ;;  %v17390_v11 = vld [vmem:[#allocation2 + $0x1c4] ss:$112 sps:$4 sm:$0xff]   ;;  %v17392_v12 = vld [vmem:[#allocation2 + $0xe8] ss:$112 sps:$4 sm:$0xff]   ;;  %v17394_v13 = vld [vmem:[#allocation2 + $0xec] ss:$112 sps:$4 sm:$0xff]  }
 0x105   : > { %s20151_s19 = scalar_lea.vmem %s20535_s0, %s17259_s21  ;;  %v17395_v14 = vld [vmem:[#allocation2 + $0x1c0] ss:$112 sps:$4 sm:$0xff]   ;;  %v17396_v15 = vld [vmem:[#allocation2 + $0x2a4] ss:$112 sps:$4 sm:$0xff]   ;;  %v17400_v16 = vld [vmem:[#allocation2 + $0x1cc] ss:$112 sps:$4 sm:$0xff]  }
 0x106   : > { %v528_v9 = vld [vmem:[%s20151_s19 + $0x30] sm:$0xff]  ;;  %8775 = vmatpush1.bf16.msra.mxu0 %v17389_v8  ;;  %v17398_v18 = vld [vmem:[#allocation2 + $0x1c8] ss:$112 sps:$4 sm:$0xff]   ;;  %v17406_v20 = vld [vmem:[#allocation2 + $0x2ac] ss:$112 sps:$4 sm:$0xff]   ;;  %s15095_s12 = sshll.u32 %s20566_s20, 3 }
 0x107   : > { %v20154_v10 = vpack.c.bf16 %v528_v9, %v528_v9  ;;  %8776 = vmatprep.subr.bf16.mxu0 %v17390_v11  ;;  %v17401_v17 = vld [vmem:[#allocation2 + $0x2a0] ss:$112 sps:$4 sm:$0xff]   ;;  %v17402_v19 = vld [vmem:[#allocation2 + $0x384] ss:$112 sps:$4 sm:$0xff]   ;;  %v17404_v21 = vld [vmem:[#allocation2 + $0x2a8] ss:$112 sps:$4 sm:$0xff]   ;;  %s520_s28 = scalar_lea.vmem %s20546_s11, %s15095_s12 }
 0x108   : > { %v17407_v22 = vld [vmem:[#allocation2 + $0x380] ss:$112 sps:$4 sm:$0xff]   ;;  %v17408_v23 = vld [vmem:[#allocation2 + $0x464] ss:$112 sps:$4 sm:$0xff]   ;;  %v17412_v24 = vld [vmem:[#allocation2 + $0x38c] ss:$112 sps:$4 sm:$0xff]  }
 0x109   : > { %16468 = vmatmul.mubr.msk.bf16.vlgmr.msra.gmra.mrb[0].mxu1 %vm8768_vm0, %v20154_v10  ;;  %v17413_v25 = vld [vmem:[#allocation2 + $0x460] ss:$112 sps:$4 sm:$0xff]   ;;  %v17410_v26 = vld [vmem:[#allocation2 + $0x388] ss:$112 sps:$4 sm:$0xff]   ;;  %v17414_v27 = vld [vmem:[#allocation2 + $0x544] ss:$112 sps:$4 sm:$0xff]  }
 0x10a   : > { %8937 = vmatpush1.bf16.msra.mxu1 %v17386_v6  ;;  %8777 = vmatpush1.bf16.msra.mxu0 %v17395_v14  ;;  %v17418_v28 = vld [vmem:[#allocation2 + $0x46c] ss:$112 sps:$4 sm:$0xff]   ;;  %v17416_v29 = vld [vmem:[#allocation2 + $0x468] ss:$112 sps:$4 sm:$0xff]   ;;  %v17419_v30 = vld [vmem:[#allocation2 + $0x540] ss:$112 sps:$4 sm:$0xff]  }
 0x10b   : > { %8938 = vmatprep.subr.bf16.mxu1 %v17394_v13  ;;  %8778 = vmatprep.subr.bf16.mxu0 %v17396_v15  ;;  %v17420_v31 = vld [vmem:[#allocation2 + $0x624] ss:$112 sps:$4 sm:$0xff]   ;;  %v17424_v32 = vld [vmem:[#allocation2 + $0x54c] ss:$112 sps:$4 sm:$0xff]   ;;  %v17425_v33 = vld [vmem:[#allocation2 + $0x620] ss:$112 sps:$4 sm:$0xff]  }
 0x10c   : > { %v17422_v34 = vld [vmem:[#allocation2 + $0x548] ss:$112 sps:$4 sm:$0xff]   ;;  %v17426_v35 = vld [vmem:[#allocation2 + $0x704] ss:$112 sps:$4 sm:$0xff]   ;;  %v17430_v36 = vld [vmem:[#allocation2 + $0x62c] ss:$112 sps:$4 sm:$0xff]  }
 0x10d   : > { %v17428_v37 = vld [vmem:[#allocation2 + $0x628] ss:$112 sps:$4 sm:$0xff]   ;;  %v17431_v38 = vld [vmem:[#allocation2 + $0x700] ss:$112 sps:$4 sm:$0xff]   ;;  %v17432_v39 = vld [vmem:[#allocation2 + $0x7e4] ss:$112 sps:$4 sm:$0xff]  }
 0x10e   : > { %8939 = vmatpush1.bf16.msra.mxu1 %v17392_v12  ;;  %8779 = vmatpush1.bf16.msra.mxu0 %v17401_v17  ;;  %v17436_v40 = vld [vmem:[#allocation2 + $0x70c] ss:$112 sps:$4 sm:$0xff]   ;;  %v17437_v41 = vld [vmem:[#allocation2 + $0x7e0] ss:$112 sps:$4 sm:$0xff]   ;;  %v17434_v42 = vld [vmem:[#allocation2 + $0x708] ss:$112 sps:$4 sm:$0xff]  }
 0x10f   : > { %8940 = vmatprep.subr.bf16.mxu1 %v17400_v16  ;;  %8780 = vmatprep.subr.bf16.mxu0 %v17402_v19  ;;  %v17438_v43 = vld [vmem:[#allocation2 + $0x8c4] ss:$112 sps:$4 sm:$0xff]   ;;  %v17442_v44 = vld [vmem:[#allocation2 + $0x7ec] ss:$112 sps:$4 sm:$0xff]   ;;  %v17440_v45 = vld [vmem:[#allocation2 + $0x7e8] ss:$112 sps:$4 sm:$0xff]  }
 0x110   : > { %v17443_v46 = vld [vmem:[#allocation2 + $0x8c0] ss:$112 sps:$4 sm:$0xff]   ;;  %v17444_v47 = vld [vmem:[#allocation2 + $0x9a4] ss:$112 sps:$4 sm:$0xff]   ;;  %v17448_v48 = vld [vmem:[#allocation2 + $0x8cc] ss:$112 sps:$4 sm:$0xff]  }
 0x111   : > { %v523_v49 = vld [vmem:[%s20151_s19 + $0x8] sm:$0xff]  ;;  %v17449_v50 = vld [vmem:[#allocation2 + $0x9a0] ss:$112 sps:$4 sm:$0xff]   ;;  %v17450_v53 = vld [vmem:[#allocation2 + $0xa84] ss:$112 sps:$4 sm:$0xff]  }
 0x112   : > { %8941 = vmatpush1.bf16.msra.mxu1 %v17398_v18  ;;  %8781 = vmatpush1.bf16.msra.mxu0 %v17407_v22  ;;  %v20159_v51 = vpack.c.bf16 %v523_v49, %v523_v49  ;;  %v17446_v52 = vld [vmem:[#allocation2 + $0x8c8] ss:$112 sps:$4 sm:$0xff]   ;;  %v17454_v54 = vld [vmem:[#allocation2 + $0x9ac] ss:$112 sps:$4 sm:$0xff]   ;;  %v17455_v56 = vld [vmem:[#allocation2 + $0xa80] ss:$112 sps:$4 sm:$0xff]  }
 0x113   : > { %8942 = vmatprep.subr.bf16.mxu1 %v17406_v20  ;;  %8782 = vmatprep.subr.bf16.mxu0 %v17408_v23  ;;  %v17452_v55 = vld [vmem:[#allocation2 + $0x9a8] ss:$112 sps:$4 sm:$0xff]   ;;  %v17456_v57 = vld [vmem:[#allocation2 + $0xb64] ss:$112 sps:$4 sm:$0xff]   ;;  %v17460_v58 = vld [vmem:[#allocation2 + $0xa8c] ss:$112 sps:$4 sm:$0xff]  }
 0x114   : > { %8804 = vmatprep.mubr.bf16.mxu0 %v20159_v51  ;;  %8968 = vmatprep.mubr.bf16.mxu1 %v20159_v51  ;;  %v17458_v59 = vld [vmem:[#allocation2 + $0xa88] ss:$112 sps:$4 sm:$0xff]   ;;  %v17461_v60 = vld [vmem:[#allocation2 + $0xb60] ss:$112 sps:$4 sm:$0xff]   ;;  %v17462_v61 = vld [vmem:[#allocation2 + $0xc44] ss:$112 sps:$4 sm:$0xff]  }
 0x115   : > { %v17466_v62 = vld [vmem:[#allocation2 + $0xb6c] ss:$112 sps:$4 sm:$0xff]   ;;  %v17464_v63 = vld [vmem:[#allocation2 + $0xb68] ss:$112 sps:$4 sm:$0xff]   ;;  %v17467_v1 = vld [vmem:[#allocation2 + $0xc40] ss:$112 sps:$4 sm:$0xff]  }
 0x116   : > { %8943 = vmatpush1.bf16.msra.mxu1 %v17404_v21  ;;  %8783 = vmatpush1.bf16.msra.mxu0 %v17413_v25  ;;  %v17468_v2 = vld [vmem:[#allocation2 + $0xd24] ss:$112 sps:$4 sm:$0xff]   ;;  %v17472_v3 = vld [vmem:[#allocation2 + $0xc4c] ss:$112 sps:$4 sm:$0xff]   ;;  %v17470_v4 = vld [vmem:[#allocation2 + $0xc48] ss:$112 sps:$4 sm:$0xff]  }
 0x117   : > { %8944 = vmatprep.subr.bf16.mxu1 %v17412_v24  ;;  %8784 = vmatprep.subr.bf16.mxu0 %v17414_v27  ;;  %v17473_v5 = vld [vmem:[#allocation2 + $0xd20] ss:$112 sps:$4 sm:$0xff]   ;;  %v17476_v7 = vld [vmem:[#allocation2 + $0xe04] ss:$112 sps:$4 sm:$0xff]   ;;  %v17479_v8 = vld [vmem:[#allocation2 + $0xd2c] ss:$112 sps:$4 sm:$0xff]  }
 0x118   : > { %v522_v6 = vld [vmem:[%s20151_s19] sm:$0xff]  ;;  %v17477_v12 = vld [vmem:[#allocation2 + $0xd28] ss:$112 sps:$4 sm:$0xff]   ;;  %v17485_v14 = vld [vmem:[#allocation2 + $0xe0c] ss:$112 sps:$4 sm:$0xff]  }
 0x119   : > { %v20164_v9 = vpack.c.bf16 %v522_v6, %v522_v6  ;;  %v17474_v11 = vld [vmem:[#allocation2 + $0xe00] ss:$112 sps:$4 sm:$0xff]   ;;  %v17482_v13 = vld [vmem:[#allocation2 + $0xee4] ss:$112 sps:$4 sm:$0xff]   ;;  %v17483_v16 = vld [vmem:[#allocation2 + $0xe08] ss:$112 sps:$4 sm:$0xff]  }
 0x11a   : > { %8945 = vmatpush1.bf16.msra.mxu1 %v17410_v26  ;;  %8785 = vmatpush1.bf16.msra.mxu0 %v17419_v30  ;;  %v17480_v15 = vld [vmem:[#allocation2 + $0xee0] ss:$112 sps:$4 sm:$0xff]   ;;  %v17488_v17 = vld [vmem:[#allocation2 + $0xfc4] ss:$112 sps:$4 sm:$0xff]   ;;  %v17491_v18 = vld [vmem:[#allocation2 + $0xeec] ss:$112 sps:$4 sm:$0xff]  }
 0x11b   : > { %8946 = vmatprep.subr.bf16.mxu1 %v17418_v28  ;;  %8786 = vmatprep.subr.bf16.mxu0 %v17420_v31  ;;  %v17486_v19 = vld [vmem:[#allocation2 + $0xfc0] ss:$112 sps:$4 sm:$0xff]   ;;  %v17489_v20 = vld [vmem:[#allocation2 + $0xee8] ss:$112 sps:$4 sm:$0xff]   ;;  %v17494_v21 = vld [vmem:[#allocation2 + $0x10a4] ss:$112 sps:$4 sm:$0xff]  }
 0x11c   : > { %v17497_v22 = vld [vmem:[#allocation2 + $0xfcc] ss:$112 sps:$4 sm:$0xff]   ;;  %v17492_v23 = vld [vmem:[#allocation2 + $0x10a0] ss:$112 sps:$4 sm:$0xff]   ;;  %v17495_v24 = vld [vmem:[#allocation2 + $0xfc8] ss:$112 sps:$4 sm:$0xff]  }
 0x11d   : > { %v17500_v25 = vld [vmem:[#allocation2 + $0x1184] ss:$112 sps:$4 sm:$0xff]   ;;  %v17503_v26 = vld [vmem:[#allocation2 + $0x10ac] ss:$112 sps:$4 sm:$0xff]   ;;  %v17498_v27 = vld [vmem:[#allocation2 + $0x1180] ss:$112 sps:$4 sm:$0xff]  }
 0x11e   : > { %8947 = vmatpush1.bf16.msra.mxu1 %v17416_v29  ;;  %8787 = vmatpush1.bf16.msra.mxu0 %v17425_v33  ;;  %v17501_v28 = vld [vmem:[#allocation2 + $0x10a8] ss:$112 sps:$4 sm:$0xff]   ;;  %v17506_v29 = vld [vmem:[#allocation2 + $0x1264] ss:$112 sps:$4 sm:$0xff]   ;;  %v17509_v30 = vld [vmem:[#allocation2 + $0x118c] ss:$112 sps:$4 sm:$0xff]  }
 0x11f   : > { %8948 = vmatprep.subr.bf16.mxu1 %v17424_v32  ;;  %8788 = vmatprep.subr.bf16.mxu0 %v17426_v35  ;;  %v17504_v31 = vld [vmem:[#allocation2 + $0x1260] ss:$112 sps:$4 sm:$0xff]   ;;  %v17507_v32 = vld [vmem:[#allocation2 + $0x1188] ss:$112 sps:$4 sm:$0xff]   ;;  %v17512_v33 = vld [vmem:[#allocation2 + $0x1344] ss:$112 sps:$4 sm:$0xff]  }
 0x120   : > { %v525_v35 = vld [vmem:[%s20151_s19 + $0x18] sm:$0xff]  ;;  %v17528_v49 = vld [vmem:[#allocation2 + $0x15e0] ss:$112 sps:$4 sm:$0xff]  }
 0x121   : > { %v17563_v6 = vld [vmem:[#allocation2 + $0x196c] ss:$112 sps:$4 sm:$0xff]  }
 0x122   : > { %8949 = vmatpush1.bf16.msra.mxu1 %v17422_v34  ;;  %8789 = vmatpush1.bf16.msra.mxu0 %v17431_v38  ;;  %v17515_v34 = vld [vmem:[#allocation2 + $0x126c] ss:$112 sps:$4 sm:$0xff]   ;;  %v17513_v38 = vld [vmem:[#allocation2 + $0x1268] ss:$112 sps:$4 sm:$0xff]  }
 0x123   : > { %8950 = vmatprep.subr.bf16.mxu1 %v17430_v36  ;;  %8790 = vmatprep.subr.bf16.mxu0 %v17432_v39  ;;  %v20169_v36 = vpack.c.bf16 %v525_v35, %v525_v35  ;;  %v17518_v39 = vld [vmem:[#allocation2 + $0x1424] ss:$112 sps:$4 sm:$0xff]  }
 0x124   : > { %v17596_v35 = vld [vmem:[#allocation2 + $0x1f84] ss:$112 sps:$4 sm:$0xff]  }
 0x126   : > { %8951 = vmatpush1.bf16.msra.mxu1 %v17428_v37  ;;  %8791 = vmatpush1.bf16.msra.mxu0 %v17437_v41  ;;  %v17510_v37 = vld [vmem:[#allocation2 + $0x1340] ss:$112 sps:$4 sm:$0xff]  }
 0x127   : > { %8952 = vmatprep.subr.bf16.mxu1 %v17436_v40  ;;  %8792 = vmatprep.subr.bf16.mxu0 %v17438_v43  ;;  %v17521_v40 = vld [vmem:[#allocation2 + $0x134c] ss:$112 sps:$4 sm:$0xff]   ;;  %v17516_v41 = vld [vmem:[#allocation2 + $0x1420] ss:$112 sps:$4 sm:$0xff]   ;;  %v17524_v43 = vld [vmem:[#allocation2 + $0x1504] ss:$112 sps:$4 sm:$0xff]  }
 0x12a   : > { %8953 = vmatpush1.bf16.msra.mxu1 %v17434_v42  ;;  %8793 = vmatpush1.bf16.msra.mxu0 %v17443_v46  ;;  %v17519_v42 = vld [vmem:[#allocation2 + $0x1348] ss:$112 sps:$4 sm:$0xff]  }
 0x12b   : > { %8954 = vmatprep.subr.bf16.mxu1 %v17442_v44  ;;  %8794 = vmatprep.subr.bf16.mxu0 %v17444_v47  ;;  %v17527_v44 = vld [vmem:[#allocation2 + $0x142c] ss:$112 sps:$4 sm:$0xff]   ;;  %v17525_v46 = vld [vmem:[#allocation2 + $0x1428] ss:$112 sps:$4 sm:$0xff]   ;;  %v17530_v47 = vld [vmem:[#allocation2 + $0x15e4] ss:$112 sps:$4 sm:$0xff]  }
 0x12e   : > { %8955 = vmatpush1.bf16.msra.mxu1 %v17440_v45  ;;  %8795 = vmatpush1.bf16.msra.mxu0 %v17449_v50  ;;  %v17522_v45 = vld [vmem:[#allocation2 + $0x1500] ss:$112 sps:$4 sm:$0xff]   ;;  %v17531_v50 = vld [vmem:[#allocation2 + $0x1508] ss:$112 sps:$4 sm:$0xff]  }
 0x12f   : > { %8956 = vmatprep.subr.bf16.mxu1 %v17448_v48  ;;  %8796 = vmatprep.subr.bf16.mxu0 %v17450_v53  ;;  %v17533_v48 = vld [vmem:[#allocation2 + $0x150c] ss:$112 sps:$4 sm:$0xff]  }
 0x130   : > { %v17539_v53 = vld [vmem:[#allocation2 + $0x15ec] ss:$112 sps:$4 sm:$0xff]  }
 0x132   : > { %8957 = vmatpush1.bf16.msra.mxu1 %v17446_v52  ;;  %8797 = vmatpush1.bf16.msra.mxu0 %v17455_v56  ;;  %v17536_v52 = vld [vmem:[#allocation2 + $0x16c4] ss:$112 sps:$4 sm:$0xff]  }
 0x133   : > { %8958 = vmatprep.subr.bf16.mxu1 %v17454_v54  ;;  %8798 = vmatprep.subr.bf16.mxu0 %v17456_v57  ;;  %v17534_v54 = vld [vmem:[#allocation2 + $0x16c0] ss:$112 sps:$4 sm:$0xff]   ;;  %v17542_v56 = vld [vmem:[#allocation2 + $0x17a4] ss:$112 sps:$4 sm:$0xff]   ;;  %v17545_v57 = vld [vmem:[#allocation2 + $0x16cc] ss:$112 sps:$4 sm:$0xff]  }
 0x136   : > { %8959 = vmatpush1.bf16.msra.mxu1 %v17452_v55  ;;  %8799 = vmatpush1.bf16.msra.mxu0 %v17461_v60  ;;  %v17537_v55 = vld [vmem:[#allocation2 + $0x15e8] ss:$112 sps:$4 sm:$0xff]   ;;  %v17548_v60 = vld [vmem:[#allocation2 + $0x1884] ss:$112 sps:$4 sm:$0xff]  }
 0x137   : > { %8960 = vmatprep.subr.bf16.mxu1 %v17460_v58  ;;  %8800 = vmatprep.subr.bf16.mxu0 %v17462_v61  ;;  %v17540_v58 = vld [vmem:[#allocation2 + $0x17a0] ss:$112 sps:$4 sm:$0xff]   ;;  %v17551_v61 = vld [vmem:[#allocation2 + $0x17ac] ss:$112 sps:$4 sm:$0xff]  }
 0x13a   : > { %8961 = vmatpush1.bf16.msra.mxu1 %v17458_v59  ;;  %8801 = vmatpush1.bf16.msra.mxu0 %v17467_v1  ;;  %v17543_v59 = vld [vmem:[#allocation2 + $0x16c8] ss:$112 sps:$4 sm:$0xff]   ;;  %v17554_v1 = vld [vmem:[#allocation2 + $0x1964] ss:$112 sps:$4 sm:$0xff]  }
 0x13b   : > { %8962 = vmatprep.subr.bf16.mxu1 %v17466_v62  ;;  %8802 = vmatprep.subr.bf16.mxu0 %v17468_v2  ;;  %v17546_v62 = vld [vmem:[#allocation2 + $0x1880] ss:$112 sps:$4 sm:$0xff]   ;;  %v17557_v2 = vld [vmem:[#allocation2 + $0x188c] ss:$112 sps:$4 sm:$0xff]  }
 0x13e   : > { %8963 = vmatpush1.bf16.msra.mxu1 %v17464_v63  ;;  %8803 = vmatpush1.bf16.msra.mxu0 %v17473_v5  ;;  %v17549_v63 = vld [vmem:[#allocation2 + $0x17a8] ss:$112 sps:$4 sm:$0xff]   ;;  %v17560_v5 = vld [vmem:[#allocation2 + $0x1a44] ss:$112 sps:$4 sm:$0xff]  }
 0x13f   : > { %8964 = vmatprep.subr.bf16.mxu1 %v17472_v3  ;;  %8813 = vmatprep.subr.bf16.mxu0 %v17476_v7  ;;  %v17552_v3 = vld [vmem:[#allocation2 + $0x1960] ss:$112 sps:$4 sm:$0xff]  }
 0x140   : > { %v17558_v7 = vld [vmem:[#allocation2 + $0x1a40] ss:$112 sps:$4 sm:$0xff]  }
 0x141   : > { %8805 = vmatmul.mubr.bf16.vlgmr.msra.gmra.mrb[0].mxu0 %v20164_v9 }
 0x142   : > { %8965 = vmatpush1.bf16.msra.mxu1 %v17470_v4  ;;  %8814 = vmatpush1.bf16.msra.mxu0 %v17474_v11  ;;  %v17555_v4 = vld [vmem:[#allocation2 + $0x1888] ss:$112 sps:$4 sm:$0xff]   ;;  %v17566_v11 = vld [vmem:[#allocation2 + $0x1b24] ss:$112 sps:$4 sm:$0xff]  }
 0x143   : > { %8966 = vmatprep.subr.bf16.mxu1 %v17479_v8  ;;  %8815 = vmatprep.subr.bf16.mxu0 %v17482_v13  ;;  %v17561_v8 = vld [vmem:[#allocation2 + $0x1968] ss:$112 sps:$4 sm:$0xff]   ;;  %v17564_v13 = vld [vmem:[#allocation2 + $0x1b20] ss:$112 sps:$4 sm:$0xff]  }
 0x144   : > { %8845 = vmatprep.mubr.bf16.mxu0 %v20169_v36 }
 0x146   : > { %8967 = vmatpush1.bf16.msra.mxu1 %v17477_v12  ;;  %8816 = vmatpush1.bf16.msra.mxu0 %v17480_v15  ;;  %v17569_v12 = vld [vmem:[#allocation2 + $0x1a4c] ss:$112 sps:$4 sm:$0xff]   ;;  %v17567_v15 = vld [vmem:[#allocation2 + $0x1a48] ss:$112 sps:$4 sm:$0xff]  }
 0x147   : > { %8977 = vmatprep.subr.bf16.mxu1 %v17485_v14  ;;  %8817 = vmatprep.subr.bf16.mxu0 %v17488_v17  ;;  %v524_v14 = vld [vmem:[%s20151_s19 + $0x10] sm:$0xff]  ;;  %v17575_v17 = vld [vmem:[#allocation2 + $0x1b2c] ss:$112 sps:$4 sm:$0xff]  }
 0x149   : > { %8969 = vmatmul.mubr.bf16.vlgmr.msra.gmra.mrb[4].mxu1 %v20164_v9 }
 0x14a   : > { %8978 = vmatpush1.bf16.msra.mxu1 %v17483_v16  ;;  %8818 = vmatpush1.bf16.msra.mxu0 %v17486_v19  ;;  %v17572_v16 = vld [vmem:[#allocation2 + $0x1c04] ss:$112 sps:$4 sm:$0xff]   ;;  %v17570_v19 = vld [vmem:[#allocation2 + $0x1c00] ss:$112 sps:$4 sm:$0xff]  }
 0x14b   : > { %8979 = vmatprep.subr.bf16.mxu1 %v17491_v18  ;;  %8819 = vmatprep.subr.bf16.mxu0 %v17494_v21  ;;  %v20174_v18 = vpack.c.bf16 %v524_v14, %v524_v14  ;;  %v17578_v21 = vld [vmem:[#allocation2 + $0x1ce4] ss:$112 sps:$4 sm:$0xff]   ;;  %v17648_v14 = vld [vmem:[#allocation2 + $0x2760] ss:$112 sps:$4 sm:$0xff]  }
 0x14c   : > { %9009 = vmatprep.mubr.bf16.mxu1 %v20169_v36 }
 0x14e   : > { %8980 = vmatpush1.bf16.msra.mxu1 %v17489_v20  ;;  %8820 = vmatpush1.bf16.msra.mxu0 %v17492_v23  ;;  %v17573_v20 = vld [vmem:[#allocation2 + $0x1b28] ss:$112 sps:$4 sm:$0xff]   ;;  %v17581_v23 = vld [vmem:[#allocation2 + $0x1c0c] ss:$112 sps:$4 sm:$0xff]  }
 0x14f   : > { %8981 = vmatprep.subr.bf16.mxu1 %v17497_v22  ;;  %8821 = vmatprep.subr.bf16.mxu0 %v17500_v25  ;;  %v527_v22 = vld [vmem:[%s20151_s19 + $0x28] sm:$0xff]  ;;  %v17576_v25 = vld [vmem:[#allocation2 + $0x1ce0] ss:$112 sps:$4 sm:$0xff]  }
 0x152   : > { %8982 = vmatpush1.bf16.msra.mxu1 %v17495_v24  ;;  %8822 = vmatpush1.bf16.msra.mxu0 %v17498_v27  ;;  %v20177_v24 = vpack.c.bf16 %v527_v22, %v527_v22  ;;  %v17584_v27 = vld [vmem:[#allocation2 + $0x1dc4] ss:$112 sps:$4 sm:$0xff]   ;;  %v17665_v22 = vld [vmem:[#allocation2 + $0x284c] ss:$112 sps:$4 sm:$0xff]  }
 0x153   : > { %8983 = vmatprep.subr.bf16.mxu1 %v17503_v26  ;;  %8823 = vmatprep.subr.bf16.mxu0 %v17506_v29  ;;  %v17579_v26 = vld [vmem:[#allocation2 + $0x1c08] ss:$112 sps:$4 sm:$0xff]   ;;  %v17582_v29 = vld [vmem:[#allocation2 + $0x1dc0] ss:$112 sps:$4 sm:$0xff]  }
 0x156   : > { %8984 = vmatpush1.bf16.msra.mxu1 %v17501_v28  ;;  %8824 = vmatpush1.bf16.msra.mxu0 %v17504_v31  ;;  %v17587_v28 = vld [vmem:[#allocation2 + $0x1cec] ss:$112 sps:$4 sm:$0xff]   ;;  %v17590_v31 = vld [vmem:[#allocation2 + $0x1ea4] ss:$112 sps:$4 sm:$0xff]  }
 0x157   : > { %8985 = vmatprep.subr.bf16.mxu1 %v17509_v30  ;;  %8825 = vmatprep.subr.bf16.mxu0 %v17512_v33  ;;  %v17585_v30 = vld [vmem:[#allocation2 + $0x1ce8] ss:$112 sps:$4 sm:$0xff]   ;;  %v17588_v33 = vld [vmem:[#allocation2 + $0x1ea0] ss:$112 sps:$4 sm:$0xff]  }
 0x15a   : > { %8986 = vmatpush1.bf16.msra.mxu1 %v17507_v32  ;;  %8826 = vmatpush1.bf16.msra.mxu0 %v17510_v37  ;;  %v17593_v32 = vld [vmem:[#allocation2 + $0x1dcc] ss:$112 sps:$4 sm:$0xff]  }
 0x15b   : > { %8987 = vmatprep.subr.bf16.mxu1 %v17515_v34  ;;  %8827 = vmatprep.subr.bf16.mxu0 %v17518_v39  ;;  %v17591_v34 = vld [vmem:[#allocation2 + $0x1dc8] ss:$112 sps:$4 sm:$0xff]   ;;  %v17599_v37 = vld [vmem:[#allocation2 + $0x1eac] ss:$112 sps:$4 sm:$0xff]  }
 0x15c   : > { %v17597_v39 = vld [vmem:[#allocation2 + $0x1ea8] ss:$112 sps:$4 sm:$0xff]  }
 0x15e   : > { %8988 = vmatpush1.bf16.msra.mxu1 %v17513_v38  ;;  %8828 = vmatpush1.bf16.msra.mxu0 %v17516_v41  ;;  %v17594_v38 = vld [vmem:[#allocation2 + $0x1f80] ss:$112 sps:$4 sm:$0xff]   ;;  %v17605_v41 = vld [vmem:[#allocation2 + $0x1f8c] ss:$112 sps:$4 sm:$0xff]  }
 0x15f   : > { %8989 = vmatprep.subr.bf16.mxu1 %v17521_v40  ;;  %8829 = vmatprep.subr.bf16.mxu0 %v17524_v43  ;;  %v17602_v40 = vld [vmem:[#allocation2 + $0x2064] ss:$112 sps:$4 sm:$0xff]   ;;  %v17603_v43 = vld [vmem:[#allocation2 + $0x1f88] ss:$112 sps:$4 sm:$0xff]  }
 0x162   : > { %8990 = vmatpush1.bf16.msra.mxu1 %v17519_v42  ;;  %8830 = vmatpush1.bf16.msra.mxu0 %v17522_v45  ;;  %v17600_v42 = vld [vmem:[#allocation2 + $0x2060] ss:$112 sps:$4 sm:$0xff]   ;;  %v17611_v45 = vld [vmem:[#allocation2 + $0x206c] ss:$112 sps:$4 sm:$0xff]  }
 0x163   : > { %8991 = vmatprep.subr.bf16.mxu1 %v17527_v44  ;;  %8831 = vmatprep.subr.bf16.mxu0 %v17530_v47  ;;  %v17608_v44 = vld [vmem:[#allocation2 + $0x2144] ss:$112 sps:$4 sm:$0xff]   ;;  %v17609_v47 = vld [vmem:[#allocation2 + $0x2068] ss:$112 sps:$4 sm:$0xff]  }
 0x166   : > { %8992 = vmatpush1.bf16.msra.mxu1 %v17525_v46  ;;  %8832 = vmatpush1.bf16.msra.mxu0 %v17528_v49  ;;  %v17606_v46 = vld [vmem:[#allocation2 + $0x2140] ss:$112 sps:$4 sm:$0xff]   ;;  %v17617_v49 = vld [vmem:[#allocation2 + $0x214c] ss:$112 sps:$4 sm:$0xff]  }
 0x167   : > { %8993 = vmatprep.subr.bf16.mxu1 %v17533_v48  ;;  %8833 = vmatprep.subr.bf16.mxu0 %v17536_v52  ;;  %v17614_v48 = vld [vmem:[#allocation2 + $0x2224] ss:$112 sps:$4 sm:$0xff]   ;;  %v17615_v52 = vld [vmem:[#allocation2 + $0x2148] ss:$112 sps:$4 sm:$0xff]  }
 0x16a   : > { %8994 = vmatpush1.bf16.msra.mxu1 %v17531_v50  ;;  %8834 = vmatpush1.bf16.msra.mxu0 %v17534_v54  ;;  %v17612_v50 = vld [vmem:[#allocation2 + $0x2220] ss:$112 sps:$4 sm:$0xff]   ;;  %v17623_v54 = vld [vmem:[#allocation2 + $0x222c] ss:$112 sps:$4 sm:$0xff]  }
 0x16b   : > { %8995 = vmatprep.subr.bf16.mxu1 %v17539_v53  ;;  %8835 = vmatprep.subr.bf16.mxu0 %v17542_v56  ;;  %v17620_v53 = vld [vmem:[#allocation2 + $0x2304] ss:$112 sps:$4 sm:$0xff]   ;;  %v17621_v56 = vld [vmem:[#allocation2 + $0x2228] ss:$112 sps:$4 sm:$0xff]  }
 0x16e   : > { %8996 = vmatpush1.bf16.msra.mxu1 %v17537_v55  ;;  %8836 = vmatpush1.bf16.msra.mxu0 %v17540_v58  ;;  %v17618_v55 = vld [vmem:[#allocation2 + $0x2300] ss:$112 sps:$4 sm:$0xff]   ;;  %v17629_v58 = vld [vmem:[#allocation2 + $0x230c] ss:$112 sps:$4 sm:$0xff]  }
 0x16f   : > { %8997 = vmatprep.subr.bf16.mxu1 %v17545_v57  ;;  %8837 = vmatprep.subr.bf16.mxu0 %v17548_v60  ;;  %v17626_v57 = vld [vmem:[#allocation2 + $0x23e4] ss:$112 sps:$4 sm:$0xff]   ;;  %v17627_v60 = vld [vmem:[#allocation2 + $0x2308] ss:$112 sps:$4 sm:$0xff]  }
 0x172   : > { %8998 = vmatpush1.bf16.msra.mxu1 %v17543_v59  ;;  %8838 = vmatpush1.bf16.msra.mxu0 %v17546_v62  ;;  %v17624_v59 = vld [vmem:[#allocation2 + $0x23e0] ss:$112 sps:$4 sm:$0xff]   ;;  %v17635_v62 = vld [vmem:[#allocation2 + $0x23ec] ss:$112 sps:$4 sm:$0xff]  }
 0x173   : > { %8999 = vmatprep.subr.bf16.mxu1 %v17551_v61  ;;  %8839 = vmatprep.subr.bf16.mxu0 %v17554_v1  ;;  %v17632_v61 = vld [vmem:[#allocation2 + $0x24c4] ss:$112 sps:$4 sm:$0xff]   ;;  %v17633_v1 = vld [vmem:[#allocation2 + $0x23e8] ss:$112 sps:$4 sm:$0xff]  }
 0x176   : > { %9000 = vmatpush1.bf16.msra.mxu1 %v17549_v63  ;;  %8840 = vmatpush1.bf16.msra.mxu0 %v17552_v3  ;;  %v17630_v63 = vld [vmem:[#allocation2 + $0x24c0] ss:$112 sps:$4 sm:$0xff]   ;;  %v17641_v3 = vld [vmem:[#allocation2 + $0x24cc] ss:$112 sps:$4 sm:$0xff]  }
 0x177   : > { %9001 = vmatprep.subr.bf16.mxu1 %v17557_v2  ;;  %8841 = vmatprep.subr.bf16.mxu0 %v17560_v5  ;;  %v17638_v2 = vld [vmem:[#allocation2 + $0x25a4] ss:$112 sps:$4 sm:$0xff]   ;;  %v17639_v5 = vld [vmem:[#allocation2 + $0x24c8] ss:$112 sps:$4 sm:$0xff]  }
 0x17a   : > { %9002 = vmatpush1.bf16.msra.mxu1 %v17555_v4  ;;  %8842 = vmatpush1.bf16.msra.mxu0 %v17558_v7  ;;  %v17636_v4 = vld [vmem:[#allocation2 + $0x25a0] ss:$112 sps:$4 sm:$0xff]   ;;  %v17647_v7 = vld [vmem:[#allocation2 + $0x25ac] ss:$112 sps:$4 sm:$0xff]  }
 0x17b   : > { %9003 = vmatprep.subr.bf16.mxu1 %v17563_v6  ;;  %8843 = vmatprep.subr.bf16.mxu0 %v17566_v11  ;;  %v17644_v6 = vld [vmem:[#allocation2 + $0x2684] ss:$112 sps:$4 sm:$0xff]   ;;  %v17645_v11 = vld [vmem:[#allocation2 + $0x25a8] ss:$112 sps:$4 sm:$0xff]  }
 0x17e   : > { %9004 = vmatpush1.bf16.msra.mxu1 %v17561_v8  ;;  %8844 = vmatpush1.bf16.msra.mxu0 %v17564_v13  ;;  %v17642_v8 = vld [vmem:[#allocation2 + $0x2680] ss:$112 sps:$4 sm:$0xff]   ;;  %v17653_v13 = vld [vmem:[#allocation2 + $0x268c] ss:$112 sps:$4 sm:$0xff]  }
 0x17f   : > { %9005 = vmatprep.subr.bf16.mxu1 %v17569_v12  ;;  %8854 = vmatprep.subr.bf16.mxu0 %v17572_v16  ;;  %v17650_v12 = vld [vmem:[#allocation2 + $0x2764] ss:$112 sps:$4 sm:$0xff]  }
 0x180   : > { %v17656_v16 = vld [vmem:[#allocation2 + $0x2844] ss:$112 sps:$4 sm:$0xff]  }
 0x181   : > { %8846 = vmatmul.mubr.bf16.vlgmr.msra.gmra.mrb[0].mxu0 %v20174_v18 }
 0x182   : > { %9006 = vmatpush1.bf16.msra.mxu1 %v17567_v15  ;;  %8855 = vmatpush1.bf16.msra.mxu0 %v17570_v19  ;;  %v17651_v15 = vld [vmem:[#allocation2 + $0x2688] ss:$112 sps:$4 sm:$0xff]   ;;  %v17654_v19 = vld [vmem:[#allocation2 + $0x2840] ss:$112 sps:$4 sm:$0xff]  }
 0x183   : > { %9007 = vmatprep.subr.bf16.mxu1 %v17575_v17  ;;  %8886 = vmatprep.mubr.bf16.mxu0 %v20177_v24  ;;  %v17659_v17 = vld [vmem:[#allocation2 + $0x276c] ss:$112 sps:$4 sm:$0xff]  }
 0x184   : > { %8856 = vmatprep.subr.bf16.mxu0 %v17578_v21  ;;  %v17662_v21 = vld [vmem:[#allocation2 + $0x2924] ss:$112 sps:$4 sm:$0xff]  }
 0x186   : > { %9008 = vmatpush1.bf16.msra.mxu1 %v17573_v20  ;;  %8857 = vmatpush1.bf16.msra.mxu0 %v17576_v25  ;;  %v17657_v20 = vld [vmem:[#allocation2 + $0x2768] ss:$112 sps:$4 sm:$0xff]  }
 0x187   : > { %9018 = vmatprep.subr.bf16.mxu1 %v17581_v23  ;;  %8858 = vmatprep.subr.bf16.mxu0 %v17584_v27  ;;  %v17660_v23 = vld [vmem:[#allocation2 + $0x2920] ss:$112 sps:$4 sm:$0xff]   ;;  %v17663_v25 = vld [vmem:[#allocation2 + $0x2848] ss:$112 sps:$4 sm:$0xff]   ;;  %v17671_v27 = vld [vmem:[#allocation2 + $0x14] ss:$112 sps:$4 sm:$0xff]  }
 0x189   : > { %9010 = vmatmul.mubr.bf16.vlgmr.msra.gmra.mrb[4].mxu1 %v20174_v18 }
 0x18a   : > { %9019 = vmatpush1.bf16.msra.mxu1 %v17579_v26  ;;  %9050 = vmatprep.mubr.bf16.mxu1 %v20177_v24  ;;  %v526_v26 = vld [vmem:[%s20151_s19 + $0x20] sm:$0xff] }
 0x18b   : > { %9020 = vmatprep.subr.bf16.mxu1 %v17587_v28  ;;  %8859 = vmatpush1.bf16.msra.mxu0 %v17582_v29  ;;  %v17668_v28 = vld [vmem:[#allocation2 + $0x292c] ss:$112 sps:$4 sm:$0xff]   ;;  %v20184_v29 = vpack.c.bf16 %v526_v26, %v526_v26 }
 0x18c   : > { %8860 = vmatprep.subr.bf16.mxu0 %v17590_v31  ;;  %v17669_v31 = vld [vmem:[#allocation2 + $0x10] ss:$112 sps:$4 sm:$0xff]   ;;  %v17743_v26 = vld [vmem:[#allocation2 + $0x71c] ss:$112 sps:$4 sm:$0xff]  }
 0x18e   : > { %9021 = vmatpush1.bf16.msra.mxu1 %v17585_v30  ;;  %v17666_v30 = vld [vmem:[#allocation2 + $0x2928] ss:$112 sps:$4 sm:$0xff]  }
 0x18f   : > { %9022 = vmatprep.subr.bf16.mxu1 %v17593_v32  ;;  %8861 = vmatpush1.bf16.msra.mxu0 %v17588_v33  ;;  %v17674_v32 = vld [vmem:[#allocation2 + $0xf4] ss:$112 sps:$4 sm:$0xff]   ;;  %v17680_v33 = vld [vmem:[#allocation2 + $0x2a0c] ss:$112 sps:$4 sm:$0xff]  }
 0x190   : > { %8862 = vmatprep.subr.bf16.mxu0 %v17596_v35  ;;  %v17677_v35 = vld [vmem:[#allocation2 + $0x1d4] ss:$112 sps:$4 sm:$0xff]  }
 0x192   : > { %9023 = vmatpush1.bf16.msra.mxu1 %v17591_v34  ;;  %v17672_v34 = vld [vmem:[#allocation2 + $0xf0] ss:$112 sps:$4 sm:$0xff]  }
 0x193   : > { %9024 = vmatprep.subr.bf16.mxu1 %v17599_v37  ;;  %8863 = vmatpush1.bf16.msra.mxu0 %v17594_v38  ;;  %v17678_v37 = vld [vmem:[#allocation2 + $0x2a08] ss:$112 sps:$4 sm:$0xff]   ;;  %v17689_v38 = vld [vmem:[#allocation2 + $0x2a14] ss:$112 sps:$4 sm:$0xff]  }
 0x194   : > { %8864 = vmatprep.subr.bf16.mxu0 %v17602_v40  ;;  %v17683_v40 = vld [vmem:[#allocation2 + $0x2b4] ss:$112 sps:$4 sm:$0xff]  }
 0x196   : > { %9025 = vmatpush1.bf16.msra.mxu1 %v17597_v39  ;;  %v17675_v39 = vld [vmem:[#allocation2 + $0x1d0] ss:$112 sps:$4 sm:$0xff]  }
 0x197   : > { %9026 = vmatprep.subr.bf16.mxu1 %v17605_v41  ;;  %8865 = vmatpush1.bf16.msra.mxu0 %v17600_v42  ;;  %v17681_v41 = vld [vmem:[#allocation2 + $0x2b0] ss:$112 sps:$4 sm:$0xff]   ;;  %v17686_v42 = vld [vmem:[#allocation2 + $0x394] ss:$112 sps:$4 sm:$0xff]  }
 0x198   : > { %8866 = vmatprep.subr.bf16.mxu0 %v17608_v44  ;;  %v17687_v44 = vld [vmem:[#allocation2 + $0x2a10] ss:$112 sps:$4 sm:$0xff]  }
 0x19a   : > { %9027 = vmatpush1.bf16.msra.mxu1 %v17603_v43  ;;  %v17684_v43 = vld [vmem:[#allocation2 + $0x390] ss:$112 sps:$4 sm:$0xff]  }
 0x19b   : > { %9028 = vmatprep.subr.bf16.mxu1 %v17611_v45  ;;  %8867 = vmatpush1.bf16.msra.mxu0 %v17606_v46  ;;  %v17692_v45 = vld [vmem:[#allocation2 + $0x474] ss:$112 sps:$4 sm:$0xff]   ;;  %v17695_v46 = vld [vmem:[#allocation2 + $0x1c] ss:$112 sps:$4 sm:$0xff]  }
 0x19c   : > { %8868 = vmatprep.subr.bf16.mxu0 %v17614_v48  ;;  %v17698_v48 = vld [vmem:[#allocation2 + $0x554] ss:$112 sps:$4 sm:$0xff]  }
 0x19e   : > { %9029 = vmatpush1.bf16.msra.mxu1 %v17609_v47  ;;  %v17690_v47 = vld [vmem:[#allocation2 + $0x470] ss:$112 sps:$4 sm:$0xff]  }
 0x19f   : > { %9030 = vmatprep.subr.bf16.mxu1 %v17617_v49  ;;  %8869 = vmatpush1.bf16.msra.mxu0 %v17612_v50  ;;  %v17693_v49 = vld [vmem:[#allocation2 + $0x18] ss:$112 sps:$4 sm:$0xff]   ;;  %v17696_v50 = vld [vmem:[#allocation2 + $0x550] ss:$112 sps:$4 sm:$0xff]  }
 0x1a0   : > { %8870 = vmatprep.subr.bf16.mxu0 %v17620_v53  ;;  %v17701_v53 = vld [vmem:[#allocation2 + $0xfc] ss:$112 sps:$4 sm:$0xff]  }
 0x1a2   : > { %9031 = vmatpush1.bf16.msra.mxu1 %v17615_v52  ;;  %v17704_v52 = vld [vmem:[#allocation2 + $0x634] ss:$112 sps:$4 sm:$0xff]  }
 0x1a3   : > { %9032 = vmatprep.subr.bf16.mxu1 %v17623_v54  ;;  %8871 = vmatpush1.bf16.msra.mxu0 %v17618_v55  ;;  %v17699_v55 = vld [vmem:[#allocation2 + $0xf8] ss:$112 sps:$4 sm:$0xff]  }
 0x1a4   : > { %8872 = vmatprep.subr.bf16.mxu0 %v17626_v57 }
 0x1a6   : > { %9033 = vmatpush1.bf16.msra.mxu1 %v17621_v56  ;;  %v17702_v56 = vld [vmem:[#allocation2 + $0x630] ss:$112 sps:$4 sm:$0xff]  }
 0x1a7   : > { %9034 = vmatprep.subr.bf16.mxu1 %v17629_v58  ;;  %8873 = vmatpush1.bf16.msra.mxu0 %v17624_v59  ;;  %v17710_v58 = vld [vmem:[#allocation2 + $0x714] ss:$112 sps:$4 sm:$0xff]  }
 0x1a8   : > { %8874 = vmatprep.subr.bf16.mxu0 %v17632_v61 }
 0x1aa   : > { %9035 = vmatpush1.bf16.msra.mxu1 %v17627_v60  ;;  %v17707_v60 = vld [vmem:[#allocation2 + $0x1dc] ss:$112 sps:$4 sm:$0xff]  }
 0x1ab   : > { %9036 = vmatprep.subr.bf16.mxu1 %v17635_v62  ;;  %8875 = vmatpush1.bf16.msra.mxu0 %v17630_v63  ;;  %v17705_v62 = vld [vmem:[#allocation2 + $0x1d8] ss:$112 sps:$4 sm:$0xff]   ;;  %v17708_v63 = vld [vmem:[#allocation2 + $0x710] ss:$112 sps:$4 sm:$0xff]  }
 0x1ac   : > { %8876 = vmatprep.subr.bf16.mxu0 %v17638_v2  ;;  %v17713_v2 = vld [vmem:[#allocation2 + $0x2bc] ss:$112 sps:$4 sm:$0xff]  }
 0x1ae   : > { %9037 = vmatpush1.bf16.msra.mxu1 %v17633_v1  ;;  %v17716_v1 = vld [vmem:[#allocation2 + $0x7f4] ss:$112 sps:$4 sm:$0xff]  }
 0x1af   : > { %9038 = vmatprep.subr.bf16.mxu1 %v17641_v3  ;;  %8877 = vmatpush1.bf16.msra.mxu0 %v17636_v4  ;;  %v17711_v3 = vld [vmem:[#allocation2 + $0x2b8] ss:$112 sps:$4 sm:$0xff]   ;;  %v17714_v4 = vld [vmem:[#allocation2 + $0x7f0] ss:$112 sps:$4 sm:$0xff]  }
 0x1b0   : > { %8878 = vmatprep.subr.bf16.mxu0 %v17644_v6  ;;  %v17719_v6 = vld [vmem:[#allocation2 + $0x39c] ss:$112 sps:$4 sm:$0xff]  }
 0x1b2   : > { %9039 = vmatpush1.bf16.msra.mxu1 %v17639_v5  ;;  %v17722_v5 = vld [vmem:[#allocation2 + $0x8d4] ss:$112 sps:$4 sm:$0xff]  }
 0x1b3   : > { %9040 = vmatprep.subr.bf16.mxu1 %v17647_v7  ;;  %8879 = vmatpush1.bf16.msra.mxu0 %v17642_v8  ;;  %v17717_v7 = vld [vmem:[#allocation2 + $0x398] ss:$112 sps:$4 sm:$0xff]   ;;  %v17720_v8 = vld [vmem:[#allocation2 + $0x8d0] ss:$112 sps:$4 sm:$0xff]  }
 0x1b4   : > { %8880 = vmatprep.subr.bf16.mxu0 %v17650_v12  ;;  %v17725_v12 = vld [vmem:[#allocation2 + $0x47c] ss:$112 sps:$4 sm:$0xff]  }
 0x1b6   : > { %9041 = vmatpush1.bf16.msra.mxu1 %v17645_v11  ;;  %v17728_v11 = vld [vmem:[#allocation2 + $0x9b4] ss:$112 sps:$4 sm:$0xff]  }
 0x1b7   : > { %9042 = vmatprep.subr.bf16.mxu1 %v17653_v13  ;;  %8881 = vmatpush1.bf16.msra.mxu0 %v17648_v14  ;;  %v17723_v13 = vld [vmem:[#allocation2 + $0x478] ss:$112 sps:$4 sm:$0xff]   ;;  %v17726_v14 = vld [vmem:[#allocation2 + $0x9b0] ss:$112 sps:$4 sm:$0xff]  }
 0x1b8   : > { %8882 = vmatprep.subr.bf16.mxu0 %v17656_v16  ;;  %v17731_v16 = vld [vmem:[#allocation2 + $0x55c] ss:$112 sps:$4 sm:$0xff]  }
 0x1ba   : > { %9043 = vmatpush1.bf16.msra.mxu1 %v17651_v15  ;;  %v17734_v15 = vld [vmem:[#allocation2 + $0xa94] ss:$112 sps:$4 sm:$0xff]  }
 0x1bb   : > { %9044 = vmatprep.subr.bf16.mxu1 %v17659_v17  ;;  %8883 = vmatpush1.bf16.msra.mxu0 %v17654_v19  ;;  %v17729_v17 = vld [vmem:[#allocation2 + $0x558] ss:$112 sps:$4 sm:$0xff]   ;;  %v17732_v19 = vld [vmem:[#allocation2 + $0xa90] ss:$112 sps:$4 sm:$0xff]  }
 0x1bc   : > { %8884 = vmatprep.subr.bf16.mxu0 %v17662_v21  ;;  %v17737_v21 = vld [vmem:[#allocation2 + $0x63c] ss:$112 sps:$4 sm:$0xff]  }
 0x1be   : > { %9045 = vmatpush1.bf16.msra.mxu1 %v17657_v20  ;;  %v17740_v20 = vld [vmem:[#allocation2 + $0xb74] ss:$112 sps:$4 sm:$0xff]  }
 0x1bf   : > { %9046 = vmatprep.subr.bf16.mxu1 %v17665_v22  ;;  %8885 = vmatpush1.bf16.msra.mxu0 %v17660_v23  ;;  %v17735_v22 = vld [vmem:[#allocation2 + $0x638] ss:$112 sps:$4 sm:$0xff]   ;;  %v17738_v23 = vld [vmem:[#allocation2 + $0xb70] ss:$112 sps:$4 sm:$0xff]  }
 0x1c0   : > { %9100 = vmatprep.subr.bf16.mxu0 %v17671_v27  ;;  %v17741_v27 = vld [vmem:[#allocation2 + $0x718] ss:$112 sps:$4 sm:$0xff]  }
 0x1c2   : > { %9047 = vmatpush1.bf16.msra.mxu1 %v17663_v25  ;;  %8887 = vmatmul.mubr.bf16.vlgmr.msra.gmra.mrb[0].mxu0 %v20184_v29  ;;  %v17746_v25 = vld [vmem:[#allocation2 + $0xc54] ss:$112 sps:$4 sm:$0xff]  }
 0x1c3   : > { %9048 = vmatprep.subr.bf16.mxu1 %v17668_v28  ;;  %9101 = vmatpush1.bf16.msra.mxu0 %v17669_v31  ;;  %v17744_v28 = vld [vmem:[#allocation2 + $0xc50] ss:$112 sps:$4 sm:$0xff]   ;;  %v17749_v31 = vld [vmem:[#allocation2 + $0x7fc] ss:$112 sps:$4 sm:$0xff]  }
 0x1c4   : > { %9132 = vmatprep.mubr.bf16.mxu0 %v20159_v51  ;;  %9102 = vmatprep.subr.bf16.mxu0 %v17674_v32  ;;  %v17750_v32 = vld [vmem:[#allocation2 + $0xd30] ss:$112 sps:$4 sm:$0xff]  }
 0x1c6   : > { %9049 = vmatpush1.bf16.msra.mxu1 %v17666_v30  ;;  %v17752_v30 = vld [vmem:[#allocation2 + $0xd34] ss:$112 sps:$4 sm:$0xff]  }
 0x1c7   : > { %9059 = vmatprep.subr.bf16.mxu1 %v17680_v33  ;;  %9103 = vmatpush1.bf16.msra.mxu0 %v17672_v34  ;;  %v17747_v33 = vld [vmem:[#allocation2 + $0x7f8] ss:$112 sps:$4 sm:$0xff]   ;;  %v17758_v34 = vld [vmem:[#allocation2 + $0xe14] ss:$112 sps:$4 sm:$0xff]  }
 0x1c8   : > { %9104 = vmatprep.subr.bf16.mxu0 %v17677_v35  ;;  %v17755_v35 = vld [vmem:[#allocation2 + $0x8dc] ss:$112 sps:$4 sm:$0xff]  }
 0x1c9   : > { %9051 = vmatmul.mubr.bf16.vlgmr.msra.gmra.mrb[4].mxu1 %v20184_v29 }
 0x1ca   : > { %9060 = vmatpush1.bf16.msra.mxu1 %v17678_v37  ;;  %9091 = vmatprep.mubr.bf16.mxu1 %v19797_v0  ;;  %v17756_v37 = vld [vmem:[#allocation2 + $0xe10] ss:$112 sps:$4 sm:$0xff]  }
 0x1cb   : > { %9223 = vmatprep.subr.bf16.mxu1 %v17689_v38  ;;  %9105 = vmatpush1.bf16.msra.mxu0 %v17675_v39  ;;  %v17753_v38 = vld [vmem:[#allocation2 + $0x8d8] ss:$112 sps:$4 sm:$0xff]   ;;  %v17761_v39 = vld [vmem:[#allocation2 + $0x9bc] ss:$112 sps:$4 sm:$0xff]  }
 0x1cc   : > { %9106 = vmatprep.subr.bf16.mxu0 %v17683_v40  ;;  %v17764_v40 = vld [vmem:[#allocation2 + $0xef4] ss:$112 sps:$4 sm:$0xff]  }
 0x1cf   : > { %9107 = vmatpush1.bf16.msra.mxu0 %v17681_v41  ;;  %v17759_v41 = vld [vmem:[#allocation2 + $0x9b8] ss:$112 sps:$4 sm:$0xff]  }
 0x1d0   : > { %9108 = vmatprep.subr.bf16.mxu0 %v17686_v42  ;;  %v17762_v42 = vld [vmem:[#allocation2 + $0xef0] ss:$112 sps:$4 sm:$0xff]  }
 0x1d3   : > { %9109 = vmatpush1.bf16.msra.mxu0 %v17684_v43  ;;  %v17767_v43 = vld [vmem:[#allocation2 + $0xa9c] ss:$112 sps:$4 sm:$0xff]  }
 0x1d4   : > { %9110 = vmatprep.subr.bf16.mxu0 %v17692_v45  ;;  %v17765_v45 = vld [vmem:[#allocation2 + $0xa98] ss:$112 sps:$4 sm:$0xff]  }
 0x1d5   : > { %16469 = vmatmul.mubr.msk.bf16.vlgmr.msra.gmra.mrb[4].mxu1 %vm8768_vm0, %v20154_v10 }
 0x1d6   : > { %9224 = vmatpush1.bf16.msra.mxu1 %v17687_v44  ;;  %9255 = vmatprep.mubr.bf16.mxu1 %v19797_v0  ;;  %v17770_v44 = vld [vmem:[#allocation2 + $0xfd4] ss:$112 sps:$4 sm:$0xff]  }
 0x1d7   : > { %9264 = vmatprep.subr.bf16.mxu1 %v17695_v46  ;;  %9111 = vmatpush1.bf16.msra.mxu0 %v17690_v47  ;;  %v17768_v46 = vld [vmem:[#allocation2 + $0xfd0] ss:$112 sps:$4 sm:$0xff]   ;;  %v17773_v47 = vld [vmem:[#allocation2 + $0xb7c] ss:$112 sps:$4 sm:$0xff]  }
 0x1d8   : > { %9112 = vmatprep.subr.bf16.mxu0 %v17698_v48  ;;  %v17776_v48 = vld [vmem:[#allocation2 + $0x10b4] ss:$112 sps:$4 sm:$0xff]  }
 0x1db   : > { %9113 = vmatpush1.bf16.msra.mxu0 %v17696_v50  ;;  %v17774_v50 = vld [vmem:[#allocation2 + $0x10b0] ss:$112 sps:$4 sm:$0xff]  }
 0x1dc   : > { %v20193_v54 = vpop.f32.mrb[0].mxu1  ;;  %9114 = vmatprep.subr.bf16.mxu0 %v17704_v52  ;;  %v17779_v52 = vld [vmem:[#allocation2 + $0xc5c] ss:$112 sps:$4 sm:$0xff]  }
 0x1dd   : > { %16470 = vmatmul.mubr.msk.bf16.vlgmr.msra.gmra.mrb[8].mxu1 %vm8768_vm0, %v20154_v10  ;;  %v20197_v57 = vpop.f32.mrb[1].mxu1 }
 0x1de   : > { %9265 = vmatpush1.bf16.msra.mxu1 %v17693_v49  ;;  %v8933_v59 = vpop.f32.mrb[2].mxu1  ;;  %9296 = vmatprep.mubr.bf16.mxu1 %v20159_v51  ;;  %v17771_v49 = vld [vmem:[#allocation2 + $0xb78] ss:$112 sps:$4 sm:$0xff]  }
 0x1df   : > { %9266 = vmatprep.subr.bf16.mxu1 %v17701_v53  ;;  %v8934_v61 = vpop.f32.mrb[3].mxu1  ;;  %9115 = vmatpush1.bf16.msra.mxu0 %v17702_v56  ;;  %v17782_v53 = vld [vmem:[#allocation2 + $0x1194] ss:$112 sps:$4 sm:$0xff]   ;;  %v17780_v56 = vld [vmem:[#allocation2 + $0x1190] ss:$112 sps:$4 sm:$0xff]  }
 0x1e0   : > { %9116 = vmatprep.subr.bf16.mxu0 %v17710_v58  ;;  %v17785_v58 = vld [vmem:[#allocation2 + $0xd3c] ss:$112 sps:$4 sm:$0xff]   ;;  %v17788_v59 = vld [vmem:[#allocation2 + $0x1274] ss:$112 sps:$4 sm:$0xff]   ;;  %v17786_v61 = vld [vmem:[#allocation2 + $0x1270] ss:$112 sps:$4 sm:$0xff]  }
 0x1e2   : > { %9267 = vmatpush1.bf16.msra.mxu1 %v17699_v55  ;;  %v17777_v55 = vld [vmem:[#allocation2 + $0xc58] ss:$112 sps:$4 sm:$0xff]  }
 0x1e3   : > { %9268 = vmatprep.subr.bf16.mxu1 %v17707_v60  ;;  %9117 = vmatpush1.bf16.msra.mxu0 %v17708_v63  ;;  %v17783_v60 = vld [vmem:[#allocation2 + $0xd38] ss:$112 sps:$4 sm:$0xff]   ;;  %v17791_v63 = vld [vmem:[#allocation2 + $0xe1c] ss:$112 sps:$4 sm:$0xff]  }
 0x1e4   : > { %9118 = vmatprep.subr.bf16.mxu0 %v17716_v1  ;;  %v17789_v1 = vld [vmem:[#allocation2 + $0xe18] ss:$112 sps:$4 sm:$0xff]  }
 0x1e6   : > { %9269 = vmatpush1.bf16.msra.mxu1 %v17705_v62  ;;  %v17794_v62 = vld [vmem:[#allocation2 + $0x1354] ss:$112 sps:$4 sm:$0xff]  }
 0x1e7   : > { %9270 = vmatprep.subr.bf16.mxu1 %v17713_v2  ;;  %9119 = vmatpush1.bf16.msra.mxu0 %v17714_v4  ;;  %v17792_v2 = vld [vmem:[#allocation2 + $0x1350] ss:$112 sps:$4 sm:$0xff]   ;;  %v17800_v4 = vld [vmem:[#allocation2 + $0x1434] ss:$112 sps:$4 sm:$0xff]  }
 0x1e8   : > { %9120 = vmatprep.subr.bf16.mxu0 %v17722_v5  ;;  %v17795_v5 = vld [vmem:[#allocation2 + $0xef8] ss:$112 sps:$4 sm:$0xff]  }
 0x1ea   : > { %9271 = vmatpush1.bf16.msra.mxu1 %v17711_v3  ;;  %v17797_v3 = vld [vmem:[#allocation2 + $0xefc] ss:$112 sps:$4 sm:$0xff]  }
 0x1eb   : > { %9272 = vmatprep.subr.bf16.mxu1 %v17719_v6  ;;  %9121 = vmatpush1.bf16.msra.mxu0 %v17720_v8  ;;  %v17798_v6 = vld [vmem:[#allocation2 + $0x1430] ss:$112 sps:$4 sm:$0xff]   ;;  %v17806_v8 = vld [vmem:[#allocation2 + $0x1514] ss:$112 sps:$4 sm:$0xff]  }
 0x1ec   : > { %9122 = vmatprep.subr.bf16.mxu0 %v17728_v11  ;;  %v17801_v11 = vld [vmem:[#allocation2 + $0xfd8] ss:$112 sps:$4 sm:$0xff]  }
 0x1ee   : > { %9273 = vmatpush1.bf16.msra.mxu1 %v17717_v7  ;;  %v17803_v7 = vld [vmem:[#allocation2 + $0xfdc] ss:$112 sps:$4 sm:$0xff]  }
 0x1ef   : > { %9274 = vmatprep.subr.bf16.mxu1 %v17725_v12  ;;  %9123 = vmatpush1.bf16.msra.mxu0 %v17726_v14  ;;  %v17804_v12 = vld [vmem:[#allocation2 + $0x1510] ss:$112 sps:$4 sm:$0xff]   ;;  %v17812_v14 = vld [vmem:[#allocation2 + $0x15f4] ss:$112 sps:$4 sm:$0xff]  }
 0x1f0   : > { %9124 = vmatprep.subr.bf16.mxu0 %v17734_v15  ;;  %v17810_v15 = vld [vmem:[#allocation2 + $0x15f0] ss:$112 sps:$4 sm:$0xff]  }
 0x1f2   : > { %9275 = vmatpush1.bf16.msra.mxu1 %v17723_v13  ;;  %v17809_v13 = vld [vmem:[#allocation2 + $0x10bc] ss:$112 sps:$4 sm:$0xff]  }
 0x1f3   : > { %9276 = vmatprep.subr.bf16.mxu1 %v17731_v16  ;;  %9125 = vmatpush1.bf16.msra.mxu0 %v17732_v19  ;;  %v17807_v16 = vld [vmem:[#allocation2 + $0x10b8] ss:$112 sps:$4 sm:$0xff]   ;;  %v17818_v19 = vld [vmem:[#allocation2 + $0x16d4] ss:$112 sps:$4 sm:$0xff]  }
 0x1f4   : > { %9126 = vmatprep.subr.bf16.mxu0 %v17740_v20  ;;  %v17813_v20 = vld [vmem:[#allocation2 + $0x1198] ss:$112 sps:$4 sm:$0xff]  }
 0x1f6   : > { %9277 = vmatpush1.bf16.msra.mxu1 %v17729_v17  ;;  %v17815_v17 = vld [vmem:[#allocation2 + $0x119c] ss:$112 sps:$4 sm:$0xff]  }
 0x1f7   : > { %9278 = vmatprep.subr.bf16.mxu1 %v17737_v21  ;;  %9127 = vmatpush1.bf16.msra.mxu0 %v17738_v23  ;;  %v17816_v21 = vld [vmem:[#allocation2 + $0x16d0] ss:$112 sps:$4 sm:$0xff]   ;;  %v17821_v23 = vld [vmem:[#allocation2 + $0x127c] ss:$112 sps:$4 sm:$0xff]  }
 0x1f8   : > { %9128 = vmatprep.subr.bf16.mxu0 %v17746_v25  ;;  %v17822_v25 = vld [vmem:[#allocation2 + $0x17b0] ss:$112 sps:$4 sm:$0xff]  }
 0x1fa   : > { %9279 = vmatpush1.bf16.msra.mxu1 %v17735_v22  ;;  %v17824_v22 = vld [vmem:[#allocation2 + $0x17b4] ss:$112 sps:$4 sm:$0xff]  }
 0x1fb   : > { %9280 = vmatprep.subr.bf16.mxu1 %v17743_v26  ;;  %9129 = vmatpush1.bf16.msra.mxu0 %v17744_v28  ;;  %v17819_v26 = vld [vmem:[#allocation2 + $0x1278] ss:$112 sps:$4 sm:$0xff]   ;;  %v17830_v28 = vld [vmem:[#allocation2 + $0x1894] ss:$112 sps:$4 sm:$0xff]  }
 0x1fc   : > { %9130 = vmatprep.subr.bf16.mxu0 %v17752_v30  ;;  %v17828_v30 = vld [vmem:[#allocation2 + $0x1890] ss:$112 sps:$4 sm:$0xff]  }
 0x1fe   : > { %9281 = vmatpush1.bf16.msra.mxu1 %v17741_v27  ;;  %v17827_v27 = vld [vmem:[#allocation2 + $0x135c] ss:$112 sps:$4 sm:$0xff]  }
 0x1ff   : > { %9282 = vmatprep.subr.bf16.mxu1 %v17749_v31  ;;  %9131 = vmatpush1.bf16.msra.mxu0 %v17750_v32  ;;  %v17825_v31 = vld [vmem:[#allocation2 + $0x1358] ss:$112 sps:$4 sm:$0xff]   ;;  %v17833_v32 = vld [vmem:[#allocation2 + $0x143c] ss:$112 sps:$4 sm:$0xff]  }
 0x200   : > { %9141 = vmatprep.subr.bf16.mxu0 %v17758_v34  ;;  %v17834_v34 = vld [vmem:[#allocation2 + $0x1970] ss:$112 sps:$4 sm:$0xff]  }
 0x202   : > { %9283 = vmatpush1.bf16.msra.mxu1 %v17747_v33  ;;  %9133 = vmatmul.mubr.bf16.vlgmr.msra.gmra.mrb[4].mxu0 %v20164_v9  ;;  %v17836_v33 = vld [vmem:[#allocation2 + $0x1974] ss:$112 sps:$4 sm:$0xff]  }
 0x203   : > { %9284 = vmatprep.subr.bf16.mxu1 %v17755_v35  ;;  %9142 = vmatpush1.bf16.msra.mxu0 %v17756_v37  ;;  %v17831_v35 = vld [vmem:[#allocation2 + $0x1438] ss:$112 sps:$4 sm:$0xff]   ;;  %v17839_v37 = vld [vmem:[#allocation2 + $0x151c] ss:$112 sps:$4 sm:$0xff]  }
 0x204   : > { %9173 = vmatprep.mubr.bf16.mxu0 %v20169_v36  ;;  %9143 = vmatprep.subr.bf16.mxu0 %v17764_v40  ;;  %v17837_v40 = vld [vmem:[#allocation2 + $0x1518] ss:$112 sps:$4 sm:$0xff]  }
 0x206   : > { %9285 = vmatpush1.bf16.msra.mxu1 %v17753_v38  ;;  %v17842_v38 = vld [vmem:[#allocation2 + $0x1a54] ss:$112 sps:$4 sm:$0xff]  }
 0x207   : > { %9286 = vmatprep.subr.bf16.mxu1 %v17761_v39  ;;  %9144 = vmatpush1.bf16.msra.mxu0 %v17762_v42  ;;  %v17840_v39 = vld [vmem:[#allocation2 + $0x1a50] ss:$112 sps:$4 sm:$0xff]   ;;  %v17848_v42 = vld [vmem:[#allocation2 + $0x1b34] ss:$112 sps:$4 sm:$0xff]  }
 0x208   : > { %9145 = vmatprep.subr.bf16.mxu0 %v17770_v44  ;;  %v17843_v44 = vld [vmem:[#allocation2 + $0x15f8] ss:$112 sps:$4 sm:$0xff]  }
 0x20a   : > { %9287 = vmatpush1.bf16.msra.mxu1 %v17759_v41  ;;  %v17845_v41 = vld [vmem:[#allocation2 + $0x15fc] ss:$112 sps:$4 sm:$0xff]  }
 0x20b   : > { %9288 = vmatprep.subr.bf16.mxu1 %v17767_v43  ;;  %9146 = vmatpush1.bf16.msra.mxu0 %v17768_v46  ;;  %v17846_v43 = vld [vmem:[#allocation2 + $0x1b30] ss:$112 sps:$4 sm:$0xff]   ;;  %v17854_v46 = vld [vmem:[#allocation2 + $0x1c14] ss:$112 sps:$4 sm:$0xff]  }
 0x20c   : > { %9147 = vmatprep.subr.bf16.mxu0 %v17776_v48  ;;  %v17849_v48 = vld [vmem:[#allocation2 + $0x16d8] ss:$112 sps:$4 sm:$0xff]  }
 0x20e   : > { %9289 = vmatpush1.bf16.msra.mxu1 %v17765_v45  ;;  %v17851_v45 = vld [vmem:[#allocation2 + $0x16dc] ss:$112 sps:$4 sm:$0xff]  }
 0x20f   : > { %9290 = vmatprep.subr.bf16.mxu1 %v17773_v47  ;;  %9148 = vmatpush1.bf16.msra.mxu0 %v17774_v50  ;;  %v17852_v47 = vld [vmem:[#allocation2 + $0x1c10] ss:$112 sps:$4 sm:$0xff]   ;;  %v17860_v50 = vld [vmem:[#allocation2 + $0x1cf4] ss:$112 sps:$4 sm:$0xff]  }
 0x210   : > { %9149 = vmatprep.subr.bf16.mxu0 %v17782_v53  ;;  %v17855_v53 = vld [vmem:[#allocation2 + $0x17b8] ss:$112 sps:$4 sm:$0xff]  }
 0x212   : > { %9291 = vmatpush1.bf16.msra.mxu1 %v17771_v49  ;;  %v17857_v49 = vld [vmem:[#allocation2 + $0x17bc] ss:$112 sps:$4 sm:$0xff]  }
 0x213   : > { %9292 = vmatprep.subr.bf16.mxu1 %v17779_v52  ;;  %9150 = vmatpush1.bf16.msra.mxu0 %v17780_v56  ;;  %v17858_v52 = vld [vmem:[#allocation2 + $0x1cf0] ss:$112 sps:$4 sm:$0xff]   ;;  %v17866_v56 = vld [vmem:[#allocation2 + $0x1dd4] ss:$112 sps:$4 sm:$0xff]  }
 0x214   : > { %9151 = vmatprep.subr.bf16.mxu0 %v17788_v59  ;;  %v17861_v59 = vld [vmem:[#allocation2 + $0x1898] ss:$112 sps:$4 sm:$0xff]  }
 0x216   : > { %9293 = vmatpush1.bf16.msra.mxu1 %v17777_v55  ;;  %v17863_v55 = vld [vmem:[#allocation2 + $0x189c] ss:$112 sps:$4 sm:$0xff]  }
 0x217   : > { %9294 = vmatprep.subr.bf16.mxu1 %v17785_v58  ;;  %9152 = vmatpush1.bf16.msra.mxu0 %v17786_v61  ;;  %v17864_v58 = vld [vmem:[#allocation2 + $0x1dd0] ss:$112 sps:$4 sm:$0xff]   ;;  %v17872_v61 = vld [vmem:[#allocation2 + $0x1eb4] ss:$112 sps:$4 sm:$0xff]  }
 0x218   : > { %9153 = vmatprep.subr.bf16.mxu0 %v17794_v62  ;;  %v17870_v62 = vld [vmem:[#allocation2 + $0x1eb0] ss:$112 sps:$4 sm:$0xff]  }
 0x21a   : > { %9295 = vmatpush1.bf16.msra.mxu1 %v17783_v60  ;;  %v17869_v60 = vld [vmem:[#allocation2 + $0x197c] ss:$112 sps:$4 sm:$0xff]  }
 0x21b   : > { %9305 = vmatprep.subr.bf16.mxu1 %v17791_v63  ;;  %9154 = vmatpush1.bf16.msra.mxu0 %v17792_v2  ;;  %v17867_v63 = vld [vmem:[#allocation2 + $0x1978] ss:$112 sps:$4 sm:$0xff]   ;;  %v17878_v2 = vld [vmem:[#allocation2 + $0x1f94] ss:$112 sps:$4 sm:$0xff]  }
 0x21c   : > { %9155 = vmatprep.subr.bf16.mxu0 %v17800_v4  ;;  %v17873_v4 = vld [vmem:[#allocation2 + $0x1a58] ss:$112 sps:$4 sm:$0xff]  }
 0x21d   : > { %9297 = vmatmul.mubr.bf16.vlgmr.msra.gmra.mrb[12].mxu1 %v20164_v9 }
 0x21e   : > { %9306 = vmatpush1.bf16.msra.mxu1 %v17789_v1  ;;  %9337 = vmatprep.mubr.bf16.mxu1 %v20169_v36  ;;  %v17875_v1 = vld [vmem:[#allocation2 + $0x1a5c] ss:$112 sps:$4 sm:$0xff]  }
 0x21f   : > { %9307 = vmatprep.subr.bf16.mxu1 %v17797_v3  ;;  %9156 = vmatpush1.bf16.msra.mxu0 %v17798_v6  ;;  %v17876_v3 = vld [vmem:[#allocation2 + $0x1f90] ss:$112 sps:$4 sm:$0xff]   ;;  %v17884_v6 = vld [vmem:[#allocation2 + $0x2074] ss:$112 sps:$4 sm:$0xff]  }
 0x220   : > { %9157 = vmatprep.subr.bf16.mxu0 %v17806_v8  ;;  %v17879_v8 = vld [vmem:[#allocation2 + $0x1b38] ss:$112 sps:$4 sm:$0xff]  }
 0x222   : > { %9308 = vmatpush1.bf16.msra.mxu1 %v17795_v5  ;;  %v17881_v5 = vld [vmem:[#allocation2 + $0x1b3c] ss:$112 sps:$4 sm:$0xff]  }
 0x223   : > { %9309 = vmatprep.subr.bf16.mxu1 %v17803_v7  ;;  %9158 = vmatpush1.bf16.msra.mxu0 %v17804_v12  ;;  %v17882_v7 = vld [vmem:[#allocation2 + $0x2070] ss:$112 sps:$4 sm:$0xff]   ;;  %v17890_v12 = vld [vmem:[#allocation2 + $0x2154] ss:$112 sps:$4 sm:$0xff]  }
 0x224   : > { %9159 = vmatprep.subr.bf16.mxu0 %v17812_v14  ;;  %v17885_v14 = vld [vmem:[#allocation2 + $0x1c18] ss:$112 sps:$4 sm:$0xff]  }
 0x226   : > { %9310 = vmatpush1.bf16.msra.mxu1 %v17801_v11  ;;  %v17887_v11 = vld [vmem:[#allocation2 + $0x1c1c] ss:$112 sps:$4 sm:$0xff]  }
 0x227   : > { %9311 = vmatprep.subr.bf16.mxu1 %v17809_v13  ;;  %9160 = vmatpush1.bf16.msra.mxu0 %v17810_v15  ;;  %v17888_v13 = vld [vmem:[#allocation2 + $0x2150] ss:$112 sps:$4 sm:$0xff]   ;;  %v17893_v15 = vld [vmem:[#allocation2 + $0x1cfc] ss:$112 sps:$4 sm:$0xff]  }
 0x228   : > { %9161 = vmatprep.subr.bf16.mxu0 %v17818_v19  ;;  %v17891_v19 = vld [vmem:[#allocation2 + $0x1cf8] ss:$112 sps:$4 sm:$0xff]  }
 0x22a   : > { %9312 = vmatpush1.bf16.msra.mxu1 %v17807_v16  ;;  %v17896_v16 = vld [vmem:[#allocation2 + $0x2234] ss:$112 sps:$4 sm:$0xff]  }
 0x22b   : > { %9313 = vmatprep.subr.bf16.mxu1 %v17815_v17  ;;  %9162 = vmatpush1.bf16.msra.mxu0 %v17816_v21  ;;  %v17894_v17 = vld [vmem:[#allocation2 + $0x2230] ss:$112 sps:$4 sm:$0xff]   ;;  %v17902_v21 = vld [vmem:[#allocation2 + $0x2314] ss:$112 sps:$4 sm:$0xff]  }
 0x22c   : > { %9163 = vmatprep.subr.bf16.mxu0 %v17824_v22  ;;  %v17900_v22 = vld [vmem:[#allocation2 + $0x2310] ss:$112 sps:$4 sm:$0xff]  }
 0x22e   : > { %9314 = vmatpush1.bf16.msra.mxu1 %v17813_v20  ;;  %v17899_v20 = vld [vmem:[#allocation2 + $0x1ddc] ss:$112 sps:$4 sm:$0xff]  }
 0x22f   : > { %9315 = vmatprep.subr.bf16.mxu1 %v17821_v23  ;;  %9164 = vmatpush1.bf16.msra.mxu0 %v17822_v25  ;;  %v17897_v23 = vld [vmem:[#allocation2 + $0x1dd8] ss:$112 sps:$4 sm:$0xff]   ;;  %v17905_v25 = vld [vmem:[#allocation2 + $0x1ebc] ss:$112 sps:$4 sm:$0xff]  }
 0x230   : > { %9165 = vmatprep.subr.bf16.mxu0 %v17830_v28  ;;  %v17903_v28 = vld [vmem:[#allocation2 + $0x1eb8] ss:$112 sps:$4 sm:$0xff]  }
 0x232   : > { %9316 = vmatpush1.bf16.msra.mxu1 %v17819_v26  ;;  %v17908_v26 = vld [vmem:[#allocation2 + $0x23f4] ss:$112 sps:$4 sm:$0xff]  }
 0x233   : > { %9317 = vmatprep.subr.bf16.mxu1 %v17827_v27  ;;  %9166 = vmatpush1.bf16.msra.mxu0 %v17828_v30  ;;  %v17906_v27 = vld [vmem:[#allocation2 + $0x23f0] ss:$112 sps:$4 sm:$0xff]   ;;  %v17911_v30 = vld [vmem:[#allocation2 + $0x1f9c] ss:$112 sps:$4 sm:$0xff]  }
 0x234   : > { %9167 = vmatprep.subr.bf16.mxu0 %v17836_v33  ;;  %v17909_v33 = vld [vmem:[#allocation2 + $0x1f98] ss:$112 sps:$4 sm:$0xff]  }
 0x236   : > { %9318 = vmatpush1.bf16.msra.mxu1 %v17825_v31  ;;  %v17914_v31 = vld [vmem:[#allocation2 + $0x24d4] ss:$112 sps:$4 sm:$0xff]  }
 0x237   : > { %9319 = vmatprep.subr.bf16.mxu1 %v17833_v32  ;;  %9168 = vmatpush1.bf16.msra.mxu0 %v17834_v34  ;;  %v17912_v32 = vld [vmem:[#allocation2 + $0x24d0] ss:$112 sps:$4 sm:$0xff]   ;;  %v17917_v34 = vld [vmem:[#allocation2 + $0x207c] ss:$112 sps:$4 sm:$0xff]  }
 0x238   : > { %9169 = vmatprep.subr.bf16.mxu0 %v17842_v38  ;;  %v17915_v38 = vld [vmem:[#allocation2 + $0x2078] ss:$112 sps:$4 sm:$0xff]  }
 0x23a   : > { %9320 = vmatpush1.bf16.msra.mxu1 %v17831_v35  ;;  %v17920_v35 = vld [vmem:[#allocation2 + $0x25b4] ss:$112 sps:$4 sm:$0xff]  }
 0x23b   : > { %9321 = vmatprep.subr.bf16.mxu1 %v17839_v37  ;;  %9170 = vmatpush1.bf16.msra.mxu0 %v17840_v39  ;;  %v17918_v37 = vld [vmem:[#allocation2 + $0x25b0] ss:$112 sps:$4 sm:$0xff]   ;;  %v17923_v39 = vld [vmem:[#allocation2 + $0x215c] ss:$112 sps:$4 sm:$0xff]  }
 0x23c   : > { %9171 = vmatprep.subr.bf16.mxu0 %v17848_v42  ;;  %v17921_v42 = vld [vmem:[#allocation2 + $0x2158] ss:$112 sps:$4 sm:$0xff]  }
 0x23e   : > { %9322 = vmatpush1.bf16.msra.mxu1 %v17837_v40  ;;  %v17926_v40 = vld [vmem:[#allocation2 + $0x2694] ss:$112 sps:$4 sm:$0xff]  }
 0x23f   : > { %9323 = vmatprep.subr.bf16.mxu1 %v17845_v41  ;;  %9172 = vmatpush1.bf16.msra.mxu0 %v17846_v43  ;;  %v17924_v41 = vld [vmem:[#allocation2 + $0x2690] ss:$112 sps:$4 sm:$0xff]   ;;  %v17929_v43 = vld [vmem:[#allocation2 + $0x223c] ss:$112 sps:$4 sm:$0xff]  }
 0x240   : > { %9182 = vmatprep.subr.bf16.mxu0 %v17854_v46  ;;  %v17927_v46 = vld [vmem:[#allocation2 + $0x2238] ss:$112 sps:$4 sm:$0xff]  }
 0x242   : > { %9324 = vmatpush1.bf16.msra.mxu1 %v17843_v44  ;;  %9174 = vmatmul.mubr.bf16.vlgmr.msra.gmra.mrb[4].mxu0 %v20174_v18  ;;  %v17932_v44 = vld [vmem:[#allocation2 + $0x2774] ss:$112 sps:$4 sm:$0xff]  }
 0x243   : > { %9325 = vmatprep.subr.bf16.mxu1 %v17851_v45  ;;  %9183 = vmatpush1.bf16.msra.mxu0 %v17852_v47  ;;  %v17930_v45 = vld [vmem:[#allocation2 + $0x2770] ss:$112 sps:$4 sm:$0xff]   ;;  %v17935_v47 = vld [vmem:[#allocation2 + $0x231c] ss:$112 sps:$4 sm:$0xff]  }
 0x244   : > { %9214 = vmatprep.mubr.bf16.mxu0 %v20177_v24  ;;  %9184 = vmatprep.subr.bf16.mxu0 %v17860_v50  ;;  %v17933_v50 = vld [vmem:[#allocation2 + $0x2318] ss:$112 sps:$4 sm:$0xff]  }
 0x246   : > { %9326 = vmatpush1.bf16.msra.mxu1 %v17849_v48  ;;  %v17938_v48 = vld [vmem:[#allocation2 + $0x2854] ss:$112 sps:$4 sm:$0xff]  }
 0x247   : > { %9327 = vmatprep.subr.bf16.mxu1 %v17857_v49  ;;  %9185 = vmatpush1.bf16.msra.mxu0 %v17858_v52  ;;  %v17936_v49 = vld [vmem:[#allocation2 + $0x2850] ss:$112 sps:$4 sm:$0xff]   ;;  %v17941_v52 = vld [vmem:[#allocation2 + $0x23fc] ss:$112 sps:$4 sm:$0xff]  }
 0x248   : > { %9186 = vmatprep.subr.bf16.mxu0 %v17866_v56  ;;  %v17939_v56 = vld [vmem:[#allocation2 + $0x23f8] ss:$112 sps:$4 sm:$0xff]  }
 0x24a   : > { %9328 = vmatpush1.bf16.msra.mxu1 %v17855_v53  ;;  %v17944_v53 = vld [vmem:[#allocation2 + $0x2934] ss:$112 sps:$4 sm:$0xff]  }
 0x24b   : > { %9329 = vmatprep.subr.bf16.mxu1 %v17863_v55  ;;  %9187 = vmatpush1.bf16.msra.mxu0 %v17864_v58  ;;  %v17942_v55 = vld [vmem:[#allocation2 + $0x2930] ss:$112 sps:$4 sm:$0xff]   ;;  %v17947_v58 = vld [vmem:[#allocation2 + $0x24dc] ss:$112 sps:$4 sm:$0xff]  }
 0x24c   : > { %9188 = vmatprep.subr.bf16.mxu0 %v17872_v61  ;;  %v17945_v61 = vld [vmem:[#allocation2 + $0x24d8] ss:$112 sps:$4 sm:$0xff]  }
 0x24e   : > { %9330 = vmatpush1.bf16.msra.mxu1 %v17861_v59  ;;  %v17950_v59 = vld [vmem:[#allocation2 + $0x24] ss:$112 sps:$4 sm:$0xff]  }
 0x24f   : > { %9331 = vmatprep.subr.bf16.mxu1 %v17869_v60  ;;  %9189 = vmatpush1.bf16.msra.mxu0 %v17870_v62  ;;  %v17948_v60 = vld [vmem:[#allocation2 + $0x20] ss:$112 sps:$4 sm:$0xff]   ;;  %v17953_v62 = vld [vmem:[#allocation2 + $0x25bc] ss:$112 sps:$4 sm:$0xff]  }
 0x250   : > { %9190 = vmatprep.subr.bf16.mxu0 %v17878_v2  ;;  %v17951_v2 = vld [vmem:[#allocation2 + $0x25b8] ss:$112 sps:$4 sm:$0xff]  }
 0x252   : > { %9332 = vmatpush1.bf16.msra.mxu1 %v17867_v63  ;;  %v17956_v63 = vld [vmem:[#allocation2 + $0x104] ss:$112 sps:$4 sm:$0xff]  }
 0x253   : > { %9333 = vmatprep.subr.bf16.mxu1 %v17875_v1  ;;  %9191 = vmatpush1.bf16.msra.mxu0 %v17876_v3  ;;  %v17954_v1 = vld [vmem:[#allocation2 + $0x100] ss:$112 sps:$4 sm:$0xff]   ;;  %v17959_v3 = vld [vmem:[#allocation2 + $0x269c] ss:$112 sps:$4 sm:$0xff]  }
 0x254   : > { %9192 = vmatprep.subr.bf16.mxu0 %v17884_v6  ;;  %v17957_v6 = vld [vmem:[#allocation2 + $0x2698] ss:$112 sps:$4 sm:$0xff]  }
 0x256   : > { %9334 = vmatpush1.bf16.msra.mxu1 %v17873_v4  ;;  %v17962_v4 = vld [vmem:[#allocation2 + $0x1e4] ss:$112 sps:$4 sm:$0xff]  }
 0x257   : > { %9335 = vmatprep.subr.bf16.mxu1 %v17881_v5  ;;  %9193 = vmatpush1.bf16.msra.mxu0 %v17882_v7  ;;  %v17960_v5 = vld [vmem:[#allocation2 + $0x1e0] ss:$112 sps:$4 sm:$0xff]   ;;  %v17965_v7 = vld [vmem:[#allocation2 + $0x277c] ss:$112 sps:$4 sm:$0xff]  }
 0x258   : > { %9194 = vmatprep.subr.bf16.mxu0 %v17890_v12  ;;  %v17963_v12 = vld [vmem:[#allocation2 + $0x2778] ss:$112 sps:$4 sm:$0xff]  }
 0x25a   : > { %9336 = vmatpush1.bf16.msra.mxu1 %v17879_v8  ;;  %v17968_v8 = vld [vmem:[#allocation2 + $0x2c4] ss:$112 sps:$4 sm:$0xff]  }
 0x25b   : > { %9346 = vmatprep.subr.bf16.mxu1 %v17887_v11  ;;  %9195 = vmatpush1.bf16.msra.mxu0 %v17888_v13  ;;  %v17966_v11 = vld [vmem:[#allocation2 + $0x2c0] ss:$112 sps:$4 sm:$0xff]   ;;  %v17971_v13 = vld [vmem:[#allocation2 + $0x285c] ss:$112 sps:$4 sm:$0xff]  }
 0x25c   : > { %9196 = vmatprep.subr.bf16.mxu0 %v17896_v16  ;;  %v17969_v16 = vld [vmem:[#allocation2 + $0x2858] ss:$112 sps:$4 sm:$0xff]  }
 0x25d   : > { %9338 = vmatmul.mubr.bf16.vlgmr.msra.gmra.mrb[12].mxu1 %v20174_v18 }
 0x25e   : > { %9347 = vmatpush1.bf16.msra.mxu1 %v17885_v14  ;;  %9378 = vmatprep.mubr.bf16.mxu1 %v20177_v24  ;;  %v17974_v14 = vld [vmem:[#allocation2 + $0x3a4] ss:$112 sps:$4 sm:$0xff]  }
 0x25f   : > { %9348 = vmatprep.subr.bf16.mxu1 %v17893_v15  ;;  %9197 = vmatpush1.bf16.msra.mxu0 %v17894_v17  ;;  %v17972_v15 = vld [vmem:[#allocation2 + $0x3a0] ss:$112 sps:$4 sm:$0xff]   ;;  %v17977_v17 = vld [vmem:[#allocation2 + $0x293c] ss:$112 sps:$4 sm:$0xff]  }
 0x260   : > { %9198 = vmatprep.subr.bf16.mxu0 %v17902_v21  ;;  %v17975_v21 = vld [vmem:[#allocation2 + $0x2938] ss:$112 sps:$4 sm:$0xff]  }
 0x262   : > { %9349 = vmatpush1.bf16.msra.mxu1 %v17891_v19  ;;  %v17980_v19 = vld [vmem:[#allocation2 + $0x484] ss:$112 sps:$4 sm:$0xff]  }
 0x263   : > { %9350 = vmatprep.subr.bf16.mxu1 %v17899_v20  ;;  %9199 = vmatpush1.bf16.msra.mxu0 %v17900_v22  ;;  %v17978_v20 = vld [vmem:[#allocation2 + $0x480] ss:$112 sps:$4 sm:$0xff]   ;;  %v17983_v22 = vld [vmem:[#allocation2 + $0x564] ss:$112 sps:$4 sm:$0xff]  }
 0x264   : > { %9200 = vmatprep.subr.bf16.mxu0 %v17908_v26 }
 0x266   : > { %9351 = vmatpush1.bf16.msra.mxu1 %v17897_v23  ;;  %v17989_v23 = vld [vmem:[#allocation2 + $0x2a1c] ss:$112 sps:$4 sm:$0xff]  }
 0x267   : > { %9352 = vmatprep.subr.bf16.mxu1 %v17905_v25  ;;  %9201 = vmatpush1.bf16.msra.mxu0 %v17906_v27 }
 0x268   : > { %9202 = vmatprep.subr.bf16.mxu0 %v17914_v31  ;;  %v17981_v31 = vld [vmem:[#allocation2 + $0x560] ss:$112 sps:$4 sm:$0xff]  }
 0x26a   : > { %9353 = vmatpush1.bf16.msra.mxu1 %v17903_v28 }
 0x26b   : > { %9354 = vmatprep.subr.bf16.mxu1 %v17911_v30  ;;  %9203 = vmatpush1.bf16.msra.mxu0 %v17912_v32 }
 0x26c   : > { %9204 = vmatprep.subr.bf16.mxu0 %v17920_v35  ;;  %v17995_v35 = vld [vmem:[#allocation2 + $0x2c] ss:$112 sps:$4 sm:$0xff]  }
 0x26e   : > { %9355 = vmatpush1.bf16.msra.mxu1 %v17909_v33  ;;  %v17986_v33 = vld [vmem:[#allocation2 + $0x644] ss:$112 sps:$4 sm:$0xff]  }
 0x26f   : > { %9356 = vmatprep.subr.bf16.mxu1 %v17917_v34  ;;  %9205 = vmatpush1.bf16.msra.mxu0 %v17918_v37  ;;  %v17987_v34 = vld [vmem:[#allocation2 + $0x2a18] ss:$112 sps:$4 sm:$0xff]   ;;  %v17984_v37 = vld [vmem:[#allocation2 + $0x640] ss:$112 sps:$4 sm:$0xff]  }
 0x270   : > { %9206 = vmatprep.subr.bf16.mxu0 %v17926_v40  ;;  %v17993_v40 = vld [vmem:[#allocation2 + $0x28] ss:$112 sps:$4 sm:$0xff]  }
 0x272   : > { %9357 = vmatpush1.bf16.msra.mxu1 %v17915_v38  ;;  %v17998_v38 = vld [vmem:[#allocation2 + $0x804] ss:$112 sps:$4 sm:$0xff]  }
 0x273   : > { %9358 = vmatprep.subr.bf16.mxu1 %v17923_v39  ;;  %9207 = vmatpush1.bf16.msra.mxu0 %v17924_v41  ;;  %v17996_v39 = vld [vmem:[#allocation2 + $0x800] ss:$112 sps:$4 sm:$0xff]   ;;  %v18001_v41 = vld [vmem:[#allocation2 + $0x10c] ss:$112 sps:$4 sm:$0xff]  }
 0x274   : > { %9208 = vmatprep.subr.bf16.mxu0 %v17932_v44 }
 0x276   : > { %9359 = vmatpush1.bf16.msra.mxu1 %v17921_v42  ;;  %v18004_v42 = vld [vmem:[#allocation2 + $0x8e4] ss:$112 sps:$4 sm:$0xff]  }
 0x277   : > { %9360 = vmatprep.subr.bf16.mxu1 %v17929_v43  ;;  %9209 = vmatpush1.bf16.msra.mxu0 %v17930_v45  ;;  %v18002_v45 = vld [vmem:[#allocation2 + $0x8e0] ss:$112 sps:$4 sm:$0xff]  }
 0x278   : > { %9210 = vmatprep.subr.bf16.mxu0 %v17938_v48  ;;  %v18010_v48 = vld [vmem:[#allocation2 + $0x9c4] ss:$112 sps:$4 sm:$0xff]  }
 0x27a   : > { %9361 = vmatpush1.bf16.msra.mxu1 %v17927_v46 }
 0x27b   : > { %9362 = vmatprep.subr.bf16.mxu1 %v17935_v47  ;;  %9211 = vmatpush1.bf16.msra.mxu0 %v17936_v49  ;;  %v17999_v47 = vld [vmem:[#allocation2 + $0x108] ss:$112 sps:$4 sm:$0xff]  }
 0x27c   : > { %9212 = vmatprep.subr.bf16.mxu0 %v17944_v53  ;;  %v18005_v53 = vld [vmem:[#allocation2 + $0x1e8] ss:$112 sps:$4 sm:$0xff]  }
 0x27e   : > { %9363 = vmatpush1.bf16.msra.mxu1 %v17933_v50  ;;  %v18007_v50 = vld [vmem:[#allocation2 + $0x1ec] ss:$112 sps:$4 sm:$0xff]  }
 0x27f   : > { %9364 = vmatprep.subr.bf16.mxu1 %v17941_v52  ;;  %9213 = vmatpush1.bf16.msra.mxu0 %v17942_v55  ;;  %v18008_v52 = vld [vmem:[#allocation2 + $0x9c0] ss:$112 sps:$4 sm:$0xff]   ;;  %v18013_v55 = vld [vmem:[#allocation2 + $0x2cc] ss:$112 sps:$4 sm:$0xff]  }
 0x280   : > { %9428 = vmatprep.subr.bf16.mxu0 %v17950_v59  ;;  %v18014_v59 = vld [vmem:[#allocation2 + $0xaa0] ss:$112 sps:$4 sm:$0xff]  }
 0x282   : > { %9365 = vmatpush1.bf16.msra.mxu1 %v17939_v56  ;;  %9215 = vmatmul.mubr.bf16.vlgmr.msra.gmra.mrb[4].mxu0 %v20184_v29  ;;  %v18016_v56 = vld [vmem:[#allocation2 + $0xaa4] ss:$112 sps:$4 sm:$0xff]  }
 0x283   : > { %9366 = vmatprep.subr.bf16.mxu1 %v17947_v58  ;;  %9429 = vmatpush1.bf16.msra.mxu0 %v17948_v60 }
 0x284   : > { %9460 = vmatprep.mubr.bf16.mxu0 %v20159_v51  ;;  %9430 = vmatprep.subr.bf16.mxu0 %v17956_v63 }
 0x286   : > { %9367 = vmatpush1.bf16.msra.mxu1 %v17945_v61  ;;  %v18011_v61 = vld [vmem:[#allocation2 + $0x2c8] ss:$112 sps:$4 sm:$0xff]  }
 0x287   : > { %9368 = vmatprep.subr.bf16.mxu1 %v17953_v62  ;;  %9431 = vmatpush1.bf16.msra.mxu0 %v17954_v1  ;;  %v18022_v62 = vld [vmem:[#allocation2 + $0xb84] ss:$112 sps:$4 sm:$0xff]   ;;  %v18019_v1 = vld [vmem:[#allocation2 + $0x3ac] ss:$112 sps:$4 sm:$0xff]  }
 0x288   : > { %9432 = vmatprep.subr.bf16.mxu0 %v17962_v4  ;;  %v18017_v4 = vld [vmem:[#allocation2 + $0x3a8] ss:$112 sps:$4 sm:$0xff]  }
 0x28a   : > { %9369 = vmatpush1.bf16.msra.mxu1 %v17951_v2 }
 0x28b   : > { %9370 = vmatprep.subr.bf16.mxu1 %v17959_v3  ;;  %9433 = vmatpush1.bf16.msra.mxu0 %v17960_v5  ;;  %v18020_v3 = vld [vmem:[#allocation2 + $0xb80] ss:$112 sps:$4 sm:$0xff]   ;;  %v18025_v5 = vld [vmem:[#allocation2 + $0x48c] ss:$112 sps:$4 sm:$0xff]  }
 0x28c   : > { %9434 = vmatprep.subr.bf16.mxu0 %v17968_v8  ;;  %v18023_v8 = vld [vmem:[#allocation2 + $0x488] ss:$112 sps:$4 sm:$0xff]  }
 0x28e   : > { %9371 = vmatpush1.bf16.msra.mxu1 %v17957_v6  ;;  %v18028_v6 = vld [vmem:[#allocation2 + $0xc64] ss:$112 sps:$4 sm:$0xff]  }
 0x28f   : > { %9372 = vmatprep.subr.bf16.mxu1 %v17965_v7  ;;  %9435 = vmatpush1.bf16.msra.mxu0 %v17966_v11  ;;  %v18026_v7 = vld [vmem:[#allocation2 + $0xc60] ss:$112 sps:$4 sm:$0xff]   ;;  %v18031_v11 = vld [vmem:[#allocation2 + $0x56c] ss:$112 sps:$4 sm:$0xff]  }
 0x290   : > { %9436 = vmatprep.subr.bf16.mxu0 %v17974_v14  ;;  %v18029_v14 = vld [vmem:[#allocation2 + $0x568] ss:$112 sps:$4 sm:$0xff]  }
 0x292   : > { %9373 = vmatpush1.bf16.msra.mxu1 %v17963_v12  ;;  %v18034_v12 = vld [vmem:[#allocation2 + $0xd44] ss:$112 sps:$4 sm:$0xff]  }
 0x293   : > { %9374 = vmatprep.subr.bf16.mxu1 %v17971_v13  ;;  %9437 = vmatpush1.bf16.msra.mxu0 %v17972_v15  ;;  %v18032_v13 = vld [vmem:[#allocation2 + $0xd40] ss:$112 sps:$4 sm:$0xff]   ;;  %v18037_v15 = vld [vmem:[#allocation2 + $0x64c] ss:$112 sps:$4 sm:$0xff]  }
 0x294   : > { %9438 = vmatprep.subr.bf16.mxu0 %v17980_v19  ;;  %v18035_v19 = vld [vmem:[#allocation2 + $0x648] ss:$112 sps:$4 sm:$0xff]  }
 0x295   : > { %v8888_v25 = vpop.f32.mrb[0].mxu0 }
 0x296   : > { %9375 = vmatpush1.bf16.msra.mxu1 %v17969_v16  ;;  %v20211_v26 = vadd.f32 %v20193_v54, %v8888_v25  ;;  %v8890_v27 = vpop.f32.mrb[1].mxu0  ;;  %v17992_v54 = vld [vmem:[#allocation2 + $0x724] ss:$112 sps:$4 sm:$0xff]   ;;  %v18049_v25 = vld [vmem:[#allocation2 + $0x80c] ss:$112 sps:$4 sm:$0xff]  }
 0x297   : > { %9376 = vmatprep.subr.bf16.mxu1 %v17977_v17  ;;  %v20214_v28 = vadd.f32 %v20197_v57, %v8890_v27  ;;  %v8892_v30 = vpop.f32.mrb[2].mxu0  ;;  %9439 = vmatpush1.bf16.msra.mxu0 %v17978_v20  ;;  %v17990_v57 = vld [vmem:[#allocation2 + $0x720] ss:$112 sps:$4 sm:$0xff]   ;;  %v18040_v16 = vld [vmem:[#allocation2 + $0xe24] ss:$112 sps:$4 sm:$0xff]  }
 0x298   : > { %v8893_v32 = vpop.f32.mrb[3].mxu0  ;;  %9440 = vmatprep.subr.bf16.mxu0 %v17983_v22  ;;  %v18038_v17 = vld [vmem:[#allocation2 + $0xe20] ss:$112 sps:$4 sm:$0xff]   ;;  %v18043_v20 = vld [vmem:[#allocation2 + $0x72c] ss:$112 sps:$4 sm:$0xff]  }
 0x299   : > { %v18044_v22 = vld [vmem:[#allocation2 + $0xf00] ss:$112 sps:$4 sm:$0xff]   ;;  %v18052_v27 = vld [vmem:[#allocation2 + $0xfe4] ss:$112 sps:$4 sm:$0xff]   ;;  %v18055_v32 = vld [vmem:[#allocation2 + $0x8ec] ss:$112 sps:$4 sm:$0xff]  }
 0x29a   : > { %9377 = vmatpush1.bf16.msra.mxu1 %v17975_v21  ;;  %v18046_v21 = vld [vmem:[#allocation2 + $0xf04] ss:$112 sps:$4 sm:$0xff]   ;;  %v18050_v30 = vld [vmem:[#allocation2 + $0xfe0] ss:$112 sps:$4 sm:$0xff]  }
 0x29b   : > { %9387 = vmatprep.subr.bf16.mxu1 %v17989_v23  ;;  %9441 = vmatpush1.bf16.msra.mxu0 %v17981_v31  ;;  %v18041_v23 = vld [vmem:[#allocation2 + $0x728] ss:$112 sps:$4 sm:$0xff]  }
 0x29c   : > { %9442 = vmatprep.subr.bf16.mxu0 %v17986_v33  ;;  %v18047_v31 = vld [vmem:[#allocation2 + $0x808] ss:$112 sps:$4 sm:$0xff]   ;;  %v18058_v33 = vld [vmem:[#allocation2 + $0x10c4] ss:$112 sps:$4 sm:$0xff]  }
 0x29d   : > { %9379 = vmatmul.mubr.bf16.vlgmr.msra.gmra.mrb[12].mxu1 %v20184_v29 }
 0x29e   : > { %9388 = vmatpush1.bf16.msra.mxu1 %v17987_v34  ;;  %9419 = vmatprep.mubr.bf16.mxu1 %v19797_v0  ;;  %v18056_v34 = vld [vmem:[#allocation2 + $0x10c0] ss:$112 sps:$4 sm:$0xff]  }
 0x29f   : > { %9592 = vmatprep.subr.bf16.mxu1 %v17995_v35  ;;  %9443 = vmatpush1.bf16.msra.mxu0 %v17984_v37  ;;  %v18053_v35 = vld [vmem:[#allocation2 + $0x8e8] ss:$112 sps:$4 sm:$0xff]   ;;  %v18061_v37 = vld [vmem:[#allocation2 + $0x9cc] ss:$112 sps:$4 sm:$0xff]  }
 0x2a0   : > { %9444 = vmatprep.subr.bf16.mxu0 %v17992_v54  ;;  %v18064_v54 = vld [vmem:[#allocation2 + $0x11a4] ss:$112 sps:$4 sm:$0xff]  }
 0x2a3   : > { %9445 = vmatpush1.bf16.msra.mxu0 %v17990_v57  ;;  %v18059_v57 = vld [vmem:[#allocation2 + $0x9c8] ss:$112 sps:$4 sm:$0xff]  }
 0x2a4   : > { %9446 = vmatprep.subr.bf16.mxu0 %v17998_v38  ;;  %v18062_v38 = vld [vmem:[#allocation2 + $0x11a0] ss:$112 sps:$4 sm:$0xff]  }
 0x2a7   : > { %9447 = vmatpush1.bf16.msra.mxu0 %v17996_v39  ;;  %v18067_v39 = vld [vmem:[#allocation2 + $0xaac] ss:$112 sps:$4 sm:$0xff]  }
 0x2a8   : > { %v20218_v43 = vpop.f32.mrb[4].mxu1  ;;  %9448 = vmatprep.subr.bf16.mxu0 %v18004_v42  ;;  %v18068_v42 = vld [vmem:[#allocation2 + $0x1280] ss:$112 sps:$4 sm:$0xff]  }
 0x2a9   : > { %16471 = vmatmul.mubr.msk.bf16.vlgmr.msra.gmra.mrb[12].mxu1 %vm8768_vm0, %v20154_v10  ;;  %v20222_v44 = vpop.f32.mrb[5].mxu1 }
 0x2aa   : > { %9593 = vmatpush1.bf16.msra.mxu1 %v17993_v40  ;;  %v9097_v46 = vpop.f32.mrb[6].mxu1  ;;  %9624 = vmatprep.mubr.bf16.mxu1 %v20159_v51  ;;  %v18070_v40 = vld [vmem:[#allocation2 + $0x1284] ss:$112 sps:$4 sm:$0xff]  }
 0x2ab   : > { %v9098_v49 = vpop.f32.mrb[7].mxu1  ;;  %9594 = vmatprep.subr.bf16.mxu1 %v18001_v41  ;;  %9449 = vmatpush1.bf16.msra.mxu0 %v18002_v45  ;;  %v18065_v41 = vld [vmem:[#allocation2 + $0xaa8] ss:$112 sps:$4 sm:$0xff]   ;;  %v18073_v45 = vld [vmem:[#allocation2 + $0xb8c] ss:$112 sps:$4 sm:$0xff]  }
 0x2ac   : > { %9450 = vmatprep.subr.bf16.mxu0 %v18010_v48  ;;  %v18076_v46 = vld [vmem:[#allocation2 + $0x1364] ss:$112 sps:$4 sm:$0xff]   ;;  %v18074_v48 = vld [vmem:[#allocation2 + $0x1360] ss:$112 sps:$4 sm:$0xff]   ;;  %v18079_v49 = vld [vmem:[#allocation2 + $0xc6c] ss:$112 sps:$4 sm:$0xff]  }
 0x2ae   : > { %9595 = vmatpush1.bf16.msra.mxu1 %v17999_v47  ;;  %v18071_v47 = vld [vmem:[#allocation2 + $0xb88] ss:$112 sps:$4 sm:$0xff]  }
 0x2af   : > { %9596 = vmatprep.subr.bf16.mxu1 %v18007_v50  ;;  %9451 = vmatpush1.bf16.msra.mxu0 %v18008_v52  ;;  %v18082_v50 = vld [vmem:[#allocation2 + $0x1444] ss:$112 sps:$4 sm:$0xff]   ;;  %v18077_v52 = vld [vmem:[#allocation2 + $0xc68] ss:$112 sps:$4 sm:$0xff]  }
 0x2b0   : > { %v20225_v58 = vpop.f32.mrb[8].mxu1  ;;  %9452 = vmatprep.subr.bf16.mxu0 %v18016_v56  ;;  %v18088_v56 = vld [vmem:[#allocation2 + $0x1524] ss:$112 sps:$4 sm:$0xff]  }
 0x2b1   : > { %v20227_v60 = vpop.f32.mrb[9].mxu1 }
 0x2b2   : > { %9597 = vmatpush1.bf16.msra.mxu1 %v18005_v53  ;;  %v9261_v63 = vpop.f32.mrb[10].mxu1  ;;  %v18080_v53 = vld [vmem:[#allocation2 + $0x1440] ss:$112 sps:$4 sm:$0xff]  }
 0x2b3   : > { %9598 = vmatprep.subr.bf16.mxu1 %v18013_v55  ;;  %v9262_v2 = vpop.f32.mrb[11].mxu1  ;;  %9453 = vmatpush1.bf16.msra.mxu0 %v18014_v59  ;;  %v18085_v55 = vld [vmem:[#allocation2 + $0xd4c] ss:$112 sps:$4 sm:$0xff]   ;;  %v18083_v59 = vld [vmem:[#allocation2 + $0xd48] ss:$112 sps:$4 sm:$0xff]  }
 0x2b4   : > { %9454 = vmatprep.subr.bf16.mxu0 %v18022_v62  ;;  %v18091_v62 = vld [vmem:[#allocation2 + $0xe2c] ss:$112 sps:$4 sm:$0xff]   ;;  %v18094_v63 = vld [vmem:[#allocation2 + $0x1604] ss:$112 sps:$4 sm:$0xff]   ;;  %v18092_v2 = vld [vmem:[#allocation2 + $0x1600] ss:$112 sps:$4 sm:$0xff]  }
 0x2b6   : > { %9599 = vmatpush1.bf16.msra.mxu1 %v18011_v61  ;;  %v18086_v61 = vld [vmem:[#allocation2 + $0x1520] ss:$112 sps:$4 sm:$0xff]  }
 0x2b7   : > { %9600 = vmatprep.subr.bf16.mxu1 %v18019_v1  ;;  %9455 = vmatpush1.bf16.msra.mxu0 %v18020_v3  ;;  %v18089_v1 = vld [vmem:[#allocation2 + $0xe28] ss:$112 sps:$4 sm:$0xff]   ;;  %v18097_v3 = vld [vmem:[#allocation2 + $0xf0c] ss:$112 sps:$4 sm:$0xff]  }
 0x2b8   : > { %9456 = vmatprep.subr.bf16.mxu0 %v18028_v6  ;;  %v18098_v6 = vld [vmem:[#allocation2 + $0x16e0] ss:$112 sps:$4 sm:$0xff]  }
 0x2ba   : > { %9601 = vmatpush1.bf16.msra.mxu1 %v18017_v4  ;;  %v18100_v4 = vld [vmem:[#allocation2 + $0x16e4] ss:$112 sps:$4 sm:$0xff]  }
 0x2bb   : > { %9602 = vmatprep.subr.bf16.mxu1 %v18025_v5  ;;  %9457 = vmatpush1.bf16.msra.mxu0 %v18026_v7  ;;  %v18095_v5 = vld [vmem:[#allocation2 + $0xf08] ss:$112 sps:$4 sm:$0xff]   ;;  %v18103_v7 = vld [vmem:[#allocation2 + $0xfec] ss:$112 sps:$4 sm:$0xff]  }
 0x2bc   : > { %9458 = vmatprep.subr.bf16.mxu0 %v18034_v12  ;;  %v18104_v12 = vld [vmem:[#allocation2 + $0x17c0] ss:$112 sps:$4 sm:$0xff]  }
 0x2be   : > { %9603 = vmatpush1.bf16.msra.mxu1 %v18023_v8  ;;  %v18106_v8 = vld [vmem:[#allocation2 + $0x17c4] ss:$112 sps:$4 sm:$0xff]  }
 0x2bf   : > { %9604 = vmatprep.subr.bf16.mxu1 %v18031_v11  ;;  %9459 = vmatpush1.bf16.msra.mxu0 %v18032_v13  ;;  %v18101_v11 = vld [vmem:[#allocation2 + $0xfe8] ss:$112 sps:$4 sm:$0xff]   ;;  %v18109_v13 = vld [vmem:[#allocation2 + $0x10cc] ss:$112 sps:$4 sm:$0xff]  }
 0x2c0   : > { %9469 = vmatprep.subr.bf16.mxu0 %v18040_v16  ;;  %v18107_v16 = vld [vmem:[#allocation2 + $0x10c8] ss:$112 sps:$4 sm:$0xff]  }
 0x2c2   : > { %9605 = vmatpush1.bf16.msra.mxu1 %v18029_v14  ;;  %9461 = vmatmul.mubr.bf16.vlgmr.msra.gmra.mrb[8].mxu0 %v20164_v9  ;;  %v18112_v14 = vld [vmem:[#allocation2 + $0x18a4] ss:$112 sps:$4 sm:$0xff]  }
 0x2c3   : > { %9606 = vmatprep.subr.bf16.mxu1 %v18037_v15  ;;  %9470 = vmatpush1.bf16.msra.mxu0 %v18038_v17  ;;  %v18110_v15 = vld [vmem:[#allocation2 + $0x18a0] ss:$112 sps:$4 sm:$0xff]   ;;  %v18115_v17 = vld [vmem:[#allocation2 + $0x11ac] ss:$112 sps:$4 sm:$0xff]  }
 0x2c4   : > { %9501 = vmatprep.mubr.bf16.mxu0 %v20169_v36  ;;  %9471 = vmatprep.subr.bf16.mxu0 %v18046_v21  ;;  %v18113_v21 = vld [vmem:[#allocation2 + $0x11a8] ss:$112 sps:$4 sm:$0xff]  }
 0x2c6   : > { %9607 = vmatpush1.bf16.msra.mxu1 %v18035_v19  ;;  %v18118_v19 = vld [vmem:[#allocation2 + $0x1984] ss:$112 sps:$4 sm:$0xff]  }
 0x2c7   : > { %9608 = vmatprep.subr.bf16.mxu1 %v18043_v20  ;;  %9472 = vmatpush1.bf16.msra.mxu0 %v18044_v22  ;;  %v18116_v20 = vld [vmem:[#allocation2 + $0x1980] ss:$112 sps:$4 sm:$0xff]   ;;  %v18121_v22 = vld [vmem:[#allocation2 + $0x128c] ss:$112 sps:$4 sm:$0xff]  }
 0x2c8   : > { %9473 = vmatprep.subr.bf16.mxu0 %v18052_v27  ;;  %v18119_v27 = vld [vmem:[#allocation2 + $0x1288] ss:$112 sps:$4 sm:$0xff]  }
 0x2ca   : > { %9609 = vmatpush1.bf16.msra.mxu1 %v18041_v23  ;;  %v18124_v23 = vld [vmem:[#allocation2 + $0x1a64] ss:$112 sps:$4 sm:$0xff]  }
 0x2cb   : > { %9610 = vmatprep.subr.bf16.mxu1 %v18049_v25  ;;  %9474 = vmatpush1.bf16.msra.mxu0 %v18050_v30  ;;  %v18122_v25 = vld [vmem:[#allocation2 + $0x1a60] ss:$112 sps:$4 sm:$0xff]   ;;  %v18127_v30 = vld [vmem:[#allocation2 + $0x136c] ss:$112 sps:$4 sm:$0xff]  }
 0x2cc   : > { %9475 = vmatprep.subr.bf16.mxu0 %v18058_v33  ;;  %v18128_v33 = vld [vmem:[#allocation2 + $0x1b40] ss:$112 sps:$4 sm:$0xff]  }
 0x2ce   : > { %9611 = vmatpush1.bf16.msra.mxu1 %v18047_v31  ;;  %v18130_v31 = vld [vmem:[#allocation2 + $0x1b44] ss:$112 sps:$4 sm:$0xff]  }
 0x2cf   : > { %9612 = vmatprep.subr.bf16.mxu1 %v18055_v32  ;;  %9476 = vmatpush1.bf16.msra.mxu0 %v18056_v34  ;;  %v18125_v32 = vld [vmem:[#allocation2 + $0x1368] ss:$112 sps:$4 sm:$0xff]   ;;  %v18136_v34 = vld [vmem:[#allocation2 + $0x1c24] ss:$112 sps:$4 sm:$0xff]  }
 0x2d0   : > { %9477 = vmatprep.subr.bf16.mxu0 %v18064_v54  ;;  %v18131_v54 = vld [vmem:[#allocation2 + $0x1448] ss:$112 sps:$4 sm:$0xff]  }
 0x2d2   : > { %9613 = vmatpush1.bf16.msra.mxu1 %v18053_v35  ;;  %v18133_v35 = vld [vmem:[#allocation2 + $0x144c] ss:$112 sps:$4 sm:$0xff]  }
 0x2d3   : > { %9614 = vmatprep.subr.bf16.mxu1 %v18061_v37  ;;  %9478 = vmatpush1.bf16.msra.mxu0 %v18062_v38  ;;  %v18134_v37 = vld [vmem:[#allocation2 + $0x1c20] ss:$112 sps:$4 sm:$0xff]   ;;  %v18142_v38 = vld [vmem:[#allocation2 + $0x1d04] ss:$112 sps:$4 sm:$0xff]  }
 0x2d4   : > { %9479 = vmatprep.subr.bf16.mxu0 %v18070_v40  ;;  %v18137_v40 = vld [vmem:[#allocation2 + $0x1528] ss:$112 sps:$4 sm:$0xff]  }
 0x2d6   : > { %9615 = vmatpush1.bf16.msra.mxu1 %v18059_v57  ;;  %v18139_v57 = vld [vmem:[#allocation2 + $0x152c] ss:$112 sps:$4 sm:$0xff]  }
 0x2d7   : > { %9616 = vmatprep.subr.bf16.mxu1 %v18067_v39  ;;  %9480 = vmatpush1.bf16.msra.mxu0 %v18068_v42  ;;  %v18140_v39 = vld [vmem:[#allocation2 + $0x1d00] ss:$112 sps:$4 sm:$0xff]   ;;  %v18148_v42 = vld [vmem:[#allocation2 + $0x1de4] ss:$112 sps:$4 sm:$0xff]  }
 0x2d8   : > { %9481 = vmatprep.subr.bf16.mxu0 %v18076_v46  ;;  %v18143_v46 = vld [vmem:[#allocation2 + $0x1608] ss:$112 sps:$4 sm:$0xff]  }
 0x2da   : > { %9617 = vmatpush1.bf16.msra.mxu1 %v18065_v41  ;;  %v18145_v41 = vld [vmem:[#allocation2 + $0x160c] ss:$112 sps:$4 sm:$0xff]  }
 0x2db   : > { %9618 = vmatprep.subr.bf16.mxu1 %v18073_v45  ;;  %9482 = vmatpush1.bf16.msra.mxu0 %v18074_v48  ;;  %v18146_v45 = vld [vmem:[#allocation2 + $0x1de0] ss:$112 sps:$4 sm:$0xff]   ;;  %v18154_v48 = vld [vmem:[#allocation2 + $0x1ec4] ss:$112 sps:$4 sm:$0xff]  }
 0x2dc   : > { %9483 = vmatprep.subr.bf16.mxu0 %v18082_v50  ;;  %v18149_v50 = vld [vmem:[#allocation2 + $0x16e8] ss:$112 sps:$4 sm:$0xff]  }
 0x2de   : > { %9619 = vmatpush1.bf16.msra.mxu1 %v18071_v47  ;;  %v18151_v47 = vld [vmem:[#allocation2 + $0x16ec] ss:$112 sps:$4 sm:$0xff]  }
 0x2df   : > { %9620 = vmatprep.subr.bf16.mxu1 %v18079_v49  ;;  %9484 = vmatpush1.bf16.msra.mxu0 %v18080_v53  ;;  %v18152_v49 = vld [vmem:[#allocation2 + $0x1ec0] ss:$112 sps:$4 sm:$0xff]   ;;  %v18160_v53 = vld [vmem:[#allocation2 + $0x1fa4] ss:$112 sps:$4 sm:$0xff]  }
 0x2e0   : > { %9485 = vmatprep.subr.bf16.mxu0 %v18088_v56  ;;  %v18155_v56 = vld [vmem:[#allocation2 + $0x17c8] ss:$112 sps:$4 sm:$0xff]  }
 0x2e2   : > { %9621 = vmatpush1.bf16.msra.mxu1 %v18077_v52  ;;  %v18157_v52 = vld [vmem:[#allocation2 + $0x17cc] ss:$112 sps:$4 sm:$0xff]  }
 0x2e3   : > { %9622 = vmatprep.subr.bf16.mxu1 %v18085_v55  ;;  %9486 = vmatpush1.bf16.msra.mxu0 %v18086_v61  ;;  %v18158_v55 = vld [vmem:[#allocation2 + $0x1fa0] ss:$112 sps:$4 sm:$0xff]   ;;  %v18166_v61 = vld [vmem:[#allocation2 + $0x2084] ss:$112 sps:$4 sm:$0xff]  }
 0x2e4   : > { %9487 = vmatprep.subr.bf16.mxu0 %v18094_v63  ;;  %v18161_v63 = vld [vmem:[#allocation2 + $0x18a8] ss:$112 sps:$4 sm:$0xff]  }
 0x2e6   : > { %9623 = vmatpush1.bf16.msra.mxu1 %v18083_v59  ;;  %v18163_v59 = vld [vmem:[#allocation2 + $0x18ac] ss:$112 sps:$4 sm:$0xff]  }
 0x2e7   : > { %9633 = vmatprep.subr.bf16.mxu1 %v18091_v62  ;;  %9488 = vmatpush1.bf16.msra.mxu0 %v18092_v2  ;;  %v18164_v62 = vld [vmem:[#allocation2 + $0x2080] ss:$112 sps:$4 sm:$0xff]   ;;  %v18172_v2 = vld [vmem:[#allocation2 + $0x2164] ss:$112 sps:$4 sm:$0xff]  }
 0x2e8   : > { %9489 = vmatprep.subr.bf16.mxu0 %v18100_v4  ;;  %v18167_v4 = vld [vmem:[#allocation2 + $0x1988] ss:$112 sps:$4 sm:$0xff]  }
 0x2e9   : > { %9625 = vmatmul.mubr.bf16.vlgmr.msra.gmra.mrb[16].mxu1 %v20164_v9 }
 0x2ea   : > { %9634 = vmatpush1.bf16.msra.mxu1 %v18089_v1  ;;  %9665 = vmatprep.mubr.bf16.mxu1 %v20169_v36  ;;  %v18169_v1 = vld [vmem:[#allocation2 + $0x198c] ss:$112 sps:$4 sm:$0xff]  }
 0x2eb   : > { %9635 = vmatprep.subr.bf16.mxu1 %v18097_v3  ;;  %9490 = vmatpush1.bf16.msra.mxu0 %v18098_v6  ;;  %v18170_v3 = vld [vmem:[#allocation2 + $0x2160] ss:$112 sps:$4 sm:$0xff]   ;;  %v18178_v6 = vld [vmem:[#allocation2 + $0x2244] ss:$112 sps:$4 sm:$0xff]  }
 0x2ec   : > { %9491 = vmatprep.subr.bf16.mxu0 %v18106_v8  ;;  %v18173_v8 = vld [vmem:[#allocation2 + $0x1a68] ss:$112 sps:$4 sm:$0xff]  }
 0x2ee   : > { %9636 = vmatpush1.bf16.msra.mxu1 %v18095_v5  ;;  %v18175_v5 = vld [vmem:[#allocation2 + $0x1a6c] ss:$112 sps:$4 sm:$0xff]  }
 0x2ef   : > { %9637 = vmatprep.subr.bf16.mxu1 %v18103_v7  ;;  %9492 = vmatpush1.bf16.msra.mxu0 %v18104_v12  ;;  %v18176_v7 = vld [vmem:[#allocation2 + $0x2240] ss:$112 sps:$4 sm:$0xff]   ;;  %v18184_v12 = vld [vmem:[#allocation2 + $0x2324] ss:$112 sps:$4 sm:$0xff]  }
 0x2f0   : > { %9493 = vmatprep.subr.bf16.mxu0 %v18112_v14  ;;  %v18179_v14 = vld [vmem:[#allocation2 + $0x1b48] ss:$112 sps:$4 sm:$0xff]  }
 0x2f2   : > { %9638 = vmatpush1.bf16.msra.mxu1 %v18101_v11  ;;  %v18181_v11 = vld [vmem:[#allocation2 + $0x1b4c] ss:$112 sps:$4 sm:$0xff]  }
 0x2f3   : > { %9639 = vmatprep.subr.bf16.mxu1 %v18109_v13  ;;  %9494 = vmatpush1.bf16.msra.mxu0 %v18110_v15  ;;  %v18182_v13 = vld [vmem:[#allocation2 + $0x2320] ss:$112 sps:$4 sm:$0xff]   ;;  %v18187_v15 = vld [vmem:[#allocation2 + $0x1c2c] ss:$112 sps:$4 sm:$0xff]  }
 0x2f4   : > { %9495 = vmatprep.subr.bf16.mxu0 %v18118_v19  ;;  %v18185_v19 = vld [vmem:[#allocation2 + $0x1c28] ss:$112 sps:$4 sm:$0xff]  }
 0x2f6   : > { %9640 = vmatpush1.bf16.msra.mxu1 %v18107_v16  ;;  %v18190_v16 = vld [vmem:[#allocation2 + $0x2404] ss:$112 sps:$4 sm:$0xff]  }
 0x2f7   : > { %9641 = vmatprep.subr.bf16.mxu1 %v18115_v17  ;;  %9496 = vmatpush1.bf16.msra.mxu0 %v18116_v20  ;;  %v18188_v17 = vld [vmem:[#allocation2 + $0x2400] ss:$112 sps:$4 sm:$0xff]   ;;  %v18193_v20 = vld [vmem:[#allocation2 + $0x1d0c] ss:$112 sps:$4 sm:$0xff]  }
 0x2f8   : > { %9497 = vmatprep.subr.bf16.mxu0 %v18124_v23  ;;  %v18191_v23 = vld [vmem:[#allocation2 + $0x1d08] ss:$112 sps:$4 sm:$0xff]  }
 0x2fa   : > { %9642 = vmatpush1.bf16.msra.mxu1 %v18113_v21  ;;  %v18196_v21 = vld [vmem:[#allocation2 + $0x24e4] ss:$112 sps:$4 sm:$0xff]  }
 0x2fb   : > { %9643 = vmatprep.subr.bf16.mxu1 %v18121_v22  ;;  %9498 = vmatpush1.bf16.msra.mxu0 %v18122_v25  ;;  %v18194_v22 = vld [vmem:[#allocation2 + $0x24e0] ss:$112 sps:$4 sm:$0xff]   ;;  %v18199_v25 = vld [vmem:[#allocation2 + $0x1dec] ss:$112 sps:$4 sm:$0xff]  }
 0x2fc   : > { %9499 = vmatprep.subr.bf16.mxu0 %v18130_v31  ;;  %v18197_v31 = vld [vmem:[#allocation2 + $0x1de8] ss:$112 sps:$4 sm:$0xff]  }
 0x2fe   : > { %9644 = vmatpush1.bf16.msra.mxu1 %v18119_v27  ;;  %v18202_v27 = vld [vmem:[#allocation2 + $0x25c4] ss:$112 sps:$4 sm:$0xff]  }
 0x2ff   : > { %9645 = vmatprep.subr.bf16.mxu1 %v18127_v30  ;;  %9500 = vmatpush1.bf16.msra.mxu0 %v18128_v33  ;;  %v18200_v30 = vld [vmem:[#allocation2 + $0x25c0] ss:$112 sps:$4 sm:$0xff]   ;;  %v18208_v33 = vld [vmem:[#allocation2 + $0x26a4] ss:$112 sps:$4 sm:$0xff]  }
 0x300   : > { %9510 = vmatprep.subr.bf16.mxu0 %v18136_v34  ;;  %v18206_v34 = vld [vmem:[#allocation2 + $0x26a0] ss:$112 sps:$4 sm:$0xff]  }
 0x302   : > { %9646 = vmatpush1.bf16.msra.mxu1 %v18125_v32  ;;  %9502 = vmatmul.mubr.bf16.vlgmr.msra.gmra.mrb[8].mxu0 %v20174_v18  ;;  %v18205_v32 = vld [vmem:[#allocation2 + $0x1ecc] ss:$112 sps:$4 sm:$0xff]  }
 0x303   : > { %9647 = vmatprep.subr.bf16.mxu1 %v18133_v35  ;;  %9511 = vmatpush1.bf16.msra.mxu0 %v18134_v37  ;;  %v18203_v35 = vld [vmem:[#allocation2 + $0x1ec8] ss:$112 sps:$4 sm:$0xff]   ;;  %v18211_v37 = vld [vmem:[#allocation2 + $0x1fac] ss:$112 sps:$4 sm:$0xff]  }
 0x304   : > { %9542 = vmatprep.mubr.bf16.mxu0 %v20177_v24  ;;  %9512 = vmatprep.subr.bf16.mxu0 %v18142_v38  ;;  %v18209_v38 = vld [vmem:[#allocation2 + $0x1fa8] ss:$112 sps:$4 sm:$0xff]  }
 0x306   : > { %9648 = vmatpush1.bf16.msra.mxu1 %v18131_v54  ;;  %v18214_v54 = vld [vmem:[#allocation2 + $0x2784] ss:$112 sps:$4 sm:$0xff]  }
 0x307   : > { %9649 = vmatprep.subr.bf16.mxu1 %v18139_v57  ;;  %9513 = vmatpush1.bf16.msra.mxu0 %v18140_v39  ;;  %v18212_v57 = vld [vmem:[#allocation2 + $0x2780] ss:$112 sps:$4 sm:$0xff]   ;;  %v18217_v39 = vld [vmem:[#allocation2 + $0x208c] ss:$112 sps:$4 sm:$0xff]  }
 0x308   : > { %9514 = vmatprep.subr.bf16.mxu0 %v18148_v42  ;;  %v18215_v42 = vld [vmem:[#allocation2 + $0x2088] ss:$112 sps:$4 sm:$0xff]  }
 0x30a   : > { %9650 = vmatpush1.bf16.msra.mxu1 %v18137_v40  ;;  %v18220_v40 = vld [vmem:[#allocation2 + $0x2864] ss:$112 sps:$4 sm:$0xff]  }
 0x30b   : > { %9651 = vmatprep.subr.bf16.mxu1 %v18145_v41  ;;  %9515 = vmatpush1.bf16.msra.mxu0 %v18146_v45  ;;  %v18218_v41 = vld [vmem:[#allocation2 + $0x2860] ss:$112 sps:$4 sm:$0xff]   ;;  %v18223_v45 = vld [vmem:[#allocation2 + $0x216c] ss:$112 sps:$4 sm:$0xff]  }
 0x30c   : > { %9516 = vmatprep.subr.bf16.mxu0 %v18154_v48  ;;  %v18221_v48 = vld [vmem:[#allocation2 + $0x2168] ss:$112 sps:$4 sm:$0xff]  }
 0x30e   : > { %9652 = vmatpush1.bf16.msra.mxu1 %v18143_v46  ;;  %v18226_v46 = vld [vmem:[#allocation2 + $0x2944] ss:$112 sps:$4 sm:$0xff]  }
 0x30f   : > { %9653 = vmatprep.subr.bf16.mxu1 %v18151_v47  ;;  %9517 = vmatpush1.bf16.msra.mxu0 %v18152_v49  ;;  %v18224_v47 = vld [vmem:[#allocation2 + $0x2940] ss:$112 sps:$4 sm:$0xff]   ;;  %v18229_v49 = vld [vmem:[#allocation2 + $0x224c] ss:$112 sps:$4 sm:$0xff]  }
 0x310   : > { %9518 = vmatprep.subr.bf16.mxu0 %v18160_v53  ;;  %v18227_v53 = vld [vmem:[#allocation2 + $0x2248] ss:$112 sps:$4 sm:$0xff]  }
 0x312   : > { %9654 = vmatpush1.bf16.msra.mxu1 %v18149_v50  ;;  %v18232_v50 = vld [vmem:[#allocation2 + $0x2a24] ss:$112 sps:$4 sm:$0xff]  }
 0x313   : > { %9655 = vmatprep.subr.bf16.mxu1 %v18157_v52  ;;  %9519 = vmatpush1.bf16.msra.mxu0 %v18158_v55  ;;  %v18230_v52 = vld [vmem:[#allocation2 + $0x2a20] ss:$112 sps:$4 sm:$0xff]   ;;  %v18235_v55 = vld [vmem:[#allocation2 + $0x232c] ss:$112 sps:$4 sm:$0xff]  }
 0x314   : > { %9520 = vmatprep.subr.bf16.mxu0 %v18166_v61  ;;  %v18238_v61 = vld [vmem:[#allocation2 + $0x240c] ss:$112 sps:$4 sm:$0xff]  }
 0x316   : > { %9656 = vmatpush1.bf16.msra.mxu1 %v18155_v56  ;;  %v18244_v56 = vld [vmem:[#allocation2 + $0x34] ss:$112 sps:$4 sm:$0xff]  }
 0x317   : > { %9657 = vmatprep.subr.bf16.mxu1 %v18163_v59  ;;  %9521 = vmatpush1.bf16.msra.mxu0 %v18164_v62  ;;  %v18233_v59 = vld [vmem:[#allocation2 + $0x2328] ss:$112 sps:$4 sm:$0xff]  }
 0x318   : > { %9522 = vmatprep.subr.bf16.mxu0 %v18172_v2  ;;  %v18236_v62 = vld [vmem:[#allocation2 + $0x2408] ss:$112 sps:$4 sm:$0xff]  }
 0x319   : > { %v18239_v2 = vld [vmem:[#allocation2 + $0x24e8] ss:$112 sps:$4 sm:$0xff]  }
 0x31a   : > { %9658 = vmatpush1.bf16.msra.mxu1 %v18161_v63  ;;  %v18241_v63 = vld [vmem:[#allocation2 + $0x24ec] ss:$112 sps:$4 sm:$0xff]  }
 0x31b   : > { %9659 = vmatprep.subr.bf16.mxu1 %v18169_v1  ;;  %9523 = vmatpush1.bf16.msra.mxu0 %v18170_v3  ;;  %v18242_v1 = vld [vmem:[#allocation2 + $0x30] ss:$112 sps:$4 sm:$0xff]   ;;  %v18247_v3 = vld [vmem:[#allocation2 + $0x25cc] ss:$112 sps:$4 sm:$0xff]  }
 0x31c   : > { %9524 = vmatprep.subr.bf16.mxu0 %v18178_v6  ;;  %v18245_v6 = vld [vmem:[#allocation2 + $0x25c8] ss:$112 sps:$4 sm:$0xff]  }
 0x31e   : > { %9660 = vmatpush1.bf16.msra.mxu1 %v18167_v4  ;;  %v18250_v4 = vld [vmem:[#allocation2 + $0x114] ss:$112 sps:$4 sm:$0xff]  }
 0x31f   : > { %9661 = vmatprep.subr.bf16.mxu1 %v18175_v5  ;;  %9525 = vmatpush1.bf16.msra.mxu0 %v18176_v7  ;;  %v18248_v5 = vld [vmem:[#allocation2 + $0x110] ss:$112 sps:$4 sm:$0xff]   ;;  %v18253_v7 = vld [vmem:[#allocation2 + $0x26ac] ss:$112 sps:$4 sm:$0xff]  }
 0x320   : > { %9526 = vmatprep.subr.bf16.mxu0 %v18184_v12  ;;  %v18251_v12 = vld [vmem:[#allocation2 + $0x26a8] ss:$112 sps:$4 sm:$0xff]  }
 0x322   : > { %9662 = vmatpush1.bf16.msra.mxu1 %v18173_v8  ;;  %v18256_v8 = vld [vmem:[#allocation2 + $0x1f4] ss:$112 sps:$4 sm:$0xff]  }
 0x323   : > { %9663 = vmatprep.subr.bf16.mxu1 %v18181_v11  ;;  %9527 = vmatpush1.bf16.msra.mxu0 %v18182_v13  ;;  %v18254_v11 = vld [vmem:[#allocation2 + $0x1f0] ss:$112 sps:$4 sm:$0xff]   ;;  %v18259_v13 = vld [vmem:[#allocation2 + $0x278c] ss:$112 sps:$4 sm:$0xff]  }
 0x324   : > { %9528 = vmatprep.subr.bf16.mxu0 %v18190_v16 }
 0x326   : > { %9664 = vmatpush1.bf16.msra.mxu1 %v18179_v14  ;;  %v18262_v14 = vld [vmem:[#allocation2 + $0x2d4] ss:$112 sps:$4 sm:$0xff]  }
 0x327   : > { %9674 = vmatprep.subr.bf16.mxu1 %v18187_v15  ;;  %9529 = vmatpush1.bf16.msra.mxu0 %v18188_v17 }
 0x328   : > { %9530 = vmatprep.subr.bf16.mxu0 %v18196_v21  ;;  %v18260_v21 = vld [vmem:[#allocation2 + $0x2d0] ss:$112 sps:$4 sm:$0xff]  }
 0x329   : > { %9666 = vmatmul.mubr.bf16.vlgmr.msra.gmra.mrb[16].mxu1 %v20174_v18 }
 0x32a   : > { %9675 = vmatpush1.bf16.msra.mxu1 %v18185_v19  ;;  %9706 = vmatprep.mubr.bf16.mxu1 %v20177_v24 }
 0x32b   : > { %9676 = vmatprep.subr.bf16.mxu1 %v18193_v20  ;;  %9531 = vmatpush1.bf16.msra.mxu0 %v18194_v22 }
 0x32c   : > { %9532 = vmatprep.subr.bf16.mxu0 %v18202_v27  ;;  %v18265_v27 = vld [vmem:[#allocation2 + $0x286c] ss:$112 sps:$4 sm:$0xff]  }
 0x32e   : > { %9677 = vmatpush1.bf16.msra.mxu1 %v18191_v23  ;;  %v18257_v23 = vld [vmem:[#allocation2 + $0x2788] ss:$112 sps:$4 sm:$0xff]  }
 0x32f   : > { %9678 = vmatprep.subr.bf16.mxu1 %v18199_v25  ;;  %9533 = vmatpush1.bf16.msra.mxu0 %v18200_v30  ;;  %v18268_v25 = vld [vmem:[#allocation2 + $0x3b4] ss:$112 sps:$4 sm:$0xff]   ;;  %v18266_v30 = vld [vmem:[#allocation2 + $0x3b0] ss:$112 sps:$4 sm:$0xff]  }
 0x330   : > { %9534 = vmatprep.subr.bf16.mxu0 %v18208_v33  ;;  %v18269_v33 = vld [vmem:[#allocation2 + $0x2948] ss:$112 sps:$4 sm:$0xff]  }
 0x332   : > { %9679 = vmatpush1.bf16.msra.mxu1 %v18197_v31  ;;  %v18263_v31 = vld [vmem:[#allocation2 + $0x2868] ss:$112 sps:$4 sm:$0xff]  }
 0x333   : > { %9680 = vmatprep.subr.bf16.mxu1 %v18205_v32  ;;  %9535 = vmatpush1.bf16.msra.mxu0 %v18206_v34  ;;  %v18274_v32 = vld [vmem:[#allocation2 + $0x494] ss:$112 sps:$4 sm:$0xff]  }
 0x334   : > { %9536 = vmatprep.subr.bf16.mxu0 %v18214_v54  ;;  %v18277_v34 = vld [vmem:[#allocation2 + $0x574] ss:$112 sps:$4 sm:$0xff]  }
 0x335   : > { %v18280_v54 = vld [vmem:[#allocation2 + $0x654] ss:$112 sps:$4 sm:$0xff]  }
 0x336   : > { %9681 = vmatpush1.bf16.msra.mxu1 %v18203_v35  ;;  %v18283_v35 = vld [vmem:[#allocation2 + $0x2a2c] ss:$112 sps:$4 sm:$0xff]  }
 0x337   : > { %9682 = vmatprep.subr.bf16.mxu1 %v18211_v37  ;;  %9537 = vmatpush1.bf16.msra.mxu0 %v18212_v57  ;;  %v18275_v37 = vld [vmem:[#allocation2 + $0x570] ss:$112 sps:$4 sm:$0xff]   ;;  %v18281_v57 = vld [vmem:[#allocation2 + $0x2a28] ss:$112 sps:$4 sm:$0xff]  }
 0x338   : > { %9538 = vmatprep.subr.bf16.mxu0 %v18220_v40  ;;  %v18286_v40 = vld [vmem:[#allocation2 + $0x734] ss:$112 sps:$4 sm:$0xff]  }
 0x33a   : > { %9683 = vmatpush1.bf16.msra.mxu1 %v18209_v38  ;;  %v18289_v38 = vld [vmem:[#allocation2 + $0x3c] ss:$112 sps:$4 sm:$0xff]  }
 0x33b   : > { %9684 = vmatprep.subr.bf16.mxu1 %v18217_v39  ;;  %9539 = vmatpush1.bf16.msra.mxu0 %v18218_v41  ;;  %v18278_v39 = vld [vmem:[#allocation2 + $0x650] ss:$112 sps:$4 sm:$0xff]  }
 0x33c   : > { %9540 = vmatprep.subr.bf16.mxu0 %v18226_v46  ;;  %v18284_v41 = vld [vmem:[#allocation2 + $0x730] ss:$112 sps:$4 sm:$0xff]   ;;  %v18287_v46 = vld [vmem:[#allocation2 + $0x38] ss:$112 sps:$4 sm:$0xff]  }
 0x33e   : > { %9685 = vmatpush1.bf16.msra.mxu1 %v18215_v42  ;;  %v18292_v42 = vld [vmem:[#allocation2 + $0x814] ss:$112 sps:$4 sm:$0xff]  }
 0x33f   : > { %9686 = vmatprep.subr.bf16.mxu1 %v18223_v45  ;;  %9541 = vmatpush1.bf16.msra.mxu0 %v18224_v47  ;;  %v18290_v45 = vld [vmem:[#allocation2 + $0x810] ss:$112 sps:$4 sm:$0xff]   ;;  %v18295_v47 = vld [vmem:[#allocation2 + $0x11c] ss:$112 sps:$4 sm:$0xff]  }
 0x340   : > { %9551 = vmatprep.subr.bf16.mxu0 %v18232_v50  ;;  %v18293_v50 = vld [vmem:[#allocation2 + $0x118] ss:$112 sps:$4 sm:$0xff]  }
 0x342   : > { %9687 = vmatpush1.bf16.msra.mxu1 %v18221_v48  ;;  %9543 = vmatmul.mubr.bf16.vlgmr.msra.gmra.mrb[8].mxu0 %v20184_v29  ;;  %v18298_v48 = vld [vmem:[#allocation2 + $0x8f4] ss:$112 sps:$4 sm:$0xff]  }
 0x343   : > { %9688 = vmatprep.subr.bf16.mxu1 %v18229_v49  ;;  %9552 = vmatpush1.bf16.msra.mxu0 %v18230_v52  ;;  %v18296_v49 = vld [vmem:[#allocation2 + $0x8f0] ss:$112 sps:$4 sm:$0xff]   ;;  %v18301_v52 = vld [vmem:[#allocation2 + $0x1fc] ss:$112 sps:$4 sm:$0xff]  }
 0x344   : > { %9583 = vmatprep.mubr.bf16.mxu0 %v19797_v0  ;;  %9756 = vmatprep.subr.bf16.mxu0 %v18244_v56  ;;  %v18299_v56 = vld [vmem:[#allocation2 + $0x1f8] ss:$112 sps:$4 sm:$0xff]  }
 0x346   : > { %9689 = vmatpush1.bf16.msra.mxu1 %v18227_v53  ;;  %v18304_v53 = vld [vmem:[#allocation2 + $0x9d4] ss:$112 sps:$4 sm:$0xff]  }
 0x347   : > { %9690 = vmatprep.subr.bf16.mxu1 %v18235_v55  ;;  %v18302_v55 = vld [vmem:[#allocation2 + $0x9d0] ss:$112 sps:$4 sm:$0xff]  }
 0x34a   : > { %9691 = vmatpush1.bf16.msra.mxu1 %v18233_v59  ;;  %v18307_v59 = vld [vmem:[#allocation2 + $0x2dc] ss:$112 sps:$4 sm:$0xff]  }
 0x34b   : > { %9692 = vmatprep.subr.bf16.mxu1 %v18238_v61  ;;  %v18310_v61 = vld [vmem:[#allocation2 + $0xab4] ss:$112 sps:$4 sm:$0xff]  }
 0x34e   : > { %9693 = vmatpush1.bf16.msra.mxu1 %v18236_v62  ;;  %16472 = vmatmul.mubr.msk.bf16.vlgmr.msra.gmra.mrb[8].mxu0 %vm8768_vm0, %v20154_v10 }
 0x34f   : > { %9694 = vmatprep.subr.bf16.mxu1 %v18241_v63  ;;  %9757 = vmatpush1.bf16.msra.mxu0 %v18242_v1  ;;  %v18308_v1 = vld [vmem:[#allocation2 + $0xab0] ss:$112 sps:$4 sm:$0xff]  }
 0x350   : > { %9788 = vmatprep.mubr.bf16.mxu0 %v20159_v51  ;;  %9758 = vmatprep.subr.bf16.mxu0 %v18250_v4  ;;  %v18305_v4 = vld [vmem:[#allocation2 + $0x2d8] ss:$112 sps:$4 sm:$0xff]  }
 0x352   : > { %9695 = vmatpush1.bf16.msra.mxu1 %v18239_v2 }
 0x353   : > { %9696 = vmatprep.subr.bf16.mxu1 %v18247_v3  ;;  %9759 = vmatpush1.bf16.msra.mxu0 %v18248_v5  ;;  %v18316_v5 = vld [vmem:[#allocation2 + $0xb94] ss:$112 sps:$4 sm:$0xff]  }
 0x354   : > { %9760 = vmatprep.subr.bf16.mxu0 %v18256_v8  ;;  %v18314_v8 = vld [vmem:[#allocation2 + $0xb90] ss:$112 sps:$4 sm:$0xff]  }
 0x355   : > { %v9216_v15 = vpop.f32.mrb[4].mxu0 }
 0x356   : > { %9697 = vmatpush1.bf16.msra.mxu1 %v18245_v6  ;;  %v20243_v16 = vadd.f32 %v20225_v58, %v9216_v15  ;;  %v9218_v17 = vpop.f32.mrb[5].mxu0  ;;  %v18271_v58 = vld [vmem:[#allocation2 + $0x294c] ss:$112 sps:$4 sm:$0xff]   ;;  %v18317_v15 = vld [vmem:[#allocation2 + $0x498] ss:$112 sps:$4 sm:$0xff]  }
 0x357   : > { %9698 = vmatprep.subr.bf16.mxu1 %v18253_v7  ;;  %v20246_v19 = vadd.f32 %v20227_v60, %v9218_v17  ;;  %9761 = vmatpush1.bf16.msra.mxu0 %v18254_v11  ;;  %v9220_v20 = vpop.f32.mrb[6].mxu0  ;;  %v18272_v60 = vld [vmem:[#allocation2 + $0x490] ss:$112 sps:$4 sm:$0xff]   ;;  %v18313_v7 = vld [vmem:[#allocation2 + $0x3bc] ss:$112 sps:$4 sm:$0xff]  }
 0x358   : > { %v9221_v22 = vpop.f32.mrb[7].mxu0  ;;  %9762 = vmatprep.subr.bf16.mxu0 %v18262_v14  ;;  %v18311_v11 = vld [vmem:[#allocation2 + $0x3b8] ss:$112 sps:$4 sm:$0xff]   ;;  %v18320_v14 = vld [vmem:[#allocation2 + $0xc70] ss:$112 sps:$4 sm:$0xff]  }
 0x359   : > { %v18325_v17 = vld [vmem:[#allocation2 + $0x57c] ss:$112 sps:$4 sm:$0xff]   ;;  %v18328_v20 = vld [vmem:[#allocation2 + $0xd54] ss:$112 sps:$4 sm:$0xff]   ;;  %v18323_v22 = vld [vmem:[#allocation2 + $0x578] ss:$112 sps:$4 sm:$0xff]  }
 0x35a   : > { %9699 = vmatpush1.bf16.msra.mxu1 %v18251_v12  ;;  %v18319_v12 = vld [vmem:[#allocation2 + $0x49c] ss:$112 sps:$4 sm:$0xff]  }
 0x35b   : > { %9700 = vmatprep.subr.bf16.mxu1 %v18259_v13  ;;  %9763 = vmatpush1.bf16.msra.mxu0 %v18260_v21  ;;  %v18322_v13 = vld [vmem:[#allocation2 + $0xc74] ss:$112 sps:$4 sm:$0xff]   ;;  %v18326_v21 = vld [vmem:[#allocation2 + $0xd50] ss:$112 sps:$4 sm:$0xff]  }
 0x35c   : > { %9764 = vmatprep.subr.bf16.mxu0 %v18268_v25  ;;  %v18334_v25 = vld [vmem:[#allocation2 + $0xe34] ss:$112 sps:$4 sm:$0xff]  }
 0x35e   : > { %9701 = vmatpush1.bf16.msra.mxu1 %v18257_v23  ;;  %v18331_v23 = vld [vmem:[#allocation2 + $0x65c] ss:$112 sps:$4 sm:$0xff]  }
 0x35f   : > { %9702 = vmatprep.subr.bf16.mxu1 %v18265_v27  ;;  %9765 = vmatpush1.bf16.msra.mxu0 %v18266_v30  ;;  %v18332_v27 = vld [vmem:[#allocation2 + $0xe30] ss:$112 sps:$4 sm:$0xff]   ;;  %v18329_v30 = vld [vmem:[#allocation2 + $0x658] ss:$112 sps:$4 sm:$0xff]  }
 0x360   : > { %9766 = vmatprep.subr.bf16.mxu0 %v18274_v32  ;;  %v18338_v32 = vld [vmem:[#allocation2 + $0xf10] ss:$112 sps:$4 sm:$0xff]  }
 0x362   : > { %9703 = vmatpush1.bf16.msra.mxu1 %v18263_v31  ;;  %v18337_v31 = vld [vmem:[#allocation2 + $0x73c] ss:$112 sps:$4 sm:$0xff]  }
 0x363   : > { %9704 = vmatprep.subr.bf16.mxu1 %v18271_v58  ;;  %9767 = vmatpush1.bf16.msra.mxu0 %v18272_v60  ;;  %v18340_v58 = vld [vmem:[#allocation2 + $0xf14] ss:$112 sps:$4 sm:$0xff]   ;;  %v18335_v60 = vld [vmem:[#allocation2 + $0x738] ss:$112 sps:$4 sm:$0xff]  }
 0x364   : > { %9768 = vmatprep.subr.bf16.mxu0 %v18277_v34  ;;  %v18346_v34 = vld [vmem:[#allocation2 + $0xff4] ss:$112 sps:$4 sm:$0xff]  }
 0x366   : > { %9705 = vmatpush1.bf16.msra.mxu1 %v18269_v33  ;;  %v18343_v33 = vld [vmem:[#allocation2 + $0x81c] ss:$112 sps:$4 sm:$0xff]  }
 0x367   : > { %9715 = vmatprep.subr.bf16.mxu1 %v18283_v35  ;;  %9769 = vmatpush1.bf16.msra.mxu0 %v18275_v37  ;;  %v18344_v35 = vld [vmem:[#allocation2 + $0xff0] ss:$112 sps:$4 sm:$0xff]   ;;  %v18341_v37 = vld [vmem:[#allocation2 + $0x818] ss:$112 sps:$4 sm:$0xff]  }
 0x368   : > { %9770 = vmatprep.subr.bf16.mxu0 %v18280_v54  ;;  %v18349_v54 = vld [vmem:[#allocation2 + $0x8fc] ss:$112 sps:$4 sm:$0xff]  }
 0x369   : > { %9707 = vmatmul.mubr.bf16.vlgmr.msra.gmra.mrb[16].mxu1 %v20184_v29 }
 0x36a   : > { %9716 = vmatpush1.bf16.msra.mxu1 %v18281_v57  ;;  %9747 = vmatprep.mubr.bf16.mxu1 %v19797_v0  ;;  %v18352_v57 = vld [vmem:[#allocation2 + $0x10d4] ss:$112 sps:$4 sm:$0xff]  }
 0x36b   : > { %9920 = vmatprep.subr.bf16.mxu1 %v18289_v38  ;;  %9771 = vmatpush1.bf16.msra.mxu0 %v18278_v39  ;;  %v18350_v38 = vld [vmem:[#allocation2 + $0x10d0] ss:$112 sps:$4 sm:$0xff]   ;;  %v18347_v39 = vld [vmem:[#allocation2 + $0x8f8] ss:$112 sps:$4 sm:$0xff]  }
 0x36c   : > { %9772 = vmatprep.subr.bf16.mxu0 %v18286_v40  ;;  %v18355_v40 = vld [vmem:[#allocation2 + $0x9dc] ss:$112 sps:$4 sm:$0xff]  }
 0x36f   : > { %9773 = vmatpush1.bf16.msra.mxu0 %v18284_v41  ;;  %v18358_v41 = vld [vmem:[#allocation2 + $0x11b4] ss:$112 sps:$4 sm:$0xff]  }
 0x370   : > { %9774 = vmatprep.subr.bf16.mxu0 %v18292_v42  ;;  %v18353_v42 = vld [vmem:[#allocation2 + $0x9d8] ss:$112 sps:$4 sm:$0xff]  }
 0x373   : > { %9775 = vmatpush1.bf16.msra.mxu0 %v18290_v45  ;;  %v18356_v45 = vld [vmem:[#allocation2 + $0x11b0] ss:$112 sps:$4 sm:$0xff]  }
 0x374   : > { %9776 = vmatprep.subr.bf16.mxu0 %v18298_v48  ;;  %v18359_v48 = vld [vmem:[#allocation2 + $0xab8] ss:$112 sps:$4 sm:$0xff]  }
 0x375   : > { %16473 = vmatmul.mubr.msk.bf16.vlgmr.msra.gmra.mrb[16].mxu1 %vm8768_vm0, %v20154_v10 }
 0x376   : > { %9921 = vmatpush1.bf16.msra.mxu1 %v18287_v46  ;;  %9952 = vmatprep.mubr.bf16.mxu1 %v20159_v51  ;;  %v18361_v46 = vld [vmem:[#allocation2 + $0xabc] ss:$112 sps:$4 sm:$0xff]  }
 0x377   : > { %9922 = vmatprep.subr.bf16.mxu1 %v18295_v47  ;;  %9777 = vmatpush1.bf16.msra.mxu0 %v18296_v49  ;;  %v18364_v47 = vld [vmem:[#allocation2 + $0x1294] ss:$112 sps:$4 sm:$0xff]   ;;  %v18362_v49 = vld [vmem:[#allocation2 + $0x1290] ss:$112 sps:$4 sm:$0xff]  }
 0x378   : > { %9778 = vmatprep.subr.bf16.mxu0 %v18304_v53  ;;  %v18365_v53 = vld [vmem:[#allocation2 + $0xb98] ss:$112 sps:$4 sm:$0xff]  }
 0x37a   : > { %9923 = vmatpush1.bf16.msra.mxu1 %v18293_v50  ;;  %v18367_v50 = vld [vmem:[#allocation2 + $0xb9c] ss:$112 sps:$4 sm:$0xff]  }
 0x37b   : > { %9924 = vmatprep.subr.bf16.mxu1 %v18301_v52  ;;  %9779 = vmatpush1.bf16.msra.mxu0 %v18302_v55  ;;  %v18370_v52 = vld [vmem:[#allocation2 + $0x1374] ss:$112 sps:$4 sm:$0xff]   ;;  %v18368_v55 = vld [vmem:[#allocation2 + $0x1370] ss:$112 sps:$4 sm:$0xff]  }
 0x37c   : > { %v20253_v62 = vpop.f32.mrb[12].mxu1  ;;  %9780 = vmatprep.subr.bf16.mxu0 %v18310_v61  ;;  %v18371_v61 = vld [vmem:[#allocation2 + $0xc78] ss:$112 sps:$4 sm:$0xff]  }
 0x37d   : > { %v20255_v63 = vpop.f32.mrb[13].mxu1 }
 0x37e   : > { %9925 = vmatpush1.bf16.msra.mxu1 %v18299_v56  ;;  %v11068_v2 = vmax.f32 %v20211_v26, %v20255_v63  ;;  %v9425_v3 = vpop.f32.mrb[14].mxu1  ;;  %v18373_v56 = vld [vmem:[#allocation2 + $0xc7c] ss:$112 sps:$4 sm:$0xff]   ;;  %v19430_v26 = vld [vmem:[#allocation2 + $0x2988] ss:$112 sps:$4 sm:$0xff]  }
 0x37f   : > { %v9426_v6 = vpop.f32.mrb[15].mxu1  ;;  %9926 = vmatprep.subr.bf16.mxu1 %v18307_v59  ;;  %9781 = vmatpush1.bf16.msra.mxu0 %v18308_v1  ;;  %v18376_v59 = vld [vmem:[#allocation2 + $0x1454] ss:$112 sps:$4 sm:$0xff]   ;;  %v18374_v1 = vld [vmem:[#allocation2 + $0x1450] ss:$112 sps:$4 sm:$0xff]  }
 0x380   : > { %9782 = vmatprep.subr.bf16.mxu0 %v18316_v5  ;;  %v18379_v3 = vld [vmem:[#allocation2 + $0xd5c] ss:$112 sps:$4 sm:$0xff]   ;;  %v18377_v5 = vld [vmem:[#allocation2 + $0xd58] ss:$112 sps:$4 sm:$0xff]   ;;  %v18380_v6 = vld [vmem:[#allocation2 + $0x1530] ss:$112 sps:$4 sm:$0xff]  }
 0x382   : > { %9927 = vmatpush1.bf16.msra.mxu1 %v18305_v4  ;;  %v18382_v4 = vld [vmem:[#allocation2 + $0x1534] ss:$112 sps:$4 sm:$0xff]  }
 0x383   : > { %9928 = vmatprep.subr.bf16.mxu1 %v18313_v7  ;;  %9783 = vmatpush1.bf16.msra.mxu0 %v18314_v8  ;;  %v18385_v7 = vld [vmem:[#allocation2 + $0xe3c] ss:$112 sps:$4 sm:$0xff]   ;;  %v18388_v8 = vld [vmem:[#allocation2 + $0x1614] ss:$112 sps:$4 sm:$0xff]  }
 0x384   : > { %9784 = vmatprep.subr.bf16.mxu0 %v18322_v13  ;;  %v18391_v13 = vld [vmem:[#allocation2 + $0xf1c] ss:$112 sps:$4 sm:$0xff]  }
 0x386   : > { %9929 = vmatpush1.bf16.msra.mxu1 %v18311_v11  ;;  %v18383_v11 = vld [vmem:[#allocation2 + $0xe38] ss:$112 sps:$4 sm:$0xff]  }
 0x387   : > { %9930 = vmatprep.subr.bf16.mxu1 %v18319_v12  ;;  %9785 = vmatpush1.bf16.msra.mxu0 %v18320_v14  ;;  %v18386_v12 = vld [vmem:[#allocation2 + $0x1610] ss:$112 sps:$4 sm:$0xff]   ;;  %v18394_v14 = vld [vmem:[#allocation2 + $0x16f4] ss:$112 sps:$4 sm:$0xff]  }
 0x388   : > { %9786 = vmatprep.subr.bf16.mxu0 %v18328_v20  ;;  %v18397_v20 = vld [vmem:[#allocation2 + $0xffc] ss:$112 sps:$4 sm:$0xff]  }
 0x38a   : > { %9931 = vmatpush1.bf16.msra.mxu1 %v18317_v15  ;;  %v18389_v15 = vld [vmem:[#allocation2 + $0xf18] ss:$112 sps:$4 sm:$0xff]  }
 0x38b   : > { %9932 = vmatprep.subr.bf16.mxu1 %v18325_v17  ;;  %9787 = vmatpush1.bf16.msra.mxu0 %v18326_v21  ;;  %v18392_v17 = vld [vmem:[#allocation2 + $0x16f0] ss:$112 sps:$4 sm:$0xff]   ;;  %v18400_v21 = vld [vmem:[#allocation2 + $0x17d4] ss:$112 sps:$4 sm:$0xff]  }
 0x38c   : > { %9797 = vmatprep.subr.bf16.mxu0 %v18334_v25  ;;  %v18403_v25 = vld [vmem:[#allocation2 + $0x10dc] ss:$112 sps:$4 sm:$0xff]  }
 0x38e   : > { %9933 = vmatpush1.bf16.msra.mxu1 %v18323_v22  ;;  %9789 = vmatmul.mubr.bf16.vlgmr.msra.gmra.mrb[12].mxu0 %v20164_v9  ;;  %v18395_v22 = vld [vmem:[#allocation2 + $0xff8] ss:$112 sps:$4 sm:$0xff]  }
 0x38f   : > { %9934 = vmatprep.subr.bf16.mxu1 %v18331_v23  ;;  %9798 = vmatpush1.bf16.msra.mxu0 %v18332_v27  ;;  %v18398_v23 = vld [vmem:[#allocation2 + $0x17d0] ss:$112 sps:$4 sm:$0xff]   ;;  %v18406_v27 = vld [vmem:[#allocation2 + $0x18b4] ss:$112 sps:$4 sm:$0xff]  }
 0x390   : > { %9829 = vmatprep.mubr.bf16.mxu0 %v20169_v36  ;;  %9799 = vmatprep.subr.bf16.mxu0 %v18340_v58  ;;  %v18409_v58 = vld [vmem:[#allocation2 + $0x11bc] ss:$112 sps:$4 sm:$0xff]  }
 0x392   : > { %9935 = vmatpush1.bf16.msra.mxu1 %v18329_v30  ;;  %v18404_v30 = vld [vmem:[#allocation2 + $0x18b0] ss:$112 sps:$4 sm:$0xff]  }
 0x393   : > { %9936 = vmatprep.subr.bf16.mxu1 %v18337_v31  ;;  %9800 = vmatpush1.bf16.msra.mxu0 %v18338_v32  ;;  %v18401_v31 = vld [vmem:[#allocation2 + $0x10d8] ss:$112 sps:$4 sm:$0xff]   ;;  %v18412_v32 = vld [vmem:[#allocation2 + $0x1994] ss:$112 sps:$4 sm:$0xff]  }
 0x394   : > { %9801 = vmatprep.subr.bf16.mxu0 %v18346_v34  ;;  %v18415_v34 = vld [vmem:[#allocation2 + $0x129c] ss:$112 sps:$4 sm:$0xff]  }
 0x396   : > { %9937 = vmatpush1.bf16.msra.mxu1 %v18335_v60  ;;  %v18410_v60 = vld [vmem:[#allocation2 + $0x1990] ss:$112 sps:$4 sm:$0xff]  }
 0x397   : > { %9938 = vmatprep.subr.bf16.mxu1 %v18343_v33  ;;  %9802 = vmatpush1.bf16.msra.mxu0 %v18344_v35  ;;  %v18407_v33 = vld [vmem:[#allocation2 + $0x11b8] ss:$112 sps:$4 sm:$0xff]   ;;  %v18418_v35 = vld [vmem:[#allocation2 + $0x1a74] ss:$112 sps:$4 sm:$0xff]  }
 0x398   : > { %9803 = vmatprep.subr.bf16.mxu0 %v18352_v57  ;;  %v18421_v57 = vld [vmem:[#allocation2 + $0x137c] ss:$112 sps:$4 sm:$0xff]  }
 0x39a   : > { %9939 = vmatpush1.bf16.msra.mxu1 %v18341_v37  ;;  %v18416_v37 = vld [vmem:[#allocation2 + $0x1a70] ss:$112 sps:$4 sm:$0xff]  }
 0x39b   : > { %9940 = vmatprep.subr.bf16.mxu1 %v18349_v54  ;;  %9804 = vmatpush1.bf16.msra.mxu0 %v18350_v38  ;;  %v18413_v54 = vld [vmem:[#allocation2 + $0x1298] ss:$112 sps:$4 sm:$0xff]   ;;  %v18424_v38 = vld [vmem:[#allocation2 + $0x1b54] ss:$112 sps:$4 sm:$0xff]  }
 0x39c   : > { %9805 = vmatprep.subr.bf16.mxu0 %v18358_v41  ;;  %v18430_v41 = vld [vmem:[#allocation2 + $0x1c34] ss:$112 sps:$4 sm:$0xff]  }
 0x39e   : > { %9941 = vmatpush1.bf16.msra.mxu1 %v18347_v39  ;;  %v18419_v39 = vld [vmem:[#allocation2 + $0x1378] ss:$112 sps:$4 sm:$0xff]  }
 0x39f   : > { %9942 = vmatprep.subr.bf16.mxu1 %v18355_v40  ;;  %9806 = vmatpush1.bf16.msra.mxu0 %v18356_v45  ;;  %v18422_v40 = vld [vmem:[#allocation2 + $0x1b50] ss:$112 sps:$4 sm:$0xff]  }
 0x3a0   : > { %9807 = vmatprep.subr.bf16.mxu0 %v18364_v47  ;;  %v18428_v45 = vld [vmem:[#allocation2 + $0x1c30] ss:$112 sps:$4 sm:$0xff]   ;;  %v18433_v47 = vld [vmem:[#allocation2 + $0x153c] ss:$112 sps:$4 sm:$0xff]  }
 0x3a2   : > { %9943 = vmatpush1.bf16.msra.mxu1 %v18353_v42  ;;  %v18427_v42 = vld [vmem:[#allocation2 + $0x145c] ss:$112 sps:$4 sm:$0xff]  }
 0x3a3   : > { %9944 = vmatprep.subr.bf16.mxu1 %v18361_v46  ;;  %9808 = vmatpush1.bf16.msra.mxu0 %v18362_v49  ;;  %v18425_v46 = vld [vmem:[#allocation2 + $0x1458] ss:$112 sps:$4 sm:$0xff]   ;;  %v18434_v49 = vld [vmem:[#allocation2 + $0x1d10] ss:$112 sps:$4 sm:$0xff]  }
 0x3a4   : > { %9809 = vmatprep.subr.bf16.mxu0 %v18370_v52  ;;  %v18439_v52 = vld [vmem:[#allocation2 + $0x161c] ss:$112 sps:$4 sm:$0xff]  }
 0x3a6   : > { %9945 = vmatpush1.bf16.msra.mxu1 %v18359_v48  ;;  %v18436_v48 = vld [vmem:[#allocation2 + $0x1d14] ss:$112 sps:$4 sm:$0xff]  }
 0x3a7   : > { %9946 = vmatprep.subr.bf16.mxu1 %v18367_v50  ;;  %9810 = vmatpush1.bf16.msra.mxu0 %v18368_v55  ;;  %v18431_v50 = vld [vmem:[#allocation2 + $0x1538] ss:$112 sps:$4 sm:$0xff]   ;;  %v18440_v55 = vld [vmem:[#allocation2 + $0x1df0] ss:$112 sps:$4 sm:$0xff]  }
 0x3a8   : > { %9811 = vmatprep.subr.bf16.mxu0 %v18376_v59  ;;  %v18445_v59 = vld [vmem:[#allocation2 + $0x16fc] ss:$112 sps:$4 sm:$0xff]  }
 0x3aa   : > { %9947 = vmatpush1.bf16.msra.mxu1 %v18365_v53  ;;  %v18442_v53 = vld [vmem:[#allocation2 + $0x1df4] ss:$112 sps:$4 sm:$0xff]  }
 0x3ab   : > { %9948 = vmatprep.subr.bf16.mxu1 %v18373_v56  ;;  %9812 = vmatpush1.bf16.msra.mxu0 %v18374_v1  ;;  %v18437_v56 = vld [vmem:[#allocation2 + $0x1618] ss:$112 sps:$4 sm:$0xff]   ;;  %v18446_v1 = vld [vmem:[#allocation2 + $0x1ed0] ss:$112 sps:$4 sm:$0xff]  }
 0x3ac   : > { %9813 = vmatprep.subr.bf16.mxu0 %v18382_v4  ;;  %v18451_v4 = vld [vmem:[#allocation2 + $0x17dc] ss:$112 sps:$4 sm:$0xff]  }
 0x3ae   : > { %9949 = vmatpush1.bf16.msra.mxu1 %v18371_v61  ;;  %v18448_v61 = vld [vmem:[#allocation2 + $0x1ed4] ss:$112 sps:$4 sm:$0xff]  }
 0x3af   : > { %9950 = vmatprep.subr.bf16.mxu1 %v18379_v3  ;;  %9814 = vmatpush1.bf16.msra.mxu0 %v18380_v6  ;;  %v18443_v3 = vld [vmem:[#allocation2 + $0x16f8] ss:$112 sps:$4 sm:$0xff]   ;;  %v18452_v6 = vld [vmem:[#allocation2 + $0x1fb0] ss:$112 sps:$4 sm:$0xff]  }
 0x3b0   : > { %9815 = vmatprep.subr.bf16.mxu0 %v18388_v8  ;;  %v18457_v8 = vld [vmem:[#allocation2 + $0x18bc] ss:$112 sps:$4 sm:$0xff]  }
 0x3b2   : > { %9951 = vmatpush1.bf16.msra.mxu1 %v18377_v5  ;;  %v18454_v5 = vld [vmem:[#allocation2 + $0x1fb4] ss:$112 sps:$4 sm:$0xff]  }
 0x3b3   : > { %9961 = vmatprep.subr.bf16.mxu1 %v18385_v7  ;;  %9816 = vmatpush1.bf16.msra.mxu0 %v18386_v12  ;;  %v18449_v7 = vld [vmem:[#allocation2 + $0x17d8] ss:$112 sps:$4 sm:$0xff]   ;;  %v18458_v12 = vld [vmem:[#allocation2 + $0x2090] ss:$112 sps:$4 sm:$0xff]  }
 0x3b4   : > { %9817 = vmatprep.subr.bf16.mxu0 %v18394_v14  ;;  %v18463_v14 = vld [vmem:[#allocation2 + $0x199c] ss:$112 sps:$4 sm:$0xff]  }
 0x3b5   : > { %9953 = vmatmul.mubr.bf16.vlgmr.msra.gmra.mrb[20].mxu1 %v20164_v9 }
 0x3b6   : > { %9962 = vmatpush1.bf16.msra.mxu1 %v18383_v11  ;;  %9993 = vmatprep.mubr.bf16.mxu1 %v20169_v36  ;;  %v18460_v11 = vld [vmem:[#allocation2 + $0x2094] ss:$112 sps:$4 sm:$0xff]  }
 0x3b7   : > { %9963 = vmatprep.subr.bf16.mxu1 %v18391_v13  ;;  %9818 = vmatpush1.bf16.msra.mxu0 %v18392_v17  ;;  %v18455_v13 = vld [vmem:[#allocation2 + $0x18b8] ss:$112 sps:$4 sm:$0xff]   ;;  %v18464_v17 = vld [vmem:[#allocation2 + $0x2170] ss:$112 sps:$4 sm:$0xff]  }
 0x3b8   : > { %9819 = vmatprep.subr.bf16.mxu0 %v18400_v21  ;;  %v18469_v21 = vld [vmem:[#allocation2 + $0x1a7c] ss:$112 sps:$4 sm:$0xff]  }
 0x3ba   : > { %9964 = vmatpush1.bf16.msra.mxu1 %v18389_v15  ;;  %v18466_v15 = vld [vmem:[#allocation2 + $0x2174] ss:$112 sps:$4 sm:$0xff]  }
 0x3bb   : > { %9965 = vmatprep.subr.bf16.mxu1 %v18397_v20  ;;  %9820 = vmatpush1.bf16.msra.mxu0 %v18398_v23  ;;  %v18461_v20 = vld [vmem:[#allocation2 + $0x1998] ss:$112 sps:$4 sm:$0xff]   ;;  %v18470_v23 = vld [vmem:[#allocation2 + $0x2250] ss:$112 sps:$4 sm:$0xff]  }
 0x3bc   : > { %9821 = vmatprep.subr.bf16.mxu0 %v18406_v27  ;;  %v18475_v27 = vld [vmem:[#allocation2 + $0x1b5c] ss:$112 sps:$4 sm:$0xff]  }
 0x3be   : > { %9966 = vmatpush1.bf16.msra.mxu1 %v18395_v22  ;;  %v18472_v22 = vld [vmem:[#allocation2 + $0x2254] ss:$112 sps:$4 sm:$0xff]  }
 0x3bf   : > { %9967 = vmatprep.subr.bf16.mxu1 %v18403_v25  ;;  %9822 = vmatpush1.bf16.msra.mxu0 %v18404_v30  ;;  %v18467_v25 = vld [vmem:[#allocation2 + $0x1a78] ss:$112 sps:$4 sm:$0xff]   ;;  %v18478_v30 = vld [vmem:[#allocation2 + $0x2334] ss:$112 sps:$4 sm:$0xff]  }
 0x3c0   : > { %9823 = vmatprep.subr.bf16.mxu0 %v18412_v32  ;;  %v18481_v32 = vld [vmem:[#allocation2 + $0x1c3c] ss:$112 sps:$4 sm:$0xff]  }
 0x3c2   : > { %9968 = vmatpush1.bf16.msra.mxu1 %v18401_v31  ;;  %v18476_v31 = vld [vmem:[#allocation2 + $0x2330] ss:$112 sps:$4 sm:$0xff]  }
 0x3c3   : > { %9969 = vmatprep.subr.bf16.mxu1 %v18409_v58  ;;  %9824 = vmatpush1.bf16.msra.mxu0 %v18410_v60  ;;  %v18473_v58 = vld [vmem:[#allocation2 + $0x1b58] ss:$112 sps:$4 sm:$0xff]   ;;  %v18484_v60 = vld [vmem:[#allocation2 + $0x2414] ss:$112 sps:$4 sm:$0xff]  }
 0x3c4   : > { %9825 = vmatprep.subr.bf16.mxu0 %v18418_v35  ;;  %v18487_v35 = vld [vmem:[#allocation2 + $0x1d1c] ss:$112 sps:$4 sm:$0xff]  }
 0x3c6   : > { %9970 = vmatpush1.bf16.msra.mxu1 %v18407_v33  ;;  %v18482_v33 = vld [vmem:[#allocation2 + $0x2410] ss:$112 sps:$4 sm:$0xff]  }
 0x3c7   : > { %9971 = vmatprep.subr.bf16.mxu1 %v18415_v34  ;;  %9826 = vmatpush1.bf16.msra.mxu0 %v18416_v37  ;;  %v18479_v34 = vld [vmem:[#allocation2 + $0x1c38] ss:$112 sps:$4 sm:$0xff]   ;;  %v18490_v37 = vld [vmem:[#allocation2 + $0x24f4] ss:$112 sps:$4 sm:$0xff]  }
 0x3c8   : > { %9827 = vmatprep.subr.bf16.mxu0 %v18424_v38  ;;  %v18493_v38 = vld [vmem:[#allocation2 + $0x1dfc] ss:$112 sps:$4 sm:$0xff]  }
 0x3ca   : > { %9972 = vmatpush1.bf16.msra.mxu1 %v18413_v54  ;;  %v18488_v54 = vld [vmem:[#allocation2 + $0x24f0] ss:$112 sps:$4 sm:$0xff]  }
 0x3cb   : > { %9973 = vmatprep.subr.bf16.mxu1 %v18421_v57  ;;  %9828 = vmatpush1.bf16.msra.mxu0 %v18422_v40  ;;  %v18485_v57 = vld [vmem:[#allocation2 + $0x1d18] ss:$112 sps:$4 sm:$0xff]   ;;  %v18494_v40 = vld [vmem:[#allocation2 + $0x25d0] ss:$112 sps:$4 sm:$0xff]  }
 0x3cc   : > { %9838 = vmatprep.subr.bf16.mxu0 %v18430_v41  ;;  %v18491_v41 = vld [vmem:[#allocation2 + $0x1df8] ss:$112 sps:$4 sm:$0xff]  }
 0x3ce   : > { %9974 = vmatpush1.bf16.msra.mxu1 %v18419_v39  ;;  %9830 = vmatmul.mubr.bf16.vlgmr.msra.gmra.mrb[12].mxu0 %v20174_v18  ;;  %v18496_v39 = vld [vmem:[#allocation2 + $0x25d4] ss:$112 sps:$4 sm:$0xff]  }
 0x3cf   : > { %9975 = vmatprep.subr.bf16.mxu1 %v18427_v42  ;;  %9839 = vmatpush1.bf16.msra.mxu0 %v18428_v45  ;;  %v18499_v42 = vld [vmem:[#allocation2 + $0x1edc] ss:$112 sps:$4 sm:$0xff]   ;;  %v18502_v45 = vld [vmem:[#allocation2 + $0x26b4] ss:$112 sps:$4 sm:$0xff]  }
 0x3d0   : > { %9870 = vmatprep.mubr.bf16.mxu0 %v20177_v24  ;;  %9840 = vmatprep.subr.bf16.mxu0 %v18436_v48  ;;  %v18505_v48 = vld [vmem:[#allocation2 + $0x1fbc] ss:$112 sps:$4 sm:$0xff]  }
 0x3d2   : > { %9976 = vmatpush1.bf16.msra.mxu1 %v18425_v46  ;;  %v18500_v46 = vld [vmem:[#allocation2 + $0x26b0] ss:$112 sps:$4 sm:$0xff]  }
 0x3d3   : > { %9977 = vmatprep.subr.bf16.mxu1 %v18433_v47  ;;  %9841 = vmatpush1.bf16.msra.mxu0 %v18434_v49  ;;  %v18497_v47 = vld [vmem:[#allocation2 + $0x1ed8] ss:$112 sps:$4 sm:$0xff]   ;;  %v18508_v49 = vld [vmem:[#allocation2 + $0x2794] ss:$112 sps:$4 sm:$0xff]  }
 0x3d4   : > { %9842 = vmatprep.subr.bf16.mxu0 %v18442_v53  ;;  %v18511_v53 = vld [vmem:[#allocation2 + $0x209c] ss:$112 sps:$4 sm:$0xff]  }
 0x3d6   : > { %9978 = vmatpush1.bf16.msra.mxu1 %v18431_v50  ;;  %v18506_v50 = vld [vmem:[#allocation2 + $0x2790] ss:$112 sps:$4 sm:$0xff]  }
 0x3d7   : > { %9979 = vmatprep.subr.bf16.mxu1 %v18439_v52  ;;  %9843 = vmatpush1.bf16.msra.mxu0 %v18440_v55  ;;  %v18503_v52 = vld [vmem:[#allocation2 + $0x1fb8] ss:$112 sps:$4 sm:$0xff]   ;;  %v18514_v55 = vld [vmem:[#allocation2 + $0x2874] ss:$112 sps:$4 sm:$0xff]  }
 0x3d8   : > { %9844 = vmatprep.subr.bf16.mxu0 %v18448_v61  ;;  %v18520_v61 = vld [vmem:[#allocation2 + $0x2954] ss:$112 sps:$4 sm:$0xff]  }
 0x3da   : > { %9980 = vmatpush1.bf16.msra.mxu1 %v18437_v56  ;;  %v18512_v56 = vld [vmem:[#allocation2 + $0x2870] ss:$112 sps:$4 sm:$0xff]  }
 0x3db   : > { %9981 = vmatprep.subr.bf16.mxu1 %v18445_v59  ;;  %9845 = vmatpush1.bf16.msra.mxu0 %v18446_v1  ;;  %v18509_v59 = vld [vmem:[#allocation2 + $0x2098] ss:$112 sps:$4 sm:$0xff]   ;;  %v18517_v1 = vld [vmem:[#allocation2 + $0x217c] ss:$112 sps:$4 sm:$0xff]  }
 0x3dc   : > { %9846 = vmatprep.subr.bf16.mxu0 %v18454_v5  ;;  %v18526_v5 = vld [vmem:[#allocation2 + $0x2a34] ss:$112 sps:$4 sm:$0xff]  }
 0x3de   : > { %9982 = vmatpush1.bf16.msra.mxu1 %v18443_v3  ;;  %v18518_v3 = vld [vmem:[#allocation2 + $0x2950] ss:$112 sps:$4 sm:$0xff]  }
 0x3df   : > { %9983 = vmatprep.subr.bf16.mxu1 %v18451_v4  ;;  %9847 = vmatpush1.bf16.msra.mxu0 %v18452_v6  ;;  %v18515_v4 = vld [vmem:[#allocation2 + $0x2178] ss:$112 sps:$4 sm:$0xff]   ;;  %v18523_v6 = vld [vmem:[#allocation2 + $0x225c] ss:$112 sps:$4 sm:$0xff]  }
 0x3e0   : > { %9848 = vmatprep.subr.bf16.mxu0 %v18460_v11  ;;  %v18538_v11 = vld [vmem:[#allocation2 + $0x44] ss:$112 sps:$4 sm:$0xff]  }
 0x3e2   : > { %9984 = vmatpush1.bf16.msra.mxu1 %v18449_v7  ;;  %v18524_v7 = vld [vmem:[#allocation2 + $0x2a30] ss:$112 sps:$4 sm:$0xff]  }
 0x3e3   : > { %9985 = vmatprep.subr.bf16.mxu1 %v18457_v8  ;;  %9849 = vmatpush1.bf16.msra.mxu0 %v18458_v12  ;;  %v18521_v8 = vld [vmem:[#allocation2 + $0x2258] ss:$112 sps:$4 sm:$0xff]   ;;  %v18529_v12 = vld [vmem:[#allocation2 + $0x233c] ss:$112 sps:$4 sm:$0xff]  }
 0x3e4   : > { %9850 = vmatprep.subr.bf16.mxu0 %v18466_v15  ;;  %v18530_v15 = vld [vmem:[#allocation2 + $0x2418] ss:$112 sps:$4 sm:$0xff]  }
 0x3e6   : > { %9986 = vmatpush1.bf16.msra.mxu1 %v18455_v13  ;;  %v18527_v13 = vld [vmem:[#allocation2 + $0x2338] ss:$112 sps:$4 sm:$0xff]  }
 0x3e7   : > { %9987 = vmatprep.subr.bf16.mxu1 %v18463_v14  ;;  %9851 = vmatpush1.bf16.msra.mxu0 %v18464_v17  ;;  %v18532_v14 = vld [vmem:[#allocation2 + $0x241c] ss:$112 sps:$4 sm:$0xff]  }
 0x3e8   : > { %9852 = vmatprep.subr.bf16.mxu0 %v18472_v22  ;;  %v18535_v17 = vld [vmem:[#allocation2 + $0x24fc] ss:$112 sps:$4 sm:$0xff]   ;;  %v18544_v22 = vld [vmem:[#allocation2 + $0x124] ss:$112 sps:$4 sm:$0xff]  }
 0x3ea   : > { %9988 = vmatpush1.bf16.msra.mxu1 %v18461_v20  ;;  %v18536_v20 = vld [vmem:[#allocation2 + $0x40] ss:$112 sps:$4 sm:$0xff]  }
 0x3eb   : > { %9989 = vmatprep.subr.bf16.mxu1 %v18469_v21  ;;  %9853 = vmatpush1.bf16.msra.mxu0 %v18470_v23  ;;  %v18533_v21 = vld [vmem:[#allocation2 + $0x24f8] ss:$112 sps:$4 sm:$0xff]   ;;  %v18541_v23 = vld [vmem:[#allocation2 + $0x25dc] ss:$112 sps:$4 sm:$0xff]  }
 0x3ec   : > { %9854 = vmatprep.subr.bf16.mxu0 %v18478_v30  ;;  %v18550_v30 = vld [vmem:[#allocation2 + $0x204] ss:$112 sps:$4 sm:$0xff]  }
 0x3ee   : > { %9990 = vmatpush1.bf16.msra.mxu1 %v18467_v25  ;;  %v18542_v25 = vld [vmem:[#allocation2 + $0x120] ss:$112 sps:$4 sm:$0xff]  }
 0x3ef   : > { %9991 = vmatprep.subr.bf16.mxu1 %v18475_v27  ;;  %9855 = vmatpush1.bf16.msra.mxu0 %v18476_v31  ;;  %v18539_v27 = vld [vmem:[#allocation2 + $0x25d8] ss:$112 sps:$4 sm:$0xff]   ;;  %v18547_v31 = vld [vmem:[#allocation2 + $0x26bc] ss:$112 sps:$4 sm:$0xff]  }
 0x3f0   : > { %9856 = vmatprep.subr.bf16.mxu0 %v18484_v60  ;;  %v18556_v60 = vld [vmem:[#allocation2 + $0x2e4] ss:$112 sps:$4 sm:$0xff]  }
 0x3f2   : > { %9992 = vmatpush1.bf16.msra.mxu1 %v18473_v58  ;;  %v18548_v58 = vld [vmem:[#allocation2 + $0x200] ss:$112 sps:$4 sm:$0xff]  }
 0x3f3   : > { %10002 = vmatprep.subr.bf16.mxu1 %v18481_v32  ;;  %9857 = vmatpush1.bf16.msra.mxu0 %v18482_v33  ;;  %v18545_v32 = vld [vmem:[#allocation2 + $0x26b8] ss:$112 sps:$4 sm:$0xff]  }
 0x3f4   : > { %9858 = vmatprep.subr.bf16.mxu0 %v18490_v37 }
 0x3f5   : > { %9994 = vmatmul.mubr.bf16.vlgmr.msra.gmra.mrb[20].mxu1 %v20174_v18 }
 0x3f6   : > { %10003 = vmatpush1.bf16.msra.mxu1 %v18479_v34  ;;  %10034 = vmatprep.mubr.bf16.mxu1 %v20177_v24  ;;  %v18553_v34 = vld [vmem:[#allocation2 + $0x279c] ss:$112 sps:$4 sm:$0xff]  }
 0x3f7   : > { %10004 = vmatprep.subr.bf16.mxu1 %v18487_v35  ;;  %9859 = vmatpush1.bf16.msra.mxu0 %v18488_v54 }
 0x3f8   : > { %9860 = vmatprep.subr.bf16.mxu0 %v18496_v39  ;;  %v18551_v39 = vld [vmem:[#allocation2 + $0x2798] ss:$112 sps:$4 sm:$0xff]  }
 0x3fa   : > { %10005 = vmatpush1.bf16.msra.mxu1 %v18485_v57 }
 0x3fb   : > { %10006 = vmatprep.subr.bf16.mxu1 %v18493_v38  ;;  %9861 = vmatpush1.bf16.msra.mxu0 %v18494_v40  ;;  %v18554_v38 = vld [vmem:[#allocation2 + $0x2e0] ss:$112 sps:$4 sm:$0xff]  }
 0x3fc   : > { %9862 = vmatprep.subr.bf16.mxu0 %v18502_v45  ;;  %v18560_v45 = vld [vmem:[#allocation2 + $0x3c0] ss:$112 sps:$4 sm:$0xff]  }
 0x3fe   : > { %10007 = vmatpush1.bf16.msra.mxu1 %v18491_v41  ;;  %v18562_v41 = vld [vmem:[#allocation2 + $0x3c4] ss:$112 sps:$4 sm:$0xff]  }
 0x3ff   : > { %10008 = vmatprep.subr.bf16.mxu1 %v18499_v42  ;;  %9863 = vmatpush1.bf16.msra.mxu0 %v18500_v46  ;;  %v18559_v42 = vld [vmem:[#allocation2 + $0x287c] ss:$112 sps:$4 sm:$0xff]   ;;  %v18557_v46 = vld [vmem:[#allocation2 + $0x2878] ss:$112 sps:$4 sm:$0xff]  }
 0x400   : > { %9864 = vmatprep.subr.bf16.mxu0 %v18508_v49  ;;  %v18566_v49 = vld [vmem:[#allocation2 + $0x4a0] ss:$112 sps:$4 sm:$0xff]  }
 0x402   : > { %10009 = vmatpush1.bf16.msra.mxu1 %v18497_v47  ;;  %v18568_v47 = vld [vmem:[#allocation2 + $0x4a4] ss:$112 sps:$4 sm:$0xff]  }
 0x403   : > { %10010 = vmatprep.subr.bf16.mxu1 %v18505_v48  ;;  %9865 = vmatpush1.bf16.msra.mxu0 %v18506_v50  ;;  %v18565_v48 = vld [vmem:[#allocation2 + $0x295c] ss:$112 sps:$4 sm:$0xff]   ;;  %v18563_v50 = vld [vmem:[#allocation2 + $0x2958] ss:$112 sps:$4 sm:$0xff]  }
 0x404   : > { %9866 = vmatprep.subr.bf16.mxu0 %v18514_v55  ;;  %v18569_v55 = vld [vmem:[#allocation2 + $0x580] ss:$112 sps:$4 sm:$0xff]  }
 0x406   : > { %10011 = vmatpush1.bf16.msra.mxu1 %v18503_v52  ;;  %v18571_v52 = vld [vmem:[#allocation2 + $0x584] ss:$112 sps:$4 sm:$0xff]  }
 0x407   : > { %10012 = vmatprep.subr.bf16.mxu1 %v18511_v53  ;;  %9867 = vmatpush1.bf16.msra.mxu0 %v18512_v56  ;;  %v18577_v53 = vld [vmem:[#allocation2 + $0x2a3c] ss:$112 sps:$4 sm:$0xff]   ;;  %v18574_v56 = vld [vmem:[#allocation2 + $0x664] ss:$112 sps:$4 sm:$0xff]  }
 0x408   : > { %9868 = vmatprep.subr.bf16.mxu0 %v18520_v61  ;;  %v18583_v61 = vld [vmem:[#allocation2 + $0x4c] ss:$112 sps:$4 sm:$0xff]  }
 0x40a   : > { %10013 = vmatpush1.bf16.msra.mxu1 %v18509_v59  ;;  %v18575_v59 = vld [vmem:[#allocation2 + $0x2a38] ss:$112 sps:$4 sm:$0xff]  }
 0x40b   : > { %10014 = vmatprep.subr.bf16.mxu1 %v18517_v1  ;;  %9869 = vmatpush1.bf16.msra.mxu0 %v18518_v3  ;;  %v18572_v1 = vld [vmem:[#allocation2 + $0x660] ss:$112 sps:$4 sm:$0xff]   ;;  %v18580_v3 = vld [vmem:[#allocation2 + $0x744] ss:$112 sps:$4 sm:$0xff]  }
 0x40c   : > { %9879 = vmatprep.subr.bf16.mxu0 %v18526_v5  ;;  %v18586_v5 = vld [vmem:[#allocation2 + $0x824] ss:$112 sps:$4 sm:$0xff]  }
 0x40e   : > { %10015 = vmatpush1.bf16.msra.mxu1 %v18515_v4  ;;  %9871 = vmatmul.mubr.bf16.vlgmr.msra.gmra.mrb[12].mxu0 %v20184_v29  ;;  %v18578_v4 = vld [vmem:[#allocation2 + $0x740] ss:$112 sps:$4 sm:$0xff]  }
 0x40f   : > { %10016 = vmatprep.subr.bf16.mxu1 %v18523_v6  ;;  %9880 = vmatpush1.bf16.msra.mxu0 %v18524_v7  ;;  %v18584_v6 = vld [vmem:[#allocation2 + $0x820] ss:$112 sps:$4 sm:$0xff]   ;;  %v18581_v7 = vld [vmem:[#allocation2 + $0x48] ss:$112 sps:$4 sm:$0xff]  }
 0x410   : > { %9911 = vmatprep.mubr.bf16.mxu0 %v19797_v0  ;;  %10084 = vmatprep.subr.bf16.mxu0 %v18538_v11  ;;  %v18589_v11 = vld [vmem:[#allocation2 + $0x12c] ss:$112 sps:$4 sm:$0xff]  }
 0x412   : > { %10017 = vmatpush1.bf16.msra.mxu1 %v18521_v8  ;;  %v18592_v8 = vld [vmem:[#allocation2 + $0x904] ss:$112 sps:$4 sm:$0xff]  }
 0x413   : > { %10018 = vmatprep.subr.bf16.mxu1 %v18529_v12  ;;  %v18590_v12 = vld [vmem:[#allocation2 + $0x900] ss:$112 sps:$4 sm:$0xff]  }
 0x416   : > { %10019 = vmatpush1.bf16.msra.mxu1 %v18527_v13  ;;  %v18587_v13 = vld [vmem:[#allocation2 + $0x128] ss:$112 sps:$4 sm:$0xff]  }
 0x417   : > { %10020 = vmatprep.subr.bf16.mxu1 %v18532_v14  ;;  %v18598_v14 = vld [vmem:[#allocation2 + $0x9e4] ss:$112 sps:$4 sm:$0xff]  }
 0x41a   : > { %10021 = vmatpush1.bf16.msra.mxu1 %v18530_v15  ;;  %16474 = vmatmul.mubr.msk.bf16.vlgmr.msra.gmra.mrb[12].mxu0 %vm8768_vm0, %v20154_v10  ;;  %v18595_v15 = vld [vmem:[#allocation2 + $0x20c] ss:$112 sps:$4 sm:$0xff]  }
 0x41b   : > { %10022 = vmatprep.subr.bf16.mxu1 %v18535_v17  ;;  %10085 = vmatpush1.bf16.msra.mxu0 %v18536_v20  ;;  %v18596_v17 = vld [vmem:[#allocation2 + $0x9e0] ss:$112 sps:$4 sm:$0xff]   ;;  %v18593_v20 = vld [vmem:[#allocation2 + $0x208] ss:$112 sps:$4 sm:$0xff]  }
 0x41c   : > { %10116 = vmatprep.mubr.bf16.mxu0 %v20159_v51  ;;  %10086 = vmatprep.subr.bf16.mxu0 %v18544_v22  ;;  %v18601_v22 = vld [vmem:[#allocation2 + $0x2ec] ss:$112 sps:$4 sm:$0xff]  }
 0x41e   : > { %10023 = vmatpush1.bf16.msra.mxu1 %v18533_v21  ;;  %v18604_v21 = vld [vmem:[#allocation2 + $0xac4] ss:$112 sps:$4 sm:$0xff]  }
 0x41f   : > { %10024 = vmatprep.subr.bf16.mxu1 %v18541_v23  ;;  %10087 = vmatpush1.bf16.msra.mxu0 %v18542_v25 }
 0x420   : > { %10088 = vmatprep.subr.bf16.mxu0 %v18550_v30  ;;  %v18602_v30 = vld [vmem:[#allocation2 + $0xac0] ss:$112 sps:$4 sm:$0xff]  }
 0x421   : > { %v20272_v33 = vpop.f32.mrb[8].mxu0 }
 0x422   : > { %10025 = vmatpush1.bf16.msra.mxu1 %v18539_v27  ;;  %v11069_v35 = vmax.f32 %v20214_v28, %v20272_v33  ;;  %v20276_v37 = vpop.f32.mrb[9].mxu0 }
 0x423   : > { %10026 = vmatprep.subr.bf16.mxu1 %v18547_v31  ;;  %10089 = vmatpush1.bf16.msra.mxu0 %v18548_v58  ;;  %v11070_v54 = vmax.f32 %v20218_v43, %v20276_v37  ;;  %v9589_v57 = vpop.f32.mrb[10].mxu0  ;;  %v11271_v43 = vld [vmem:[#allocation6 + $0x3e0] sm:$0xff]  ;;  %v11196_v37 = vld [vmem:[#allocation6 + $0x188] sm:$0xff] }
 0x424   : > { %v9590_v40 = vpop.f32.mrb[11].mxu0  ;;  %10090 = vmatprep.subr.bf16.mxu0 %v18556_v60  ;;  %v18610_v60 = vld [vmem:[#allocation2 + $0xba4] ss:$112 sps:$4 sm:$0xff]   ;;  %v18607_v57 = vld [vmem:[#allocation2 + $0x3cc] ss:$112 sps:$4 sm:$0xff]  }
 0x425   : > { %v18616_v40 = vld [vmem:[#allocation2 + $0xc84] ss:$112 sps:$4 sm:$0xff]  }
 0x426   : > { %10027 = vmatpush1.bf16.msra.mxu1 %v18545_v32  ;;  %v18599_v32 = vld [vmem:[#allocation2 + $0x2e8] ss:$112 sps:$4 sm:$0xff]  }
 0x427   : > { %10028 = vmatprep.subr.bf16.mxu1 %v18553_v34  ;;  %10091 = vmatpush1.bf16.msra.mxu0 %v18554_v38  ;;  %v18608_v38 = vld [vmem:[#allocation2 + $0xba0] ss:$112 sps:$4 sm:$0xff]  }
 0x428   : > { %10092 = vmatprep.subr.bf16.mxu0 %v18562_v41  ;;  %v18613_v41 = vld [vmem:[#allocation2 + $0x4ac] ss:$112 sps:$4 sm:$0xff]  }
 0x42a   : > { %10029 = vmatpush1.bf16.msra.mxu1 %v18551_v39  ;;  %v18605_v39 = vld [vmem:[#allocation2 + $0x3c8] ss:$112 sps:$4 sm:$0xff]  }
 0x42b   : > { %10030 = vmatprep.subr.bf16.mxu1 %v18559_v42  ;;  %10093 = vmatpush1.bf16.msra.mxu0 %v18560_v45  ;;  %v18614_v42 = vld [vmem:[#allocation2 + $0xc80] ss:$112 sps:$4 sm:$0xff]   ;;  %v18611_v45 = vld [vmem:[#allocation2 + $0x4a8] ss:$112 sps:$4 sm:$0xff]  }
 0x42c   : > { %10094 = vmatprep.subr.bf16.mxu0 %v18568_v47  ;;  %v18619_v47 = vld [vmem:[#allocation2 + $0x58c] ss:$112 sps:$4 sm:$0xff]  }
 0x42e   : > { %10031 = vmatpush1.bf16.msra.mxu1 %v18557_v46  ;;  %v18622_v46 = vld [vmem:[#allocation2 + $0xd64] ss:$112 sps:$4 sm:$0xff]  }
 0x42f   : > { %10032 = vmatprep.subr.bf16.mxu1 %v18565_v48  ;;  %10095 = vmatpush1.bf16.msra.mxu0 %v18566_v49  ;;  %v18620_v48 = vld [vmem:[#allocation2 + $0xd60] ss:$112 sps:$4 sm:$0xff]   ;;  %v18617_v49 = vld [vmem:[#allocation2 + $0x588] ss:$112 sps:$4 sm:$0xff]  }
 0x430   : > { %10096 = vmatprep.subr.bf16.mxu0 %v18571_v52  ;;  %v18625_v52 = vld [vmem:[#allocation2 + $0x66c] ss:$112 sps:$4 sm:$0xff]  }
 0x432   : > { %10033 = vmatpush1.bf16.msra.mxu1 %v18563_v50  ;;  %v18628_v50 = vld [vmem:[#allocation2 + $0xe44] ss:$112 sps:$4 sm:$0xff]  }
 0x433   : > { %10043 = vmatprep.subr.bf16.mxu1 %v18577_v53  ;;  %10097 = vmatpush1.bf16.msra.mxu0 %v18569_v55  ;;  %v18626_v53 = vld [vmem:[#allocation2 + $0xe40] ss:$112 sps:$4 sm:$0xff]   ;;  %v18623_v55 = vld [vmem:[#allocation2 + $0x668] ss:$112 sps:$4 sm:$0xff]  }
 0x434   : > { %10098 = vmatprep.subr.bf16.mxu0 %v18574_v56  ;;  %v18634_v56 = vld [vmem:[#allocation2 + $0xf24] ss:$112 sps:$4 sm:$0xff]  }
 0x435   : > { %10035 = vmatmul.mubr.bf16.vlgmr.msra.gmra.mrb[20].mxu1 %v20184_v29 }
 0x436   : > { %10044 = vmatpush1.bf16.msra.mxu1 %v18575_v59  ;;  %10075 = vmatprep.mubr.bf16.mxu1 %v19797_v0  ;;  %v18631_v59 = vld [vmem:[#allocation2 + $0x74c] ss:$112 sps:$4 sm:$0xff]  }
 0x437   : > { %10248 = vmatprep.subr.bf16.mxu1 %v18583_v61  ;;  %10099 = vmatpush1.bf16.msra.mxu0 %v18572_v1  ;;  %v18632_v61 = vld [vmem:[#allocation2 + $0xf20] ss:$112 sps:$4 sm:$0xff]   ;;  %v18629_v1 = vld [vmem:[#allocation2 + $0x748] ss:$112 sps:$4 sm:$0xff]  }
 0x438   : > { %10100 = vmatprep.subr.bf16.mxu0 %v18580_v3  ;;  %v18640_v3 = vld [vmem:[#allocation2 + $0x1004] ss:$112 sps:$4 sm:$0xff]  }
 0x43b   : > { %10101 = vmatpush1.bf16.msra.mxu0 %v18578_v4  ;;  %v18637_v4 = vld [vmem:[#allocation2 + $0x82c] ss:$112 sps:$4 sm:$0xff]  }
 0x43c   : > { %10102 = vmatprep.subr.bf16.mxu0 %v18586_v5  ;;  %v18638_v5 = vld [vmem:[#allocation2 + $0x1000] ss:$112 sps:$4 sm:$0xff]  }
 0x43f   : > { %10103 = vmatpush1.bf16.msra.mxu0 %v18584_v6  ;;  %v18635_v6 = vld [vmem:[#allocation2 + $0x828] ss:$112 sps:$4 sm:$0xff]  }
 0x440   : > { %10104 = vmatprep.subr.bf16.mxu0 %v18592_v8  ;;  %v18643_v8 = vld [vmem:[#allocation2 + $0x90c] ss:$112 sps:$4 sm:$0xff]  }
 0x441   : > { %16475 = vmatmul.mubr.msk.bf16.vlgmr.msra.gmra.mrb[20].mxu1 %vm8768_vm0, %v20154_v10 }
 0x442   : > { %10249 = vmatpush1.bf16.msra.mxu1 %v18581_v7  ;;  %10280 = vmatprep.mubr.bf16.mxu1 %v20159_v51  ;;  %v18646_v7 = vld [vmem:[#allocation2 + $0x10e4] ss:$112 sps:$4 sm:$0xff]  }
 0x443   : > { %10250 = vmatprep.subr.bf16.mxu1 %v18589_v11  ;;  %10105 = vmatpush1.bf16.msra.mxu0 %v18590_v12  ;;  %v18644_v11 = vld [vmem:[#allocation2 + $0x10e0] ss:$112 sps:$4 sm:$0xff]   ;;  %v18641_v12 = vld [vmem:[#allocation2 + $0x908] ss:$112 sps:$4 sm:$0xff]  }
 0x444   : > { %10106 = vmatprep.subr.bf16.mxu0 %v18598_v14  ;;  %v18649_v14 = vld [vmem:[#allocation2 + $0x9ec] ss:$112 sps:$4 sm:$0xff]  }
 0x446   : > { %10251 = vmatpush1.bf16.msra.mxu1 %v18587_v13  ;;  %v18652_v13 = vld [vmem:[#allocation2 + $0x11c4] ss:$112 sps:$4 sm:$0xff]  }
 0x447   : > { %10252 = vmatprep.subr.bf16.mxu1 %v18595_v15  ;;  %10107 = vmatpush1.bf16.msra.mxu0 %v18596_v17  ;;  %v18650_v15 = vld [vmem:[#allocation2 + $0x11c0] ss:$112 sps:$4 sm:$0xff]   ;;  %v18647_v17 = vld [vmem:[#allocation2 + $0x9e8] ss:$112 sps:$4 sm:$0xff]  }
 0x448   : > { %v20285_v23 = vpop.f32.mrb[16].mxu1  ;;  %10108 = vmatprep.subr.bf16.mxu0 %v18604_v21  ;;  %v18655_v21 = vld [vmem:[#allocation2 + $0xacc] ss:$112 sps:$4 sm:$0xff]  }
 0x449   : > { %v11071_v25 = vmax.f32 %v20222_v44, %v20285_v23  ;;  %v20289_v27 = vpop.f32.mrb[17].mxu1 }
 0x44a   : > { %10253 = vmatpush1.bf16.msra.mxu1 %v18593_v20  ;;  %v11072_v31 = vmax.f32 %v20243_v16, %v20289_v27  ;;  %v9753_v58 = vpop.f32.mrb[18].mxu1  ;;  %v18658_v20 = vld [vmem:[#allocation2 + $0x12a4] ss:$112 sps:$4 sm:$0xff]   ;;  %v11423_v16 = vld [vmem:[#allocation6 + $0x8a0] sm:$0xff] }
 0x44b   : > { %v9754_v34 = vpop.f32.mrb[19].mxu1  ;;  %10254 = vmatprep.subr.bf16.mxu1 %v18601_v22  ;;  %10109 = vmatpush1.bf16.msra.mxu0 %v18602_v30  ;;  %v18656_v22 = vld [vmem:[#allocation2 + $0x12a0] ss:$112 sps:$4 sm:$0xff]   ;;  %v18653_v30 = vld [vmem:[#allocation2 + $0xac8] ss:$112 sps:$4 sm:$0xff]  }
 0x44c   : > { %10110 = vmatprep.subr.bf16.mxu0 %v18610_v60  ;;  %v18664_v58 = vld [vmem:[#allocation2 + $0x1384] ss:$112 sps:$4 sm:$0xff]   ;;  %v18662_v60 = vld [vmem:[#allocation2 + $0x1380] ss:$112 sps:$4 sm:$0xff]   ;;  %v18659_v34 = vld [vmem:[#allocation2 + $0xba8] ss:$112 sps:$4 sm:$0xff]  }
 0x44d   : > { %v11420_v27 = vld [vmem:[#allocation6 + $0x888] sm:$0xff] }
 0x44e   : > { %10255 = vmatpush1.bf16.msra.mxu1 %v18599_v32  ;;  %v18661_v32 = vld [vmem:[#allocation2 + $0xbac] ss:$112 sps:$4 sm:$0xff]  }
 0x44f   : > { %10256 = vmatprep.subr.bf16.mxu1 %v18607_v57  ;;  %10111 = vmatpush1.bf16.msra.mxu0 %v18608_v38  ;;  %v18670_v57 = vld [vmem:[#allocation2 + $0x1464] ss:$112 sps:$4 sm:$0xff]   ;;  %v18667_v38 = vld [vmem:[#allocation2 + $0xc8c] ss:$112 sps:$4 sm:$0xff]  }
 0x450   : > { %10112 = vmatprep.subr.bf16.mxu0 %v18616_v40  ;;  %v18665_v40 = vld [vmem:[#allocation2 + $0xc88] ss:$112 sps:$4 sm:$0xff]  }
 0x452   : > { %10257 = vmatpush1.bf16.msra.mxu1 %v18605_v39  ;;  %v18668_v39 = vld [vmem:[#allocation2 + $0x1460] ss:$112 sps:$4 sm:$0xff]  }
 0x453   : > { %10258 = vmatprep.subr.bf16.mxu1 %v18613_v41  ;;  %10113 = vmatpush1.bf16.msra.mxu0 %v18614_v42  ;;  %v18676_v41 = vld [vmem:[#allocation2 + $0x1544] ss:$112 sps:$4 sm:$0xff]   ;;  %v18673_v42 = vld [vmem:[#allocation2 + $0xd6c] ss:$112 sps:$4 sm:$0xff]  }
 0x454   : > { %10114 = vmatprep.subr.bf16.mxu0 %v18622_v46  ;;  %v18671_v46 = vld [vmem:[#allocation2 + $0xd68] ss:$112 sps:$4 sm:$0xff]  }
 0x456   : > { %10259 = vmatpush1.bf16.msra.mxu1 %v18611_v45  ;;  %v18674_v45 = vld [vmem:[#allocation2 + $0x1540] ss:$112 sps:$4 sm:$0xff]  }
 0x457   : > { %10260 = vmatprep.subr.bf16.mxu1 %v18619_v47  ;;  %10115 = vmatpush1.bf16.msra.mxu0 %v18620_v48  ;;  %v18682_v47 = vld [vmem:[#allocation2 + $0x1624] ss:$112 sps:$4 sm:$0xff]   ;;  %v18679_v48 = vld [vmem:[#allocation2 + $0xe4c] ss:$112 sps:$4 sm:$0xff]  }
 0x458   : > { %10125 = vmatprep.subr.bf16.mxu0 %v18628_v50  ;;  %v18677_v50 = vld [vmem:[#allocation2 + $0xe48] ss:$112 sps:$4 sm:$0xff]  }
 0x45a   : > { %10261 = vmatpush1.bf16.msra.mxu1 %v18617_v49  ;;  %10117 = vmatmul.mubr.bf16.vlgmr.msra.gmra.mrb[16].mxu0 %v20164_v9  ;;  %v18680_v49 = vld [vmem:[#allocation2 + $0x1620] ss:$112 sps:$4 sm:$0xff]  }
 0x45b   : > { %10262 = vmatprep.subr.bf16.mxu1 %v18625_v52  ;;  %10126 = vmatpush1.bf16.msra.mxu0 %v18626_v53  ;;  %v18688_v52 = vld [vmem:[#allocation2 + $0x1704] ss:$112 sps:$4 sm:$0xff]   ;;  %v18685_v53 = vld [vmem:[#allocation2 + $0xf2c] ss:$112 sps:$4 sm:$0xff]  }
 0x45c   : > { %10157 = vmatprep.mubr.bf16.mxu0 %v20169_v36  ;;  %10127 = vmatprep.subr.bf16.mxu0 %v18634_v56  ;;  %v18683_v56 = vld [vmem:[#allocation2 + $0xf28] ss:$112 sps:$4 sm:$0xff]  }
 0x45e   : > { %10263 = vmatpush1.bf16.msra.mxu1 %v18623_v55  ;;  %v18686_v55 = vld [vmem:[#allocation2 + $0x1700] ss:$112 sps:$4 sm:$0xff]  }
 0x45f   : > { %10264 = vmatprep.subr.bf16.mxu1 %v18631_v59  ;;  %10128 = vmatpush1.bf16.msra.mxu0 %v18632_v61  ;;  %v18694_v59 = vld [vmem:[#allocation2 + $0x17e4] ss:$112 sps:$4 sm:$0xff]   ;;  %v18691_v61 = vld [vmem:[#allocation2 + $0x100c] ss:$112 sps:$4 sm:$0xff]  }
 0x460   : > { %10129 = vmatprep.subr.bf16.mxu0 %v18640_v3  ;;  %v18689_v3 = vld [vmem:[#allocation2 + $0x1008] ss:$112 sps:$4 sm:$0xff]  }
 0x462   : > { %10265 = vmatpush1.bf16.msra.mxu1 %v18629_v1  ;;  %v18692_v1 = vld [vmem:[#allocation2 + $0x17e0] ss:$112 sps:$4 sm:$0xff]  }
 0x463   : > { %10266 = vmatprep.subr.bf16.mxu1 %v18637_v4  ;;  %10130 = vmatpush1.bf16.msra.mxu0 %v18638_v5  ;;  %v18700_v4 = vld [vmem:[#allocation2 + $0x18c4] ss:$112 sps:$4 sm:$0xff]   ;;  %v18697_v5 = vld [vmem:[#allocation2 + $0x10ec] ss:$112 sps:$4 sm:$0xff]  }
 0x464   : > { %10131 = vmatprep.subr.bf16.mxu0 %v18646_v7  ;;  %v18695_v7 = vld [vmem:[#allocation2 + $0x10e8] ss:$112 sps:$4 sm:$0xff]  }
 0x466   : > { %10267 = vmatpush1.bf16.msra.mxu1 %v18635_v6  ;;  %v18698_v6 = vld [vmem:[#allocation2 + $0x18c0] ss:$112 sps:$4 sm:$0xff]  }
 0x467   : > { %10268 = vmatprep.subr.bf16.mxu1 %v18643_v8  ;;  %10132 = vmatpush1.bf16.msra.mxu0 %v18644_v11  ;;  %v18706_v8 = vld [vmem:[#allocation2 + $0x19a4] ss:$112 sps:$4 sm:$0xff]   ;;  %v18703_v11 = vld [vmem:[#allocation2 + $0x11cc] ss:$112 sps:$4 sm:$0xff]  }
 0x468   : > { %10133 = vmatprep.subr.bf16.mxu0 %v18652_v13  ;;  %v18701_v13 = vld [vmem:[#allocation2 + $0x11c8] ss:$112 sps:$4 sm:$0xff]  }
 0x46a   : > { %10269 = vmatpush1.bf16.msra.mxu1 %v18641_v12  ;;  %v18704_v12 = vld [vmem:[#allocation2 + $0x19a0] ss:$112 sps:$4 sm:$0xff]  }
 0x46b   : > { %10270 = vmatprep.subr.bf16.mxu1 %v18649_v14  ;;  %10134 = vmatpush1.bf16.msra.mxu0 %v18650_v15  ;;  %v18712_v14 = vld [vmem:[#allocation2 + $0x1a84] ss:$112 sps:$4 sm:$0xff]   ;;  %v18709_v15 = vld [vmem:[#allocation2 + $0x12ac] ss:$112 sps:$4 sm:$0xff]  }
 0x46c   : > { %10135 = vmatprep.subr.bf16.mxu0 %v18658_v20  ;;  %v18707_v20 = vld [vmem:[#allocation2 + $0x12a8] ss:$112 sps:$4 sm:$0xff]  }
 0x46e   : > { %10271 = vmatpush1.bf16.msra.mxu1 %v18647_v17  ;;  %v18710_v17 = vld [vmem:[#allocation2 + $0x1a80] ss:$112 sps:$4 sm:$0xff]  }
 0x46f   : > { %10272 = vmatprep.subr.bf16.mxu1 %v18655_v21  ;;  %10136 = vmatpush1.bf16.msra.mxu0 %v18656_v22  ;;  %v18718_v21 = vld [vmem:[#allocation2 + $0x1b64] ss:$112 sps:$4 sm:$0xff]   ;;  %v18715_v22 = vld [vmem:[#allocation2 + $0x138c] ss:$112 sps:$4 sm:$0xff]  }
 0x470   : > { %10137 = vmatprep.subr.bf16.mxu0 %v18664_v58  ;;  %v18713_v58 = vld [vmem:[#allocation2 + $0x1388] ss:$112 sps:$4 sm:$0xff]  }
 0x472   : > { %10273 = vmatpush1.bf16.msra.mxu1 %v18653_v30  ;;  %v18716_v30 = vld [vmem:[#allocation2 + $0x1b60] ss:$112 sps:$4 sm:$0xff]  }
 0x473   : > { %10274 = vmatprep.subr.bf16.mxu1 %v18661_v32  ;;  %10138 = vmatpush1.bf16.msra.mxu0 %v18662_v60  ;;  %v18724_v32 = vld [vmem:[#allocation2 + $0x1c44] ss:$112 sps:$4 sm:$0xff]   ;;  %v18721_v60 = vld [vmem:[#allocation2 + $0x146c] ss:$112 sps:$4 sm:$0xff]  }
 0x474   : > { %10139 = vmatprep.subr.bf16.mxu0 %v18670_v57  ;;  %v18719_v57 = vld [vmem:[#allocation2 + $0x1468] ss:$112 sps:$4 sm:$0xff]  }
 0x476   : > { %10275 = vmatpush1.bf16.msra.mxu1 %v18659_v34  ;;  %v18722_v34 = vld [vmem:[#allocation2 + $0x1c40] ss:$112 sps:$4 sm:$0xff]  }
 0x477   : > { %10276 = vmatprep.subr.bf16.mxu1 %v18667_v38  ;;  %10140 = vmatpush1.bf16.msra.mxu0 %v18668_v39  ;;  %v18730_v38 = vld [vmem:[#allocation2 + $0x1d24] ss:$112 sps:$4 sm:$0xff]   ;;  %v18727_v39 = vld [vmem:[#allocation2 + $0x154c] ss:$112 sps:$4 sm:$0xff]  }
 0x478   : > { %10141 = vmatprep.subr.bf16.mxu0 %v18676_v41  ;;  %v18725_v41 = vld [vmem:[#allocation2 + $0x1548] ss:$112 sps:$4 sm:$0xff]  }
 0x47a   : > { %10277 = vmatpush1.bf16.msra.mxu1 %v18665_v40  ;;  %v18728_v40 = vld [vmem:[#allocation2 + $0x1d20] ss:$112 sps:$4 sm:$0xff]  }
 0x47b   : > { %10278 = vmatprep.subr.bf16.mxu1 %v18673_v42  ;;  %10142 = vmatpush1.bf16.msra.mxu0 %v18674_v45  ;;  %v18736_v42 = vld [vmem:[#allocation2 + $0x1e04] ss:$112 sps:$4 sm:$0xff]   ;;  %v18733_v45 = vld [vmem:[#allocation2 + $0x162c] ss:$112 sps:$4 sm:$0xff]  }
 0x47c   : > { %10143 = vmatprep.subr.bf16.mxu0 %v18682_v47  ;;  %v18731_v47 = vld [vmem:[#allocation2 + $0x1628] ss:$112 sps:$4 sm:$0xff]  }
 0x47e   : > { %10279 = vmatpush1.bf16.msra.mxu1 %v18671_v46  ;;  %v18734_v46 = vld [vmem:[#allocation2 + $0x1e00] ss:$112 sps:$4 sm:$0xff]  }
 0x47f   : > { %10289 = vmatprep.subr.bf16.mxu1 %v18679_v48  ;;  %10144 = vmatpush1.bf16.msra.mxu0 %v18680_v49  ;;  %v18742_v48 = vld [vmem:[#allocation2 + $0x1ee4] ss:$112 sps:$4 sm:$0xff]   ;;  %v18739_v49 = vld [vmem:[#allocation2 + $0x170c] ss:$112 sps:$4 sm:$0xff]  }
 0x480   : > { %10145 = vmatprep.subr.bf16.mxu0 %v18688_v52  ;;  %v18737_v52 = vld [vmem:[#allocation2 + $0x1708] ss:$112 sps:$4 sm:$0xff]  }
 0x481   : > { %10281 = vmatmul.mubr.bf16.vlgmr.msra.gmra.mrb[24].mxu1 %v20164_v9 }
 0x482   : > { %10290 = vmatpush1.bf16.msra.mxu1 %v18677_v50  ;;  %10321 = vmatprep.mubr.bf16.mxu1 %v20169_v36  ;;  %v18740_v50 = vld [vmem:[#allocation2 + $0x1ee0] ss:$112 sps:$4 sm:$0xff]  }
 0x483   : > { %10291 = vmatprep.subr.bf16.mxu1 %v18685_v53  ;;  %10146 = vmatpush1.bf16.msra.mxu0 %v18686_v55  ;;  %v18748_v53 = vld [vmem:[#allocation2 + $0x1fc4] ss:$112 sps:$4 sm:$0xff]   ;;  %v18745_v55 = vld [vmem:[#allocation2 + $0x17ec] ss:$112 sps:$4 sm:$0xff]  }
 0x484   : > { %10147 = vmatprep.subr.bf16.mxu0 %v18694_v59  ;;  %v18743_v59 = vld [vmem:[#allocation2 + $0x17e8] ss:$112 sps:$4 sm:$0xff]  }
 0x486   : > { %10292 = vmatpush1.bf16.msra.mxu1 %v18683_v56  ;;  %v18746_v56 = vld [vmem:[#allocation2 + $0x1fc0] ss:$112 sps:$4 sm:$0xff]  }
 0x487   : > { %10293 = vmatprep.subr.bf16.mxu1 %v18691_v61  ;;  %10148 = vmatpush1.bf16.msra.mxu0 %v18692_v1  ;;  %v18754_v61 = vld [vmem:[#allocation2 + $0x20a4] ss:$112 sps:$4 sm:$0xff]   ;;  %v18751_v1 = vld [vmem:[#allocation2 + $0x18cc] ss:$112 sps:$4 sm:$0xff]  }
 0x488   : > { %10149 = vmatprep.subr.bf16.mxu0 %v18700_v4  ;;  %v18749_v4 = vld [vmem:[#allocation2 + $0x18c8] ss:$112 sps:$4 sm:$0xff]  }
 0x48a   : > { %10294 = vmatpush1.bf16.msra.mxu1 %v18689_v3  ;;  %v18752_v3 = vld [vmem:[#allocation2 + $0x20a0] ss:$112 sps:$4 sm:$0xff]  }
 0x48b   : > { %10295 = vmatprep.subr.bf16.mxu1 %v18697_v5  ;;  %10150 = vmatpush1.bf16.msra.mxu0 %v18698_v6  ;;  %v18760_v5 = vld [vmem:[#allocation2 + $0x2184] ss:$112 sps:$4 sm:$0xff]   ;;  %v18757_v6 = vld [vmem:[#allocation2 + $0x19ac] ss:$112 sps:$4 sm:$0xff]  }
 0x48c   : > { %10151 = vmatprep.subr.bf16.mxu0 %v18706_v8  ;;  %v18755_v8 = vld [vmem:[#allocation2 + $0x19a8] ss:$112 sps:$4 sm:$0xff]  }
 0x48e   : > { %10296 = vmatpush1.bf16.msra.mxu1 %v18695_v7  ;;  %v18758_v7 = vld [vmem:[#allocation2 + $0x2180] ss:$112 sps:$4 sm:$0xff]  }
 0x48f   : > { %10297 = vmatprep.subr.bf16.mxu1 %v18703_v11  ;;  %10152 = vmatpush1.bf16.msra.mxu0 %v18704_v12  ;;  %v18766_v11 = vld [vmem:[#allocation2 + $0x2264] ss:$112 sps:$4 sm:$0xff]   ;;  %v18763_v12 = vld [vmem:[#allocation2 + $0x1a8c] ss:$112 sps:$4 sm:$0xff]  }
 0x490   : > { %10153 = vmatprep.subr.bf16.mxu0 %v18712_v14  ;;  %v18761_v14 = vld [vmem:[#allocation2 + $0x1a88] ss:$112 sps:$4 sm:$0xff]  }
 0x492   : > { %10298 = vmatpush1.bf16.msra.mxu1 %v18701_v13  ;;  %v18764_v13 = vld [vmem:[#allocation2 + $0x2260] ss:$112 sps:$4 sm:$0xff]  }
 0x493   : > { %10299 = vmatprep.subr.bf16.mxu1 %v18709_v15  ;;  %10154 = vmatpush1.bf16.msra.mxu0 %v18710_v17  ;;  %v18772_v15 = vld [vmem:[#allocation2 + $0x2344] ss:$112 sps:$4 sm:$0xff]   ;;  %v18769_v17 = vld [vmem:[#allocation2 + $0x1b6c] ss:$112 sps:$4 sm:$0xff]  }
 0x494   : > { %10155 = vmatprep.subr.bf16.mxu0 %v18718_v21  ;;  %v18767_v21 = vld [vmem:[#allocation2 + $0x1b68] ss:$112 sps:$4 sm:$0xff]  }
 0x496   : > { %10300 = vmatpush1.bf16.msra.mxu1 %v18707_v20  ;;  %v18770_v20 = vld [vmem:[#allocation2 + $0x2340] ss:$112 sps:$4 sm:$0xff]  }
 0x497   : > { %10301 = vmatprep.subr.bf16.mxu1 %v18715_v22  ;;  %10156 = vmatpush1.bf16.msra.mxu0 %v18716_v30  ;;  %v18778_v22 = vld [vmem:[#allocation2 + $0x2424] ss:$112 sps:$4 sm:$0xff]   ;;  %v18775_v30 = vld [vmem:[#allocation2 + $0x1c4c] ss:$112 sps:$4 sm:$0xff]  }
 0x498   : > { %10166 = vmatprep.subr.bf16.mxu0 %v18724_v32  ;;  %v18773_v32 = vld [vmem:[#allocation2 + $0x1c48] ss:$112 sps:$4 sm:$0xff]  }
 0x49a   : > { %10302 = vmatpush1.bf16.msra.mxu1 %v18713_v58  ;;  %10158 = vmatmul.mubr.bf16.vlgmr.msra.gmra.mrb[16].mxu0 %v20174_v18  ;;  %v18776_v58 = vld [vmem:[#allocation2 + $0x2420] ss:$112 sps:$4 sm:$0xff]  }
 0x49b   : > { %10303 = vmatprep.subr.bf16.mxu1 %v18721_v60  ;;  %10167 = vmatpush1.bf16.msra.mxu0 %v18722_v34  ;;  %v18784_v60 = vld [vmem:[#allocation2 + $0x2504] ss:$112 sps:$4 sm:$0xff]   ;;  %v18781_v34 = vld [vmem:[#allocation2 + $0x1d2c] ss:$112 sps:$4 sm:$0xff]  }
 0x49c   : > { %10198 = vmatprep.mubr.bf16.mxu0 %v20177_v24  ;;  %10168 = vmatprep.subr.bf16.mxu0 %v18730_v38  ;;  %v18779_v38 = vld [vmem:[#allocation2 + $0x1d28] ss:$112 sps:$4 sm:$0xff]  }
 0x49e   : > { %10304 = vmatpush1.bf16.msra.mxu1 %v18719_v57  ;;  %v18782_v57 = vld [vmem:[#allocation2 + $0x2500] ss:$112 sps:$4 sm:$0xff]  }
 0x49f   : > { %10305 = vmatprep.subr.bf16.mxu1 %v18727_v39  ;;  %10169 = vmatpush1.bf16.msra.mxu0 %v18728_v40  ;;  %v18790_v39 = vld [vmem:[#allocation2 + $0x25e4] ss:$112 sps:$4 sm:$0xff]   ;;  %v18787_v40 = vld [vmem:[#allocation2 + $0x1e0c] ss:$112 sps:$4 sm:$0xff]  }
 0x4a0   : > { %10170 = vmatprep.subr.bf16.mxu0 %v18736_v42  ;;  %v18785_v42 = vld [vmem:[#allocation2 + $0x1e08] ss:$112 sps:$4 sm:$0xff]  }
 0x4a2   : > { %10306 = vmatpush1.bf16.msra.mxu1 %v18725_v41  ;;  %v18788_v41 = vld [vmem:[#allocation2 + $0x25e0] ss:$112 sps:$4 sm:$0xff]  }
 0x4a3   : > { %10307 = vmatprep.subr.bf16.mxu1 %v18733_v45  ;;  %10171 = vmatpush1.bf16.msra.mxu0 %v18734_v46  ;;  %v18796_v45 = vld [vmem:[#allocation2 + $0x26c4] ss:$112 sps:$4 sm:$0xff]   ;;  %v18793_v46 = vld [vmem:[#allocation2 + $0x1eec] ss:$112 sps:$4 sm:$0xff]  }
 0x4a4   : > { %10172 = vmatprep.subr.bf16.mxu0 %v18742_v48  ;;  %v18791_v48 = vld [vmem:[#allocation2 + $0x1ee8] ss:$112 sps:$4 sm:$0xff]  }
 0x4a6   : > { %10308 = vmatpush1.bf16.msra.mxu1 %v18731_v47  ;;  %v18794_v47 = vld [vmem:[#allocation2 + $0x26c0] ss:$112 sps:$4 sm:$0xff]  }
 0x4a7   : > { %10309 = vmatprep.subr.bf16.mxu1 %v18739_v49  ;;  %10173 = vmatpush1.bf16.msra.mxu0 %v18740_v50  ;;  %v18802_v49 = vld [vmem:[#allocation2 + $0x27a4] ss:$112 sps:$4 sm:$0xff]   ;;  %v18799_v50 = vld [vmem:[#allocation2 + $0x1fcc] ss:$112 sps:$4 sm:$0xff]  }
 0x4a8   : > { %10174 = vmatprep.subr.bf16.mxu0 %v18748_v53  ;;  %v18797_v53 = vld [vmem:[#allocation2 + $0x1fc8] ss:$112 sps:$4 sm:$0xff]  }
 0x4aa   : > { %10310 = vmatpush1.bf16.msra.mxu1 %v18737_v52  ;;  %v18800_v52 = vld [vmem:[#allocation2 + $0x27a0] ss:$112 sps:$4 sm:$0xff]  }
 0x4ab   : > { %10311 = vmatprep.subr.bf16.mxu1 %v18745_v55  ;;  %10175 = vmatpush1.bf16.msra.mxu0 %v18746_v56  ;;  %v18808_v55 = vld [vmem:[#allocation2 + $0x2884] ss:$112 sps:$4 sm:$0xff]   ;;  %v18805_v56 = vld [vmem:[#allocation2 + $0x20ac] ss:$112 sps:$4 sm:$0xff]  }
 0x4ac   : > { %10176 = vmatprep.subr.bf16.mxu0 %v18754_v61  ;;  %v18803_v61 = vld [vmem:[#allocation2 + $0x20a8] ss:$112 sps:$4 sm:$0xff]  }
 0x4ae   : > { %10312 = vmatpush1.bf16.msra.mxu1 %v18743_v59  ;;  %v18806_v59 = vld [vmem:[#allocation2 + $0x2880] ss:$112 sps:$4 sm:$0xff]  }
 0x4af   : > { %10313 = vmatprep.subr.bf16.mxu1 %v18751_v1  ;;  %10177 = vmatpush1.bf16.msra.mxu0 %v18752_v3  ;;  %v18814_v1 = vld [vmem:[#allocation2 + $0x2964] ss:$112 sps:$4 sm:$0xff]   ;;  %v18811_v3 = vld [vmem:[#allocation2 + $0x218c] ss:$112 sps:$4 sm:$0xff]  }
 0x4b0   : > { %10178 = vmatprep.subr.bf16.mxu0 %v18760_v5  ;;  %v18809_v5 = vld [vmem:[#allocation2 + $0x2188] ss:$112 sps:$4 sm:$0xff]  }
 0x4b2   : > { %10314 = vmatpush1.bf16.msra.mxu1 %v18749_v4  ;;  %v18812_v4 = vld [vmem:[#allocation2 + $0x2960] ss:$112 sps:$4 sm:$0xff]  }
 0x4b3   : > { %10315 = vmatprep.subr.bf16.mxu1 %v18757_v6  ;;  %10179 = vmatpush1.bf16.msra.mxu0 %v18758_v7  ;;  %v18820_v6 = vld [vmem:[#allocation2 + $0x2a44] ss:$112 sps:$4 sm:$0xff]   ;;  %v18817_v7 = vld [vmem:[#allocation2 + $0x226c] ss:$112 sps:$4 sm:$0xff]  }
 0x4b4   : > { %10180 = vmatprep.subr.bf16.mxu0 %v18766_v11  ;;  %v18815_v11 = vld [vmem:[#allocation2 + $0x2268] ss:$112 sps:$4 sm:$0xff]  }
 0x4b6   : > { %10316 = vmatpush1.bf16.msra.mxu1 %v18755_v8  ;;  %v18818_v8 = vld [vmem:[#allocation2 + $0x2a40] ss:$112 sps:$4 sm:$0xff]  }
 0x4b7   : > { %10317 = vmatprep.subr.bf16.mxu1 %v18763_v12  ;;  %10181 = vmatpush1.bf16.msra.mxu0 %v18764_v13  ;;  %v18832_v12 = vld [vmem:[#allocation2 + $0x54] ss:$112 sps:$4 sm:$0xff]   ;;  %v18823_v13 = vld [vmem:[#allocation2 + $0x234c] ss:$112 sps:$4 sm:$0xff]  }
 0x4b8   : > { %10182 = vmatprep.subr.bf16.mxu0 %v18772_v15  ;;  %v18826_v15 = vld [vmem:[#allocation2 + $0x242c] ss:$112 sps:$4 sm:$0xff]  }
 0x4ba   : > { %10318 = vmatpush1.bf16.msra.mxu1 %v18761_v14  ;;  %v18821_v14 = vld [vmem:[#allocation2 + $0x2348] ss:$112 sps:$4 sm:$0xff]  }
 0x4bb   : > { %10319 = vmatprep.subr.bf16.mxu1 %v18769_v17  ;;  %10183 = vmatpush1.bf16.msra.mxu0 %v18770_v20  ;;  %v18824_v17 = vld [vmem:[#allocation2 + $0x2428] ss:$112 sps:$4 sm:$0xff]   ;;  %v18829_v20 = vld [vmem:[#allocation2 + $0x250c] ss:$112 sps:$4 sm:$0xff]  }
 0x4bc   : > { %10184 = vmatprep.subr.bf16.mxu0 %v18778_v22  ;;  %v18827_v22 = vld [vmem:[#allocation2 + $0x2508] ss:$112 sps:$4 sm:$0xff]  }
 0x4be   : > { %10320 = vmatpush1.bf16.msra.mxu1 %v18767_v21  ;;  %v18830_v21 = vld [vmem:[#allocation2 + $0x50] ss:$112 sps:$4 sm:$0xff]  }
 0x4bf   : > { %10330 = vmatprep.subr.bf16.mxu1 %v18775_v30  ;;  %10185 = vmatpush1.bf16.msra.mxu0 %v18776_v58  ;;  %v18838_v30 = vld [vmem:[#allocation2 + $0x134] ss:$112 sps:$4 sm:$0xff]   ;;  %v18835_v58 = vld [vmem:[#allocation2 + $0x25ec] ss:$112 sps:$4 sm:$0xff]  }
 0x4c0   : > { %10186 = vmatprep.subr.bf16.mxu0 %v18784_v60  ;;  %v18833_v60 = vld [vmem:[#allocation2 + $0x25e8] ss:$112 sps:$4 sm:$0xff]  }
 0x4c1   : > { %10322 = vmatmul.mubr.bf16.vlgmr.msra.gmra.mrb[24].mxu1 %v20174_v18 }
 0x4c2   : > { %10331 = vmatpush1.bf16.msra.mxu1 %v18773_v32  ;;  %10362 = vmatprep.mubr.bf16.mxu1 %v20177_v24  ;;  %v18836_v32 = vld [vmem:[#allocation2 + $0x130] ss:$112 sps:$4 sm:$0xff]  }
 0x4c3   : > { %10332 = vmatprep.subr.bf16.mxu1 %v18781_v34  ;;  %10187 = vmatpush1.bf16.msra.mxu0 %v18782_v57  ;;  %v18844_v34 = vld [vmem:[#allocation2 + $0x214] ss:$112 sps:$4 sm:$0xff]   ;;  %v18841_v57 = vld [vmem:[#allocation2 + $0x26cc] ss:$112 sps:$4 sm:$0xff]  }
 0x4c4   : > { %10188 = vmatprep.subr.bf16.mxu0 %v18790_v39  ;;  %v18839_v39 = vld [vmem:[#allocation2 + $0x26c8] ss:$112 sps:$4 sm:$0xff]  }
 0x4c6   : > { %10333 = vmatpush1.bf16.msra.mxu1 %v18779_v38  ;;  %v18842_v38 = vld [vmem:[#allocation2 + $0x210] ss:$112 sps:$4 sm:$0xff]  }
 0x4c7   : > { %10334 = vmatprep.subr.bf16.mxu1 %v18787_v40  ;;  %10189 = vmatpush1.bf16.msra.mxu0 %v18788_v41  ;;  %v18850_v40 = vld [vmem:[#allocation2 + $0x2f4] ss:$112 sps:$4 sm:$0xff]  }
 0x4c8   : > { %10190 = vmatprep.subr.bf16.mxu0 %v18796_v45 }
 0x4ca   : > { %10335 = vmatpush1.bf16.msra.mxu1 %v18785_v42  ;;  %v18847_v42 = vld [vmem:[#allocation2 + $0x27ac] ss:$112 sps:$4 sm:$0xff]  }
 0x4cb   : > { %10336 = vmatprep.subr.bf16.mxu1 %v18793_v46  ;;  %10191 = vmatpush1.bf16.msra.mxu0 %v18794_v47 }
 0x4cc   : > { %10192 = vmatprep.subr.bf16.mxu0 %v18802_v49  ;;  %v18848_v49 = vld [vmem:[#allocation2 + $0x2f0] ss:$112 sps:$4 sm:$0xff]  }
 0x4ce   : > { %10337 = vmatpush1.bf16.msra.mxu1 %v18791_v48 }
 0x4cf   : > { %10338 = vmatprep.subr.bf16.mxu1 %v18799_v50  ;;  %10193 = vmatpush1.bf16.msra.mxu0 %v18800_v52  ;;  %v18845_v50 = vld [vmem:[#allocation2 + $0x27a8] ss:$112 sps:$4 sm:$0xff]  }
 0x4d0   : > { %10194 = vmatprep.subr.bf16.mxu0 %v18808_v55  ;;  %v18853_v55 = vld [vmem:[#allocation2 + $0x288c] ss:$112 sps:$4 sm:$0xff]  }
 0x4d2   : > { %10339 = vmatpush1.bf16.msra.mxu1 %v18797_v53  ;;  %v18856_v53 = vld [vmem:[#allocation2 + $0x3d4] ss:$112 sps:$4 sm:$0xff]  }
 0x4d3   : > { %10340 = vmatprep.subr.bf16.mxu1 %v18805_v56  ;;  %10195 = vmatpush1.bf16.msra.mxu0 %v18806_v59  ;;  %v18854_v56 = vld [vmem:[#allocation2 + $0x3d0] ss:$112 sps:$4 sm:$0xff]   ;;  %v18851_v59 = vld [vmem:[#allocation2 + $0x2888] ss:$112 sps:$4 sm:$0xff]  }
 0x4d4   : > { %10196 = vmatprep.subr.bf16.mxu0 %v18814_v1  ;;  %v18859_v1 = vld [vmem:[#allocation2 + $0x296c] ss:$112 sps:$4 sm:$0xff]  }
 0x4d6   : > { %10341 = vmatpush1.bf16.msra.mxu1 %v18803_v61  ;;  %v18862_v61 = vld [vmem:[#allocation2 + $0x4b4] ss:$112 sps:$4 sm:$0xff]  }
 0x4d7   : > { %10342 = vmatprep.subr.bf16.mxu1 %v18811_v3  ;;  %10197 = vmatpush1.bf16.msra.mxu0 %v18812_v4  ;;  %v18860_v3 = vld [vmem:[#allocation2 + $0x4b0] ss:$112 sps:$4 sm:$0xff]   ;;  %v18857_v4 = vld [vmem:[#allocation2 + $0x2968] ss:$112 sps:$4 sm:$0xff]  }
 0x4d8   : > { %10207 = vmatprep.subr.bf16.mxu0 %v18820_v6  ;;  %v18871_v6 = vld [vmem:[#allocation2 + $0x2a4c] ss:$112 sps:$4 sm:$0xff]  }
 0x4da   : > { %10343 = vmatpush1.bf16.msra.mxu1 %v18809_v5  ;;  %10199 = vmatmul.mubr.bf16.vlgmr.msra.gmra.mrb[16].mxu0 %v20184_v29  ;;  %v18865_v5 = vld [vmem:[#allocation2 + $0x594] ss:$112 sps:$4 sm:$0xff]  }
 0x4db   : > { %10344 = vmatprep.subr.bf16.mxu1 %v18817_v7  ;;  %10208 = vmatpush1.bf16.msra.mxu0 %v18818_v8  ;;  %v18863_v7 = vld [vmem:[#allocation2 + $0x590] ss:$112 sps:$4 sm:$0xff]   ;;  %v18868_v8 = vld [vmem:[#allocation2 + $0x674] ss:$112 sps:$4 sm:$0xff]  }
 0x4dc   : > { %10239 = vmatprep.mubr.bf16.mxu0 %v19797_v0  ;;  %10412 = vmatprep.subr.bf16.mxu0 %v18832_v12  ;;  %v18877_v12 = vld [vmem:[#allocation2 + $0x5c] ss:$112 sps:$4 sm:$0xff]  }
 0x4de   : > { %10345 = vmatpush1.bf16.msra.mxu1 %v18815_v11  ;;  %v18869_v11 = vld [vmem:[#allocation2 + $0x2a48] ss:$112 sps:$4 sm:$0xff]  }
 0x4df   : > { %10346 = vmatprep.subr.bf16.mxu1 %v18823_v13  ;;  %v18866_v13 = vld [vmem:[#allocation2 + $0x670] ss:$112 sps:$4 sm:$0xff]  }
 0x4e2   : > { %10347 = vmatpush1.bf16.msra.mxu1 %v18821_v14  ;;  %v18874_v14 = vld [vmem:[#allocation2 + $0x754] ss:$112 sps:$4 sm:$0xff]  }
 0x4e3   : > { %10348 = vmatprep.subr.bf16.mxu1 %v18826_v15  ;;  %v18872_v15 = vld [vmem:[#allocation2 + $0x750] ss:$112 sps:$4 sm:$0xff]  }
 0x4e6   : > { %10349 = vmatpush1.bf16.msra.mxu1 %v18824_v17  ;;  %16476 = vmatmul.mubr.msk.bf16.vlgmr.msra.gmra.mrb[16].mxu0 %vm8768_vm0, %v20154_v10  ;;  %v18880_v17 = vld [vmem:[#allocation2 + $0x834] ss:$112 sps:$4 sm:$0xff]  }
 0x4e7   : > { %10350 = vmatprep.subr.bf16.mxu1 %v18829_v20  ;;  %10413 = vmatpush1.bf16.msra.mxu0 %v18830_v21  ;;  %v18878_v20 = vld [vmem:[#allocation2 + $0x830] ss:$112 sps:$4 sm:$0xff]   ;;  %v18875_v21 = vld [vmem:[#allocation2 + $0x58] ss:$112 sps:$4 sm:$0xff]  }
 0x4e8   : > { %10444 = vmatprep.mubr.bf16.mxu0 %v20159_v51  ;;  %10414 = vmatprep.subr.bf16.mxu0 %v18838_v30  ;;  %v18883_v30 = vld [vmem:[#allocation2 + $0x13c] ss:$112 sps:$4 sm:$0xff]  }
 0x4ea   : > { %10351 = vmatpush1.bf16.msra.mxu1 %v18827_v22  ;;  %v18886_v22 = vld [vmem:[#allocation2 + $0x914] ss:$112 sps:$4 sm:$0xff]  }
 0x4eb   : > { %10352 = vmatprep.subr.bf16.mxu1 %v18835_v58  ;;  %10415 = vmatpush1.bf16.msra.mxu0 %v18836_v32  ;;  %v18884_v58 = vld [vmem:[#allocation2 + $0x910] ss:$112 sps:$4 sm:$0xff]   ;;  %v18881_v32 = vld [vmem:[#allocation2 + $0x138] ss:$112 sps:$4 sm:$0xff]  }
 0x4ec   : > { %10416 = vmatprep.subr.bf16.mxu0 %v18844_v34  ;;  %v18889_v34 = vld [vmem:[#allocation2 + $0x21c] ss:$112 sps:$4 sm:$0xff]  }
 0x4ed   : > { %v20306_v41 = vpop.f32.mrb[12].mxu0 }
 0x4ee   : > { %10353 = vmatpush1.bf16.msra.mxu1 %v18833_v60  ;;  %v11073_v45 = vmax.f32 %v20246_v19, %v20306_v41  ;;  %v20310_v46 = vpop.f32.mrb[13].mxu0  ;;  %v18892_v60 = vld [vmem:[#allocation2 + $0x9f4] ss:$112 sps:$4 sm:$0xff]  }
 0x4ef   : > { %10354 = vmatprep.subr.bf16.mxu1 %v18841_v57  ;;  %10417 = vmatpush1.bf16.msra.mxu0 %v18842_v38  ;;  %v11074_v47 = vmax.f32 %v20253_v62, %v20310_v46  ;;  %v9917_v48 = vpop.f32.mrb[14].mxu0  ;;  %v18890_v57 = vld [vmem:[#allocation2 + $0x9f0] ss:$112 sps:$4 sm:$0xff]   ;;  %v18887_v38 = vld [vmem:[#allocation2 + $0x218] ss:$112 sps:$4 sm:$0xff]  }
 0x4f0   : > { %v9918_v52 = vpop.f32.mrb[15].mxu0  ;;  %10418 = vmatprep.subr.bf16.mxu0 %v18850_v40  ;;  %v18895_v40 = vld [vmem:[#allocation2 + $0x2fc] ss:$112 sps:$4 sm:$0xff]   ;;  %v11488_v19 = vld [vmem:[#allocation6 + $0xaa8] sm:$0xff] }
 0x4f1   : > { %v18893_v52 = vld [vmem:[#allocation2 + $0x2f8] ss:$112 sps:$4 sm:$0xff]  }
 0x4f2   : > { %10355 = vmatpush1.bf16.msra.mxu1 %v18839_v39  ;;  %v18898_v39 = vld [vmem:[#allocation2 + $0xad4] ss:$112 sps:$4 sm:$0xff]  }
 0x4f3   : > { %10356 = vmatprep.subr.bf16.mxu1 %v18847_v42  ;;  %10419 = vmatpush1.bf16.msra.mxu0 %v18848_v49  ;;  %v18896_v49 = vld [vmem:[#allocation2 + $0xad0] ss:$112 sps:$4 sm:$0xff]  }
 0x4f4   : > { %10420 = vmatprep.subr.bf16.mxu0 %v18856_v53  ;;  %v18904_v53 = vld [vmem:[#allocation2 + $0xbb4] ss:$112 sps:$4 sm:$0xff]  }
 0x4f6   : > { %10357 = vmatpush1.bf16.msra.mxu1 %v18845_v50 }
 0x4f7   : > { %10358 = vmatprep.subr.bf16.mxu1 %v18853_v55  ;;  %10421 = vmatpush1.bf16.msra.mxu0 %v18854_v56  ;;  %v18901_v56 = vld [vmem:[#allocation2 + $0x3dc] ss:$112 sps:$4 sm:$0xff]  }
 0x4f8   : > { %10422 = vmatprep.subr.bf16.mxu0 %v18862_v61  ;;  %v18899_v61 = vld [vmem:[#allocation2 + $0x3d8] ss:$112 sps:$4 sm:$0xff]  }
 0x4fa   : > { %10359 = vmatpush1.bf16.msra.mxu1 %v18851_v59  ;;  %v18902_v59 = vld [vmem:[#allocation2 + $0xbb0] ss:$112 sps:$4 sm:$0xff]  }
 0x4fb   : > { %10360 = vmatprep.subr.bf16.mxu1 %v18859_v1  ;;  %10423 = vmatpush1.bf16.msra.mxu0 %v18860_v3  ;;  %v18910_v1 = vld [vmem:[#allocation2 + $0xc94] ss:$112 sps:$4 sm:$0xff]   ;;  %v18907_v3 = vld [vmem:[#allocation2 + $0x4bc] ss:$112 sps:$4 sm:$0xff]  }
 0x4fc   : > { %10424 = vmatprep.subr.bf16.mxu0 %v18865_v5  ;;  %v18905_v5 = vld [vmem:[#allocation2 + $0x4b8] ss:$112 sps:$4 sm:$0xff]  }
 0x4fe   : > { %10361 = vmatpush1.bf16.msra.mxu1 %v18857_v4  ;;  %v18908_v4 = vld [vmem:[#allocation2 + $0xc90] ss:$112 sps:$4 sm:$0xff]  }
 0x4ff   : > { %10371 = vmatprep.subr.bf16.mxu1 %v18871_v6  ;;  %10425 = vmatpush1.bf16.msra.mxu0 %v18863_v7  ;;  %v18916_v6 = vld [vmem:[#allocation2 + $0xd74] ss:$112 sps:$4 sm:$0xff]   ;;  %v18913_v7 = vld [vmem:[#allocation2 + $0x59c] ss:$112 sps:$4 sm:$0xff]  }
 0x500   : > { %10426 = vmatprep.subr.bf16.mxu0 %v18868_v8  ;;  %v18914_v8 = vld [vmem:[#allocation2 + $0xd70] ss:$112 sps:$4 sm:$0xff]  }
 0x501   : > { %10363 = vmatmul.mubr.bf16.vlgmr.msra.gmra.mrb[24].mxu1 %v20184_v29 }
 0x502   : > { %10372 = vmatpush1.bf16.msra.mxu1 %v18869_v11  ;;  %10403 = vmatprep.mubr.bf16.mxu1 %v19797_v0  ;;  %v18911_v11 = vld [vmem:[#allocation2 + $0x598] ss:$112 sps:$4 sm:$0xff]  }
 0x503   : > { %10576 = vmatprep.subr.bf16.mxu1 %v18877_v12  ;;  %10427 = vmatpush1.bf16.msra.mxu0 %v18866_v13  ;;  %v18922_v12 = vld [vmem:[#allocation2 + $0xe54] ss:$112 sps:$4 sm:$0xff]   ;;  %v18919_v13 = vld [vmem:[#allocation2 + $0x67c] ss:$112 sps:$4 sm:$0xff]  }
 0x504   : > { %10428 = vmatprep.subr.bf16.mxu0 %v18874_v14  ;;  %v18920_v14 = vld [vmem:[#allocation2 + $0xe50] ss:$112 sps:$4 sm:$0xff]  }
 0x507   : > { %10429 = vmatpush1.bf16.msra.mxu0 %v18872_v15  ;;  %v18917_v15 = vld [vmem:[#allocation2 + $0x678] ss:$112 sps:$4 sm:$0xff]  }
 0x508   : > { %10430 = vmatprep.subr.bf16.mxu0 %v18880_v17  ;;  %v18928_v17 = vld [vmem:[#allocation2 + $0xf34] ss:$112 sps:$4 sm:$0xff]  }
 0x50b   : > { %10431 = vmatpush1.bf16.msra.mxu0 %v18878_v20  ;;  %v18925_v20 = vld [vmem:[#allocation2 + $0x75c] ss:$112 sps:$4 sm:$0xff]  }
 0x50c   : > { %10432 = vmatprep.subr.bf16.mxu0 %v18886_v22  ;;  %v18923_v22 = vld [vmem:[#allocation2 + $0x758] ss:$112 sps:$4 sm:$0xff]  }
 0x50d   : > { %16477 = vmatmul.mubr.msk.bf16.vlgmr.msra.gmra.mrb[24].mxu1 %vm8768_vm0, %v20154_v10 }
 0x50e   : > { %10577 = vmatpush1.bf16.msra.mxu1 %v18875_v21  ;;  %10608 = vmatprep.mubr.bf16.mxu1 %v20159_v51  ;;  %v18926_v21 = vld [vmem:[#allocation2 + $0xf30] ss:$112 sps:$4 sm:$0xff]  }
 0x50f   : > { %10578 = vmatprep.subr.bf16.mxu1 %v18883_v30  ;;  %10433 = vmatpush1.bf16.msra.mxu0 %v18884_v58  ;;  %v18934_v30 = vld [vmem:[#allocation2 + $0x1014] ss:$112 sps:$4 sm:$0xff]   ;;  %v18931_v58 = vld [vmem:[#allocation2 + $0x83c] ss:$112 sps:$4 sm:$0xff]  }
 0x510   : > { %10434 = vmatprep.subr.bf16.mxu0 %v18892_v60  ;;  %v18929_v60 = vld [vmem:[#allocation2 + $0x838] ss:$112 sps:$4 sm:$0xff]  }
 0x512   : > { %10579 = vmatpush1.bf16.msra.mxu1 %v18881_v32  ;;  %v18932_v32 = vld [vmem:[#allocation2 + $0x1010] ss:$112 sps:$4 sm:$0xff]  }
 0x513   : > { %10580 = vmatprep.subr.bf16.mxu1 %v18889_v34  ;;  %10435 = vmatpush1.bf16.msra.mxu0 %v18890_v57  ;;  %v18940_v34 = vld [vmem:[#allocation2 + $0x10f4] ss:$112 sps:$4 sm:$0xff]   ;;  %v18937_v57 = vld [vmem:[#allocation2 + $0x91c] ss:$112 sps:$4 sm:$0xff]  }
 0x514   : > { %v20319_v42 = vpop.f32.mrb[20].mxu1  ;;  %10436 = vmatprep.subr.bf16.mxu0 %v18898_v39  ;;  %v18935_v39 = vld [vmem:[#allocation2 + $0x918] ss:$112 sps:$4 sm:$0xff]  }
 0x515   : > { %v20321_v48 = vpop.f32.mrb[21].mxu1 }
 0x516   : > { %10581 = vmatpush1.bf16.msra.mxu1 %v18887_v38  ;;  %v10081_v50 = vpop.f32.mrb[22].mxu1  ;;  %v18938_v38 = vld [vmem:[#allocation2 + $0x10f0] ss:$112 sps:$4 sm:$0xff]  }
 0x517   : > { %v10082_v55 = vpop.f32.mrb[23].mxu1  ;;  %10582 = vmatprep.subr.bf16.mxu1 %v18895_v40  ;;  %10437 = vmatpush1.bf16.msra.mxu0 %v18896_v49  ;;  %v18946_v40 = vld [vmem:[#allocation2 + $0x11d4] ss:$112 sps:$4 sm:$0xff]   ;;  %v18943_v49 = vld [vmem:[#allocation2 + $0x9fc] ss:$112 sps:$4 sm:$0xff]  }
 0x518   : > { %10438 = vmatprep.subr.bf16.mxu0 %v18904_v53  ;;  %v18944_v50 = vld [vmem:[#allocation2 + $0x11d0] ss:$112 sps:$4 sm:$0xff]   ;;  %v18952_v53 = vld [vmem:[#allocation2 + $0x12b4] ss:$112 sps:$4 sm:$0xff]   ;;  %v18949_v55 = vld [vmem:[#allocation2 + $0xadc] ss:$112 sps:$4 sm:$0xff]  }
 0x51a   : > { %10583 = vmatpush1.bf16.msra.mxu1 %v18893_v52  ;;  %v18941_v52 = vld [vmem:[#allocation2 + $0x9f8] ss:$112 sps:$4 sm:$0xff]  }
 0x51b   : > { %10584 = vmatprep.subr.bf16.mxu1 %v18901_v56  ;;  %10439 = vmatpush1.bf16.msra.mxu0 %v18902_v59  ;;  %v18950_v56 = vld [vmem:[#allocation2 + $0x12b0] ss:$112 sps:$4 sm:$0xff]   ;;  %v18947_v59 = vld [vmem:[#allocation2 + $0xad8] ss:$112 sps:$4 sm:$0xff]  }
 0x51c   : > { %10440 = vmatprep.subr.bf16.mxu0 %v18910_v1  ;;  %v18955_v1 = vld [vmem:[#allocation2 + $0xbbc] ss:$112 sps:$4 sm:$0xff]  }
 0x51e   : > { %10585 = vmatpush1.bf16.msra.mxu1 %v18899_v61  ;;  %v18958_v61 = vld [vmem:[#allocation2 + $0x1394] ss:$112 sps:$4 sm:$0xff]  }
 0x51f   : > { %10586 = vmatprep.subr.bf16.mxu1 %v18907_v3  ;;  %10441 = vmatpush1.bf16.msra.mxu0 %v18908_v4  ;;  %v18956_v3 = vld [vmem:[#allocation2 + $0x1390] ss:$112 sps:$4 sm:$0xff]   ;;  %v18953_v4 = vld [vmem:[#allocation2 + $0xbb8] ss:$112 sps:$4 sm:$0xff]  }
 0x520   : > { %10442 = vmatprep.subr.bf16.mxu0 %v18916_v6  ;;  %v18961_v6 = vld [vmem:[#allocation2 + $0xc9c] ss:$112 sps:$4 sm:$0xff]  }
 0x522   : > { %10587 = vmatpush1.bf16.msra.mxu1 %v18905_v5  ;;  %v18964_v5 = vld [vmem:[#allocation2 + $0x1474] ss:$112 sps:$4 sm:$0xff]  }
 0x523   : > { %10588 = vmatprep.subr.bf16.mxu1 %v18913_v7  ;;  %10443 = vmatpush1.bf16.msra.mxu0 %v18914_v8  ;;  %v18962_v7 = vld [vmem:[#allocation2 + $0x1470] ss:$112 sps:$4 sm:$0xff]   ;;  %v18959_v8 = vld [vmem:[#allocation2 + $0xc98] ss:$112 sps:$4 sm:$0xff]  }
 0x524   : > { %10453 = vmatprep.subr.bf16.mxu0 %v18922_v12  ;;  %v18967_v12 = vld [vmem:[#allocation2 + $0xd7c] ss:$112 sps:$4 sm:$0xff]  }
 0x526   : > { %10589 = vmatpush1.bf16.msra.mxu1 %v18911_v11  ;;  %10445 = vmatmul.mubr.bf16.vlgmr.msra.gmra.mrb[20].mxu0 %v20164_v9  ;;  %v18970_v11 = vld [vmem:[#allocation2 + $0x1554] ss:$112 sps:$4 sm:$0xff]  }
 0x527   : > { %10590 = vmatprep.subr.bf16.mxu1 %v18919_v13  ;;  %10454 = vmatpush1.bf16.msra.mxu0 %v18920_v14  ;;  %v18968_v13 = vld [vmem:[#allocation2 + $0x1550] ss:$112 sps:$4 sm:$0xff]   ;;  %v18965_v14 = vld [vmem:[#allocation2 + $0xd78] ss:$112 sps:$4 sm:$0xff]  }
 0x528   : > { %10485 = vmatprep.mubr.bf16.mxu0 %v20169_v36  ;;  %10455 = vmatprep.subr.bf16.mxu0 %v18928_v17  ;;  %v18973_v17 = vld [vmem:[#allocation2 + $0xe5c] ss:$112 sps:$4 sm:$0xff]  }
 0x52a   : > { %10591 = vmatpush1.bf16.msra.mxu1 %v18917_v15  ;;  %v18976_v15 = vld [vmem:[#allocation2 + $0x1634] ss:$112 sps:$4 sm:$0xff]  }
 0x52b   : > { %10592 = vmatprep.subr.bf16.mxu1 %v18925_v20  ;;  %10456 = vmatpush1.bf16.msra.mxu0 %v18926_v21  ;;  %v18974_v20 = vld [vmem:[#allocation2 + $0x1630] ss:$112 sps:$4 sm:$0xff]   ;;  %v18971_v21 = vld [vmem:[#allocation2 + $0xe58] ss:$112 sps:$4 sm:$0xff]  }
 0x52c   : > { %10457 = vmatprep.subr.bf16.mxu0 %v18934_v30  ;;  %v18979_v30 = vld [vmem:[#allocation2 + $0xf3c] ss:$112 sps:$4 sm:$0xff]  }
 0x52e   : > { %10593 = vmatpush1.bf16.msra.mxu1 %v18923_v22  ;;  %v18982_v22 = vld [vmem:[#allocation2 + $0x1714] ss:$112 sps:$4 sm:$0xff]  }
 0x52f   : > { %10594 = vmatprep.subr.bf16.mxu1 %v18931_v58  ;;  %10458 = vmatpush1.bf16.msra.mxu0 %v18932_v32  ;;  %v18980_v58 = vld [vmem:[#allocation2 + $0x1710] ss:$112 sps:$4 sm:$0xff]   ;;  %v18977_v32 = vld [vmem:[#allocation2 + $0xf38] ss:$112 sps:$4 sm:$0xff]  }
 0x530   : > { %10459 = vmatprep.subr.bf16.mxu0 %v18940_v34  ;;  %v18985_v34 = vld [vmem:[#allocation2 + $0x101c] ss:$112 sps:$4 sm:$0xff]  }
 0x532   : > { %10595 = vmatpush1.bf16.msra.mxu1 %v18929_v60  ;;  %v18988_v60 = vld [vmem:[#allocation2 + $0x17f4] ss:$112 sps:$4 sm:$0xff]  }
 0x533   : > { %10596 = vmatprep.subr.bf16.mxu1 %v18937_v57  ;;  %10460 = vmatpush1.bf16.msra.mxu0 %v18938_v38  ;;  %v18986_v57 = vld [vmem:[#allocation2 + $0x17f0] ss:$112 sps:$4 sm:$0xff]   ;;  %v18983_v38 = vld [vmem:[#allocation2 + $0x1018] ss:$112 sps:$4 sm:$0xff]  }
 0x534   : > { %10461 = vmatprep.subr.bf16.mxu0 %v18946_v40  ;;  %v18991_v40 = vld [vmem:[#allocation2 + $0x10fc] ss:$112 sps:$4 sm:$0xff]  }
 0x536   : > { %10597 = vmatpush1.bf16.msra.mxu1 %v18935_v39  ;;  %v18994_v39 = vld [vmem:[#allocation2 + $0x18d4] ss:$112 sps:$4 sm:$0xff]  }
 0x537   : > { %10598 = vmatprep.subr.bf16.mxu1 %v18943_v49  ;;  %10462 = vmatpush1.bf16.msra.mxu0 %v18944_v50  ;;  %v18992_v49 = vld [vmem:[#allocation2 + $0x18d0] ss:$112 sps:$4 sm:$0xff]   ;;  %v18989_v50 = vld [vmem:[#allocation2 + $0x10f8] ss:$112 sps:$4 sm:$0xff]  }
 0x538   : > { %10463 = vmatprep.subr.bf16.mxu0 %v18952_v53  ;;  %v18997_v53 = vld [vmem:[#allocation2 + $0x11dc] ss:$112 sps:$4 sm:$0xff]  }
 0x53a   : > { %10599 = vmatpush1.bf16.msra.mxu1 %v18941_v52  ;;  %v19000_v52 = vld [vmem:[#allocation2 + $0x19b4] ss:$112 sps:$4 sm:$0xff]  }
 0x53b   : > { %10600 = vmatprep.subr.bf16.mxu1 %v18949_v55  ;;  %10464 = vmatpush1.bf16.msra.mxu0 %v18950_v56  ;;  %v18998_v55 = vld [vmem:[#allocation2 + $0x19b0] ss:$112 sps:$4 sm:$0xff]   ;;  %v18995_v56 = vld [vmem:[#allocation2 + $0x11d8] ss:$112 sps:$4 sm:$0xff]  }
 0x53c   : > { %10465 = vmatprep.subr.bf16.mxu0 %v18958_v61  ;;  %v19003_v61 = vld [vmem:[#allocation2 + $0x12bc] ss:$112 sps:$4 sm:$0xff]  }
 0x53e   : > { %10601 = vmatpush1.bf16.msra.mxu1 %v18947_v59  ;;  %v19006_v59 = vld [vmem:[#allocation2 + $0x1a94] ss:$112 sps:$4 sm:$0xff]  }
 0x53f   : > { %10602 = vmatprep.subr.bf16.mxu1 %v18955_v1  ;;  %10466 = vmatpush1.bf16.msra.mxu0 %v18956_v3  ;;  %v19004_v1 = vld [vmem:[#allocation2 + $0x1a90] ss:$112 sps:$4 sm:$0xff]   ;;  %v19001_v3 = vld [vmem:[#allocation2 + $0x12b8] ss:$112 sps:$4 sm:$0xff]  }
 0x540   : > { %10467 = vmatprep.subr.bf16.mxu0 %v18964_v5  ;;  %v19009_v5 = vld [vmem:[#allocation2 + $0x139c] ss:$112 sps:$4 sm:$0xff]  }
 0x542   : > { %10603 = vmatpush1.bf16.msra.mxu1 %v18953_v4  ;;  %v19012_v4 = vld [vmem:[#allocation2 + $0x1b74] ss:$112 sps:$4 sm:$0xff]  }
 0x543   : > { %10604 = vmatprep.subr.bf16.mxu1 %v18961_v6  ;;  %10468 = vmatpush1.bf16.msra.mxu0 %v18962_v7  ;;  %v19010_v6 = vld [vmem:[#allocation2 + $0x1b70] ss:$112 sps:$4 sm:$0xff]   ;;  %v19007_v7 = vld [vmem:[#allocation2 + $0x1398] ss:$112 sps:$4 sm:$0xff]  }
 0x544   : > { %10469 = vmatprep.subr.bf16.mxu0 %v18970_v11  ;;  %v19015_v11 = vld [vmem:[#allocation2 + $0x147c] ss:$112 sps:$4 sm:$0xff]  }
 0x546   : > { %10605 = vmatpush1.bf16.msra.mxu1 %v18959_v8  ;;  %v19018_v8 = vld [vmem:[#allocation2 + $0x1c54] ss:$112 sps:$4 sm:$0xff]  }
 0x547   : > { %10606 = vmatprep.subr.bf16.mxu1 %v18967_v12  ;;  %10470 = vmatpush1.bf16.msra.mxu0 %v18968_v13  ;;  %v19016_v12 = vld [vmem:[#allocation2 + $0x1c50] ss:$112 sps:$4 sm:$0xff]   ;;  %v19013_v13 = vld [vmem:[#allocation2 + $0x1478] ss:$112 sps:$4 sm:$0xff]  }
 0x548   : > { %10471 = vmatprep.subr.bf16.mxu0 %v18976_v15  ;;  %v19021_v15 = vld [vmem:[#allocation2 + $0x155c] ss:$112 sps:$4 sm:$0xff]  }
 0x54a   : > { %10607 = vmatpush1.bf16.msra.mxu1 %v18965_v14  ;;  %v19024_v14 = vld [vmem:[#allocation2 + $0x1d34] ss:$112 sps:$4 sm:$0xff]  }
 0x54b   : > { %10617 = vmatprep.subr.bf16.mxu1 %v18973_v17  ;;  %10472 = vmatpush1.bf16.msra.mxu0 %v18974_v20  ;;  %v19022_v17 = vld [vmem:[#allocation2 + $0x1d30] ss:$112 sps:$4 sm:$0xff]   ;;  %v19019_v20 = vld [vmem:[#allocation2 + $0x1558] ss:$112 sps:$4 sm:$0xff]  }
 0x54c   : > { %10473 = vmatprep.subr.bf16.mxu0 %v18982_v22  ;;  %v19027_v22 = vld [vmem:[#allocation2 + $0x163c] ss:$112 sps:$4 sm:$0xff]  }
 0x54d   : > { %10609 = vmatmul.mubr.bf16.vlgmr.msra.gmra.mrb[28].mxu1 %v20164_v9 }
 0x54e   : > { %10618 = vmatpush1.bf16.msra.mxu1 %v18971_v21  ;;  %10649 = vmatprep.mubr.bf16.mxu1 %v20169_v36  ;;  %v19030_v21 = vld [vmem:[#allocation2 + $0x1e14] ss:$112 sps:$4 sm:$0xff]  }
 0x54f   : > { %10619 = vmatprep.subr.bf16.mxu1 %v18979_v30  ;;  %10474 = vmatpush1.bf16.msra.mxu0 %v18980_v58  ;;  %v19028_v30 = vld [vmem:[#allocation2 + $0x1e10] ss:$112 sps:$4 sm:$0xff]   ;;  %v19025_v58 = vld [vmem:[#allocation2 + $0x1638] ss:$112 sps:$4 sm:$0xff]  }
 0x550   : > { %10475 = vmatprep.subr.bf16.mxu0 %v18988_v60  ;;  %v19033_v60 = vld [vmem:[#allocation2 + $0x171c] ss:$112 sps:$4 sm:$0xff]  }
 0x552   : > { %10620 = vmatpush1.bf16.msra.mxu1 %v18977_v32  ;;  %v19036_v32 = vld [vmem:[#allocation2 + $0x1ef4] ss:$112 sps:$4 sm:$0xff]  }
 0x553   : > { %10621 = vmatprep.subr.bf16.mxu1 %v18985_v34  ;;  %10476 = vmatpush1.bf16.msra.mxu0 %v18986_v57  ;;  %v19034_v34 = vld [vmem:[#allocation2 + $0x1ef0] ss:$112 sps:$4 sm:$0xff]   ;;  %v19031_v57 = vld [vmem:[#allocation2 + $0x1718] ss:$112 sps:$4 sm:$0xff]  }
 0x554   : > { %10477 = vmatprep.subr.bf16.mxu0 %v18994_v39  ;;  %v19039_v39 = vld [vmem:[#allocation2 + $0x17fc] ss:$112 sps:$4 sm:$0xff]  }
 0x556   : > { %10622 = vmatpush1.bf16.msra.mxu1 %v18983_v38  ;;  %v19042_v38 = vld [vmem:[#allocation2 + $0x1fd4] ss:$112 sps:$4 sm:$0xff]  }
 0x557   : > { %10623 = vmatprep.subr.bf16.mxu1 %v18991_v40  ;;  %10478 = vmatpush1.bf16.msra.mxu0 %v18992_v49  ;;  %v19040_v40 = vld [vmem:[#allocation2 + $0x1fd0] ss:$112 sps:$4 sm:$0xff]   ;;  %v19037_v49 = vld [vmem:[#allocation2 + $0x17f8] ss:$112 sps:$4 sm:$0xff]  }
 0x558   : > { %10479 = vmatprep.subr.bf16.mxu0 %v19000_v52  ;;  %v19045_v52 = vld [vmem:[#allocation2 + $0x18dc] ss:$112 sps:$4 sm:$0xff]  }
 0x55a   : > { %10624 = vmatpush1.bf16.msra.mxu1 %v18989_v50  ;;  %v19048_v50 = vld [vmem:[#allocation2 + $0x20b4] ss:$112 sps:$4 sm:$0xff]  }
 0x55b   : > { %10625 = vmatprep.subr.bf16.mxu1 %v18997_v53  ;;  %10480 = vmatpush1.bf16.msra.mxu0 %v18998_v55  ;;  %v19046_v53 = vld [vmem:[#allocation2 + $0x20b0] ss:$112 sps:$4 sm:$0xff]   ;;  %v19043_v55 = vld [vmem:[#allocation2 + $0x18d8] ss:$112 sps:$4 sm:$0xff]  }
 0x55c   : > { %10481 = vmatprep.subr.bf16.mxu0 %v19006_v59  ;;  %v19051_v59 = vld [vmem:[#allocation2 + $0x19bc] ss:$112 sps:$4 sm:$0xff]  }
 0x55e   : > { %10626 = vmatpush1.bf16.msra.mxu1 %v18995_v56  ;;  %v19054_v56 = vld [vmem:[#allocation2 + $0x2194] ss:$112 sps:$4 sm:$0xff]  }
 0x55f   : > { %10627 = vmatprep.subr.bf16.mxu1 %v19003_v61  ;;  %10482 = vmatpush1.bf16.msra.mxu0 %v19004_v1  ;;  %v19052_v61 = vld [vmem:[#allocation2 + $0x2190] ss:$112 sps:$4 sm:$0xff]   ;;  %v19049_v1 = vld [vmem:[#allocation2 + $0x19b8] ss:$112 sps:$4 sm:$0xff]  }
 0x560   : > { %10483 = vmatprep.subr.bf16.mxu0 %v19012_v4  ;;  %v19057_v4 = vld [vmem:[#allocation2 + $0x1a9c] ss:$112 sps:$4 sm:$0xff]  }
 0x562   : > { %10628 = vmatpush1.bf16.msra.mxu1 %v19001_v3  ;;  %v19060_v3 = vld [vmem:[#allocation2 + $0x2274] ss:$112 sps:$4 sm:$0xff]  }
 0x563   : > { %10629 = vmatprep.subr.bf16.mxu1 %v19009_v5  ;;  %10484 = vmatpush1.bf16.msra.mxu0 %v19010_v6  ;;  %v19058_v5 = vld [vmem:[#allocation2 + $0x2270] ss:$112 sps:$4 sm:$0xff]   ;;  %v19055_v6 = vld [vmem:[#allocation2 + $0x1a98] ss:$112 sps:$4 sm:$0xff]  }
 0x564   : > { %10494 = vmatprep.subr.bf16.mxu0 %v19018_v8  ;;  %v19063_v8 = vld [vmem:[#allocation2 + $0x1b7c] ss:$112 sps:$4 sm:$0xff]  }
 0x566   : > { %10630 = vmatpush1.bf16.msra.mxu1 %v19007_v7  ;;  %10486 = vmatmul.mubr.bf16.vlgmr.msra.gmra.mrb[20].mxu0 %v20174_v18  ;;  %v19066_v7 = vld [vmem:[#allocation2 + $0x2354] ss:$112 sps:$4 sm:$0xff]  }
 0x567   : > { %10631 = vmatprep.subr.bf16.mxu1 %v19015_v11  ;;  %10495 = vmatpush1.bf16.msra.mxu0 %v19016_v12  ;;  %v19064_v11 = vld [vmem:[#allocation2 + $0x2350] ss:$112 sps:$4 sm:$0xff]   ;;  %v19061_v12 = vld [vmem:[#allocation2 + $0x1b78] ss:$112 sps:$4 sm:$0xff]  }
 0x568   : > { %10526 = vmatprep.mubr.bf16.mxu0 %v20177_v24  ;;  %10496 = vmatprep.subr.bf16.mxu0 %v19024_v14  ;;  %v19069_v14 = vld [vmem:[#allocation2 + $0x1c5c] ss:$112 sps:$4 sm:$0xff]  }
 0x56a   : > { %10632 = vmatpush1.bf16.msra.mxu1 %v19013_v13  ;;  %v19072_v13 = vld [vmem:[#allocation2 + $0x2434] ss:$112 sps:$4 sm:$0xff]  }
 0x56b   : > { %10633 = vmatprep.subr.bf16.mxu1 %v19021_v15  ;;  %10497 = vmatpush1.bf16.msra.mxu0 %v19022_v17  ;;  %v19070_v15 = vld [vmem:[#allocation2 + $0x2430] ss:$112 sps:$4 sm:$0xff]   ;;  %v19067_v17 = vld [vmem:[#allocation2 + $0x1c58] ss:$112 sps:$4 sm:$0xff]  }
 0x56c   : > { %10498 = vmatprep.subr.bf16.mxu0 %v19030_v21  ;;  %v19075_v21 = vld [vmem:[#allocation2 + $0x1d3c] ss:$112 sps:$4 sm:$0xff]  }
 0x56e   : > { %10634 = vmatpush1.bf16.msra.mxu1 %v19019_v20  ;;  %v19078_v20 = vld [vmem:[#allocation2 + $0x2514] ss:$112 sps:$4 sm:$0xff]  }
 0x56f   : > { %10635 = vmatprep.subr.bf16.mxu1 %v19027_v22  ;;  %10499 = vmatpush1.bf16.msra.mxu0 %v19028_v30  ;;  %v19076_v22 = vld [vmem:[#allocation2 + $0x2510] ss:$112 sps:$4 sm:$0xff]   ;;  %v19073_v30 = vld [vmem:[#allocation2 + $0x1d38] ss:$112 sps:$4 sm:$0xff]  }
 0x570   : > { %10500 = vmatprep.subr.bf16.mxu0 %v19036_v32  ;;  %v19081_v32 = vld [vmem:[#allocation2 + $0x1e1c] ss:$112 sps:$4 sm:$0xff]  }
 0x572   : > { %10636 = vmatpush1.bf16.msra.mxu1 %v19025_v58  ;;  %v19084_v58 = vld [vmem:[#allocation2 + $0x25f4] ss:$112 sps:$4 sm:$0xff]  }
 0x573   : > { %10637 = vmatprep.subr.bf16.mxu1 %v19033_v60  ;;  %10501 = vmatpush1.bf16.msra.mxu0 %v19034_v34  ;;  %v19082_v60 = vld [vmem:[#allocation2 + $0x25f0] ss:$112 sps:$4 sm:$0xff]   ;;  %v19079_v34 = vld [vmem:[#allocation2 + $0x1e18] ss:$112 sps:$4 sm:$0xff]  }
 0x574   : > { %10502 = vmatprep.subr.bf16.mxu0 %v19042_v38  ;;  %v19087_v38 = vld [vmem:[#allocation2 + $0x1efc] ss:$112 sps:$4 sm:$0xff]  }
 0x576   : > { %10638 = vmatpush1.bf16.msra.mxu1 %v19031_v57  ;;  %v19090_v57 = vld [vmem:[#allocation2 + $0x26d4] ss:$112 sps:$4 sm:$0xff]  }
 0x577   : > { %10639 = vmatprep.subr.bf16.mxu1 %v19039_v39  ;;  %10503 = vmatpush1.bf16.msra.mxu0 %v19040_v40  ;;  %v19088_v39 = vld [vmem:[#allocation2 + $0x26d0] ss:$112 sps:$4 sm:$0xff]   ;;  %v19085_v40 = vld [vmem:[#allocation2 + $0x1ef8] ss:$112 sps:$4 sm:$0xff]  }
 0x578   : > { %10504 = vmatprep.subr.bf16.mxu0 %v19048_v50  ;;  %v19093_v50 = vld [vmem:[#allocation2 + $0x1fdc] ss:$112 sps:$4 sm:$0xff]  }
 0x57a   : > { %10640 = vmatpush1.bf16.msra.mxu1 %v19037_v49  ;;  %v19096_v49 = vld [vmem:[#allocation2 + $0x27b4] ss:$112 sps:$4 sm:$0xff]  }
 0x57b   : > { %10641 = vmatprep.subr.bf16.mxu1 %v19045_v52  ;;  %10505 = vmatpush1.bf16.msra.mxu0 %v19046_v53  ;;  %v19094_v52 = vld [vmem:[#allocation2 + $0x27b0] ss:$112 sps:$4 sm:$0xff]   ;;  %v19091_v53 = vld [vmem:[#allocation2 + $0x1fd8] ss:$112 sps:$4 sm:$0xff]  }
 0x57c   : > { %10506 = vmatprep.subr.bf16.mxu0 %v19054_v56  ;;  %v19099_v56 = vld [vmem:[#allocation2 + $0x20bc] ss:$112 sps:$4 sm:$0xff]  }
 0x57e   : > { %10642 = vmatpush1.bf16.msra.mxu1 %v19043_v55  ;;  %v19102_v55 = vld [vmem:[#allocation2 + $0x2894] ss:$112 sps:$4 sm:$0xff]  }
 0x57f   : > { %10643 = vmatprep.subr.bf16.mxu1 %v19051_v59  ;;  %10507 = vmatpush1.bf16.msra.mxu0 %v19052_v61  ;;  %v19100_v59 = vld [vmem:[#allocation2 + $0x2890] ss:$112 sps:$4 sm:$0xff]   ;;  %v19097_v61 = vld [vmem:[#allocation2 + $0x20b8] ss:$112 sps:$4 sm:$0xff]  }
 0x580   : > { %10508 = vmatprep.subr.bf16.mxu0 %v19060_v3  ;;  %v19105_v3 = vld [vmem:[#allocation2 + $0x219c] ss:$112 sps:$4 sm:$0xff]  }
 0x582   : > { %10644 = vmatpush1.bf16.msra.mxu1 %v19049_v1  ;;  %v19108_v1 = vld [vmem:[#allocation2 + $0x2974] ss:$112 sps:$4 sm:$0xff]  }
 0x583   : > { %10645 = vmatprep.subr.bf16.mxu1 %v19057_v4  ;;  %10509 = vmatpush1.bf16.msra.mxu0 %v19058_v5  ;;  %v19106_v4 = vld [vmem:[#allocation2 + $0x2970] ss:$112 sps:$4 sm:$0xff]   ;;  %v19103_v5 = vld [vmem:[#allocation2 + $0x2198] ss:$112 sps:$4 sm:$0xff]  }
 0x584   : > { %10510 = vmatprep.subr.bf16.mxu0 %v19066_v7  ;;  %v19111_v7 = vld [vmem:[#allocation2 + $0x227c] ss:$112 sps:$4 sm:$0xff]  }
 0x586   : > { %10646 = vmatpush1.bf16.msra.mxu1 %v19055_v6  ;;  %v19114_v6 = vld [vmem:[#allocation2 + $0x2a54] ss:$112 sps:$4 sm:$0xff]  }
 0x587   : > { %10647 = vmatprep.subr.bf16.mxu1 %v19063_v8  ;;  %10511 = vmatpush1.bf16.msra.mxu0 %v19064_v11  ;;  %v19112_v8 = vld [vmem:[#allocation2 + $0x2a50] ss:$112 sps:$4 sm:$0xff]   ;;  %v19109_v11 = vld [vmem:[#allocation2 + $0x2278] ss:$112 sps:$4 sm:$0xff]  }
 0x588   : > { %10512 = vmatprep.subr.bf16.mxu0 %v19072_v13  ;;  %v19117_v13 = vld [vmem:[#allocation2 + $0x235c] ss:$112 sps:$4 sm:$0xff]  }
 0x58a   : > { %10648 = vmatpush1.bf16.msra.mxu1 %v19061_v12  ;;  %v19126_v12 = vld [vmem:[#allocation2 + $0x64] ss:$112 sps:$4 sm:$0xff]  }
 0x58b   : > { %10658 = vmatprep.subr.bf16.mxu1 %v19069_v14  ;;  %10513 = vmatpush1.bf16.msra.mxu0 %v19070_v15  ;;  %v19115_v14 = vld [vmem:[#allocation2 + $0x2358] ss:$112 sps:$4 sm:$0xff]   ;;  %v19120_v15 = vld [vmem:[#allocation2 + $0x243c] ss:$112 sps:$4 sm:$0xff]  }
 0x58c   : > { %10514 = vmatprep.subr.bf16.mxu0 %v19078_v20  ;;  %v19123_v20 = vld [vmem:[#allocation2 + $0x251c] ss:$112 sps:$4 sm:$0xff]  }
 0x58d   : > { %10650 = vmatmul.mubr.bf16.vlgmr.msra.gmra.mrb[28].mxu1 %v20174_v18 }
 0x58e   : > { %10659 = vmatpush1.bf16.msra.mxu1 %v19067_v17  ;;  %10690 = vmatprep.mubr.bf16.mxu1 %v20177_v24  ;;  %v19118_v17 = vld [vmem:[#allocation2 + $0x2438] ss:$112 sps:$4 sm:$0xff]  }
 0x58f   : > { %10660 = vmatprep.subr.bf16.mxu1 %v19075_v21  ;;  %10515 = vmatpush1.bf16.msra.mxu0 %v19076_v22  ;;  %v19124_v21 = vld [vmem:[#allocation2 + $0x60] ss:$112 sps:$4 sm:$0xff]   ;;  %v19121_v22 = vld [vmem:[#allocation2 + $0x2518] ss:$112 sps:$4 sm:$0xff]  }
 0x590   : > { %10516 = vmatprep.subr.bf16.mxu0 %v19084_v58  ;;  %v19129_v58 = vld [vmem:[#allocation2 + $0x25fc] ss:$112 sps:$4 sm:$0xff]  }
 0x592   : > { %10661 = vmatpush1.bf16.msra.mxu1 %v19073_v30  ;;  %v19132_v30 = vld [vmem:[#allocation2 + $0x144] ss:$112 sps:$4 sm:$0xff]  }
 0x593   : > { %10662 = vmatprep.subr.bf16.mxu1 %v19081_v32  ;;  %10517 = vmatpush1.bf16.msra.mxu0 %v19082_v60  ;;  %v19130_v32 = vld [vmem:[#allocation2 + $0x140] ss:$112 sps:$4 sm:$0xff]   ;;  %v19127_v60 = vld [vmem:[#allocation2 + $0x25f8] ss:$112 sps:$4 sm:$0xff]  }
 0x594   : > { %10518 = vmatprep.subr.bf16.mxu0 %v19090_v57  ;;  %v19135_v57 = vld [vmem:[#allocation2 + $0x26dc] ss:$112 sps:$4 sm:$0xff]  }
 0x596   : > { %10663 = vmatpush1.bf16.msra.mxu1 %v19079_v34  ;;  %v19138_v34 = vld [vmem:[#allocation2 + $0x224] ss:$112 sps:$4 sm:$0xff]  }
 0x597   : > { %10664 = vmatprep.subr.bf16.mxu1 %v19087_v38  ;;  %10519 = vmatpush1.bf16.msra.mxu0 %v19088_v39  ;;  %v19136_v38 = vld [vmem:[#allocation2 + $0x220] ss:$112 sps:$4 sm:$0xff]   ;;  %v19133_v39 = vld [vmem:[#allocation2 + $0x26d8] ss:$112 sps:$4 sm:$0xff]  }
 0x598   : > { %10520 = vmatprep.subr.bf16.mxu0 %v19096_v49 }
 0x59a   : > { %10665 = vmatpush1.bf16.msra.mxu1 %v19085_v40  ;;  %v19144_v40 = vld [vmem:[#allocation2 + $0x304] ss:$112 sps:$4 sm:$0xff]  }
 0x59b   : > { %10666 = vmatprep.subr.bf16.mxu1 %v19093_v50  ;;  %10521 = vmatpush1.bf16.msra.mxu0 %v19094_v52  ;;  %v19141_v50 = vld [vmem:[#allocation2 + $0x27bc] ss:$112 sps:$4 sm:$0xff]  }
 0x59c   : > { %10522 = vmatprep.subr.bf16.mxu0 %v19102_v55  ;;  %v19142_v55 = vld [vmem:[#allocation2 + $0x300] ss:$112 sps:$4 sm:$0xff]  }
 0x59e   : > { %10667 = vmatpush1.bf16.msra.mxu1 %v19091_v53 }
 0x59f   : > { %10668 = vmatprep.subr.bf16.mxu1 %v19099_v56  ;;  %10523 = vmatpush1.bf16.msra.mxu0 %v19100_v59  ;;  %v19139_v56 = vld [vmem:[#allocation2 + $0x27b8] ss:$112 sps:$4 sm:$0xff]  }
 0x5a0   : > { %10524 = vmatprep.subr.bf16.mxu0 %v19108_v1  ;;  %v19147_v1 = vld [vmem:[#allocation2 + $0x289c] ss:$112 sps:$4 sm:$0xff]  }
 0x5a2   : > { %10669 = vmatpush1.bf16.msra.mxu1 %v19097_v61  ;;  %v19150_v61 = vld [vmem:[#allocation2 + $0x3e4] ss:$112 sps:$4 sm:$0xff]  }
 0x5a3   : > { %10670 = vmatprep.subr.bf16.mxu1 %v19105_v3  ;;  %10525 = vmatpush1.bf16.msra.mxu0 %v19106_v4  ;;  %v19148_v3 = vld [vmem:[#allocation2 + $0x3e0] ss:$112 sps:$4 sm:$0xff]   ;;  %v19145_v4 = vld [vmem:[#allocation2 + $0x2898] ss:$112 sps:$4 sm:$0xff]  }
 0x5a4   : > { %10535 = vmatprep.subr.bf16.mxu0 %v19114_v6  ;;  %v19153_v6 = vld [vmem:[#allocation2 + $0x297c] ss:$112 sps:$4 sm:$0xff]  }
 0x5a6   : > { %10671 = vmatpush1.bf16.msra.mxu1 %v19103_v5  ;;  %10527 = vmatmul.mubr.bf16.vlgmr.msra.gmra.mrb[20].mxu0 %v20184_v29  ;;  %v19156_v5 = vld [vmem:[#allocation2 + $0x4c4] ss:$112 sps:$4 sm:$0xff]  }
 0x5a7   : > { %10672 = vmatprep.subr.bf16.mxu1 %v19111_v7  ;;  %10536 = vmatpush1.bf16.msra.mxu0 %v19112_v8  ;;  %v19154_v7 = vld [vmem:[#allocation2 + $0x4c0] ss:$112 sps:$4 sm:$0xff]   ;;  %v19151_v8 = vld [vmem:[#allocation2 + $0x2978] ss:$112 sps:$4 sm:$0xff]  }
 0x5a8   : > { %10567 = vmatprep.mubr.bf16.mxu0 %v19797_v0  ;;  %10740 = vmatprep.subr.bf16.mxu0 %v19126_v12  ;;  %v19165_v12 = vld [vmem:[#allocation2 + $0x2a5c] ss:$112 sps:$4 sm:$0xff]  }
 0x5aa   : > { %10673 = vmatpush1.bf16.msra.mxu1 %v19109_v11  ;;  %v19159_v11 = vld [vmem:[#allocation2 + $0x5a4] ss:$112 sps:$4 sm:$0xff]  }
 0x5ab   : > { %10674 = vmatprep.subr.bf16.mxu1 %v19117_v13  ;;  %v19157_v13 = vld [vmem:[#allocation2 + $0x5a0] ss:$112 sps:$4 sm:$0xff]  }
 0x5ae   : > { %10675 = vmatpush1.bf16.msra.mxu1 %v19115_v14  ;;  %v19162_v14 = vld [vmem:[#allocation2 + $0x684] ss:$112 sps:$4 sm:$0xff]  }
 0x5af   : > { %10676 = vmatprep.subr.bf16.mxu1 %v19120_v15  ;;  %v19163_v15 = vld [vmem:[#allocation2 + $0x2a58] ss:$112 sps:$4 sm:$0xff]  }
 0x5b2   : > { %10677 = vmatpush1.bf16.msra.mxu1 %v19118_v17  ;;  %16478 = vmatmul.mubr.msk.bf16.vlgmr.msra.gmra.mrb[20].mxu0 %vm8768_vm0, %v20154_v10  ;;  %v19171_v17 = vld [vmem:[#allocation2 + $0x6c] ss:$112 sps:$4 sm:$0xff]  }
 0x5b3   : > { %10678 = vmatprep.subr.bf16.mxu1 %v19123_v20  ;;  %10741 = vmatpush1.bf16.msra.mxu0 %v19124_v21  ;;  %v19160_v20 = vld [vmem:[#allocation2 + $0x680] ss:$112 sps:$4 sm:$0xff]   ;;  %v19168_v21 = vld [vmem:[#allocation2 + $0x764] ss:$112 sps:$4 sm:$0xff]  }
 0x5b4   : > { %10772 = vmatprep.mubr.bf16.mxu0 %v20159_v51  ;;  %10742 = vmatprep.subr.bf16.mxu0 %v19132_v30  ;;  %v19174_v30 = vld [vmem:[#allocation2 + $0x844] ss:$112 sps:$4 sm:$0xff]  }
 0x5b6   : > { %10679 = vmatpush1.bf16.msra.mxu1 %v19121_v22  ;;  %v19166_v22 = vld [vmem:[#allocation2 + $0x760] ss:$112 sps:$4 sm:$0xff]  }
 0x5b7   : > { %10680 = vmatprep.subr.bf16.mxu1 %v19129_v58  ;;  %10743 = vmatpush1.bf16.msra.mxu0 %v19130_v32  ;;  %v19172_v58 = vld [vmem:[#allocation2 + $0x840] ss:$112 sps:$4 sm:$0xff]   ;;  %v19169_v32 = vld [vmem:[#allocation2 + $0x68] ss:$112 sps:$4 sm:$0xff]  }
 0x5b8   : > { %10744 = vmatprep.subr.bf16.mxu0 %v19138_v34  ;;  %v19177_v34 = vld [vmem:[#allocation2 + $0x14c] ss:$112 sps:$4 sm:$0xff]  }
 0x5b9   : > { %v20336_v49 = vpop.f32.mrb[16].mxu0 }
 0x5ba   : > { %10681 = vmatpush1.bf16.msra.mxu1 %v19127_v60  ;;  %v20338_v52 = vpop.f32.mrb[17].mxu0  ;;  %v19180_v60 = vld [vmem:[#allocation2 + $0x924] ss:$112 sps:$4 sm:$0xff]  }
 0x5bb   : > { %10682 = vmatprep.subr.bf16.mxu1 %v19135_v57  ;;  %10745 = vmatpush1.bf16.msra.mxu0 %v19136_v38  ;;  %v10245_v53 = vpop.f32.mrb[18].mxu0  ;;  %v19178_v57 = vld [vmem:[#allocation2 + $0x920] ss:$112 sps:$4 sm:$0xff]   ;;  %v19175_v38 = vld [vmem:[#allocation2 + $0x148] ss:$112 sps:$4 sm:$0xff]  }
 0x5bc   : > { %v10246_v59 = vpop.f32.mrb[19].mxu0  ;;  %10746 = vmatprep.subr.bf16.mxu0 %v19144_v40  ;;  %v19183_v40 = vld [vmem:[#allocation2 + $0x22c] ss:$112 sps:$4 sm:$0xff]   ;;  %v19181_v53 = vld [vmem:[#allocation2 + $0x228] ss:$112 sps:$4 sm:$0xff]  }
 0x5be   : > { %10683 = vmatpush1.bf16.msra.mxu1 %v19133_v39  ;;  %v19186_v39 = vld [vmem:[#allocation2 + $0xa04] ss:$112 sps:$4 sm:$0xff]  }
 0x5bf   : > { %10684 = vmatprep.subr.bf16.mxu1 %v19141_v50  ;;  %10747 = vmatpush1.bf16.msra.mxu0 %v19142_v55  ;;  %v19184_v50 = vld [vmem:[#allocation2 + $0xa00] ss:$112 sps:$4 sm:$0xff]   ;;  %v19192_v55 = vld [vmem:[#allocation2 + $0xae4] ss:$112 sps:$4 sm:$0xff]  }
 0x5c0   : > { %10748 = vmatprep.subr.bf16.mxu0 %v19150_v61 }
 0x5c2   : > { %10685 = vmatpush1.bf16.msra.mxu1 %v19139_v56  ;;  %v19189_v56 = vld [vmem:[#allocation2 + $0x30c] ss:$112 sps:$4 sm:$0xff]  }
 0x5c3   : > { %10686 = vmatprep.subr.bf16.mxu1 %v19147_v1  ;;  %10749 = vmatpush1.bf16.msra.mxu0 %v19148_v3  ;;  %v19190_v1 = vld [vmem:[#allocation2 + $0xae0] ss:$112 sps:$4 sm:$0xff]  }
 0x5c4   : > { %10750 = vmatprep.subr.bf16.mxu0 %v19156_v5  ;;  %v19198_v5 = vld [vmem:[#allocation2 + $0xbc4] ss:$112 sps:$4 sm:$0xff]  }
 0x5c6   : > { %10687 = vmatpush1.bf16.msra.mxu1 %v19145_v4  ;;  %v19187_v4 = vld [vmem:[#allocation2 + $0x308] ss:$112 sps:$4 sm:$0xff]  }
 0x5c7   : > { %10688 = vmatprep.subr.bf16.mxu1 %v19153_v6  ;;  %10751 = vmatpush1.bf16.msra.mxu0 %v19154_v7  ;;  %v19195_v6 = vld [vmem:[#allocation2 + $0x3ec] ss:$112 sps:$4 sm:$0xff]   ;;  %v19196_v7 = vld [vmem:[#allocation2 + $0xbc0] ss:$112 sps:$4 sm:$0xff]  }
 0x5c8   : > { %10752 = vmatprep.subr.bf16.mxu0 %v19159_v11  ;;  %v19204_v11 = vld [vmem:[#allocation2 + $0xca4] ss:$112 sps:$4 sm:$0xff]  }
 0x5ca   : > { %10689 = vmatpush1.bf16.msra.mxu1 %v19151_v8  ;;  %v19193_v8 = vld [vmem:[#allocation2 + $0x3e8] ss:$112 sps:$4 sm:$0xff]  }
 0x5cb   : > { %10699 = vmatprep.subr.bf16.mxu1 %v19165_v12  ;;  %10753 = vmatpush1.bf16.msra.mxu0 %v19157_v13  ;;  %v19201_v12 = vld [vmem:[#allocation2 + $0x4cc] ss:$112 sps:$4 sm:$0xff]   ;;  %v19202_v13 = vld [vmem:[#allocation2 + $0xca0] ss:$112 sps:$4 sm:$0xff]  }
 0x5cc   : > { %10754 = vmatprep.subr.bf16.mxu0 %v19162_v14  ;;  %v19199_v14 = vld [vmem:[#allocation2 + $0x4c8] ss:$112 sps:$4 sm:$0xff]  }
 0x5cd   : > { %10691 = vmatmul.mubr.bf16.vlgmr.msra.gmra.mrb[28].mxu1 %v20184_v29 }
 0x5ce   : > { %10700 = vmatpush1.bf16.msra.mxu1 %v19163_v15  ;;  %10731 = vmatprep.mubr.bf16.mxu1 %v19797_v0  ;;  %v19210_v15 = vld [vmem:[#allocation2 + $0xd84] ss:$112 sps:$4 sm:$0xff]  }
 0x5cf   : > { %10904 = vmatprep.subr.bf16.mxu1 %v19171_v17  ;;  %10755 = vmatpush1.bf16.msra.mxu0 %v19160_v20  ;;  %v19207_v17 = vld [vmem:[#allocation2 + $0x5ac] ss:$112 sps:$4 sm:$0xff]   ;;  %v19208_v20 = vld [vmem:[#allocation2 + $0xd80] ss:$112 sps:$4 sm:$0xff]  }
 0x5d0   : > { %10756 = vmatprep.subr.bf16.mxu0 %v19168_v21  ;;  %v19205_v21 = vld [vmem:[#allocation2 + $0x5a8] ss:$112 sps:$4 sm:$0xff]  }
 0x5d3   : > { %10757 = vmatpush1.bf16.msra.mxu0 %v19166_v22  ;;  %v19216_v22 = vld [vmem:[#allocation2 + $0xe64] ss:$112 sps:$4 sm:$0xff]  }
 0x5d4   : > { %10758 = vmatprep.subr.bf16.mxu0 %v19174_v30  ;;  %v19213_v30 = vld [vmem:[#allocation2 + $0x68c] ss:$112 sps:$4 sm:$0xff]  }
 0x5d7   : > { %10759 = vmatpush1.bf16.msra.mxu0 %v19172_v58  ;;  %v19214_v58 = vld [vmem:[#allocation2 + $0xe60] ss:$112 sps:$4 sm:$0xff]  }
 0x5d8   : > { %10760 = vmatprep.subr.bf16.mxu0 %v19180_v60  ;;  %v19222_v60 = vld [vmem:[#allocation2 + $0xf44] ss:$112 sps:$4 sm:$0xff]  }
 0x5d9   : > { %16479 = vmatmul.mubr.msk.bf16.vlgmr.msra.gmra.mrb[28].mxu1 %vm8768_vm0, %v20154_v10 }
 0x5da   : > { %10905 = vmatpush1.bf16.msra.mxu1 %v19169_v32  ;;  %10936 = vmatprep.mubr.bf16.mxu1 %v20159_v51  ;;  %v19211_v32 = vld [vmem:[#allocation2 + $0x688] ss:$112 sps:$4 sm:$0xff]  }
 0x5db   : > { %10906 = vmatprep.subr.bf16.mxu1 %v19177_v34  ;;  %10761 = vmatpush1.bf16.msra.mxu0 %v19178_v57  ;;  %v19219_v34 = vld [vmem:[#allocation2 + $0x76c] ss:$112 sps:$4 sm:$0xff]   ;;  %v19220_v57 = vld [vmem:[#allocation2 + $0xf40] ss:$112 sps:$4 sm:$0xff]  }
 0x5dc   : > { %10762 = vmatprep.subr.bf16.mxu0 %v19186_v39  ;;  %v19228_v39 = vld [vmem:[#allocation2 + $0x1024] ss:$112 sps:$4 sm:$0xff]  }
 0x5de   : > { %10907 = vmatpush1.bf16.msra.mxu1 %v19175_v38  ;;  %v19217_v38 = vld [vmem:[#allocation2 + $0x768] ss:$112 sps:$4 sm:$0xff]  }
 0x5df   : > { %10908 = vmatprep.subr.bf16.mxu1 %v19183_v40  ;;  %10763 = vmatpush1.bf16.msra.mxu0 %v19184_v50  ;;  %v19225_v40 = vld [vmem:[#allocation2 + $0x84c] ss:$112 sps:$4 sm:$0xff]   ;;  %v19226_v50 = vld [vmem:[#allocation2 + $0x1020] ss:$112 sps:$4 sm:$0xff]  }
 0x5e0   : > { %v20345_v59 = vpop.f32.mrb[24].mxu1  ;;  %10764 = vmatprep.subr.bf16.mxu0 %v19192_v55  ;;  %v19234_v55 = vld [vmem:[#allocation2 + $0x1104] ss:$112 sps:$4 sm:$0xff]  }
 0x5e1   : > { %v20347_v61 = vpop.f32.mrb[25].mxu1 }
 0x5e2   : > { %10909 = vmatpush1.bf16.msra.mxu1 %v19181_v53  ;;  %v10409_v3 = vpop.f32.mrb[26].mxu1  ;;  %v19223_v53 = vld [vmem:[#allocation2 + $0x848] ss:$112 sps:$4 sm:$0xff]  }
 0x5e3   : > { %v10410_v51 = vpop.f32.mrb[27].mxu1  ;;  %10910 = vmatprep.subr.bf16.mxu1 %v19189_v56  ;;  %10765 = vmatpush1.bf16.msra.mxu0 %v19190_v1  ;;  %v19231_v56 = vld [vmem:[#allocation2 + $0x92c] ss:$112 sps:$4 sm:$0xff]   ;;  %v19232_v1 = vld [vmem:[#allocation2 + $0x1100] ss:$112 sps:$4 sm:$0xff]  }
 0x5e4   : > { %10766 = vmatprep.subr.bf16.mxu0 %v19198_v5  ;;  %v19229_v3 = vld [vmem:[#allocation2 + $0x928] ss:$112 sps:$4 sm:$0xff]   ;;  %v19237_v5 = vld [vmem:[#allocation2 + $0xa0c] ss:$112 sps:$4 sm:$0xff]   ;;  %v19238_v51 = vld [vmem:[#allocation2 + $0x11e0] ss:$112 sps:$4 sm:$0xff]  }
 0x5e6   : > { %10911 = vmatpush1.bf16.msra.mxu1 %v19187_v4  ;;  %v19240_v4 = vld [vmem:[#allocation2 + $0x11e4] ss:$112 sps:$4 sm:$0xff]  }
 0x5e7   : > { %10912 = vmatprep.subr.bf16.mxu1 %v19195_v6  ;;  %10767 = vmatpush1.bf16.msra.mxu0 %v19196_v7  ;;  %v19235_v6 = vld [vmem:[#allocation2 + $0xa08] ss:$112 sps:$4 sm:$0xff]   ;;  %v19246_v7 = vld [vmem:[#allocation2 + $0x12c4] ss:$112 sps:$4 sm:$0xff]  }
 0x5e8   : > { %10768 = vmatprep.subr.bf16.mxu0 %v19204_v11  ;;  %v19244_v11 = vld [vmem:[#allocation2 + $0x12c0] ss:$112 sps:$4 sm:$0xff]  }
 0x5ea   : > { %10913 = vmatpush1.bf16.msra.mxu1 %v19193_v8  ;;  %v19243_v8 = vld [vmem:[#allocation2 + $0xaec] ss:$112 sps:$4 sm:$0xff]  }
 0x5eb   : > { %10914 = vmatprep.subr.bf16.mxu1 %v19201_v12  ;;  %10769 = vmatpush1.bf16.msra.mxu0 %v19202_v13  ;;  %v19241_v12 = vld [vmem:[#allocation2 + $0xae8] ss:$112 sps:$4 sm:$0xff]   ;;  %v19252_v13 = vld [vmem:[#allocation2 + $0x13a4] ss:$112 sps:$4 sm:$0xff]  }
 0x5ec   : > { %10770 = vmatprep.subr.bf16.mxu0 %v19210_v15  ;;  %v19250_v15 = vld [vmem:[#allocation2 + $0x13a0] ss:$112 sps:$4 sm:$0xff]  }
 0x5ee   : > { %10915 = vmatpush1.bf16.msra.mxu1 %v19199_v14  ;;  %v19249_v14 = vld [vmem:[#allocation2 + $0xbcc] ss:$112 sps:$4 sm:$0xff]  }
 0x5ef   : > { %10916 = vmatprep.subr.bf16.mxu1 %v19207_v17  ;;  %10771 = vmatpush1.bf16.msra.mxu0 %v19208_v20  ;;  %v19247_v17 = vld [vmem:[#allocation2 + $0xbc8] ss:$112 sps:$4 sm:$0xff]   ;;  %v19258_v20 = vld [vmem:[#allocation2 + $0x1484] ss:$112 sps:$4 sm:$0xff]  }
 0x5f0   : > { %10781 = vmatprep.subr.bf16.mxu0 %v19216_v22  ;;  %v19256_v22 = vld [vmem:[#allocation2 + $0x1480] ss:$112 sps:$4 sm:$0xff]  }
 0x5f2   : > { %10917 = vmatpush1.bf16.msra.mxu1 %v19205_v21  ;;  %10773 = vmatmul.mubr.bf16.vlgmr.msra.gmra.mrb[24].mxu0 %v20164_v9  ;;  %v19255_v21 = vld [vmem:[#allocation2 + $0xcac] ss:$112 sps:$4 sm:$0xff]  }
 0x5f3   : > { %10918 = vmatprep.subr.bf16.mxu1 %v19213_v30  ;;  %10782 = vmatpush1.bf16.msra.mxu0 %v19214_v58  ;;  %v19253_v30 = vld [vmem:[#allocation2 + $0xca8] ss:$112 sps:$4 sm:$0xff]   ;;  %v19264_v58 = vld [vmem:[#allocation2 + $0x1564] ss:$112 sps:$4 sm:$0xff]  }
 0x5f4   : > { %10813 = vmatprep.mubr.bf16.mxu0 %v20169_v36  ;;  %10783 = vmatprep.subr.bf16.mxu0 %v19222_v60  ;;  %v19262_v60 = vld [vmem:[#allocation2 + $0x1560] ss:$112 sps:$4 sm:$0xff]  }
 0x5f6   : > { %10919 = vmatpush1.bf16.msra.mxu1 %v19211_v32  ;;  %v19261_v32 = vld [vmem:[#allocation2 + $0xd8c] ss:$112 sps:$4 sm:$0xff]  }
 0x5f7   : > { %10920 = vmatprep.subr.bf16.mxu1 %v19219_v34  ;;  %10784 = vmatpush1.bf16.msra.mxu0 %v19220_v57  ;;  %v19259_v34 = vld [vmem:[#allocation2 + $0xd88] ss:$112 sps:$4 sm:$0xff]   ;;  %v19270_v57 = vld [vmem:[#allocation2 + $0x1644] ss:$112 sps:$4 sm:$0xff]  }
 0x5f8   : > { %10785 = vmatprep.subr.bf16.mxu0 %v19228_v39  ;;  %v19268_v39 = vld [vmem:[#allocation2 + $0x1640] ss:$112 sps:$4 sm:$0xff]  }
 0x5fa   : > { %10921 = vmatpush1.bf16.msra.mxu1 %v19217_v38  ;;  %v19267_v38 = vld [vmem:[#allocation2 + $0xe6c] ss:$112 sps:$4 sm:$0xff]  }
 0x5fb   : > { %10922 = vmatprep.subr.bf16.mxu1 %v19225_v40  ;;  %10786 = vmatpush1.bf16.msra.mxu0 %v19226_v50  ;;  %v19265_v40 = vld [vmem:[#allocation2 + $0xe68] ss:$112 sps:$4 sm:$0xff]   ;;  %v19276_v50 = vld [vmem:[#allocation2 + $0x1724] ss:$112 sps:$4 sm:$0xff]  }
 0x5fc   : > { %10787 = vmatprep.subr.bf16.mxu0 %v19234_v55  ;;  %v19274_v55 = vld [vmem:[#allocation2 + $0x1720] ss:$112 sps:$4 sm:$0xff]  }
 0x5fe   : > { %10923 = vmatpush1.bf16.msra.mxu1 %v19223_v53  ;;  %v19273_v53 = vld [vmem:[#allocation2 + $0xf4c] ss:$112 sps:$4 sm:$0xff]  }
 0x5ff   : > { %10924 = vmatprep.subr.bf16.mxu1 %v19231_v56  ;;  %10788 = vmatpush1.bf16.msra.mxu0 %v19232_v1  ;;  %v19271_v56 = vld [vmem:[#allocation2 + $0xf48] ss:$112 sps:$4 sm:$0xff]   ;;  %v19282_v1 = vld [vmem:[#allocation2 + $0x1804] ss:$112 sps:$4 sm:$0xff]  }
 0x600   : > { %10789 = vmatprep.subr.bf16.mxu0 %v19240_v4  ;;  %v19280_v4 = vld [vmem:[#allocation2 + $0x1800] ss:$112 sps:$4 sm:$0xff]  }
 0x602   : > { %10925 = vmatpush1.bf16.msra.mxu1 %v19229_v3  ;;  %v19279_v3 = vld [vmem:[#allocation2 + $0x102c] ss:$112 sps:$4 sm:$0xff]  }
 0x603   : > { %10926 = vmatprep.subr.bf16.mxu1 %v19237_v5  ;;  %10790 = vmatpush1.bf16.msra.mxu0 %v19238_v51  ;;  %v19277_v5 = vld [vmem:[#allocation2 + $0x1028] ss:$112 sps:$4 sm:$0xff]   ;;  %v19288_v51 = vld [vmem:[#allocation2 + $0x18e4] ss:$112 sps:$4 sm:$0xff]  }
 0x604   : > { %10791 = vmatprep.subr.bf16.mxu0 %v19246_v7  ;;  %v19283_v7 = vld [vmem:[#allocation2 + $0x1108] ss:$112 sps:$4 sm:$0xff]  }
 0x606   : > { %10927 = vmatpush1.bf16.msra.mxu1 %v19235_v6  ;;  %v19285_v6 = vld [vmem:[#allocation2 + $0x110c] ss:$112 sps:$4 sm:$0xff]  }
 0x607   : > { %10928 = vmatprep.subr.bf16.mxu1 %v19243_v8  ;;  %10792 = vmatpush1.bf16.msra.mxu0 %v19244_v11  ;;  %v19294_v8 = vld [vmem:[#allocation2 + $0x19c4] ss:$112 sps:$4 sm:$0xff]   ;;  %v19291_v11 = vld [vmem:[#allocation2 + $0x11ec] ss:$112 sps:$4 sm:$0xff]  }
 0x608   : > { %10793 = vmatprep.subr.bf16.mxu0 %v19252_v13  ;;  %v19300_v13 = vld [vmem:[#allocation2 + $0x1aa4] ss:$112 sps:$4 sm:$0xff]  }
 0x60a   : > { %10929 = vmatpush1.bf16.msra.mxu1 %v19241_v12  ;;  %v19292_v12 = vld [vmem:[#allocation2 + $0x19c0] ss:$112 sps:$4 sm:$0xff]  }
 0x60b   : > { %10930 = vmatprep.subr.bf16.mxu1 %v19249_v14  ;;  %10794 = vmatpush1.bf16.msra.mxu0 %v19250_v15  ;;  %v19297_v14 = vld [vmem:[#allocation2 + $0x12cc] ss:$112 sps:$4 sm:$0xff]   ;;  %v19298_v15 = vld [vmem:[#allocation2 + $0x1aa0] ss:$112 sps:$4 sm:$0xff]  }
 0x60c   : > { %10795 = vmatprep.subr.bf16.mxu0 %v19258_v20  ;;  %v19306_v20 = vld [vmem:[#allocation2 + $0x1b84] ss:$112 sps:$4 sm:$0xff]  }
 0x60e   : > { %10931 = vmatpush1.bf16.msra.mxu1 %v19247_v17  ;;  %v19295_v17 = vld [vmem:[#allocation2 + $0x12c8] ss:$112 sps:$4 sm:$0xff]  }
 0x60f   : > { %10932 = vmatprep.subr.bf16.mxu1 %v19255_v21  ;;  %10796 = vmatpush1.bf16.msra.mxu0 %v19256_v22  ;;  %v19303_v21 = vld [vmem:[#allocation2 + $0x13ac] ss:$112 sps:$4 sm:$0xff]   ;;  %v19304_v22 = vld [vmem:[#allocation2 + $0x1b80] ss:$112 sps:$4 sm:$0xff]  }
 0x610   : > { %10797 = vmatprep.subr.bf16.mxu0 %v19264_v58  ;;  %v19312_v58 = vld [vmem:[#allocation2 + $0x1c64] ss:$112 sps:$4 sm:$0xff]  }
 0x612   : > { %10933 = vmatpush1.bf16.msra.mxu1 %v19253_v30  ;;  %v19301_v30 = vld [vmem:[#allocation2 + $0x13a8] ss:$112 sps:$4 sm:$0xff]  }
 0x613   : > { %10934 = vmatprep.subr.bf16.mxu1 %v19261_v32  ;;  %10798 = vmatpush1.bf16.msra.mxu0 %v19262_v60  ;;  %v19309_v32 = vld [vmem:[#allocation2 + $0x148c] ss:$112 sps:$4 sm:$0xff]   ;;  %v19310_v60 = vld [vmem:[#allocation2 + $0x1c60] ss:$112 sps:$4 sm:$0xff]  }
 0x614   : > { %10799 = vmatprep.subr.bf16.mxu0 %v19270_v57  ;;  %v19318_v57 = vld [vmem:[#allocation2 + $0x1d44] ss:$112 sps:$4 sm:$0xff]  }
 0x616   : > { %10935 = vmatpush1.bf16.msra.mxu1 %v19259_v34  ;;  %v19307_v34 = vld [vmem:[#allocation2 + $0x1488] ss:$112 sps:$4 sm:$0xff]  }
 0x617   : > { %10945 = vmatprep.subr.bf16.mxu1 %v19267_v38  ;;  %10800 = vmatpush1.bf16.msra.mxu0 %v19268_v39  ;;  %v19315_v38 = vld [vmem:[#allocation2 + $0x156c] ss:$112 sps:$4 sm:$0xff]   ;;  %v19316_v39 = vld [vmem:[#allocation2 + $0x1d40] ss:$112 sps:$4 sm:$0xff]  }
 0x618   : > { %10801 = vmatprep.subr.bf16.mxu0 %v19276_v50  ;;  %v19324_v50 = vld [vmem:[#allocation2 + $0x1e24] ss:$112 sps:$4 sm:$0xff]  }
 0x619   : > { %10937 = vmatmul.mubr.bf16.vlgmr.msra.gmra.mrb[32].mxu1 %v20164_v9  ;;  %v19286_v9 = vld [vmem:[#allocation2 + $0x18e0] ss:$112 sps:$4 sm:$0xff]  }
 0x61a   : > { %10946 = vmatpush1.bf16.msra.mxu1 %v19265_v40  ;;  %10977 = vmatprep.mubr.bf16.mxu1 %v20169_v36  ;;  %v19289_v36 = vld [vmem:[#allocation2 + $0x11e8] ss:$112 sps:$4 sm:$0xff]  }
 0x61b   : > { %10947 = vmatprep.subr.bf16.mxu1 %v19273_v53  ;;  %10802 = vmatpush1.bf16.msra.mxu0 %v19274_v55  ;;  %v19313_v40 = vld [vmem:[#allocation2 + $0x1568] ss:$112 sps:$4 sm:$0xff]   ;;  %v19321_v53 = vld [vmem:[#allocation2 + $0x164c] ss:$112 sps:$4 sm:$0xff]   ;;  %v19322_v55 = vld [vmem:[#allocation2 + $0x1e20] ss:$112 sps:$4 sm:$0xff]  }
 0x61c   : > { %10803 = vmatprep.subr.bf16.mxu0 %v19282_v1  ;;  %v19330_v1 = vld [vmem:[#allocation2 + $0x1f04] ss:$112 sps:$4 sm:$0xff]  }
 0x61e   : > { %10948 = vmatpush1.bf16.msra.mxu1 %v19271_v56  ;;  %v19319_v56 = vld [vmem:[#allocation2 + $0x1648] ss:$112 sps:$4 sm:$0xff]  }
 0x61f   : > { %10949 = vmatprep.subr.bf16.mxu1 %v19279_v3  ;;  %10804 = vmatpush1.bf16.msra.mxu0 %v19280_v4  ;;  %v19327_v3 = vld [vmem:[#allocation2 + $0x172c] ss:$112 sps:$4 sm:$0xff]   ;;  %v19328_v4 = vld [vmem:[#allocation2 + $0x1f00] ss:$112 sps:$4 sm:$0xff]  }
 0x620   : > { %10805 = vmatprep.subr.bf16.mxu0 %v19288_v51  ;;  %v19336_v51 = vld [vmem:[#allocation2 + $0x1fe4] ss:$112 sps:$4 sm:$0xff]  }
 0x622   : > { %10950 = vmatpush1.bf16.msra.mxu1 %v19277_v5  ;;  %v19325_v5 = vld [vmem:[#allocation2 + $0x1728] ss:$112 sps:$4 sm:$0xff]  }
 0x623   : > { %10951 = vmatprep.subr.bf16.mxu1 %v19285_v6  ;;  %10806 = vmatpush1.bf16.msra.mxu0 %v19286_v9  ;;  %v19333_v6 = vld [vmem:[#allocation2 + $0x180c] ss:$112 sps:$4 sm:$0xff]   ;;  %v19334_v9 = vld [vmem:[#allocation2 + $0x1fe0] ss:$112 sps:$4 sm:$0xff]  }
 0x624   : > { %10807 = vmatprep.subr.bf16.mxu0 %v19294_v8  ;;  %v19342_v8 = vld [vmem:[#allocation2 + $0x20c4] ss:$112 sps:$4 sm:$0xff]  }
 0x626   : > { %10952 = vmatpush1.bf16.msra.mxu1 %v19283_v7  ;;  %v19331_v7 = vld [vmem:[#allocation2 + $0x1808] ss:$112 sps:$4 sm:$0xff]  }
 0x627   : > { %10953 = vmatprep.subr.bf16.mxu1 %v19291_v11  ;;  %10808 = vmatpush1.bf16.msra.mxu0 %v19292_v12  ;;  %v19339_v11 = vld [vmem:[#allocation2 + $0x18ec] ss:$112 sps:$4 sm:$0xff]   ;;  %v19340_v12 = vld [vmem:[#allocation2 + $0x20c0] ss:$112 sps:$4 sm:$0xff]  }
 0x628   : > { %10809 = vmatprep.subr.bf16.mxu0 %v19300_v13  ;;  %v19348_v13 = vld [vmem:[#allocation2 + $0x21a4] ss:$112 sps:$4 sm:$0xff]  }
 0x62a   : > { %10954 = vmatpush1.bf16.msra.mxu1 %v19289_v36  ;;  %v19337_v36 = vld [vmem:[#allocation2 + $0x18e8] ss:$112 sps:$4 sm:$0xff]  }
 0x62b   : > { %10955 = vmatprep.subr.bf16.mxu1 %v19297_v14  ;;  %10810 = vmatpush1.bf16.msra.mxu0 %v19298_v15  ;;  %v19345_v14 = vld [vmem:[#allocation2 + $0x19cc] ss:$112 sps:$4 sm:$0xff]   ;;  %v19346_v15 = vld [vmem:[#allocation2 + $0x21a0] ss:$112 sps:$4 sm:$0xff]  }
 0x62c   : > { %10811 = vmatprep.subr.bf16.mxu0 %v19306_v20  ;;  %v19354_v20 = vld [vmem:[#allocation2 + $0x2284] ss:$112 sps:$4 sm:$0xff]  }
 0x62e   : > { %10956 = vmatpush1.bf16.msra.mxu1 %v19295_v17  ;;  %v19343_v17 = vld [vmem:[#allocation2 + $0x19c8] ss:$112 sps:$4 sm:$0xff]  }
 0x62f   : > { %10957 = vmatprep.subr.bf16.mxu1 %v19303_v21  ;;  %10812 = vmatpush1.bf16.msra.mxu0 %v19304_v22  ;;  %v19351_v21 = vld [vmem:[#allocation2 + $0x1aac] ss:$112 sps:$4 sm:$0xff]   ;;  %v19352_v22 = vld [vmem:[#allocation2 + $0x2280] ss:$112 sps:$4 sm:$0xff]  }
 0x630   : > { %10822 = vmatprep.subr.bf16.mxu0 %v19312_v58  ;;  %v19360_v58 = vld [vmem:[#allocation2 + $0x2364] ss:$112 sps:$4 sm:$0xff]  }
 0x632   : > { %10958 = vmatpush1.bf16.msra.mxu1 %v19301_v30  ;;  %10814 = vmatmul.mubr.bf16.vlgmr.msra.gmra.mrb[24].mxu0 %v20174_v18  ;;  %v19349_v30 = vld [vmem:[#allocation2 + $0x1aa8] ss:$112 sps:$4 sm:$0xff]  }
 0x633   : > { %10959 = vmatprep.subr.bf16.mxu1 %v19309_v32  ;;  %10823 = vmatpush1.bf16.msra.mxu0 %v19310_v60  ;;  %v19357_v32 = vld [vmem:[#allocation2 + $0x1b8c] ss:$112 sps:$4 sm:$0xff]   ;;  %v19358_v60 = vld [vmem:[#allocation2 + $0x2360] ss:$112 sps:$4 sm:$0xff]  }
 0x634   : > { %10854 = vmatprep.mubr.bf16.mxu0 %v20177_v24  ;;  %10824 = vmatprep.subr.bf16.mxu0 %v19318_v57  ;;  %v19366_v57 = vld [vmem:[#allocation2 + $0x2444] ss:$112 sps:$4 sm:$0xff]  }
 0x636   : > { %10960 = vmatpush1.bf16.msra.mxu1 %v19307_v34  ;;  %v19355_v34 = vld [vmem:[#allocation2 + $0x1b88] ss:$112 sps:$4 sm:$0xff]  }
 0x637   : > { %10961 = vmatprep.subr.bf16.mxu1 %v19315_v38  ;;  %10825 = vmatpush1.bf16.msra.mxu0 %v19316_v39  ;;  %v19363_v38 = vld [vmem:[#allocation2 + $0x1c6c] ss:$112 sps:$4 sm:$0xff]   ;;  %v19364_v39 = vld [vmem:[#allocation2 + $0x2440] ss:$112 sps:$4 sm:$0xff]  }
 0x638   : > { %10826 = vmatprep.subr.bf16.mxu0 %v19324_v50  ;;  %v19372_v50 = vld [vmem:[#allocation2 + $0x2524] ss:$112 sps:$4 sm:$0xff]  }
 0x63a   : > { %10962 = vmatpush1.bf16.msra.mxu1 %v19313_v40  ;;  %v19361_v40 = vld [vmem:[#allocation2 + $0x1c68] ss:$112 sps:$4 sm:$0xff]  }
 0x63b   : > { %10963 = vmatprep.subr.bf16.mxu1 %v19321_v53  ;;  %10827 = vmatpush1.bf16.msra.mxu0 %v19322_v55  ;;  %v19369_v53 = vld [vmem:[#allocation2 + $0x1d4c] ss:$112 sps:$4 sm:$0xff]   ;;  %v19370_v55 = vld [vmem:[#allocation2 + $0x2520] ss:$112 sps:$4 sm:$0xff]  }
 0x63c   : > { %10828 = vmatprep.subr.bf16.mxu0 %v19330_v1  ;;  %v19378_v1 = vld [vmem:[#allocation2 + $0x2604] ss:$112 sps:$4 sm:$0xff]  }
 0x63e   : > { %10964 = vmatpush1.bf16.msra.mxu1 %v19319_v56  ;;  %v19367_v56 = vld [vmem:[#allocation2 + $0x1d48] ss:$112 sps:$4 sm:$0xff]  }
 0x63f   : > { %10965 = vmatprep.subr.bf16.mxu1 %v19327_v3  ;;  %10829 = vmatpush1.bf16.msra.mxu0 %v19328_v4  ;;  %v19375_v3 = vld [vmem:[#allocation2 + $0x1e2c] ss:$112 sps:$4 sm:$0xff]   ;;  %v19376_v4 = vld [vmem:[#allocation2 + $0x2600] ss:$112 sps:$4 sm:$0xff]  }
 0x640   : > { %10830 = vmatprep.subr.bf16.mxu0 %v19336_v51  ;;  %v19384_v51 = vld [vmem:[#allocation2 + $0x26e4] ss:$112 sps:$4 sm:$0xff]  }
 0x642   : > { %10966 = vmatpush1.bf16.msra.mxu1 %v19325_v5  ;;  %v19373_v5 = vld [vmem:[#allocation2 + $0x1e28] ss:$112 sps:$4 sm:$0xff]  }
 0x643   : > { %10967 = vmatprep.subr.bf16.mxu1 %v19333_v6  ;;  %10831 = vmatpush1.bf16.msra.mxu0 %v19334_v9  ;;  %v19381_v6 = vld [vmem:[#allocation2 + $0x1f0c] ss:$112 sps:$4 sm:$0xff]   ;;  %v19379_v9 = vld [vmem:[#allocation2 + $0x1f08] ss:$112 sps:$4 sm:$0xff]  }
 0x644   : > { %10832 = vmatprep.subr.bf16.mxu0 %v19342_v8  ;;  %v19387_v8 = vld [vmem:[#allocation2 + $0x1fec] ss:$112 sps:$4 sm:$0xff]  }
 0x646   : > { %10968 = vmatpush1.bf16.msra.mxu1 %v19331_v7  ;;  %v19390_v7 = vld [vmem:[#allocation2 + $0x27c4] ss:$112 sps:$4 sm:$0xff]  }
 0x647   : > { %10969 = vmatprep.subr.bf16.mxu1 %v19339_v11  ;;  %10833 = vmatpush1.bf16.msra.mxu0 %v19340_v12  ;;  %v19388_v11 = vld [vmem:[#allocation2 + $0x27c0] ss:$112 sps:$4 sm:$0xff]   ;;  %v19396_v12 = vld [vmem:[#allocation2 + $0x28a4] ss:$112 sps:$4 sm:$0xff]  }
 0x648   : > { %10834 = vmatprep.subr.bf16.mxu0 %v19348_v13  ;;  %v19394_v13 = vld [vmem:[#allocation2 + $0x28a0] ss:$112 sps:$4 sm:$0xff]  }
 0x64a   : > { %10970 = vmatpush1.bf16.msra.mxu1 %v19337_v36  ;;  %v19393_v36 = vld [vmem:[#allocation2 + $0x20cc] ss:$112 sps:$4 sm:$0xff]  }
 0x64b   : > { %10971 = vmatprep.subr.bf16.mxu1 %v19345_v14  ;;  %10835 = vmatpush1.bf16.msra.mxu0 %v19346_v15  ;;  %v19391_v14 = vld [vmem:[#allocation2 + $0x20c8] ss:$112 sps:$4 sm:$0xff]   ;;  %v19402_v15 = vld [vmem:[#allocation2 + $0x2984] ss:$112 sps:$4 sm:$0xff]  }
 0x64c   : > { %10836 = vmatprep.subr.bf16.mxu0 %v19354_v20  ;;  %v19400_v20 = vld [vmem:[#allocation2 + $0x2980] ss:$112 sps:$4 sm:$0xff]  }
 0x64e   : > { %10972 = vmatpush1.bf16.msra.mxu1 %v19343_v17  ;;  %v19399_v17 = vld [vmem:[#allocation2 + $0x21ac] ss:$112 sps:$4 sm:$0xff]  }
 0x64f   : > { %10973 = vmatprep.subr.bf16.mxu1 %v19351_v21  ;;  %10837 = vmatpush1.bf16.msra.mxu0 %v19352_v22  ;;  %v19397_v21 = vld [vmem:[#allocation2 + $0x21a8] ss:$112 sps:$4 sm:$0xff]   ;;  %v19408_v22 = vld [vmem:[#allocation2 + $0x2a64] ss:$112 sps:$4 sm:$0xff]  }
 0x650   : > { %10838 = vmatprep.subr.bf16.mxu0 %v19360_v58  ;;  %v11147_v58 = vld [vmem:[#allocation6] sm:$0xff] }
 0x652   : > { %10974 = vmatpush1.bf16.msra.mxu1 %v19349_v30  ;;  %v19405_v30 = vld [vmem:[#allocation2 + $0x228c] ss:$112 sps:$4 sm:$0xff]  }
 0x653   : > { %10975 = vmatprep.subr.bf16.mxu1 %v19357_v32  ;;  %10839 = vmatpush1.bf16.msra.mxu0 %v19358_v60  ;;  %v11151_v32 = vld [vmem:[#allocation6 + $0x20] sm:$0xff]  ;;  %v19406_v60 = vld [vmem:[#allocation2 + $0x2a60] ss:$112 sps:$4 sm:$0xff]  }
 0x654   : > { %10840 = vmatprep.subr.bf16.mxu0 %v19366_v57  ;;  %v16483_v57 = vcombine.high %v11147_v58, %v11151_v32 }
 0x656   : > { %10976 = vmatpush1.bf16.msra.mxu1 %v19355_v34  ;;  %v19403_v34 = vld [vmem:[#allocation2 + $0x2288] ss:$112 sps:$4 sm:$0xff]  }
 0x657   : > { %10986 = vmatprep.subr.bf16.mxu1 %v19363_v38  ;;  %10841 = vmatpush1.bf16.msra.mxu0 %v19364_v39  ;;  %v19411_v38 = vld [vmem:[#allocation2 + $0x236c] ss:$112 sps:$4 sm:$0xff]   ;;  %v19409_v39 = vld [vmem:[#allocation2 + $0x2368] ss:$112 sps:$4 sm:$0xff]  }
 0x658   : > { %10842 = vmatprep.subr.bf16.mxu0 %v19372_v50  ;;  %v19412_v50 = vld [vmem:[#allocation2 + $0x2448] ss:$112 sps:$4 sm:$0xff]  }
 0x659   : > { %10978 = vmatmul.mubr.bf16.vlgmr.msra.gmra.mrb[32].mxu1 %v20174_v18  ;;  %v19382_v18 = vld [vmem:[#allocation2 + $0x26e0] ss:$112 sps:$4 sm:$0xff]  }
 0x65a   : > { %10987 = vmatpush1.bf16.msra.mxu1 %v19361_v40  ;;  %11018 = vmatprep.mubr.bf16.mxu1 %v20177_v24  ;;  %v19385_v24 = vld [vmem:[#allocation2 + $0x1fe8] ss:$112 sps:$4 sm:$0xff]   ;;  %v19414_v40 = vld [vmem:[#allocation2 + $0x244c] ss:$112 sps:$4 sm:$0xff]  }
 0x65b   : > { %10988 = vmatprep.subr.bf16.mxu1 %v19369_v53  ;;  %10843 = vmatpush1.bf16.msra.mxu0 %v19370_v55  ;;  %v19417_v53 = vld [vmem:[#allocation2 + $0x252c] ss:$112 sps:$4 sm:$0xff]  }
 0x65c   : > { %10844 = vmatprep.subr.bf16.mxu0 %v19378_v1  ;;  %v11155_v55 = vld [vmem:[#allocation6 + $0x40] sm:$0xff]  ;;  %v16482_v1 = vcombine.low %v11147_v58, %v11151_v32 }
 0x65d   : > { %v19424_v32 = vld [vmem:[#allocation2 + $0x27c8] ss:$112 sps:$4 sm:$0xff]  }
 0x65e   : > { %10989 = vmatpush1.bf16.msra.mxu1 %v19367_v56  ;;  %v11159_v56 = vld [vmem:[#allocation6 + $0x60] sm:$0xff] }
 0x65f   : > { %10990 = vmatprep.subr.bf16.mxu1 %v19375_v3  ;;  %10845 = vmatpush1.bf16.msra.mxu0 %v19376_v4  ;;  %v19415_v3 = vld [vmem:[#allocation2 + $0x2528] ss:$112 sps:$4 sm:$0xff]   ;;  %v16491_v4 = vcombine.high %v11155_v55, %v11159_v56 }
 0x660   : > { %10846 = vmatprep.subr.bf16.mxu0 %v19384_v51  ;;  %v11163_v51 = vld [vmem:[#allocation6 + $0x80] sm:$0xff] }
 0x662   : > { %10991 = vmatpush1.bf16.msra.mxu1 %v19373_v5  ;;  %v19420_v5 = vld [vmem:[#allocation2 + $0x260c] ss:$112 sps:$4 sm:$0xff]  }
 0x663   : > { %10992 = vmatprep.subr.bf16.mxu1 %v19381_v6  ;;  %10847 = vmatpush1.bf16.msra.mxu0 %v19382_v18  ;;  %v11167_v6 = vld [vmem:[#allocation6 + $0xa0] sm:$0xff]  ;;  %v16490_v18 = vcombine.low %v11155_v55, %v11159_v56 }
 0x664   : > { %10848 = vmatprep.subr.bf16.mxu0 %v19390_v7  ;;  %v16499_v7 = vcombine.high %v11163_v51, %v11167_v6  ;;  %v19432_v55 = vld [vmem:[#allocation2 + $0x298c] ss:$112 sps:$4 sm:$0xff]  }
 0x665   : > { %v11195_v56 = vld [vmem:[#allocation6 + $0x180] sm:$0xff] }
 0x666   : > { %10993 = vmatpush1.bf16.msra.mxu1 %v19379_v9  ;;  %v19418_v9 = vld [vmem:[#allocation2 + $0x2608] ss:$112 sps:$4 sm:$0xff]  }
 0x667   : > { %10994 = vmatprep.subr.bf16.mxu1 %v19387_v8  ;;  %10849 = vmatpush1.bf16.msra.mxu0 %v19388_v11  ;;  %v19423_v8 = vld [vmem:[#allocation2 + $0x26ec] ss:$112 sps:$4 sm:$0xff]  }
 0x668   : > { %10850 = vmatprep.subr.bf16.mxu0 %v19396_v12  ;;  %v11171_v11 = vld [vmem:[#allocation6 + $0xc0] sm:$0xff]  ;;  %v16498_v12 = vcombine.low %v11163_v51, %v11167_v6  ;;  %v11148_v51 = vld [vmem:[#allocation6 + $0x8] sm:$0xff] }
 0x669   : > { %v11152_v6 = vld [vmem:[#allocation6 + $0x28] sm:$0xff] }
 0x66a   : > { %10995 = vmatpush1.bf16.msra.mxu1 %v19385_v24  ;;  %v11175_v24 = vld [vmem:[#allocation6 + $0xe0] sm:$0xff] }
 0x66b   : > { %10996 = vmatprep.subr.bf16.mxu1 %v19393_v36  ;;  %10851 = vmatpush1.bf16.msra.mxu0 %v19394_v13  ;;  %v19421_v36 = vld [vmem:[#allocation2 + $0x26e8] ss:$112 sps:$4 sm:$0xff]   ;;  %v16507_v13 = vcombine.high %v11171_v11, %v11175_v24  ;;  %v16506_v58 = vcombine.low %v11171_v11, %v11175_v24  ;;  %v16485_v24 = vcombine.high %v11148_v51, %v11152_v6 }
 0x66c   : > { %10852 = vmatprep.subr.bf16.mxu0 %v19402_v15  ;;  %v19426_v15 = vld [vmem:[#allocation2 + $0x27cc] ss:$112 sps:$4 sm:$0xff]  }
 0x66d   : > { %v11215_v11 = vld [vmem:[#allocation6 + $0x220] sm:$0xff] }
 0x66e   : > { %10997 = vmatpush1.bf16.msra.mxu1 %v19391_v14 }
 0x66f   : > { %10998 = vmatprep.subr.bf16.mxu1 %v19399_v17  ;;  %10853 = vmatpush1.bf16.msra.mxu0 %v19400_v20  ;;  %v11179_v17 = vld [vmem:[#allocation6 + $0x100] sm:$0xff] }
 0x670   : > { %10863 = vmatprep.subr.bf16.mxu0 %v19408_v22  ;;  %v11183_v20 = vld [vmem:[#allocation6 + $0x120] sm:$0xff] }
 0x672   : > { %10999 = vmatpush1.bf16.msra.mxu1 %v19397_v21  ;;  %10855 = vmatmul.mubr.bf16.vlgmr.msra.gmra.mrb[24].mxu0 %v20184_v29 }
 0x673   : > { %11000 = vmatprep.subr.bf16.mxu1 %v19405_v30  ;;  %10864 = vmatpush1.bf16.msra.mxu0 %v19406_v60 }
 0x674   : > { %10895 = vmatprep.mubr.bf16.mxu0 %v19797_v0  ;;  %13835 = vmatprep.subr.bf16.mxu0 %v16483_v57 }
 0x676   : > { %11001 = vmatpush1.bf16.msra.mxu1 %v19403_v34  ;;  %v16515_v34 = vcombine.high %v11179_v17, %v11183_v20 }
 0x677   : > { %11002 = vmatprep.subr.bf16.mxu1 %v19411_v38  ;;  %v19429_v38 = vld [vmem:[#allocation2 + $0x28ac] ss:$112 sps:$4 sm:$0xff]  }
 0x67a   : > { %11003 = vmatpush1.bf16.msra.mxu1 %v19409_v39  ;;  %v11187_v39 = vld [vmem:[#allocation6 + $0x140] sm:$0xff] }
 0x67b   : > { %11004 = vmatprep.subr.bf16.mxu1 %v19414_v40  ;;  %v11191_v40 = vld [vmem:[#allocation6 + $0x160] sm:$0xff] }
 0x67e   : > { %11005 = vmatpush1.bf16.msra.mxu1 %v19412_v50  ;;  %16480 = vmatmul.mubr.msk.bf16.vlgmr.msra.gmra.mrb[24].mxu0 %vm8768_vm0, %v20154_v10  ;;  %v16514_v50 = vcombine.low %v11179_v17, %v11183_v20 }
 0x67f   : > { %11006 = vmatprep.subr.bf16.mxu1 %v19417_v53  ;;  %13836 = vmatpush1.bf16.msra.mxu0 %v16482_v1  ;;  %v16523_v53 = vcombine.high %v11187_v39, %v11191_v40  ;;  %v11199_v1 = vld [vmem:[#allocation6 + $0x1a0] sm:$0xff] }
 0x680   : > { %13837 = vmatprep.subr.bf16.mxu0 %v16491_v4  ;;  %v16531_v63 = vcombine.high %v11195_v56, %v11199_v1  ;;  %v11207_v4 = vld [vmem:[#allocation6 + $0x1e0] sm:$0xff] }
 0x682   : > { %11007 = vmatpush1.bf16.msra.mxu1 %v19415_v3  ;;  %v16522_v3 = vcombine.low %v11187_v39, %v11191_v40  ;;  %v11235_v39 = vld [vmem:[#allocation6 + $0x2c0] sm:$0xff] }
 0x683   : > { %11008 = vmatprep.subr.bf16.mxu1 %v19420_v5  ;;  %13838 = vmatpush1.bf16.msra.mxu0 %v16490_v18  ;;  %v19435_v5 = vld [vmem:[#allocation2 + $0x2a6c] ss:$112 sps:$4 sm:$0xff]   ;;  %v16530_v18 = vcombine.low %v11195_v56, %v11199_v1 }
 0x684   : > { %13839 = vmatprep.subr.bf16.mxu0 %v16499_v7  ;;  %v19433_v7 = vld [vmem:[#allocation2 + $0x2a68] ss:$112 sps:$4 sm:$0xff]  }
 0x685   : > { %v20361_v14 = vpop.f32.mrb[20].mxu0  ;;  %v11239_v40 = vld [vmem:[#allocation6 + $0x2e0] sm:$0xff] }
 0x686   : > { %11009 = vmatpush1.bf16.msra.mxu1 %v19418_v9  ;;  %v10571_v21 = vpop.f32.mrb[21].mxu0  ;;  %v16571_v56 = vcombine.high %v11235_v39, %v11239_v40 }
 0x687   : > { %11010 = vmatprep.subr.bf16.mxu1 %v19423_v8  ;;  %13840 = vmatpush1.bf16.msra.mxu0 %v16498_v12  ;;  %v11075_v22 = vmax.f32 %v20319_v42, %v10571_v21  ;;  %v10573_v30 = vpop.f32.mrb[22].mxu0  ;;  %v19427_v42 = vld [vmem:[#allocation2 + $0x28a8] ss:$112 sps:$4 sm:$0xff]  }
 0x688   : > { %v10574_v60 = vpop.f32.mrb[23].mxu0  ;;  %13841 = vmatprep.subr.bf16.mxu0 %v16507_v13  ;;  %v11211_v8 = vld [vmem:[#allocation6 + $0x200] sm:$0xff]  ;;  %v11156_v30 = vld [vmem:[#allocation6 + $0x48] sm:$0xff] }
 0x689   : > { %v20367_v57 = vmax.f32 %v11068_v2, %v11075_v22  ;;  %v11203_v2 = vld [vmem:[#allocation6 + $0x1c0] sm:$0xff]  ;;  %v16546_v17 = vcombine.low %v11211_v8, %v11215_v11 }
 0x68a   : > { %11011 = vmatpush1.bf16.msra.mxu1 %v19421_v36  ;;  %v16539_v9 = vcombine.high %v11203_v2, %v11207_v4  ;;  %v16538_v12 = vcombine.low %v11203_v2, %v11207_v4  ;;  %v16547_v36 = vcombine.high %v11211_v8, %v11215_v11  ;;  %v11219_v13 = vld [vmem:[#allocation6 + $0x240] sm:$0xff]  ;;  %v11172_v2 = vld [vmem:[#allocation6 + $0xc8] sm:$0xff]  ;;  %v20376_v8 = vld [vmem:[#allocation4] sm:$0xff] }
 0x68b   : > { %11012 = vmatprep.subr.bf16.mxu1 %v19426_v15  ;;  %13842 = vmatpush1.bf16.msra.mxu0 %v16506_v58  ;;  %v11223_v15 = vld [vmem:[#allocation6 + $0x260] sm:$0xff]  ;;  %v11160_v58 = vld [vmem:[#allocation6 + $0x68] sm:$0xff] }
 0x68c   : > { %13843 = vmatprep.subr.bf16.mxu0 %v16515_v34  ;;  %v16555_v20 = vcombine.high %v11219_v13, %v11223_v15  ;;  %v11227_v21 = vld [vmem:[#allocation6 + $0x280] sm:$0xff]  ;;  %v11091_v34 = vlaneseq  ;;  %v11176_v4 = vld [vmem:[#allocation6 + $0xe8] sm:$0xff] }
 0x68d   : > { %v11231_v22 = vld [vmem:[#allocation6 + $0x2a0] sm:$0xff] }
 0x68e   : > { %11013 = vmatpush1.bf16.msra.mxu1 %v19424_v32  ;;  %v16484_v32 = vcombine.low %v11148_v51, %v11152_v6  ;;  %v16563_v60 = vcombine.high %v11227_v21, %v11231_v22  ;;  %v20373_v1 = vshrl.u32 %v11091_v34, 7  ;;  %v16570_v51 = vcombine.low %v11235_v39, %v11239_v40  ;;  %v11263_v34 = vld [vmem:[#allocation6 + $0x3a0] sm:$0xff]  ;;  %v11188_v39 = vld [vmem:[#allocation6 + $0x148] sm:$0xff] }
 0x68f   : > { %11014 = vmatprep.subr.bf16.mxu1 %v19429_v38  ;;  %13844 = vmatpush1.bf16.msra.mxu0 %v16514_v50  ;;  %v16493_v38 = vcombine.high %v11156_v30, %v11160_v58  ;;  %v11164_v50 = vld [vmem:[#allocation6 + $0x88] sm:$0xff] }
 0x690   : > { %13845 = vmatprep.subr.bf16.mxu0 %v16523_v53  ;;  %v16562_v53 = vcombine.low %v11227_v21, %v11231_v22 }
 0x692   : > { %11015 = vmatpush1.bf16.msra.mxu1 %v19427_v42  ;;  %v11168_v42 = vld [vmem:[#allocation6 + $0xa8] sm:$0xff] }
 0x693   : > { %11016 = vmatprep.subr.bf16.mxu1 %v19432_v55  ;;  %13846 = vmatpush1.bf16.msra.mxu0 %v16522_v3  ;;  %v16492_v55 = vcombine.low %v11156_v30, %v11160_v58  ;;  %v16501_v3 = vcombine.high %v11164_v50, %v11168_v42  ;;  %v16508_v30 = vcombine.low %v11172_v2, %v11176_v4 }
 0x694   : > { %13847 = vmatprep.subr.bf16.mxu0 %v16531_v63  ;;  %v11247_v63 = vld [vmem:[#allocation6 + $0x320] sm:$0xff] }
 0x696   : > { %11017 = vmatpush1.bf16.msra.mxu1 %v19430_v26  ;;  %v11243_v26 = vld [vmem:[#allocation6 + $0x300] sm:$0xff] }
 0x697   : > { %11027 = vmatprep.subr.bf16.mxu1 %v19435_v5  ;;  %13848 = vmatpush1.bf16.msra.mxu0 %v16530_v18  ;;  %v11097_v5 = vsub.s32 1, %v20373_v1  ;;  %v16579_v6 = vcombine.high %v11243_v26, %v11247_v63  ;;  %v16509_v18 = vcombine.high %v11172_v2, %v11176_v4 }
 0x698   : > { %13849 = vmatprep.subr.bf16.mxu0 %v16539_v9  ;;  %v11251_v9 = vld [vmem:[#allocation6 + $0x340] sm:$0xff] }
 0x699   : > { %11019 = vmatmul.mubr.bf16.vlgmr.msra.gmra.mrb[32].mxu1 %v20184_v29  ;;  %v16554_v29 = vcombine.low %v11219_v13, %v11223_v15  ;;  %v11098_v13 = vrot.slane %v20376_v8, %v11097_v5 }
 0x69a   : > { %11028 = vmatpush1.bf16.msra.mxu1 %v19433_v7  ;;  %11059 = vmatprep.mubr.bf16.mxu1 %v19797_v0  ;;  %v11255_v7 = vld [vmem:[#allocation6 + $0x360] sm:$0xff] }
 0x69b   : > { %13999 = vmatprep.subr.bf16.mxu1 %v16485_v24  ;;  %13850 = vmatpush1.bf16.msra.mxu0 %v16538_v12  ;;  %v11180_v24 = vld [vmem:[#allocation6 + $0x108] sm:$0xff]  ;;  %v16587_v58 = vcombine.high %v11251_v9, %v11255_v7 }
 0x69c   : > { %13851 = vmatprep.subr.bf16.mxu0 %v16547_v36  ;;  %v11184_v12 = vld [vmem:[#allocation6 + $0x128] sm:$0xff] }
 0x69d   : > { %v16516_v33 = vcombine.low %v11180_v24, %v11184_v12 }
 0x69f   : > { %13852 = vmatpush1.bf16.msra.mxu0 %v16546_v17  ;;  %v16578_v17 = vcombine.low %v11243_v26, %v11247_v63 }
 0x6a0   : > { %13853 = vmatprep.subr.bf16.mxu0 %v16555_v20  ;;  %v11093_v20 = vsub.s32 0, %v20373_v1 }
 0x6a2   : > { %v11094_v28 = vrot.slane %v20376_v8, %v11093_v20 }
 0x6a3   : > { %13854 = vmatpush1.bf16.msra.mxu0 %v16554_v29 }
 0x6a4   : > { %13855 = vmatprep.subr.bf16.mxu0 %v16563_v60  ;;  %v11259_v60 = vld [vmem:[#allocation6 + $0x380] sm:$0xff]  ;;  %v11126_v26 = vadd.f32 %v11094_v28, %v20367_v57 }
 0x6a5   : > { %16481 = vmatmul.mubr.msk.bf16.vlgmr.msra.gmra.mrb[32].mxu1 %vm8768_vm0, %v20154_v10  ;;  %v16500_v10 = vcombine.low %v11164_v50, %v11168_v42  ;;  %v16586_v50 = vcombine.low %v11251_v9, %v11255_v7  ;;  %v11303_v28 = vld [vmem:[#allocation6 + $0x4e0] sm:$0xff] }
 0x6a6   : > { %14000 = vmatpush1.bf16.msra.mxu1 %v16484_v32  ;;  %v16517_v32 = vcombine.high %v11180_v24, %v11184_v12  ;;  %v11133_v7 = vmax.f32 %v11126_v26, 0.0  ;;  %v11283_v12 = vld [vmem:[#allocation6 + $0x440] sm:$0xff]  ;;  %v11240_v26 = vld [vmem:[#allocation6 + $0x2e8] sm:$0xff] }
 0x6a7   : > { %14001 = vmatprep.subr.bf16.mxu1 %v16493_v38  ;;  %13856 = vmatpush1.bf16.msra.mxu0 %v16562_v53 }
 0x6a8   : > { %13857 = vmatprep.subr.bf16.mxu0 %v16571_v56 }
 0x6aa   : > { %14002 = vmatpush1.bf16.msra.mxu1 %v16492_v55  ;;  %v11267_v55 = vld [vmem:[#allocation6 + $0x3c0] sm:$0xff] }
 0x6ab   : > { %14003 = vmatprep.subr.bf16.mxu1 %v16501_v3  ;;  %13858 = vmatpush1.bf16.msra.mxu0 %v16570_v51  ;;  %v16594_v3 = vcombine.low %v11259_v60, %v11263_v34  ;;  %v16603_v2 = vcombine.high %v11267_v55, %v11271_v43  ;;  %v11275_v51 = vld [vmem:[#allocation6 + $0x400] sm:$0xff]  ;;  %v16602_v9 = vcombine.low %v11267_v55, %v11271_v43 }
 0x6ac   : > { %v10733_v11 = vpop.f32.mrb[28].mxu1  ;;  %13859 = vmatprep.subr.bf16.mxu0 %v16579_v6  ;;  %v11204_v6 = vld [vmem:[#allocation6 + $0x1c8] sm:$0xff] }
 0x6ad   : > { %v11076_v36 = vmax.f32 %v20321_v48, %v10733_v11  ;;  %v10735_v15 = vpop.f32.mrb[29].mxu1 }
 0x6ae   : > { %14004 = vmatpush1.bf16.msra.mxu1 %v16500_v10  ;;  %v11077_v21 = vmax.f32 %v20336_v49, %v10735_v15  ;;  %v10737_v22 = vpop.f32.mrb[30].mxu1  ;;  %v11192_v49 = vld [vmem:[#allocation6 + $0x168] sm:$0xff]  ;;  %v11279_v10 = vld [vmem:[#allocation6 + $0x420] sm:$0xff] }
 0x6af   : > { %v11083_v48 = vmax.f32 %v11069_v35, %v11076_v36  ;;  %v10738_v29 = vpop.f32.mrb[31].mxu1  ;;  %14005 = vmatprep.subr.bf16.mxu1 %v16509_v18  ;;  %13860 = vmatpush1.bf16.msra.mxu0 %v16578_v17  ;;  %v16595_v35 = vcombine.high %v11259_v60, %v11263_v34  ;;  %v16525_v53 = vcombine.high %v11188_v39, %v11192_v49  ;;  %v11208_v18 = vld [vmem:[#allocation6 + $0x1e8] sm:$0xff]  ;;  %v11287_v36 = vld [vmem:[#allocation6 + $0x460] sm:$0xff] }
 0x6b0   : > { %v20390_v38 = vmax.f32 %v11070_v54, %v11077_v21  ;;  %13861 = vmatprep.subr.bf16.mxu0 %v16587_v58  ;;  %v11200_v54 = vld [vmem:[#allocation6 + $0x1a8] sm:$0xff]  ;;  %v16524_v63 = vcombine.low %v11188_v39, %v11192_v49  ;;  %v16611_v57 = vcombine.high %v11275_v51, %v11279_v10  ;;  %v16541_v24 = vcombine.high %v11204_v6, %v11208_v18  ;;  %v11295_v29 = vld [vmem:[#allocation6 + $0x4a0] sm:$0xff] }
 0x6b1   : > { %v11127_v40 = vadd.f32 %v11098_v13, %v11083_v48  ;;  %v16533_v4 = vcombine.high %v11196_v37, %v11200_v54  ;;  %v16532_v11 = vcombine.low %v11196_v37, %v11200_v54  ;;  %v11212_v13 = vld [vmem:[#allocation6 + $0x208] sm:$0xff]  ;;  %v16610_v17 = vcombine.low %v11275_v51, %v11279_v10  ;;  %v11291_v48 = vld [vmem:[#allocation6 + $0x480] sm:$0xff] }
 0x6b2   : > { %14006 = vmatpush1.bf16.msra.mxu1 %v16508_v30  ;;  %v11216_v15 = vld [vmem:[#allocation6 + $0x228] sm:$0xff]  ;;  %v20400_v21 = vpack.c.bf16 %v11133_v7, %v11133_v7  ;;  %v16540_v22 = vcombine.low %v11204_v6, %v11208_v18  ;;  %v16619_v30 = vcombine.high %v11283_v12, %v11287_v36  ;;  %v16618_v34 = vcombine.low %v11283_v12, %v11287_v36  ;;  %v11307_v37 = vld [vmem:[#allocation6 + $0x500] sm:$0xff] }
 0x6b3   : > { %v11134_v42 = vmax.f32 %v11127_v40, 0.0  ;;  %14007 = vmatprep.subr.bf16.mxu1 %v16517_v32  ;;  %13862 = vmatpush1.bf16.msra.mxu0 %v16586_v50  ;;  %v16549_v58 = vcombine.high %v11212_v13, %v11216_v15  ;;  %v11220_v32 = vld [vmem:[#allocation6 + $0x248] sm:$0xff]  ;;  %v16548_v39 = vcombine.low %v11212_v13, %v11216_v15  ;;  %v16627_v49 = vcombine.high %v11291_v48, %v11295_v29  ;;  %v11299_v50 = vld [vmem:[#allocation6 + $0x4c0] sm:$0xff] }
 0x6b4   : > { %13863 = vmatprep.subr.bf16.mxu0 %v16595_v35  ;;  %v11224_v60 = vld [vmem:[#allocation6 + $0x268] sm:$0xff]  ;;  %v16635_v55 = vcombine.high %v11299_v50, %v11303_v28  ;;  %v11311_v54 = vld [vmem:[#allocation6 + $0x520] sm:$0xff] }
 0x6b5   : > { %v20395_v56 = vpack.c.bf16 %v11134_v42, %v11134_v42  ;;  %v16557_v40 = vcombine.high %v11220_v32, %v11224_v60  ;;  %v11232_v35 = vld [vmem:[#allocation6 + $0x2a8] sm:$0xff]  ;;  %v16626_v42 = vcombine.low %v11291_v48, %v11295_v29  ;;  %v11315_v10 = vld [vmem:[#allocation6 + $0x540] sm:$0xff]  ;;  %v16642_v7 = vcombine.low %v11307_v37, %v11311_v54 }
 0x6b6   : > { %14008 = vmatpush1.bf16.msra.mxu1 %v16516_v33  ;;  %v11228_v33 = vld [vmem:[#allocation6 + $0x288] sm:$0xff]  ;;  %v11319_v6 = vld [vmem:[#allocation6 + $0x560] sm:$0xff] }
 0x6b7   : > { %13867 = vmatprep.mubr.bf16.mxu0 %v20395_v56  ;;  %14009 = vmatprep.subr.bf16.mxu1 %v16525_v53  ;;  %v16556_v53 = vcombine.low %v11220_v32, %v11224_v60  ;;  %v16565_v43 = vcombine.high %v11228_v33, %v11232_v35  ;;  %v11244_v18 = vld [vmem:[#allocation6 + $0x308] sm:$0xff]  ;;  %v11323_v12 = vld [vmem:[#allocation6 + $0x580] sm:$0xff] }
 0x6b8   : > { %14031 = vmatprep.mubr.bf16.mxu1 %v20395_v56  ;;  %13864 = vmatpush1.bf16.msra.mxu0 %v16594_v3  ;;  %v11236_v3 = vld [vmem:[#allocation6 + $0x2c8] sm:$0xff]  ;;  %v11327_v36 = vld [vmem:[#allocation6 + $0x5a0] sm:$0xff] }
 0x6b9   : > { %13865 = vmatprep.subr.bf16.mxu0 %v16603_v2  ;;  %v16564_v2 = vcombine.low %v11228_v33, %v11232_v35  ;;  %v16573_v51 = vcombine.high %v11236_v3, %v11240_v26  ;;  %v11252_v13 = vld [vmem:[#allocation6 + $0x348] sm:$0xff]  ;;  %v11331_v48 = vld [vmem:[#allocation6 + $0x5c0] sm:$0xff] }
 0x6ba   : > { %14010 = vmatpush1.bf16.msra.mxu1 %v16524_v63  ;;  %v16634_v63 = vcombine.low %v11299_v50, %v11303_v28  ;;  %v11256_v15 = vld [vmem:[#allocation6 + $0x368] sm:$0xff]  ;;  %v11335_v29 = vld [vmem:[#allocation6 + $0x5e0] sm:$0xff] }
 0x6bb   : > { %14011 = vmatprep.subr.bf16.mxu1 %v16533_v4  ;;  %v16643_v4 = vcombine.high %v11307_v37, %v11311_v54  ;;  %v11260_v32 = vld [vmem:[#allocation6 + $0x388] sm:$0xff]  ;;  %v11339_v50 = vld [vmem:[#allocation6 + $0x600] sm:$0xff] }
 0x6bc   : > { %13866 = vmatpush1.bf16.msra.mxu0 %v16602_v9  ;;  %v11248_v9 = vld [vmem:[#allocation6 + $0x328] sm:$0xff]  ;;  %v11343_v28 = vld [vmem:[#allocation6 + $0x620] sm:$0xff] }
 0x6bd   : > { %13876 = vmatprep.subr.bf16.mxu0 %v16611_v57  ;;  %v16651_v57 = vcombine.high %v11315_v10, %v11319_v6  ;;  %v11264_v60 = vld [vmem:[#allocation6 + $0x3a8] sm:$0xff]  ;;  %v11347_v37 = vld [vmem:[#allocation6 + $0x640] sm:$0xff] }
 0x6be   : > { %14012 = vmatpush1.bf16.msra.mxu1 %v16532_v11  ;;  %v16572_v11 = vcombine.low %v11236_v3, %v11240_v26  ;;  %v11268_v33 = vld [vmem:[#allocation6 + $0x3c8] sm:$0xff]  ;;  %v11351_v54 = vld [vmem:[#allocation6 + $0x660] sm:$0xff] }
 0x6bf   : > { %14013 = vmatprep.subr.bf16.mxu1 %v16541_v24  ;;  %13868 = vmatmul.mubr.bf16.vlgmr.msra.gmra.mrb[28].mxu0 %v20400_v21  ;;  %v16581_v24 = vcombine.high %v11244_v18, %v11248_v9  ;;  %v11272_v35 = vld [vmem:[#allocation6 + $0x3e8] sm:$0xff] }
 0x6c0   : > { %13877 = vmatpush1.bf16.msra.mxu0 %v16610_v17  ;;  %v16650_v17 = vcombine.low %v11315_v10, %v11319_v6  ;;  %v11276_v3 = vld [vmem:[#allocation6 + $0x408] sm:$0xff]  ;;  %v20405_v10 = vld [vmem:[#allocation6 + $0x820] sm:$0xff] }
 0x6c1   : > { %13878 = vmatprep.subr.bf16.mxu0 %v16619_v30  ;;  %v16659_v30 = vcombine.high %v11323_v12, %v11327_v36  ;;  %v11280_v26 = vld [vmem:[#allocation6 + $0x428] sm:$0xff] }
 0x6c2   : > { %14014 = vmatpush1.bf16.msra.mxu1 %v16540_v22  ;;  %v16580_v22 = vcombine.low %v11244_v18, %v11248_v9  ;;  %v16613_v6 = vcombine.high %v11276_v3, %v11280_v26  ;;  %v11355_v18 = vld [vmem:[#allocation6 + $0x680] sm:$0xff] }
 0x6c3   : > { %14015 = vmatprep.subr.bf16.mxu1 %v16549_v58  ;;  %v16589_v58 = vcombine.high %v11252_v13, %v11256_v15  ;;  %v11359_v9 = vld [vmem:[#allocation6 + $0x6a0] sm:$0xff] }
 0x6c4   : > { %13879 = vmatpush1.bf16.msra.mxu0 %v16618_v34  ;;  %v16658_v34 = vcombine.low %v11323_v12, %v11327_v36  ;;  %v16612_v12 = vcombine.low %v11276_v3, %v11280_v26  ;;  %v16691_v36 = vcombine.high %v11355_v18, %v11359_v9  ;;  %v11387_v26 = vld [vmem:[#allocation6 + $0x780] sm:$0xff] }
 0x6c5   : > { %13880 = vmatprep.subr.bf16.mxu0 %v16627_v49  ;;  %v16667_v49 = vcombine.high %v11331_v48, %v11335_v29 }
 0x6c6   : > { %14016 = vmatpush1.bf16.msra.mxu1 %v16548_v39  ;;  %v16588_v39 = vcombine.low %v11252_v13, %v11256_v15  ;;  %v11363_v15 = vld [vmem:[#allocation6 + $0x6c0] sm:$0xff] }
 0x6c7   : > { %14017 = vmatprep.subr.bf16.mxu1 %v16557_v40  ;;  %v16597_v40 = vcombine.high %v11260_v32, %v11264_v60 }
 0x6c8   : > { %13881 = vmatpush1.bf16.msra.mxu0 %v16626_v42  ;;  %v16666_v42 = vcombine.low %v11331_v48, %v11335_v29 }
 0x6c9   : > { %13882 = vmatprep.subr.bf16.mxu0 %v16635_v55  ;;  %v16675_v55 = vcombine.high %v11339_v50, %v11343_v28 }
 0x6ca   : > { %14018 = vmatpush1.bf16.msra.mxu1 %v16556_v53  ;;  %v16596_v53 = vcombine.low %v11260_v32, %v11264_v60  ;;  %v11371_v60 = vld [vmem:[#allocation6 + $0x700] sm:$0xff] }
 0x6cb   : > { %14019 = vmatprep.subr.bf16.mxu1 %v16565_v43  ;;  %v16605_v43 = vcombine.high %v11268_v33, %v11272_v35 }
 0x6cc   : > { %13883 = vmatpush1.bf16.msra.mxu0 %v16634_v63  ;;  %v16674_v63 = vcombine.low %v11339_v50, %v11343_v28 }
 0x6cd   : > { %13884 = vmatprep.subr.bf16.mxu0 %v16643_v4  ;;  %v16683_v4 = vcombine.high %v11347_v37, %v11351_v54 }
 0x6ce   : > { %14020 = vmatpush1.bf16.msra.mxu1 %v16564_v2  ;;  %v16604_v2 = vcombine.low %v11268_v33, %v11272_v35  ;;  %v11379_v35 = vld [vmem:[#allocation6 + $0x740] sm:$0xff] }
 0x6cf   : > { %14021 = vmatprep.subr.bf16.mxu1 %v16573_v51  ;;  %v20403_v51 = vld [vmem:[#allocation6 + $0x800] sm:$0xff] }
 0x6d0   : > { %13885 = vmatpush1.bf16.msra.mxu0 %v16642_v7  ;;  %v16738_v7 = vcombine.low %v20403_v51, %v20405_v10 }
 0x6d1   : > { %13886 = vmatprep.subr.bf16.mxu0 %v16651_v57  ;;  %v11288_v57 = vld [vmem:[#allocation6 + $0x468] sm:$0xff] }
 0x6d2   : > { %14022 = vmatpush1.bf16.msra.mxu1 %v16572_v11  ;;  %v11284_v11 = vld [vmem:[#allocation6 + $0x448] sm:$0xff] }
 0x6d3   : > { %14023 = vmatprep.subr.bf16.mxu1 %v16581_v24  ;;  %v16682_v24 = vcombine.low %v11347_v37, %v11351_v54  ;;  %v16621_v13 = vcombine.high %v11284_v11, %v11288_v57  ;;  %v16620_v48 = vcombine.low %v11284_v11, %v11288_v57  ;;  %v11395_v57 = vld [vmem:[#allocation6 + $0x7c0] sm:$0xff] }
 0x6d4   : > { %13887 = vmatpush1.bf16.msra.mxu0 %v16650_v17  ;;  %v11367_v17 = vld [vmem:[#allocation6 + $0x6e0] sm:$0xff] }
 0x6d5   : > { %13888 = vmatprep.subr.bf16.mxu0 %v16659_v30  ;;  %v11296_v30 = vld [vmem:[#allocation6 + $0x4a8] sm:$0xff]  ;;  %v16699_v29 = vcombine.high %v11363_v15, %v11367_v17 }
 0x6d6   : > { %14024 = vmatpush1.bf16.msra.mxu1 %v16580_v22  ;;  %v11292_v22 = vld [vmem:[#allocation6 + $0x488] sm:$0xff] }
 0x6d7   : > { %14025 = vmatprep.subr.bf16.mxu1 %v16589_v58  ;;  %v16690_v58 = vcombine.low %v11355_v18, %v11359_v9  ;;  %v16629_v32 = vcombine.high %v11292_v22, %v11296_v30  ;;  %v16628_v50 = vcombine.low %v11292_v22, %v11296_v30  ;;  %v11332_v30 = vld [vmem:[#allocation6 + $0x5c8] sm:$0xff] }
 0x6d8   : > { %13889 = vmatpush1.bf16.msra.mxu0 %v16658_v34  ;;  %v11375_v34 = vld [vmem:[#allocation6 + $0x720] sm:$0xff] }
 0x6d9   : > { %13890 = vmatprep.subr.bf16.mxu0 %v16667_v49  ;;  %v11304_v49 = vld [vmem:[#allocation6 + $0x4e8] sm:$0xff]  ;;  %v16707_v28 = vcombine.high %v11371_v60, %v11375_v34 }
 0x6da   : > { %14026 = vmatpush1.bf16.msra.mxu1 %v16588_v39  ;;  %v11300_v39 = vld [vmem:[#allocation6 + $0x4c8] sm:$0xff] }
 0x6db   : > { %14027 = vmatprep.subr.bf16.mxu1 %v16597_v40  ;;  %v16698_v40 = vcombine.low %v11363_v15, %v11367_v17  ;;  %v16637_v33 = vcombine.high %v11300_v39, %v11304_v49  ;;  %v16636_v37 = vcombine.low %v11300_v39, %v11304_v49  ;;  %v11344_v39 = vld [vmem:[#allocation6 + $0x628] sm:$0xff] }
 0x6dc   : > { %13891 = vmatpush1.bf16.msra.mxu0 %v16666_v42  ;;  %v11383_v42 = vld [vmem:[#allocation6 + $0x760] sm:$0xff] }
 0x6dd   : > { %13892 = vmatprep.subr.bf16.mxu0 %v16675_v55  ;;  %v11312_v55 = vld [vmem:[#allocation6 + $0x528] sm:$0xff]  ;;  %v16715_v54 = vcombine.high %v11379_v35, %v11383_v42 }
 0x6de   : > { %14028 = vmatpush1.bf16.msra.mxu1 %v16596_v53  ;;  %v11308_v53 = vld [vmem:[#allocation6 + $0x508] sm:$0xff] }
 0x6df   : > { %14029 = vmatprep.subr.bf16.mxu1 %v16605_v43  ;;  %v16706_v43 = vcombine.low %v11371_v60, %v11375_v34  ;;  %v16645_v3 = vcombine.high %v11308_v53, %v11312_v55  ;;  %v16644_v18 = vcombine.low %v11308_v53, %v11312_v55  ;;  %v11340_v34 = vld [vmem:[#allocation6 + $0x608] sm:$0xff] }
 0x6e0   : > { %13893 = vmatpush1.bf16.msra.mxu0 %v16674_v63  ;;  %v11391_v63 = vld [vmem:[#allocation6 + $0x7a0] sm:$0xff]  ;;  %v11360_v53 = vld [vmem:[#allocation6 + $0x6a8] sm:$0xff] }
 0x6e1   : > { %13894 = vmatprep.subr.bf16.mxu0 %v16683_v4  ;;  %v11320_v4 = vld [vmem:[#allocation6 + $0x568] sm:$0xff]  ;;  %v16723_v9 = vcombine.high %v11387_v26, %v11391_v63 }
 0x6e2   : > { %14030 = vmatpush1.bf16.msra.mxu1 %v16604_v2  ;;  %v11316_v2 = vld [vmem:[#allocation6 + $0x548] sm:$0xff] }
 0x6e3   : > { %14040 = vmatprep.subr.bf16.mxu1 %v16613_v6  ;;  %v16714_v6 = vcombine.low %v11379_v35, %v11383_v42  ;;  %v16653_v11 = vcombine.high %v11316_v2, %v11320_v4  ;;  %v16652_v15 = vcombine.low %v11316_v2, %v11320_v4  ;;  %v11356_v42 = vld [vmem:[#allocation6 + $0x688] sm:$0xff] }
 0x6e4   : > { %13895 = vmatpush1.bf16.msra.mxu0 %v16682_v24  ;;  %v11399_v24 = vld [vmem:[#allocation6 + $0x7e0] sm:$0xff]  ;;  %v11376_v2 = vld [vmem:[#allocation6 + $0x728] sm:$0xff] }
 0x6e5   : > { %14032 = vmatmul.mubr.bf16.vlgmr.msra.gmra.mrb[36].mxu1 %v20400_v21  ;;  %13896 = vmatprep.subr.bf16.mxu0 %v16691_v36  ;;  %v11328_v36 = vld [vmem:[#allocation6 + $0x5a8] sm:$0xff]  ;;  %v16731_v17 = vcombine.high %v11395_v57, %v11399_v24 }
 0x6e6   : > { %14041 = vmatpush1.bf16.msra.mxu1 %v16612_v12  ;;  %v11324_v12 = vld [vmem:[#allocation6 + $0x588] sm:$0xff] }
 0x6e7   : > { %14042 = vmatprep.subr.bf16.mxu1 %v16621_v13  ;;  %v16722_v13 = vcombine.low %v11387_v26, %v11391_v63  ;;  %v16661_v22 = vcombine.high %v11324_v12, %v11328_v36  ;;  %v11372_v63 = vld [vmem:[#allocation6 + $0x708] sm:$0xff] }
 0x6e8   : > { %13897 = vmatpush1.bf16.msra.mxu0 %v16690_v58  ;;  %v11336_v58 = vld [vmem:[#allocation6 + $0x5e8] sm:$0xff] }
 0x6e9   : > { %13898 = vmatprep.subr.bf16.mxu0 %v16699_v29  ;;  %v16660_v29 = vcombine.low %v11324_v12, %v11328_v36  ;;  %v16669_v60 = vcombine.high %v11332_v30, %v11336_v58  ;;  %v16668_v49 = vcombine.low %v11332_v30, %v11336_v58  ;;  %v11392_v12 = vld [vmem:[#allocation6 + $0x7a8] sm:$0xff] }
 0x6ea   : > { %14043 = vmatpush1.bf16.msra.mxu1 %v16620_v48  ;;  %v16730_v48 = vcombine.low %v11395_v57, %v11399_v24  ;;  %v11388_v24 = vld [vmem:[#allocation6 + $0x788] sm:$0xff] }
 0x6eb   : > { %14044 = vmatprep.subr.bf16.mxu1 %v16629_v32  ;;  %v16739_v32 = vcombine.high %v20403_v51, %v20405_v10  ;;  %v11404_v58 = vld [vmem:[#allocation6 + $0x808] sm:$0xff]  ;;  %v11435_v10 = vld [vmem:[#allocation6 + $0x900] sm:$0xff] }
 0x6ec   : > { %13899 = vmatpush1.bf16.msra.mxu0 %v16698_v40  ;;  %v16677_v40 = vcombine.high %v11340_v34, %v11344_v39 }
 0x6ed   : > { %13900 = vmatprep.subr.bf16.mxu0 %v16707_v28  ;;  %v11352_v28 = vld [vmem:[#allocation6 + $0x668] sm:$0xff] }
 0x6ee   : > { %14045 = vmatpush1.bf16.msra.mxu1 %v16628_v50  ;;  %v11348_v50 = vld [vmem:[#allocation6 + $0x648] sm:$0xff] }
 0x6ef   : > { %14046 = vmatprep.subr.bf16.mxu1 %v16637_v33  ;;  %v16676_v33 = vcombine.low %v11340_v34, %v11344_v39  ;;  %v16685_v35 = vcombine.high %v11348_v50, %v11352_v28  ;;  %v16684_v55 = vcombine.low %v11348_v50, %v11352_v28  ;;  %v11105_v34 = vsub.s32 3, %v20373_v1 }
 0x6f0   : > { %13901 = vmatpush1.bf16.msra.mxu0 %v16706_v43  ;;  %v16693_v43 = vcombine.high %v11356_v42, %v11360_v53 }
 0x6f1   : > { %13902 = vmatprep.subr.bf16.mxu0 %v16715_v54  ;;  %v11368_v54 = vld [vmem:[#allocation6 + $0x6e8] sm:$0xff]  ;;  %v11106_v50 = vrot.slane %v20376_v8, %v11105_v34  ;;  %v11447_v34 = vld [vmem:[#allocation6 + $0x960] sm:$0xff] }
 0x6f2   : > { %14047 = vmatpush1.bf16.msra.mxu1 %v16636_v37  ;;  %v11364_v37 = vld [vmem:[#allocation6 + $0x6c8] sm:$0xff] }
 0x6f3   : > { %14048 = vmatprep.subr.bf16.mxu1 %v16645_v3  ;;  %v16692_v3 = vcombine.low %v11356_v42, %v11360_v53  ;;  %v16701_v26 = vcombine.high %v11364_v37, %v11368_v54  ;;  %v16700_v4 = vcombine.low %v11364_v37, %v11368_v54  ;;  %v11411_v54 = vld [vmem:[#allocation6 + $0x840] sm:$0xff] }
 0x6f4   : > { %13903 = vmatpush1.bf16.msra.mxu0 %v16714_v6  ;;  %v16709_v6 = vcombine.high %v11372_v63, %v11376_v2 }
 0x6f5   : > { %13904 = vmatprep.subr.bf16.mxu0 %v16723_v9  ;;  %v11384_v9 = vld [vmem:[#allocation6 + $0x768] sm:$0xff] }
 0x6f6   : > { %14049 = vmatpush1.bf16.msra.mxu1 %v16644_v18  ;;  %v11380_v18 = vld [vmem:[#allocation6 + $0x748] sm:$0xff] }
 0x6f7   : > { %14050 = vmatprep.subr.bf16.mxu1 %v16653_v11  ;;  %v16708_v11 = vcombine.low %v11372_v63, %v11376_v2  ;;  %v16717_v57 = vcombine.high %v11380_v18, %v11384_v9  ;;  %v16716_v36 = vcombine.low %v11380_v18, %v11384_v9  ;;  %v11412_v63 = vld [vmem:[#allocation6 + $0x848] sm:$0xff] }
 0x6f8   : > { %13905 = vmatpush1.bf16.msra.mxu0 %v16722_v13  ;;  %v16725_v13 = vcombine.high %v11388_v24, %v11392_v12 }
 0x6f9   : > { %13906 = vmatprep.subr.bf16.mxu0 %v16731_v17  ;;  %v11400_v17 = vld [vmem:[#allocation6 + $0x7e8] sm:$0xff] }
 0x6fa   : > { %14051 = vmatpush1.bf16.msra.mxu1 %v16652_v15  ;;  %v11396_v15 = vld [vmem:[#allocation6 + $0x7c8] sm:$0xff] }
 0x6fb   : > { %14052 = vmatprep.subr.bf16.mxu1 %v16661_v22  ;;  %v16724_v22 = vcombine.low %v11388_v24, %v11392_v12  ;;  %v16733_v30 = vcombine.high %v11396_v15, %v11400_v17  ;;  %v11431_v24 = vld [vmem:[#allocation6 + $0x8e0] sm:$0xff]  ;;  %v11428_v12 = vld [vmem:[#allocation6 + $0x8c8] sm:$0xff] }
 0x6fc   : > { %13907 = vmatpush1.bf16.msra.mxu0 %v16730_v48  ;;  %v11408_v48 = vld [vmem:[#allocation6 + $0x828] sm:$0xff] }
 0x6fd   : > { %13917 = vmatprep.subr.bf16.mxu0 %v16739_v32  ;;  %v16741_v32 = vcombine.high %v11404_v58, %v11408_v48 }
 0x6fe   : > { %14053 = vmatpush1.bf16.msra.mxu1 %v16660_v29  ;;  %v16732_v29 = vcombine.low %v11396_v15, %v11400_v17 }
 0x6ff   : > { %14054 = vmatprep.subr.bf16.mxu1 %v16669_v60  ;;  %v11101_v60 = vsub.s32 2, %v20373_v1 }
 0x701   : > { %v11102_v39 = vrot.slane %v20376_v8, %v11101_v60  ;;  %v11443_v60 = vld [vmem:[#allocation6 + $0x940] sm:$0xff] }
 0x702   : > { %14055 = vmatpush1.bf16.msra.mxu1 %v16668_v49 }
 0x703   : > { %14056 = vmatprep.subr.bf16.mxu1 %v16677_v40 }
 0x706   : > { %14057 = vmatpush1.bf16.msra.mxu1 %v16676_v33  ;;  %v11128_v33 = vadd.f32 %v11102_v39, %v20390_v38  ;;  %v11416_v38 = vld [vmem:[#allocation6 + $0x868] sm:$0xff] }
 0x707   : > { %14058 = vmatprep.subr.bf16.mxu1 %v16685_v35  ;;  %v16749_v23 = vcombine.high %v11412_v63, %v11416_v38  ;;  %v16748_v18 = vcombine.low %v11412_v63, %v11416_v38  ;;  %v11444_v39 = vld [vmem:[#allocation6 + $0x948] sm:$0xff]  ;;  %v11463_v63 = vld [vmem:[#allocation6 + $0x9e0] sm:$0xff] }
 0x708   : > { %v11460_v38 = vld [vmem:[#allocation6 + $0x9c8] sm:$0xff] }
 0x70a   : > { %14059 = vmatpush1.bf16.msra.mxu1 %v16684_v55 }
 0x70b   : > { %14060 = vmatprep.subr.bf16.mxu1 %v16693_v43 }
 0x70e   : > { %14061 = vmatpush1.bf16.msra.mxu1 %v16692_v3 }
 0x70f   : > { %14062 = vmatprep.subr.bf16.mxu1 %v16701_v26  ;;  %v11415_v26 = vld [vmem:[#allocation6 + $0x860] sm:$0xff] }
 0x710   : > { %v16747_v44 = vcombine.high %v11411_v54, %v11415_v26 }
 0x712   : > { %14063 = vmatpush1.bf16.msra.mxu1 %v16700_v4 }
 0x713   : > { %14064 = vmatprep.subr.bf16.mxu1 %v16709_v6  ;;  %v16746_v6 = vcombine.low %v11411_v54, %v11415_v26  ;;  %v11459_v26 = vld [vmem:[#allocation6 + $0x9c0] sm:$0xff] }
 0x716   : > { %14065 = vmatpush1.bf16.msra.mxu1 %v16708_v11 }
 0x717   : > { %14066 = vmatprep.subr.bf16.mxu1 %v16717_v57  ;;  %v11427_v57 = vld [vmem:[#allocation6 + $0x8c0] sm:$0xff] }
 0x718   : > { %v16763_v17 = vcombine.high %v11427_v57, %v11431_v24 }
 0x71a   : > { %14067 = vmatpush1.bf16.msra.mxu1 %v16716_v36  ;;  %v11432_v36 = vld [vmem:[#allocation6 + $0x8e8] sm:$0xff] }
 0x71b   : > { %14068 = vmatprep.subr.bf16.mxu1 %v16725_v13  ;;  %v16765_v51 = vcombine.high %v11428_v12, %v11432_v36 }
 0x71e   : > { %14069 = vmatpush1.bf16.msra.mxu1 %v16724_v22  ;;  %v11436_v22 = vld [vmem:[#allocation6 + $0x908] sm:$0xff] }
 0x71f   : > { %14070 = vmatprep.subr.bf16.mxu1 %v16733_v30  ;;  %v11440_v30 = vld [vmem:[#allocation6 + $0x928] sm:$0xff] }
 0x722   : > { %14071 = vmatpush1.bf16.msra.mxu1 %v16732_v29 }
 0x723   : > { %14081 = vmatprep.subr.bf16.mxu1 %v16741_v32  ;;  %v16773_v32 = vcombine.high %v11436_v22, %v11440_v30 }
 0x751   : > { %v10897_v49 = vpop.f32.mrb[24].mxu0 }
 0x752   : > { %v11078_v40 = vmax.f32 %v20338_v52, %v10897_v49  ;;  %v10899_v28 = vpop.f32.mrb[25].mxu0  ;;  %v11135_v52 = vmax.f32 %v11128_v33, 0.0  ;;  %v11448_v49 = vld [vmem:[#allocation6 + $0x968] sm:$0xff] }
 0x753   : > { %v11079_v35 = vmax.f32 %v20345_v59, %v10899_v28  ;;  %v10901_v42 = vpop.f32.mrb[26].mxu0  ;;  %v16740_v59 = vcombine.low %v11404_v58, %v11408_v48  ;;  %v16762_v58 = vcombine.low %v11427_v57, %v11431_v24  ;;  %v16764_v48 = vcombine.low %v11428_v12, %v11432_v36 }
 0x754   : > { %v11085_v53 = vmax.f32 %v11071_v25, %v11078_v40  ;;  %v10902_v55 = vpop.f32.mrb[27].mxu0  ;;  %v20429_v4 = vpack.c.bf16 %v11135_v52, %v11135_v52  ;;  %v11419_v25 = vld [vmem:[#allocation6 + $0x880] sm:$0xff]  ;;  %v16779_v28 = vcombine.high %v11443_v60, %v11447_v34  ;;  %v16781_v33 = vcombine.high %v11444_v39, %v11448_v49 }
 0x755   : > { %v20425_v43 = vmax.f32 %v11072_v31, %v11079_v35  ;;  %v11424_v31 = vld [vmem:[#allocation6 + $0x8a8] sm:$0xff]  ;;  %v16755_v9 = vcombine.high %v11419_v25, %v11423_v16  ;;  %v16754_v13 = vcombine.low %v11419_v25, %v11423_v16  ;;  %v11451_v35 = vld [vmem:[#allocation6 + $0x980] sm:$0xff]  ;;  %v16780_v52 = vcombine.low %v11444_v39, %v11448_v49 }
 0x756   : > { %v11129_v37 = vadd.f32 %v11106_v50, %v11085_v53  ;;  %v16757_v11 = vcombine.high %v11420_v27, %v11424_v31  ;;  %v16756_v15 = vcombine.low %v11420_v27, %v11424_v31  ;;  %v16772_v50 = vcombine.low %v11436_v22, %v11440_v30  ;;  %v11455_v42 = vld [vmem:[#allocation6 + $0x9a0] sm:$0xff]  ;;  %v11452_v53 = vld [vmem:[#allocation6 + $0x988] sm:$0xff] }
 0x757   : > { %v11456_v55 = vld [vmem:[#allocation6 + $0x9a8] sm:$0xff]  ;;  %v16787_v54 = vcombine.high %v11451_v35, %v11455_v42  ;;  %v16795_v16 = vcombine.high %v11459_v26, %v11463_v63  ;;  %v11467_v31 = vld [vmem:[#allocation6 + $0xa00] sm:$0xff]  ;;  %v16794_v24 = vcombine.low %v11459_v26, %v11463_v63 }
 0x758   : > { %v11136_v3 = vmax.f32 %v11129_v37, 0.0  ;;  %v16778_v37 = vcombine.low %v11443_v60, %v11447_v34  ;;  %v16788_v25 = vcombine.low %v11452_v53, %v11456_v55  ;;  %v11479_v22 = vld [vmem:[#allocation6 + $0xa60] sm:$0xff]  ;;  %v11476_v30 = vld [vmem:[#allocation6 + $0xa48] sm:$0xff] }
 0x759   : > { %v11483_v39 = vld [vmem:[#allocation6 + $0xa80] sm:$0xff]  ;;  %v11500_v26 = vld [vmem:[#allocation6 + $0xb08] sm:$0xff] }
 0x75a   : > { %v20427_v2 = vpack.c.bf16 %v11136_v3, %v11136_v3  ;;  %v16789_v3 = vcombine.high %v11452_v53, %v11456_v55  ;;  %v11487_v49 = vld [vmem:[#allocation6 + $0xaa0] sm:$0xff]  ;;  %v11504_v63 = vld [vmem:[#allocation6 + $0xb28] sm:$0xff] }
 0x75b   : > { %v16818_v53 = vcombine.low %v11483_v39, %v11487_v49 }
 0x75c   : > { %13908 = vmatprep.mubr.bf16.mxu0 %v20427_v2  ;;  %14072 = vmatprep.mubr.bf16.mxu1 %v20427_v2 }
 0x75d   : > { %13909 = vmatmul.mubr.bf16.vlgmr.msra.gmra.mrb[28].mxu0 %v20429_v4  ;;  %14073 = vmatmul.mubr.bf16.vlgmr.msra.gmra.mrb[36].mxu1 %v20429_v4 }
 0x75e   : > { %13918 = vmatpush1.bf16.msra.mxu0 %v16738_v7  ;;  %14082 = vmatpush1.bf16.msra.mxu1 %v16740_v59  ;;  %v11439_v7 = vld [vmem:[#allocation6 + $0x920] sm:$0xff]  ;;  %v11464_v59 = vld [vmem:[#allocation6 + $0x9e8] sm:$0xff] }
 0x75f   : > { %13919 = vmatprep.subr.bf16.mxu0 %v16747_v44  ;;  %14083 = vmatprep.subr.bf16.mxu1 %v16749_v23  ;;  %v16771_v29 = vcombine.high %v11435_v10, %v11439_v7  ;;  %v16770_v40 = vcombine.low %v11435_v10, %v11439_v7  ;;  %v11113_v44 = vsub.s32 5, %v20373_v1  ;;  %v16786_v23 = vcombine.low %v11451_v35, %v11455_v42  ;;  %v11492_v35 = vld [vmem:[#allocation6 + $0xac8] sm:$0xff] }
 0x760   : > { %v16797_v27 = vcombine.high %v11460_v38, %v11464_v59  ;;  %v16796_v12 = vcombine.low %v11460_v38, %v11464_v59  ;;  %v11496_v42 = vld [vmem:[#allocation6 + $0xae8] sm:$0xff] }
 0x761   : > { %v11114_v57 = vrot.slane %v20376_v8, %v11113_v44  ;;  %v16828_v59 = vcombine.low %v11492_v35, %v11496_v42 }
 0x762   : > { %13920 = vmatpush1.bf16.msra.mxu0 %v16746_v6  ;;  %14084 = vmatpush1.bf16.msra.mxu1 %v16748_v18  ;;  %v11471_v6 = vld [vmem:[#allocation6 + $0xa20] sm:$0xff]  ;;  %v11468_v18 = vld [vmem:[#allocation6 + $0xa08] sm:$0xff] }
 0x763   : > { %13921 = vmatprep.subr.bf16.mxu0 %v16755_v9  ;;  %14085 = vmatprep.subr.bf16.mxu1 %v16757_v11  ;;  %v11472_v9 = vld [vmem:[#allocation6 + $0xa28] sm:$0xff] }
 0x766   : > { %13922 = vmatpush1.bf16.msra.mxu0 %v16754_v13  ;;  %14086 = vmatpush1.bf16.msra.mxu1 %v16756_v15  ;;  %v16803_v15 = vcombine.high %v11467_v31, %v11471_v6 }
 0x767   : > { %13923 = vmatprep.subr.bf16.mxu0 %v16763_v17  ;;  %14087 = vmatprep.subr.bf16.mxu1 %v16765_v51  ;;  %v16805_v17 = vcombine.high %v11468_v18, %v11472_v9  ;;  %v11475_v51 = vld [vmem:[#allocation6 + $0xa40] sm:$0xff] }
 0x76a   : > { %13924 = vmatpush1.bf16.msra.mxu0 %v16762_v58  ;;  %14088 = vmatpush1.bf16.msra.mxu1 %v16764_v48  ;;  %v11480_v58 = vld [vmem:[#allocation6 + $0xa68] sm:$0xff] }
 0x76b   : > { %13925 = vmatprep.subr.bf16.mxu0 %v16771_v29  ;;  %14089 = vmatprep.subr.bf16.mxu1 %v16773_v32  ;;  %v16802_v29 = vcombine.low %v11467_v31, %v11471_v6  ;;  %v16804_v32 = vcombine.low %v11468_v18, %v11472_v9  ;;  %v16813_v34 = vcombine.high %v11476_v30, %v11480_v58  ;;  %v11512_v31 = vld [vmem:[#allocation6 + $0xb68] sm:$0xff]  ;;  %v11109_v9 = vsub.s32 4, %v20373_v1 }
 0x76c   : > { %v16812_v62 = vcombine.low %v11476_v30, %v11480_v58  ;;  %v16836_v18 = vcombine.low %v11500_v26, %v11504_v63  ;;  %v11523_v30 = vld [vmem:[#allocation6 + $0xbc0] sm:$0xff] }
 0x76d   : > { %v11527_v58 = vld [vmem:[#allocation6 + $0xbe0] sm:$0xff] }
 0x76e   : > { %13926 = vmatpush1.bf16.msra.mxu0 %v16770_v40  ;;  %14090 = vmatpush1.bf16.msra.mxu1 %v16772_v50  ;;  %v11484_v40 = vld [vmem:[#allocation6 + $0xa88] sm:$0xff] }
 0x76f   : > { %13927 = vmatprep.subr.bf16.mxu0 %v16779_v28  ;;  %14091 = vmatprep.subr.bf16.mxu1 %v16781_v33  ;;  %v16821_v50 = vcombine.high %v11484_v40, %v11488_v19  ;;  %v11491_v28 = vld [vmem:[#allocation6 + $0xac0] sm:$0xff]  ;;  %v16820_v55 = vcombine.low %v11484_v40, %v11488_v19  ;;  %v11532_v40 = vld [vmem:[#allocation6 + $0xc08] sm:$0xff] }
 0x770   : > { %v11495_v33 = vld [vmem:[#allocation6 + $0xae0] sm:$0xff]  ;;  %v11536_v19 = vld [vmem:[#allocation6 + $0xc28] sm:$0xff] }
 0x771   : > { %v16826_v38 = vcombine.low %v11491_v28, %v11495_v33 }
 0x772   : > { %13928 = vmatpush1.bf16.msra.mxu0 %v16778_v37  ;;  %14092 = vmatpush1.bf16.msra.mxu1 %v16780_v52  ;;  %v16827_v37 = vcombine.high %v11491_v28, %v11495_v33  ;;  %v16829_v52 = vcombine.high %v11492_v35, %v11496_v42  ;;  %v11539_v28 = vld [vmem:[#allocation6 + $0xc40] sm:$0xff]  ;;  %v11544_v35 = vld [vmem:[#allocation6 + $0xc68] sm:$0xff] }
 0x773   : > { %13929 = vmatprep.subr.bf16.mxu0 %v16787_v54  ;;  %14093 = vmatprep.subr.bf16.mxu1 %v16789_v3  ;;  %v11499_v54 = vld [vmem:[#allocation6 + $0xb00] sm:$0xff] }
 0x774   : > { %v11503_v3 = vld [vmem:[#allocation6 + $0xb20] sm:$0xff] }
 0x775   : > { %v16835_v44 = vcombine.high %v11499_v54, %v11503_v3  ;;  %v16834_v6 = vcombine.low %v11499_v54, %v11503_v3  ;;  %v11543_v33 = vld [vmem:[#allocation6 + $0xc60] sm:$0xff] }
 0x776   : > { %13930 = vmatpush1.bf16.msra.mxu0 %v16786_v23  ;;  %14094 = vmatpush1.bf16.msra.mxu1 %v16788_v25  ;;  %v16837_v23 = vcombine.high %v11500_v26, %v11504_v63  ;;  %v11507_v25 = vld [vmem:[#allocation6 + $0xb40] sm:$0xff]  ;;  %v11548_v26 = vld [vmem:[#allocation6 + $0xc88] sm:$0xff] }
 0x777   : > { %13931 = vmatprep.subr.bf16.mxu0 %v16795_v16  ;;  %14095 = vmatprep.subr.bf16.mxu1 %v16797_v27  ;;  %v11511_v16 = vld [vmem:[#allocation6 + $0xb60] sm:$0xff]  ;;  %v11508_v27 = vld [vmem:[#allocation6 + $0xb48] sm:$0xff] }
 0x778   : > { %v11061_v11 = vpop.f32.mrb[32].mxu1  ;;  %v11547_v54 = vld [vmem:[#allocation6 + $0xc80] sm:$0xff]  ;;  %v11552_v63 = vld [vmem:[#allocation6 + $0xca8] sm:$0xff] }
 0x779   : > { %v11080_v36 = vmax.f32 %v20347_v61, %v11061_v11  ;;  %v11063_v13 = vpop.f32.mrb[33].mxu1  ;;  %v16843_v11 = vcombine.high %v11507_v25, %v11511_v16  ;;  %v11551_v3 = vld [vmem:[#allocation6 + $0xca0] sm:$0xff] }
 0x77a   : > { %v11081_v10 = vmax.f32 %v20361_v14, %v11063_v13  ;;  %v11065_v7 = vpop.f32.mrb[34].mxu1  ;;  %13932 = vmatpush1.bf16.msra.mxu0 %v16794_v24  ;;  %14096 = vmatpush1.bf16.msra.mxu1 %v16796_v12  ;;  %v16811_v14 = vcombine.high %v11475_v51, %v11479_v22  ;;  %v11515_v24 = vld [vmem:[#allocation6 + $0xb80] sm:$0xff]  ;;  %v11520_v13 = vld [vmem:[#allocation6 + $0xba8] sm:$0xff] }
 0x77b   : > { %v11087_v8 = vmax.f32 %v11073_v45, %v11080_v36  ;;  %v11066_v48 = vpop.f32.mrb[35].mxu1  ;;  %13933 = vmatprep.subr.bf16.mxu0 %v16803_v15  ;;  %14097 = vmatprep.subr.bf16.mxu1 %v16805_v17  ;;  %v16810_v45 = vcombine.low %v11475_v51, %v11479_v22  ;;  %v11519_v12 = vld [vmem:[#allocation6 + $0xba0] sm:$0xff]  ;;  %v11516_v36 = vld [vmem:[#allocation6 + $0xb88] sm:$0xff]  ;;  %v16842_v15 = vcombine.low %v11507_v25, %v11511_v16  ;;  %v20455_v51 = vld [vmem:[#allocation4] sm:$0xff] }
 0x77c   : > { %v20448_v61 = vmax.f32 %v11074_v47, %v11081_v10  ;;  %v16819_v47 = vcombine.high %v11483_v39, %v11487_v49  ;;  %v16844_v17 = vcombine.low %v11508_v27, %v11512_v31  ;;  %v11110_v10 = vrot.slane %v20455_v51, %v11109_v9  ;;  %v11528_v48 = vld [vmem:[#allocation6 + $0xbe8] sm:$0xff]  ;;  %v11531_v39 = vld [vmem:[#allocation6 + $0xc00] sm:$0xff] }
 0x77d   : > { %v11131_v60 = vadd.f32 %v11114_v57, %v11087_v8  ;;  %v16845_v57 = vcombine.high %v11508_v27, %v11512_v31  ;;  %v16851_v7 = vcombine.high %v11515_v24, %v11519_v12  ;;  %v16853_v22 = vcombine.high %v11516_v36, %v11520_v13  ;;  %v11524_v8 = vld [vmem:[#allocation6 + $0xbc8] sm:$0xff]  ;;  %v11535_v49 = vld [vmem:[#allocation6 + $0xc20] sm:$0xff] }
 0x77e   : > { %13934 = vmatpush1.bf16.msra.mxu0 %v16802_v29  ;;  %14098 = vmatpush1.bf16.msra.mxu1 %v16804_v32  ;;  %v16850_v29 = vcombine.low %v11515_v24, %v11519_v12  ;;  %v16852_v32 = vcombine.low %v11516_v36, %v11520_v13  ;;  %v16866_v42 = vcombine.low %v11531_v39, %v11535_v49  ;;  %v11555_v25 = vld [vmem:[#allocation6 + $0xcc0] sm:$0xff]  ;;  %v11556_v27 = vld [vmem:[#allocation6 + $0xcc8] sm:$0xff] }
 0x77f   : > { %v11138_v41 = vmax.f32 %v11131_v60, 0.0  ;;  %13935 = vmatprep.subr.bf16.mxu0 %v16811_v14  ;;  %14099 = vmatprep.subr.bf16.mxu1 %v16813_v34  ;;  %v11130_v60 = vadd.f32 %v11110_v10, %v20425_v43  ;;  %v16859_v14 = vcombine.high %v11523_v30, %v11527_v58  ;;  %v16861_v34 = vcombine.high %v11524_v8, %v11528_v48  ;;  %v11540_v43 = vld [vmem:[#allocation6 + $0xc48] sm:$0xff]  ;;  %v11559_v16 = vld [vmem:[#allocation6 + $0xce0] sm:$0xff] }
 0x780   : > { %v11560_v31 = vld [vmem:[#allocation6 + $0xce8] sm:$0xff]  ;;  %v16891_v9 = vcombine.high %v11555_v25, %v11559_v16  ;;  %v11567_v24 = vld [vmem:[#allocation6 + $0xd20] sm:$0xff]  ;;  %v16890_v13 = vcombine.low %v11555_v25, %v11559_v16  ;;  %v11161_v25 = vld [vmem:[#allocation6 + $0x70] sm:$0xff] }
 0x781   : > { %v20450_v46 = vpack.c.bf16 %v11138_v41, %v11138_v41  ;;  %v16858_v41 = vcombine.low %v11523_v30, %v11527_v58  ;;  %v11564_v12 = vld [vmem:[#allocation6 + $0xd08] sm:$0xff]  ;;  %v11162_v16 = vld [vmem:[#allocation6 + $0x78] sm:$0xff] }
 0x782   : > { %13936 = vmatpush1.bf16.msra.mxu0 %v16810_v45  ;;  %14100 = vmatpush1.bf16.msra.mxu1 %v16812_v62  ;;  %v16860_v45 = vcombine.low %v11524_v8, %v11528_v48  ;;  %v11137_v62 = vmax.f32 %v11130_v60, 0.0  ;;  %v11568_v36 = vld [vmem:[#allocation6 + $0xd28] sm:$0xff] }
 0x783   : > { %13949 = vmatprep.mubr.bf16.mxu0 %v20450_v46  ;;  %14113 = vmatprep.mubr.bf16.mxu1 %v20450_v46  ;;  %v16901_v10 = vcombine.high %v11564_v12, %v11568_v36  ;;  %v11572_v30 = vld [vmem:[#allocation6 + $0xd48] sm:$0xff]  ;;  %v16900_v48 = vcombine.low %v11564_v12, %v11568_v36  ;;  %v11170_v12 = vld [vmem:[#allocation6 + $0xb8] sm:$0xff] }
 0x784   : > { %13937 = vmatprep.subr.bf16.mxu0 %v16819_v47  ;;  %14101 = vmatprep.subr.bf16.mxu1 %v16821_v50  ;;  %v16867_v47 = vcombine.high %v11531_v39, %v11535_v49  ;;  %v16869_v50 = vcombine.high %v11532_v40, %v11536_v19  ;;  %v11576_v58 = vld [vmem:[#allocation6 + $0xd68] sm:$0xff] }
 0x785   : > { %v16909_v60 = vcombine.high %v11572_v30, %v11576_v58  ;;  %v11580_v39 = vld [vmem:[#allocation6 + $0xd88] sm:$0xff] }
 0x786   : > { %13938 = vmatpush1.bf16.msra.mxu0 %v16818_v53  ;;  %14102 = vmatpush1.bf16.msra.mxu1 %v16820_v55  ;;  %v16868_v53 = vcombine.low %v11532_v40, %v11536_v19  ;;  %v20459_v55 = vpack.c.bf16 %v11137_v62, %v11137_v62  ;;  %v11584_v49 = vld [vmem:[#allocation6 + $0xda8] sm:$0xff]  ;;  %v16908_v19 = vcombine.low %v11572_v30, %v11576_v58  ;;  %v11178_v30 = vld [vmem:[#allocation6 + $0xf8] sm:$0xff] }
 0x787   : > { %13939 = vmatprep.subr.bf16.mxu0 %v16827_v37  ;;  %14103 = vmatprep.subr.bf16.mxu1 %v16829_v52  ;;  %v16875_v37 = vcombine.high %v11539_v28, %v11543_v33  ;;  %v16877_v52 = vcombine.high %v11540_v43, %v11544_v35  ;;  %v16917_v62 = vcombine.high %v11580_v39, %v11584_v49 }
 0x78a   : > { %13940 = vmatpush1.bf16.msra.mxu0 %v16826_v38  ;;  %14104 = vmatpush1.bf16.msra.mxu1 %v16828_v59  ;;  %v16874_v38 = vcombine.low %v11539_v28, %v11543_v33  ;;  %v16876_v59 = vcombine.low %v11540_v43, %v11544_v35  ;;  %v11588_v28 = vld [vmem:[#allocation6 + $0xdc8] sm:$0xff]  ;;  %v16916_v35 = vcombine.low %v11580_v39, %v11584_v49 }
 0x78b   : > { %13941 = vmatprep.subr.bf16.mxu0 %v16835_v44  ;;  %14105 = vmatprep.subr.bf16.mxu1 %v16837_v23  ;;  %v16883_v44 = vcombine.high %v11547_v54, %v11551_v3  ;;  %v16885_v23 = vcombine.high %v11548_v26, %v11552_v63  ;;  %v11592_v33 = vld [vmem:[#allocation6 + $0xde8] sm:$0xff] }
 0x78e   : > { %13942 = vmatpush1.bf16.msra.mxu0 %v16834_v6  ;;  %14106 = vmatpush1.bf16.msra.mxu1 %v16836_v18  ;;  %v16882_v6 = vcombine.low %v11547_v54, %v11551_v3  ;;  %v16884_v18 = vcombine.low %v11548_v26, %v11552_v63  ;;  %v11150_v54 = vld [vmem:[#allocation6 + $0x18] sm:$0xff]  ;;  %v16924_v63 = vcombine.low %v11588_v28, %v11592_v33 }
 0x78f   : > { %13943 = vmatprep.subr.bf16.mxu0 %v16843_v11  ;;  %14107 = vmatprep.subr.bf16.mxu1 %v16845_v57  ;;  %v16893_v11 = vcombine.high %v11556_v27, %v11560_v31  ;;  %v11563_v57 = vld [vmem:[#allocation6 + $0xd00] sm:$0xff]  ;;  %v11154_v3 = vld [vmem:[#allocation6 + $0x38] sm:$0xff] }
 0x790   : > { %v16898_v8 = vcombine.low %v11563_v57, %v11567_v24 }
 0x792   : > { %13944 = vmatpush1.bf16.msra.mxu0 %v16842_v15  ;;  %14108 = vmatpush1.bf16.msra.mxu1 %v16844_v17  ;;  %v16892_v15 = vcombine.low %v11556_v27, %v11560_v31  ;;  %v16899_v17 = vcombine.high %v11563_v57, %v11567_v24  ;;  %v11169_v57 = vld [vmem:[#allocation6 + $0xb0] sm:$0xff]  ;;  %v11166_v24 = vld [vmem:[#allocation6 + $0x98] sm:$0xff] }
 0x793   : > { %13945 = vmatprep.subr.bf16.mxu0 %v16851_v7  ;;  %14109 = vmatprep.subr.bf16.mxu1 %v16853_v22  ;;  %v11571_v7 = vld [vmem:[#allocation6 + $0xd40] sm:$0xff] }
 0x794   : > { %v11575_v22 = vld [vmem:[#allocation6 + $0xd60] sm:$0xff] }
 0x795   : > { %v16906_v40 = vcombine.low %v11571_v7, %v11575_v22 }
 0x796   : > { %13946 = vmatpush1.bf16.msra.mxu0 %v16850_v29  ;;  %14110 = vmatpush1.bf16.msra.mxu1 %v16852_v32  ;;  %v11117_v29 = vsub.s32 6, %v20373_v1  ;;  %v16907_v32 = vcombine.high %v11571_v7, %v11575_v22  ;;  %v11177_v7 = vld [vmem:[#allocation6 + $0xf0] sm:$0xff]  ;;  %v11174_v22 = vld [vmem:[#allocation6 + $0xd8] sm:$0xff] }
 0x797   : > { %13947 = vmatprep.subr.bf16.mxu0 %v16859_v14  ;;  %14111 = vmatprep.subr.bf16.mxu1 %v16861_v34  ;;  %v11579_v14 = vld [vmem:[#allocation6 + $0xd80] sm:$0xff]  ;;  %v16512_v39 = vcombine.low %v11174_v22, %v11178_v30  ;;  %v19458_v1 = vld [vmem:[#allocation12 + $0x30] sm:$0xff]  }
 0x798   : > { %v11583_v34 = vld [vmem:[#allocation6 + $0xda0] sm:$0xff] }
 0x799   : > { %v16914_v43 = vcombine.low %v11579_v14, %v11583_v34 }
 0x79a   : > { %13948 = vmatpush1.bf16.msra.mxu0 %v16858_v41  ;;  %14112 = vmatpush1.bf16.msra.mxu1 %v16860_v45  ;;  %v11118_v41 = vrot.slane %v20455_v51, %v11117_v29  ;;  %v16915_v45 = vcombine.high %v11579_v14, %v11583_v34  ;;  %v11153_v51 = vld [vmem:[#allocation6 + $0x30] sm:$0xff]  ;;  %v16513_v29 = vcombine.high %v11174_v22, %v11178_v30  ;;  %v11186_v14 = vld [vmem:[#allocation6 + $0x138] sm:$0xff] }
 0x79b   : > { %13958 = vmatprep.subr.bf16.mxu0 %v16867_v47  ;;  %14122 = vmatprep.subr.bf16.mxu1 %v16869_v50  ;;  %v11587_v47 = vld [vmem:[#allocation6 + $0xdc0] sm:$0xff]  ;;  %v11229_v22 = vld [vmem:[#allocation6 + $0x290] sm:$0xff] }
 0x79c   : > { %v11591_v50 = vld [vmem:[#allocation6 + $0xde0] sm:$0xff]  ;;  %v11233_v30 = vld [vmem:[#allocation6 + $0x2b0] sm:$0xff] }
 0x79d   : > { %13950 = vmatmul.mubr.bf16.vlgmr.msra.gmra.mrb[28].mxu0 %v20459_v55  ;;  %14114 = vmatmul.mubr.bf16.vlgmr.msra.gmra.mrb[36].mxu1 %v20459_v55  ;;  %v16922_v26 = vcombine.low %v11587_v47, %v11591_v50 }
 0x79e   : > { %13959 = vmatpush1.bf16.msra.mxu0 %v16866_v42  ;;  %14123 = vmatpush1.bf16.msra.mxu1 %v16868_v53  ;;  %v11132_v42 = vadd.f32 %v11118_v41, %v20448_v61  ;;  %v16923_v53 = vcombine.high %v11587_v47, %v11591_v50  ;;  %v11158_v61 = vld [vmem:[#allocation6 + $0x58] sm:$0xff]  ;;  %v11193_v41 = vld [vmem:[#allocation6 + $0x170] sm:$0xff] }
 0x79f   : > { %13960 = vmatprep.subr.bf16.mxu0 %v16875_v37  ;;  %14124 = vmatprep.subr.bf16.mxu1 %v16877_v52  ;;  %v16925_v37 = vcombine.high %v11588_v28, %v11592_v33  ;;  %v11149_v52 = vld [vmem:[#allocation6 + $0x10] sm:$0xff] }
 0x7a0   : > { %13990 = vmatprep.mubr.bf16.mxu0 %v19797_v0  ;;  %14154 = vmatprep.mubr.bf16.mxu1 %v19797_v0  ;;  %v16486_v27 = vcombine.low %v11149_v52, %v11153_v51 }
 0x7a2   : > { %13961 = vmatpush1.bf16.msra.mxu0 %v16874_v38  ;;  %14125 = vmatpush1.bf16.msra.mxu1 %v16876_v59  ;;  %v11139_v38 = vmax.f32 %v11132_v42, 0.0  ;;  %v16487_v59 = vcombine.high %v11149_v52, %v11153_v51  ;;  %v11198_v42 = vld [vmem:[#allocation6 + $0x198] sm:$0xff] }
 0x7a3   : > { %13962 = vmatprep.subr.bf16.mxu0 %v16883_v44  ;;  %14126 = vmatprep.subr.bf16.mxu1 %v16885_v23  ;;  %v16489_v44 = vcombine.high %v11150_v54, %v11154_v3  ;;  %v11157_v23 = vld [vmem:[#allocation6 + $0x50] sm:$0xff] }
 0x7a4   : > { %v20468_v31 = vpack.c.bf16 %v11139_v38, %v11139_v38  ;;  %v16494_v36 = vcombine.low %v11157_v23, %v11161_v25  ;;  %v11210_v38 = vld [vmem:[#allocation6 + $0x1f8] sm:$0xff] }
 0x7a6   : > { %13963 = vmatpush1.bf16.msra.mxu0 %v16882_v6  ;;  %14127 = vmatpush1.bf16.msra.mxu1 %v16884_v18  ;;  %v16488_v6 = vcombine.low %v11150_v54, %v11154_v3  ;;  %v16495_v18 = vcombine.high %v11157_v23, %v11161_v25  ;;  %v11205_v3 = vld [vmem:[#allocation6 + $0x1d0] sm:$0xff] }
 0x7a7   : > { %13964 = vmatprep.subr.bf16.mxu0 %v16891_v9  ;;  %14128 = vmatprep.subr.bf16.mxu1 %v16893_v11  ;;  %v16497_v9 = vcombine.high %v11158_v61, %v11162_v16  ;;  %v11165_v11 = vld [vmem:[#allocation6 + $0x90] sm:$0xff] }
 0x7a8   : > { %v16502_v58 = vcombine.low %v11165_v11, %v11169_v57 }
 0x7aa   : > { %13965 = vmatpush1.bf16.msra.mxu0 %v16890_v13  ;;  %14129 = vmatpush1.bf16.msra.mxu1 %v16892_v15  ;;  %v16496_v13 = vcombine.low %v11158_v61, %v11162_v16  ;;  %v16503_v15 = vcombine.high %v11165_v11, %v11169_v57  ;;  %v11213_v61 = vld [vmem:[#allocation6 + $0x210] sm:$0xff] }
 0x7ab   : > { %13966 = vmatprep.subr.bf16.mxu0 %v16899_v17  ;;  %14130 = vmatprep.subr.bf16.mxu1 %v16901_v10  ;;  %v16505_v17 = vcombine.high %v11166_v24, %v11170_v12  ;;  %v11173_v10 = vld [vmem:[#allocation6 + $0xd0] sm:$0xff] }
 0x7ac   : > { %v16510_v34 = vcombine.low %v11173_v10, %v11177_v7  ;;  %v11217_v16 = vld [vmem:[#allocation6 + $0x230] sm:$0xff] }
 0x7ad   : > { %v16551_v11 = vcombine.high %v11213_v61, %v11217_v16 }
 0x7ae   : > { %13967 = vmatpush1.bf16.msra.mxu0 %v16898_v8  ;;  %14131 = vmatpush1.bf16.msra.mxu1 %v16900_v48  ;;  %v16504_v8 = vcombine.low %v11166_v24, %v11170_v12  ;;  %v16511_v48 = vcombine.high %v11173_v10, %v11177_v7  ;;  %v11221_v24 = vld [vmem:[#allocation6 + $0x250] sm:$0xff] }
 0x7af   : > { %13968 = vmatprep.subr.bf16.mxu0 %v16907_v32  ;;  %14132 = vmatprep.subr.bf16.mxu1 %v16909_v60  ;;  %v11181_v32 = vld [vmem:[#allocation6 + $0x110] sm:$0xff] }
 0x7b0   : > { %v11185_v60 = vld [vmem:[#allocation6 + $0x130] sm:$0xff] }
 0x7b1   : > { %v16519_v49 = vcombine.high %v11181_v32, %v11185_v60  ;;  %v16518_v47 = vcombine.low %v11181_v32, %v11185_v60  ;;  %v11225_v12 = vld [vmem:[#allocation6 + $0x270] sm:$0xff]  ;;  %v16567_v32 = vcombine.high %v11229_v22, %v11233_v30 }
 0x7b2   : > { %13969 = vmatpush1.bf16.msra.mxu0 %v16906_v40  ;;  %14133 = vmatpush1.bf16.msra.mxu1 %v16908_v19  ;;  %v11189_v19 = vld [vmem:[#allocation6 + $0x150] sm:$0xff]  ;;  %v16559_v10 = vcombine.high %v11221_v24, %v11225_v12 }
 0x7b3   : > { %13970 = vmatprep.subr.bf16.mxu0 %v16915_v45  ;;  %14134 = vmatprep.subr.bf16.mxu1 %v16917_v62  ;;  %v11190_v45 = vld [vmem:[#allocation6 + $0x158] sm:$0xff]  ;;  %v16527_v28 = vcombine.high %v11189_v19, %v11193_v41 }
 0x7b4   : > { %v11194_v62 = vld [vmem:[#allocation6 + $0x178] sm:$0xff] }
 0x7b5   : > { %v16529_v33 = vcombine.high %v11190_v45, %v11194_v62  ;;  %v16528_v52 = vcombine.low %v11190_v45, %v11194_v62  ;;  %v11245_v45 = vld [vmem:[#allocation6 + $0x310] sm:$0xff] }
 0x7b6   : > { %13971 = vmatpush1.bf16.msra.mxu0 %v16914_v43  ;;  %14135 = vmatpush1.bf16.msra.mxu1 %v16916_v35  ;;  %v11197_v43 = vld [vmem:[#allocation6 + $0x190] sm:$0xff] }
 0x7b7   : > { %13972 = vmatprep.subr.bf16.mxu0 %v16923_v53  ;;  %14136 = vmatprep.subr.bf16.mxu1 %v16925_v37  ;;  %v11201_v35 = vld [vmem:[#allocation6 + $0x1b0] sm:$0xff]  ;;  %v11202_v53 = vld [vmem:[#allocation6 + $0x1b8] sm:$0xff]  ;;  %v16526_v37 = vcombine.low %v11189_v19, %v11193_v41 }
 0x7b8   : > { %v16535_v51 = vcombine.high %v11197_v43, %v11201_v35  ;;  %v16537_v54 = vcombine.high %v11198_v42, %v11202_v53  ;;  %v11249_v62 = vld [vmem:[#allocation6 + $0x330] sm:$0xff] }
 0x7ba   : > { %13973 = vmatpush1.bf16.msra.mxu0 %v16922_v26  ;;  %14137 = vmatpush1.bf16.msra.mxu1 %v16924_v63  ;;  %v11209_v26 = vld [vmem:[#allocation6 + $0x1f0] sm:$0xff]  ;;  %v11206_v63 = vld [vmem:[#allocation6 + $0x1d8] sm:$0xff] }
 0x7bb   : > { %14163 = vmatprep.subr.bf16.mxu0 %v16487_v59  ;;  %14327 = vmatprep.subr.bf16.mxu1 %v16489_v44  ;;  %v16534_v59 = vcombine.low %v11197_v43, %v11201_v35  ;;  %v16536_v44 = vcombine.low %v11198_v42, %v11202_v53  ;;  %v16543_v23 = vcombine.high %v11205_v3, %v11209_v26  ;;  %v11253_v42 = vld [vmem:[#allocation6 + $0x350] sm:$0xff] }
 0x7bc   : > { %v16545_v25 = vcombine.high %v11206_v63, %v11210_v38  ;;  %v16583_v43 = vcombine.high %v11245_v45, %v11249_v62  ;;  %v11257_v53 = vld [vmem:[#allocation6 + $0x370] sm:$0xff] }
 0x7bd   : > { %13991 = vmatmul.mubr.bf16.vlgmr.msra.gmra.mrb[28].mxu0 %v20468_v31  ;;  %14155 = vmatmul.mubr.bf16.vlgmr.msra.gmra.mrb[36].mxu1 %v20468_v31 }
 0x7be   : > { %14164 = vmatpush1.bf16.msra.mxu0 %v16486_v27  ;;  %14195 = vmatprep.mubr.bf16.mxu0 %v20395_v56  ;;  %v11214_v27 = vld [vmem:[#allocation6 + $0x218] sm:$0xff] }
 0x7bf   : > { %14328 = vmatpush1.bf16.msra.mxu1 %v16488_v6  ;;  %14359 = vmatprep.mubr.bf16.mxu1 %v20395_v56  ;;  %v11182_v56 = vld [vmem:[#allocation6 + $0x118] sm:$0xff] }
 0x7c0   : > { %14165 = vmatprep.subr.bf16.mxu0 %v16495_v18  ;;  %14329 = vmatprep.subr.bf16.mxu1 %v16497_v9  ;;  %v16521_v40 = vcombine.high %v11182_v56, %v11186_v14  ;;  %v16520_v50 = vcombine.low %v11182_v56, %v11186_v14  ;;  %v11218_v6 = vld [vmem:[#allocation6 + $0x238] sm:$0xff]  ;;  %v16542_v18 = vcombine.low %v11205_v3, %v11209_v26  ;;  %v11237_v56 = vld [vmem:[#allocation6 + $0x2d0] sm:$0xff] }
 0x7c1   : > { %v16544_v9 = vcombine.low %v11206_v63, %v11210_v38  ;;  %v16553_v57 = vcombine.high %v11214_v27, %v11218_v6  ;;  %v11241_v14 = vld [vmem:[#allocation6 + $0x2f0] sm:$0xff]  ;;  %v16591_v3 = vcombine.high %v11253_v42, %v11257_v53 }
 0x7c2   : > { %14166 = vmatpush1.bf16.msra.mxu0 %v16494_v36  ;;  %v11222_v36 = vld [vmem:[#allocation6 + $0x258] sm:$0xff]  ;;  %v16575_v19 = vcombine.high %v11237_v56, %v11241_v14  ;;  %v11261_v63 = vld [vmem:[#allocation6 + $0x390] sm:$0xff] }
 0x7c3   : > { %14330 = vmatpush1.bf16.msra.mxu1 %v16496_v13  ;;  %14167 = vmatprep.subr.bf16.mxu0 %v16503_v15  ;;  %v11226_v13 = vld [vmem:[#allocation6 + $0x278] sm:$0xff]  ;;  %v16550_v15 = vcombine.low %v11213_v61, %v11217_v16  ;;  %v11265_v38 = vld [vmem:[#allocation6 + $0x3b0] sm:$0xff] }
 0x7c4   : > { %14331 = vmatprep.subr.bf16.mxu1 %v16505_v17  ;;  %v16552_v17 = vcombine.low %v11214_v27, %v11218_v6  ;;  %v16561_v7 = vcombine.high %v11222_v36, %v11226_v13  ;;  %v16599_v61 = vcombine.high %v11261_v63, %v11265_v38  ;;  %v11269_v27 = vld [vmem:[#allocation6 + $0x3d0] sm:$0xff] }
 0x7c5   : > { %v11273_v6 = vld [vmem:[#allocation6 + $0x3f0] sm:$0xff] }
 0x7c6   : > { %14168 = vmatpush1.bf16.msra.mxu0 %v16502_v58  ;;  %v11230_v58 = vld [vmem:[#allocation6 + $0x298] sm:$0xff] }
 0x7c7   : > { %14332 = vmatpush1.bf16.msra.mxu1 %v16504_v8  ;;  %14169 = vmatprep.subr.bf16.mxu0 %v16511_v48  ;;  %v11234_v8 = vld [vmem:[#allocation6 + $0x2b8] sm:$0xff]  ;;  %v16558_v48 = vcombine.low %v11221_v24, %v11225_v12  ;;  %v16607_v24 = vcombine.high %v11269_v27, %v11273_v6 }
 0x7c8   : > { %14333 = vmatprep.subr.bf16.mxu1 %v16513_v29  ;;  %v16560_v29 = vcombine.low %v11222_v36, %v11226_v13  ;;  %v16569_v60 = vcombine.high %v11230_v58, %v11234_v8  ;;  %v11277_v36 = vld [vmem:[#allocation6 + $0x410] sm:$0xff] }
 0x7c9   : > { %v11281_v13 = vld [vmem:[#allocation6 + $0x430] sm:$0xff] }
 0x7ca   : > { %14170 = vmatpush1.bf16.msra.mxu0 %v16510_v34  ;;  %v11238_v34 = vld [vmem:[#allocation6 + $0x2d8] sm:$0xff] }
 0x7cb   : > { %14334 = vmatpush1.bf16.msra.mxu1 %v16512_v39  ;;  %14171 = vmatprep.subr.bf16.mxu0 %v16519_v49  ;;  %v11242_v39 = vld [vmem:[#allocation6 + $0x2f8] sm:$0xff]  ;;  %v16566_v49 = vcombine.low %v11229_v22, %v11233_v30  ;;  %v16615_v22 = vcombine.high %v11277_v36, %v11281_v13 }
 0x7cc   : > { %14335 = vmatprep.subr.bf16.mxu1 %v16521_v40  ;;  %v16568_v40 = vcombine.low %v11230_v58, %v11234_v8  ;;  %v16577_v41 = vcombine.high %v11238_v34, %v11242_v39  ;;  %v11285_v58 = vld [vmem:[#allocation6 + $0x450] sm:$0xff] }
 0x7cd   : > { %v11289_v8 = vld [vmem:[#allocation6 + $0x470] sm:$0xff] }
 0x7ce   : > { %14172 = vmatpush1.bf16.msra.mxu0 %v16518_v47  ;;  %v11246_v47 = vld [vmem:[#allocation6 + $0x318] sm:$0xff] }
 0x7cf   : > { %14336 = vmatpush1.bf16.msra.mxu1 %v16520_v50  ;;  %14173 = vmatprep.subr.bf16.mxu0 %v16527_v28  ;;  %v11250_v50 = vld [vmem:[#allocation6 + $0x338] sm:$0xff]  ;;  %v16574_v28 = vcombine.low %v11237_v56, %v11241_v14  ;;  %v16623_v56 = vcombine.high %v11285_v58, %v11289_v8  ;;  %v11293_v14 = vld [vmem:[#allocation6 + $0x490] sm:$0xff] }
 0x7d0   : > { %14337 = vmatprep.subr.bf16.mxu1 %v16529_v33  ;;  %v16576_v33 = vcombine.low %v11238_v34, %v11242_v39  ;;  %v16585_v35 = vcombine.high %v11246_v47, %v11250_v50  ;;  %v11297_v34 = vld [vmem:[#allocation6 + $0x4b0] sm:$0xff] }
 0x7d2   : > { %14174 = vmatpush1.bf16.msra.mxu0 %v16526_v37  ;;  %v11254_v37 = vld [vmem:[#allocation6 + $0x358] sm:$0xff] }
 0x7d3   : > { %14338 = vmatpush1.bf16.msra.mxu1 %v16528_v52  ;;  %14175 = vmatprep.subr.bf16.mxu0 %v16535_v51  ;;  %v11258_v52 = vld [vmem:[#allocation6 + $0x378] sm:$0xff]  ;;  %v16582_v51 = vcombine.low %v11245_v45, %v11249_v62  ;;  %v16631_v45 = vcombine.high %v11293_v14, %v11297_v34 }
 0x7d4   : > { %14339 = vmatprep.subr.bf16.mxu1 %v16537_v54  ;;  %v16584_v54 = vcombine.low %v11246_v47, %v11250_v50  ;;  %v16593_v26 = vcombine.high %v11254_v37, %v11258_v52  ;;  %v11301_v47 = vld [vmem:[#allocation6 + $0x4d0] sm:$0xff] }
 0x7d5   : > { %v11305_v50 = vld [vmem:[#allocation6 + $0x4f0] sm:$0xff] }
 0x7d6   : > { %14176 = vmatpush1.bf16.msra.mxu0 %v16534_v59  ;;  %v11262_v59 = vld [vmem:[#allocation6 + $0x398] sm:$0xff] }
 0x7d7   : > { %14340 = vmatpush1.bf16.msra.mxu1 %v16536_v44  ;;  %14177 = vmatprep.subr.bf16.mxu0 %v16543_v23  ;;  %v11266_v44 = vld [vmem:[#allocation6 + $0x3b8] sm:$0xff]  ;;  %v16590_v23 = vcombine.low %v11253_v42, %v11257_v53  ;;  %v11309_v53 = vld [vmem:[#allocation6 + $0x510] sm:$0xff] }
 0x7d8   : > { %14341 = vmatprep.subr.bf16.mxu1 %v16545_v25  ;;  %v16592_v25 = vcombine.low %v11254_v37, %v11258_v52  ;;  %v16601_v16 = vcombine.high %v11262_v59, %v11266_v44  ;;  %v11313_v37 = vld [vmem:[#allocation6 + $0x530] sm:$0xff]  ;;  %v11310_v52 = vld [vmem:[#allocation6 + $0x518] sm:$0xff] }
 0x7da   : > { %14178 = vmatpush1.bf16.msra.mxu0 %v16542_v18  ;;  %v11270_v18 = vld [vmem:[#allocation6 + $0x3d8] sm:$0xff] }
 0x7db   : > { %14342 = vmatpush1.bf16.msra.mxu1 %v16544_v9  ;;  %14179 = vmatprep.subr.bf16.mxu0 %v16551_v11  ;;  %v11274_v9 = vld [vmem:[#allocation6 + $0x3f8] sm:$0xff]  ;;  %v16598_v11 = vcombine.low %v11261_v63, %v11265_v38  ;;  %v11317_v63 = vld [vmem:[#allocation6 + $0x550] sm:$0xff] }
 0x7dc   : > { %14343 = vmatprep.subr.bf16.mxu1 %v16553_v57  ;;  %v16600_v57 = vcombine.low %v11262_v59, %v11266_v44  ;;  %v16609_v12 = vcombine.high %v11270_v18, %v11274_v9  ;;  %v11321_v38 = vld [vmem:[#allocation6 + $0x570] sm:$0xff]  ;;  %v11318_v59 = vld [vmem:[#allocation6 + $0x558] sm:$0xff] }
 0x7dd   : > { %v11322_v44 = vld [vmem:[#allocation6 + $0x578] sm:$0xff] }
 0x7de   : > { %14180 = vmatpush1.bf16.msra.mxu0 %v16550_v15  ;;  %v11278_v15 = vld [vmem:[#allocation6 + $0x418] sm:$0xff] }
 0x7df   : > { %14344 = vmatpush1.bf16.msra.mxu1 %v16552_v17  ;;  %14181 = vmatprep.subr.bf16.mxu0 %v16559_v10  ;;  %v11282_v17 = vld [vmem:[#allocation6 + $0x438] sm:$0xff]  ;;  %v16606_v10 = vcombine.low %v11269_v27, %v11273_v6  ;;  %v11325_v27 = vld [vmem:[#allocation6 + $0x590] sm:$0xff] }
 0x7e0   : > { %14345 = vmatprep.subr.bf16.mxu1 %v16561_v7  ;;  %v16608_v7 = vcombine.low %v11270_v18, %v11274_v9  ;;  %v16617_v30 = vcombine.high %v11278_v15, %v11282_v17  ;;  %v11329_v6 = vld [vmem:[#allocation6 + $0x5b0] sm:$0xff]  ;;  %v11326_v18 = vld [vmem:[#allocation6 + $0x598] sm:$0xff] }
 0x7e1   : > { %v11330_v9 = vld [vmem:[#allocation6 + $0x5b8] sm:$0xff] }
 0x7e2   : > { %14182 = vmatpush1.bf16.msra.mxu0 %v16558_v48  ;;  %v16614_v48 = vcombine.low %v11277_v36, %v11281_v13  ;;  %v11333_v36 = vld [vmem:[#allocation6 + $0x5d0] sm:$0xff] }
 0x7e3   : > { %14346 = vmatpush1.bf16.msra.mxu1 %v16560_v29  ;;  %14183 = vmatprep.subr.bf16.mxu0 %v16567_v32  ;;  %v11286_v29 = vld [vmem:[#allocation6 + $0x458] sm:$0xff]  ;;  %v11337_v13 = vld [vmem:[#allocation6 + $0x5f0] sm:$0xff] }
 0x7e4   : > { %14347 = vmatprep.subr.bf16.mxu1 %v16569_v60  ;;  %v11290_v32 = vld [vmem:[#allocation6 + $0x478] sm:$0xff]  ;;  %v16616_v60 = vcombine.low %v11278_v15, %v11282_v17 }
 0x7e5   : > { %v16625_v39 = vcombine.high %v11286_v29, %v11290_v32  ;;  %v11334_v15 = vld [vmem:[#allocation6 + $0x5d8] sm:$0xff] }
 0x7e6   : > { %14184 = vmatpush1.bf16.msra.mxu0 %v16566_v49  ;;  %v11294_v49 = vld [vmem:[#allocation6 + $0x498] sm:$0xff] }
 0x7e7   : > { %14348 = vmatpush1.bf16.msra.mxu1 %v16568_v40  ;;  %14185 = vmatprep.subr.bf16.mxu0 %v16575_v19  ;;  %v11298_v40 = vld [vmem:[#allocation6 + $0x4b8] sm:$0xff]  ;;  %v16622_v19 = vcombine.low %v11285_v58, %v11289_v8  ;;  %v11341_v58 = vld [vmem:[#allocation6 + $0x610] sm:$0xff] }
 0x7e8   : > { %14349 = vmatprep.subr.bf16.mxu1 %v16577_v41  ;;  %v16624_v41 = vcombine.low %v11286_v29, %v11290_v32  ;;  %v16633_v62 = vcombine.high %v11294_v49, %v11298_v40  ;;  %v11338_v17 = vld [vmem:[#allocation6 + $0x5f8] sm:$0xff]  ;;  %v11345_v8 = vld [vmem:[#allocation6 + $0x630] sm:$0xff]  ;;  %v16670_v32 = vcombine.low %v11333_v36, %v11337_v13 }
 0x7e9   : > { %v11346_v29 = vld [vmem:[#allocation6 + $0x638] sm:$0xff] }
 0x7ea   : > { %14186 = vmatpush1.bf16.msra.mxu0 %v16574_v28  ;;  %v11302_v28 = vld [vmem:[#allocation6 + $0x4d8] sm:$0xff] }
 0x7eb   : > { %14350 = vmatpush1.bf16.msra.mxu1 %v16576_v33  ;;  %14187 = vmatprep.subr.bf16.mxu0 %v16583_v43  ;;  %v11306_v33 = vld [vmem:[#allocation6 + $0x4f8] sm:$0xff]  ;;  %v16630_v43 = vcombine.low %v11293_v14, %v11297_v34  ;;  %v11349_v34 = vld [vmem:[#allocation6 + $0x650] sm:$0xff] }
 0x7ec   : > { %14351 = vmatprep.subr.bf16.mxu1 %v16585_v35  ;;  %v16639_v35 = vcombine.high %v11301_v47, %v11305_v50  ;;  %v16641_v42 = vcombine.high %v11302_v28, %v11306_v33 }
 0x7ee   : > { %14188 = vmatpush1.bf16.msra.mxu0 %v16582_v51  ;;  %v11314_v51 = vld [vmem:[#allocation6 + $0x538] sm:$0xff] }
 0x7ef   : > { %14352 = vmatpush1.bf16.msra.mxu1 %v16584_v54  ;;  %14189 = vmatprep.subr.bf16.mxu0 %v16591_v3  ;;  %v16640_v54 = vcombine.low %v11302_v28, %v11306_v33  ;;  %v16647_v3 = vcombine.high %v11309_v53, %v11313_v37  ;;  %v11358_v28 = vld [vmem:[#allocation6 + $0x698] sm:$0xff] }
 0x7f0   : > { %14353 = vmatprep.subr.bf16.mxu1 %v16593_v26  ;;  %v16649_v26 = vcombine.high %v11310_v52, %v11314_v51  ;;  %v11362_v33 = vld [vmem:[#allocation6 + $0x6b8] sm:$0xff] }
 0x7f2   : > { %14190 = vmatpush1.bf16.msra.mxu0 %v16590_v23  ;;  %v16646_v23 = vcombine.low %v11309_v53, %v11313_v37  ;;  %v11365_v53 = vld [vmem:[#allocation6 + $0x6d0] sm:$0xff] }
 0x7f3   : > { %14354 = vmatpush1.bf16.msra.mxu1 %v16592_v25  ;;  %14191 = vmatprep.subr.bf16.mxu0 %v16599_v61  ;;  %v16648_v25 = vcombine.low %v11310_v52, %v11314_v51  ;;  %v16655_v61 = vcombine.high %v11317_v63, %v11321_v38  ;;  %v11369_v37 = vld [vmem:[#allocation6 + $0x6f0] sm:$0xff]  ;;  %v11366_v52 = vld [vmem:[#allocation6 + $0x6d8] sm:$0xff] }
 0x7f4   : > { %14355 = vmatprep.subr.bf16.mxu1 %v16601_v16  ;;  %v16657_v16 = vcombine.high %v11318_v59, %v11322_v44  ;;  %v11370_v51 = vld [vmem:[#allocation6 + $0x6f8] sm:$0xff] }
 0x7f6   : > { %14192 = vmatpush1.bf16.msra.mxu0 %v16598_v11  ;;  %v16654_v11 = vcombine.low %v11317_v63, %v11321_v38  ;;  %v11373_v63 = vld [vmem:[#allocation6 + $0x710] sm:$0xff] }
 0x7f7   : > { %14356 = vmatpush1.bf16.msra.mxu1 %v16600_v57  ;;  %14193 = vmatprep.subr.bf16.mxu0 %v16607_v24  ;;  %v16656_v57 = vcombine.low %v11318_v59, %v11322_v44  ;;  %v16663_v24 = vcombine.high %v11325_v27, %v11329_v6  ;;  %v11377_v38 = vld [vmem:[#allocation6 + $0x730] sm:$0xff]  ;;  %v11374_v59 = vld [vmem:[#allocation6 + $0x718] sm:$0xff] }
 0x7f8   : > { %14357 = vmatprep.subr.bf16.mxu1 %v16609_v12  ;;  %v16665_v12 = vcombine.high %v11326_v18, %v11330_v9  ;;  %v11378_v44 = vld [vmem:[#allocation6 + $0x738] sm:$0xff] }
 0x7fa   : > { %14194 = vmatpush1.bf16.msra.mxu0 %v16606_v10  ;;  %v16662_v10 = vcombine.low %v11325_v27, %v11329_v6  ;;  %v11381_v27 = vld [vmem:[#allocation6 + $0x750] sm:$0xff] }
 0x7fb   : > { %14358 = vmatpush1.bf16.msra.mxu1 %v16608_v7  ;;  %14204 = vmatprep.subr.bf16.mxu0 %v16615_v22  ;;  %v16664_v7 = vcombine.low %v11326_v18, %v11330_v9  ;;  %v16671_v22 = vcombine.high %v11333_v36, %v11337_v13  ;;  %v11385_v6 = vld [vmem:[#allocation6 + $0x770] sm:$0xff]  ;;  %v11382_v18 = vld [vmem:[#allocation6 + $0x758] sm:$0xff] }
 0x7fc   : > { %14368 = vmatprep.subr.bf16.mxu1 %v16617_v30  ;;  %v16673_v30 = vcombine.high %v11334_v15, %v11338_v17  ;;  %v11386_v9 = vld [vmem:[#allocation6 + $0x778] sm:$0xff]  ;;  %v11389_v36 = vld [vmem:[#allocation6 + $0x790] sm:$0xff] }
 0x7fd   : > { %14196 = vmatmul.mubr.bf16.vlgmr.msra.gmra.mrb[32].mxu0 %v20400_v21  ;;  %v11393_v13 = vld [vmem:[#allocation6 + $0x7b0] sm:$0xff] }
 0x7fe   : > { %14360 = vmatmul.mubr.bf16.vlgmr.msra.gmra.mrb[40].mxu1 %v20400_v21  ;;  %14205 = vmatpush1.bf16.msra.mxu0 %v16614_v48  ;;  %v16632_v21 = vcombine.low %v11294_v49, %v11298_v40  ;;  %v11342_v48 = vld [vmem:[#allocation6 + $0x618] sm:$0xff] }
 0x7ff   : > { %14236 = vmatprep.mubr.bf16.mxu0 %v20427_v2  ;;  %14369 = vmatpush1.bf16.msra.mxu1 %v16616_v60  ;;  %v16672_v60 = vcombine.low %v11334_v15, %v11338_v17  ;;  %v16681_v14 = vcombine.high %v11342_v48, %v11346_v29  ;;  %v11350_v49 = vld [vmem:[#allocation6 + $0x658] sm:$0xff] }
 0x800   : > { %14400 = vmatprep.mubr.bf16.mxu1 %v20427_v2  ;;  %14206 = vmatprep.subr.bf16.mxu0 %v16623_v56  ;;  %v16638_v2 = vcombine.low %v11301_v47, %v11305_v50  ;;  %v16679_v56 = vcombine.high %v11341_v58, %v11345_v8  ;;  %v11354_v40 = vld [vmem:[#allocation6 + $0x678] sm:$0xff]  ;;  %v11357_v47 = vld [vmem:[#allocation6 + $0x690] sm:$0xff] }
 0x801   : > { %14370 = vmatprep.subr.bf16.mxu1 %v16625_v39  ;;  %v11353_v39 = vld [vmem:[#allocation6 + $0x670] sm:$0xff]  ;;  %v11390_v15 = vld [vmem:[#allocation6 + $0x798] sm:$0xff] }
 0x802   : > { %14207 = vmatpush1.bf16.msra.mxu0 %v16622_v19  ;;  %v16678_v19 = vcombine.low %v11341_v58, %v11345_v8  ;;  %v11361_v50 = vld [vmem:[#allocation6 + $0x6b0] sm:$0xff]  ;;  %v11394_v17 = vld [vmem:[#allocation6 + $0x7b8] sm:$0xff] }
 0x803   : > { %14371 = vmatpush1.bf16.msra.mxu1 %v16624_v41  ;;  %14208 = vmatprep.subr.bf16.mxu0 %v16631_v45  ;;  %v16680_v41 = vcombine.low %v11342_v48, %v11346_v29  ;;  %v16687_v45 = vcombine.high %v11349_v34, %v11353_v39  ;;  %v11397_v58 = vld [vmem:[#allocation6 + $0x7d0] sm:$0xff]  ;;  %v11398_v48 = vld [vmem:[#allocation6 + $0x7d8] sm:$0xff] }
 0x804   : > { %14372 = vmatprep.subr.bf16.mxu1 %v16633_v62  ;;  %v16689_v62 = vcombine.high %v11350_v49, %v11354_v40  ;;  %v11401_v8 = vld [vmem:[#allocation6 + $0x7f0] sm:$0xff]  ;;  %v11402_v29 = vld [vmem:[#allocation6 + $0x7f8] sm:$0xff] }
 0x806   : > { %14209 = vmatpush1.bf16.msra.mxu0 %v16630_v43  ;;  %v16686_v43 = vcombine.low %v11349_v34, %v11353_v39  ;;  %v11405_v34 = vld [vmem:[#allocation6 + $0x810] sm:$0xff] }
 0x807   : > { %14373 = vmatpush1.bf16.msra.mxu1 %v16632_v21  ;;  %14210 = vmatprep.subr.bf16.mxu0 %v16639_v35  ;;  %v16688_v21 = vcombine.low %v11350_v49, %v11354_v40  ;;  %v16695_v35 = vcombine.high %v11357_v47, %v11361_v50  ;;  %v11409_v39 = vld [vmem:[#allocation6 + $0x830] sm:$0xff]  ;;  %v11406_v49 = vld [vmem:[#allocation6 + $0x818] sm:$0xff] }
 0x808   : > { %14374 = vmatprep.subr.bf16.mxu1 %v16641_v42  ;;  %v16697_v42 = vcombine.high %v11358_v28, %v11362_v33  ;;  %v11410_v40 = vld [vmem:[#allocation6 + $0x838] sm:$0xff] }
 0x80a   : > { %14211 = vmatpush1.bf16.msra.mxu0 %v16638_v2  ;;  %v16694_v2 = vcombine.low %v11357_v47, %v11361_v50  ;;  %v11413_v47 = vld [vmem:[#allocation6 + $0x850] sm:$0xff] }
 0x80b   : > { %14375 = vmatpush1.bf16.msra.mxu1 %v16640_v54  ;;  %14212 = vmatprep.subr.bf16.mxu0 %v16647_v3  ;;  %v16696_v54 = vcombine.low %v11358_v28, %v11362_v33  ;;  %v16703_v3 = vcombine.high %v11365_v53, %v11369_v37  ;;  %v11417_v50 = vld [vmem:[#allocation6 + $0x870] sm:$0xff]  ;;  %v16742_v28 = vcombine.low %v11405_v34, %v11409_v39  ;;  %v11414_v33 = vld [vmem:[#allocation6 + $0x858] sm:$0xff] }
 0x80c   : > { %14376 = vmatprep.subr.bf16.mxu1 %v16649_v26  ;;  %v16705_v26 = vcombine.high %v11366_v52, %v11370_v51 }
 0x80e   : > { %14213 = vmatpush1.bf16.msra.mxu0 %v16646_v23  ;;  %v16702_v23 = vcombine.low %v11365_v53, %v11369_v37  ;;  %v11425_v53 = vld [vmem:[#allocation6 + $0x8b0] sm:$0xff] }
 0x80f   : > { %14377 = vmatpush1.bf16.msra.mxu1 %v16648_v25  ;;  %14214 = vmatprep.subr.bf16.mxu0 %v16655_v61  ;;  %v16704_v25 = vcombine.low %v11366_v52, %v11370_v51  ;;  %v16711_v61 = vcombine.high %v11373_v63, %v11377_v38  ;;  %v11422_v52 = vld [vmem:[#allocation6 + $0x898] sm:$0xff] }
 0x810   : > { %14378 = vmatprep.subr.bf16.mxu1 %v16657_v16  ;;  %v16713_v16 = vcombine.high %v11374_v59, %v11378_v44  ;;  %v11426_v51 = vld [vmem:[#allocation6 + $0x8b8] sm:$0xff] }
 0x812   : > { %14215 = vmatpush1.bf16.msra.mxu0 %v16654_v11  ;;  %v16710_v11 = vcombine.low %v11373_v63, %v11377_v38  ;;  %v11429_v63 = vld [vmem:[#allocation6 + $0x8d0] sm:$0xff] }
 0x813   : > { %14379 = vmatpush1.bf16.msra.mxu1 %v16656_v57  ;;  %14216 = vmatprep.subr.bf16.mxu0 %v16663_v24  ;;  %v16712_v57 = vcombine.low %v11374_v59, %v11378_v44  ;;  %v16719_v24 = vcombine.high %v11381_v27, %v11385_v6  ;;  %v11433_v38 = vld [vmem:[#allocation6 + $0x8f0] sm:$0xff]  ;;  %v11430_v59 = vld [vmem:[#allocation6 + $0x8d8] sm:$0xff] }
 0x814   : > { %14380 = vmatprep.subr.bf16.mxu1 %v16665_v12  ;;  %v16721_v12 = vcombine.high %v11382_v18, %v11386_v9  ;;  %v11434_v44 = vld [vmem:[#allocation6 + $0x8f8] sm:$0xff] }
 0x816   : > { %14217 = vmatpush1.bf16.msra.mxu0 %v16662_v10  ;;  %v16718_v10 = vcombine.low %v11381_v27, %v11385_v6  ;;  %v11441_v27 = vld [vmem:[#allocation6 + $0x930] sm:$0xff]  ;;  %v11438_v6 = vld [vmem:[#allocation6 + $0x918] sm:$0xff] }
 0x817   : > { %14381 = vmatpush1.bf16.msra.mxu1 %v16664_v7  ;;  %14218 = vmatprep.subr.bf16.mxu0 %v16671_v22  ;;  %v16720_v7 = vcombine.low %v11382_v18, %v11386_v9  ;;  %v16727_v22 = vcombine.high %v11389_v36, %v11393_v13  ;;  %v11442_v18 = vld [vmem:[#allocation6 + $0x938] sm:$0xff]  ;;  %v16768_v9 = vcombine.low %v11430_v59, %v11434_v44 }
 0x818   : > { %14382 = vmatprep.subr.bf16.mxu1 %v16673_v30  ;;  %v16729_v30 = vcombine.high %v11390_v15, %v11394_v17 }
 0x81a   : > { %14219 = vmatpush1.bf16.msra.mxu0 %v16670_v32  ;;  %v16726_v32 = vcombine.low %v11389_v36, %v11393_v13  ;;  %v11446_v36 = vld [vmem:[#allocation6 + $0x958] sm:$0xff] }
 0x81b   : > { %14383 = vmatpush1.bf16.msra.mxu1 %v16672_v60  ;;  %14220 = vmatprep.subr.bf16.mxu0 %v16679_v56  ;;  %v16728_v60 = vcombine.low %v11390_v15, %v11394_v17  ;;  %v16735_v56 = vcombine.high %v11397_v58, %v11401_v8  ;;  %v11450_v13 = vld [vmem:[#allocation6 + $0x978] sm:$0xff]  ;;  %v16776_v17 = vcombine.low %v11438_v6, %v11442_v18 }
 0x81c   : > { %14384 = vmatprep.subr.bf16.mxu1 %v16681_v14  ;;  %v16737_v14 = vcombine.high %v11398_v48, %v11402_v29 }
 0x81e   : > { %14221 = vmatpush1.bf16.msra.mxu0 %v16678_v19  ;;  %v16734_v19 = vcombine.low %v11397_v58, %v11401_v8  ;;  %v11454_v58 = vld [vmem:[#allocation6 + $0x998] sm:$0xff] }
 0x81f   : > { %14385 = vmatpush1.bf16.msra.mxu1 %v16680_v41  ;;  %14222 = vmatprep.subr.bf16.mxu0 %v16687_v45  ;;  %v16736_v41 = vcombine.low %v11398_v48, %v11402_v29  ;;  %v16743_v45 = vcombine.high %v11405_v34, %v11409_v39  ;;  %v11458_v8 = vld [vmem:[#allocation6 + $0x9b8] sm:$0xff]  ;;  %v16784_v29 = vcombine.low %v11446_v36, %v11450_v13 }
 0x820   : > { %14386 = vmatprep.subr.bf16.mxu1 %v16689_v62  ;;  %v16745_v62 = vcombine.high %v11406_v49, %v11410_v40  ;;  %v11462_v34 = vld [vmem:[#allocation6 + $0x9d8] sm:$0xff] }
 0x821   : > { %v11466_v39 = vld [vmem:[#allocation6 + $0x9f8] sm:$0xff] }
 0x822   : > { %14223 = vmatpush1.bf16.msra.mxu0 %v16686_v43  ;;  %v11418_v43 = vld [vmem:[#allocation6 + $0x878] sm:$0xff] }
 0x823   : > { %14387 = vmatpush1.bf16.msra.mxu1 %v16688_v21  ;;  %14224 = vmatprep.subr.bf16.mxu0 %v16695_v35  ;;  %v16744_v21 = vcombine.low %v11406_v49, %v11410_v40  ;;  %v16751_v35 = vcombine.high %v11413_v47, %v11417_v50  ;;  %v16753_v37 = vcombine.high %v11414_v33, %v11418_v43 }
 0x824   : > { %14388 = vmatprep.subr.bf16.mxu1 %v16697_v42  ;;  %v11421_v42 = vld [vmem:[#allocation6 + $0x890] sm:$0xff]  ;;  %v16792_v40 = vcombine.low %v11454_v58, %v11458_v8 }
 0x826   : > { %14225 = vmatpush1.bf16.msra.mxu0 %v16694_v2  ;;  %v16750_v2 = vcombine.low %v11413_v47, %v11417_v50  ;;  %v11470_v47 = vld [vmem:[#allocation6 + $0xa18] sm:$0xff] }
 0x827   : > { %14389 = vmatpush1.bf16.msra.mxu1 %v16696_v54  ;;  %14226 = vmatprep.subr.bf16.mxu0 %v16703_v3  ;;  %v16752_v54 = vcombine.low %v11414_v33, %v11418_v43  ;;  %v16759_v3 = vcombine.high %v11421_v42, %v11425_v53  ;;  %v11474_v50 = vld [vmem:[#allocation6 + $0xa38] sm:$0xff]  ;;  %v16800_v33 = vcombine.low %v11462_v34, %v11466_v39 }
 0x828   : > { %14390 = vmatprep.subr.bf16.mxu1 %v16705_v26  ;;  %v16761_v26 = vcombine.high %v11422_v52, %v11426_v51 }
 0x82a   : > { %14227 = vmatpush1.bf16.msra.mxu0 %v16702_v23  ;;  %v16758_v23 = vcombine.low %v11421_v42, %v11425_v53  ;;  %v11481_v42 = vld [vmem:[#allocation6 + $0xa70] sm:$0xff]  ;;  %v11478_v53 = vld [vmem:[#allocation6 + $0xa58] sm:$0xff] }
 0x82b   : > { %14391 = vmatpush1.bf16.msra.mxu1 %v16704_v25  ;;  %14228 = vmatprep.subr.bf16.mxu0 %v16711_v61  ;;  %v16767_v25 = vcombine.high %v11429_v63, %v11433_v38  ;;  %v16769_v61 = vcombine.high %v11430_v59, %v11434_v44 }
 0x82c   : > { %14392 = vmatprep.subr.bf16.mxu1 %v16713_v16  ;;  %v11437_v16 = vld [vmem:[#allocation6 + $0x910] sm:$0xff] }
 0x82d   : > { %v16774_v15 = vcombine.low %v11437_v16, %v11441_v27 }
 0x82e   : > { %14229 = vmatpush1.bf16.msra.mxu0 %v16710_v11  ;;  %v16775_v11 = vcombine.high %v11437_v16, %v11441_v27  ;;  %v11494_v16 = vld [vmem:[#allocation6 + $0xad8] sm:$0xff] }
 0x82f   : > { %14393 = vmatpush1.bf16.msra.mxu1 %v16712_v57  ;;  %14230 = vmatprep.subr.bf16.mxu0 %v16719_v24  ;;  %v16777_v57 = vcombine.high %v11438_v6, %v11442_v18  ;;  %v11445_v24 = vld [vmem:[#allocation6 + $0x950] sm:$0xff]  ;;  %v11498_v27 = vld [vmem:[#allocation6 + $0xaf8] sm:$0xff] }
 0x830   : > { %14394 = vmatprep.subr.bf16.mxu1 %v16721_v12  ;;  %v11449_v12 = vld [vmem:[#allocation6 + $0x970] sm:$0xff] }
 0x831   : > { %v16782_v48 = vcombine.low %v11445_v24, %v11449_v12 }
 0x832   : > { %14231 = vmatpush1.bf16.msra.mxu0 %v16718_v10  ;;  %v16783_v10 = vcombine.high %v11445_v24, %v11449_v12  ;;  %v11502_v24 = vld [vmem:[#allocation6 + $0xb18] sm:$0xff] }
 0x833   : > { %14395 = vmatpush1.bf16.msra.mxu1 %v16720_v7  ;;  %14232 = vmatprep.subr.bf16.mxu0 %v16727_v22  ;;  %v16785_v7 = vcombine.high %v11446_v36, %v11450_v13  ;;  %v11453_v22 = vld [vmem:[#allocation6 + $0x990] sm:$0xff]  ;;  %v11506_v12 = vld [vmem:[#allocation6 + $0xb38] sm:$0xff]  ;;  %v16832_v13 = vcombine.low %v11494_v16, %v11498_v27 }
 0x834   : > { %14396 = vmatprep.subr.bf16.mxu1 %v16729_v30  ;;  %v11457_v30 = vld [vmem:[#allocation6 + $0x9b0] sm:$0xff] }
 0x835   : > { %v16790_v49 = vcombine.low %v11453_v22, %v11457_v30 }
 0x836   : > { %14233 = vmatpush1.bf16.msra.mxu0 %v16726_v32  ;;  %v16791_v32 = vcombine.high %v11453_v22, %v11457_v30  ;;  %v11510_v22 = vld [vmem:[#allocation6 + $0xb58] sm:$0xff] }
 0x837   : > { %14397 = vmatpush1.bf16.msra.mxu1 %v16728_v60  ;;  %14234 = vmatprep.subr.bf16.mxu0 %v16735_v56  ;;  %v16793_v60 = vcombine.high %v11454_v58, %v11458_v8  ;;  %v11461_v56 = vld [vmem:[#allocation6 + $0x9d0] sm:$0xff]  ;;  %v11514_v30 = vld [vmem:[#allocation6 + $0xb78] sm:$0xff]  ;;  %v16840_v8 = vcombine.low %v11502_v24, %v11506_v12 }
 0x838   : > { %14398 = vmatprep.subr.bf16.mxu1 %v16737_v14  ;;  %v11465_v14 = vld [vmem:[#allocation6 + $0x9f0] sm:$0xff] }
 0x83a   : > { %14235 = vmatpush1.bf16.msra.mxu0 %v16734_v19  ;;  %v16799_v19 = vcombine.high %v11461_v56, %v11465_v14 }
 0x83b   : > { %14399 = vmatpush1.bf16.msra.mxu1 %v16736_v41  ;;  %14245 = vmatprep.subr.bf16.mxu0 %v16743_v45  ;;  %v16801_v41 = vcombine.high %v11462_v34, %v11466_v39  ;;  %v11469_v45 = vld [vmem:[#allocation6 + $0xa10] sm:$0xff]  ;;  %v16848_v39 = vcombine.low %v11510_v22, %v11514_v30 }
 0x83c   : > { %14409 = vmatprep.subr.bf16.mxu1 %v16745_v62  ;;  %v11473_v62 = vld [vmem:[#allocation6 + $0xa30] sm:$0xff] }
 0x83d   : > { %14237 = vmatmul.mubr.bf16.vlgmr.msra.gmra.mrb[32].mxu0 %v20429_v4  ;;  %v16807_v43 = vcombine.high %v11469_v45, %v11473_v62 }
 0x83e   : > { %14401 = vmatmul.mubr.bf16.vlgmr.msra.gmra.mrb[40].mxu1 %v20429_v4  ;;  %14246 = vmatpush1.bf16.msra.mxu0 %v16742_v28  ;;  %v16760_v4 = vcombine.low %v11422_v52, %v11426_v51  ;;  %v16798_v28 = vcombine.low %v11461_v56, %v11465_v14  ;;  %v16806_v52 = vcombine.low %v11469_v45, %v11473_v62  ;;  %v11518_v56 = vld [vmem:[#allocation6 + $0xb98] sm:$0xff] }
 0x83f   : > { %14277 = vmatprep.mubr.bf16.mxu0 %v20450_v46  ;;  %14410 = vmatpush1.bf16.msra.mxu1 %v16744_v21  ;;  %v16809_v21 = vcombine.high %v11470_v47, %v11474_v50  ;;  %v16808_v51 = vcombine.low %v11470_v47, %v11474_v50  ;;  %v11522_v14 = vld [vmem:[#allocation6 + $0xbb8] sm:$0xff] }
 0x840   : > { %14441 = vmatprep.mubr.bf16.mxu1 %v20450_v46  ;;  %14247 = vmatprep.subr.bf16.mxu0 %v16751_v35  ;;  %v16766_v46 = vcombine.low %v11429_v63, %v11433_v38  ;;  %v11477_v35 = vld [vmem:[#allocation6 + $0xa50] sm:$0xff]  ;;  %v11486_v63 = vld [vmem:[#allocation6 + $0xa98] sm:$0xff]  ;;  %v16856_v50 = vcombine.low %v11518_v56, %v11522_v14 }
 0x841   : > { %14411 = vmatprep.subr.bf16.mxu1 %v16753_v37  ;;  %v11482_v37 = vld [vmem:[#allocation6 + $0xa78] sm:$0xff]  ;;  %v16814_v59 = vcombine.low %v11477_v35, %v11481_v42 }
 0x842   : > { %14248 = vmatpush1.bf16.msra.mxu0 %v16750_v2  ;;  %v16815_v2 = vcombine.high %v11477_v35, %v11481_v42  ;;  %v11490_v38 = vld [vmem:[#allocation6 + $0xab8] sm:$0xff]  ;;  %v16816_v44 = vcombine.low %v11478_v53, %v11482_v37 }
 0x843   : > { %14412 = vmatpush1.bf16.msra.mxu1 %v16752_v54  ;;  %14249 = vmatprep.subr.bf16.mxu0 %v16759_v3  ;;  %v16817_v54 = vcombine.high %v11478_v53, %v11482_v37  ;;  %v11485_v3 = vld [vmem:[#allocation6 + $0xa90] sm:$0xff]  ;;  %v16824_v18 = vcombine.low %v11486_v63, %v11490_v38  ;;  %v11526_v45 = vld [vmem:[#allocation6 + $0xbd8] sm:$0xff] }
 0x844   : > { %14413 = vmatprep.subr.bf16.mxu1 %v16761_v26  ;;  %v11489_v26 = vld [vmem:[#allocation6 + $0xab0] sm:$0xff]  ;;  %v11530_v62 = vld [vmem:[#allocation6 + $0xbf8] sm:$0xff] }
 0x845   : > { %v16822_v6 = vcombine.low %v11485_v3, %v11489_v26  ;;  %v11534_v35 = vld [vmem:[#allocation6 + $0xc18] sm:$0xff]  ;;  %v16864_v37 = vcombine.low %v11526_v45, %v11530_v62 }
 0x846   : > { %14250 = vmatpush1.bf16.msra.mxu0 %v16758_v23  ;;  %v16823_v23 = vcombine.high %v11485_v3, %v11489_v26  ;;  %v11538_v42 = vld [vmem:[#allocation6 + $0xc38] sm:$0xff] }
 0x847   : > { %14414 = vmatpush1.bf16.msra.mxu1 %v16760_v4  ;;  %14251 = vmatprep.subr.bf16.mxu0 %v16767_v25  ;;  %v16825_v4 = vcombine.high %v11486_v63, %v11490_v38  ;;  %v11493_v25 = vld [vmem:[#allocation6 + $0xad0] sm:$0xff]  ;;  %v11542_v3 = vld [vmem:[#allocation6 + $0xc58] sm:$0xff]  ;;  %v16872_v38 = vcombine.low %v11534_v35, %v11538_v42 }
 0x848   : > { %14415 = vmatprep.subr.bf16.mxu1 %v16769_v61  ;;  %v11497_v61 = vld [vmem:[#allocation6 + $0xaf0] sm:$0xff]  ;;  %v11546_v26 = vld [vmem:[#allocation6 + $0xc78] sm:$0xff] }
 0x849   : > { %v16830_v36 = vcombine.low %v11493_v25, %v11497_v61 }
 0x84a   : > { %14252 = vmatpush1.bf16.msra.mxu0 %v16766_v46  ;;  %v16831_v46 = vcombine.high %v11493_v25, %v11497_v61  ;;  %v11550_v25 = vld [vmem:[#allocation6 + $0xc98] sm:$0xff] }
 0x84b   : > { %14416 = vmatpush1.bf16.msra.mxu1 %v16768_v9  ;;  %14253 = vmatprep.subr.bf16.mxu0 %v16775_v11  ;;  %v16833_v9 = vcombine.high %v11494_v16, %v11498_v27  ;;  %v11501_v11 = vld [vmem:[#allocation6 + $0xb10] sm:$0xff]  ;;  %v11554_v61 = vld [vmem:[#allocation6 + $0xcb8] sm:$0xff]  ;;  %v16880_v27 = vcombine.low %v11542_v3, %v11546_v26 }
 0x84c   : > { %14417 = vmatprep.subr.bf16.mxu1 %v16777_v57  ;;  %v11505_v57 = vld [vmem:[#allocation6 + $0xb30] sm:$0xff] }
 0x84d   : > { %v16838_v58 = vcombine.low %v11501_v11, %v11505_v57 }
 0x84e   : > { %14254 = vmatpush1.bf16.msra.mxu0 %v16774_v15  ;;  %v16839_v15 = vcombine.high %v11501_v11, %v11505_v57  ;;  %v11558_v11 = vld [vmem:[#allocation6 + $0xcd8] sm:$0xff] }
 0x84f   : > { %14418 = vmatpush1.bf16.msra.mxu1 %v16776_v17  ;;  %14255 = vmatprep.subr.bf16.mxu0 %v16783_v10  ;;  %v16841_v17 = vcombine.high %v11502_v24, %v11506_v12  ;;  %v11509_v10 = vld [vmem:[#allocation6 + $0xb50] sm:$0xff]  ;;  %v11562_v57 = vld [vmem:[#allocation6 + $0xcf8] sm:$0xff] }
 0x850   : > { %14419 = vmatprep.subr.bf16.mxu1 %v16785_v7  ;;  %v11513_v7 = vld [vmem:[#allocation6 + $0xb70] sm:$0xff] }
 0x851   : > { %v16846_v34 = vcombine.low %v11509_v10, %v11513_v7 }
 0x852   : > { %14256 = vmatpush1.bf16.msra.mxu0 %v16782_v48  ;;  %v16847_v48 = vcombine.high %v11509_v10, %v11513_v7  ;;  %v11570_v10 = vld [vmem:[#allocation6 + $0xd38] sm:$0xff] }
 0x853   : > { %14420 = vmatpush1.bf16.msra.mxu1 %v16784_v29  ;;  %14257 = vmatprep.subr.bf16.mxu0 %v16791_v32  ;;  %v16849_v29 = vcombine.high %v11510_v22, %v11514_v30  ;;  %v11517_v32 = vld [vmem:[#allocation6 + $0xb90] sm:$0xff]  ;;  %v16896_v22 = vcombine.low %v11558_v11, %v11562_v57 }
 0x854   : > { %14421 = vmatprep.subr.bf16.mxu1 %v16793_v60  ;;  %v11521_v60 = vld [vmem:[#allocation6 + $0xbb0] sm:$0xff] }
 0x855   : > { %v16854_v47 = vcombine.low %v11517_v32, %v11521_v60 }
 0x856   : > { %14258 = vmatpush1.bf16.msra.mxu0 %v16790_v49  ;;  %v16855_v49 = vcombine.high %v11517_v32, %v11521_v60 }
 0x857   : > { %14422 = vmatpush1.bf16.msra.mxu1 %v16792_v40  ;;  %14259 = vmatprep.subr.bf16.mxu0 %v16799_v19  ;;  %v16857_v40 = vcombine.high %v11518_v56, %v11522_v14  ;;  %v11525_v19 = vld [vmem:[#allocation6 + $0xbd0] sm:$0xff] }
 0x858   : > { %14423 = vmatprep.subr.bf16.mxu1 %v16801_v41  ;;  %v11529_v41 = vld [vmem:[#allocation6 + $0xbf0] sm:$0xff] }
 0x859   : > { %v16862_v53 = vcombine.low %v11525_v19, %v11529_v41 }
 0x85a   : > { %14260 = vmatpush1.bf16.msra.mxu0 %v16798_v28  ;;  %v16863_v28 = vcombine.high %v11525_v19, %v11529_v41 }
 0x85b   : > { %14424 = vmatpush1.bf16.msra.mxu1 %v16800_v33  ;;  %14261 = vmatprep.subr.bf16.mxu0 %v16807_v43  ;;  %v16865_v33 = vcombine.high %v11526_v45, %v11530_v62  ;;  %v11533_v43 = vld [vmem:[#allocation6 + $0xc10] sm:$0xff] }
 0x85c   : > { %14425 = vmatprep.subr.bf16.mxu1 %v16809_v21  ;;  %v11537_v21 = vld [vmem:[#allocation6 + $0xc30] sm:$0xff] }
 0x85d   : > { %v16870_v63 = vcombine.low %v11533_v43, %v11537_v21 }
 0x85e   : > { %14262 = vmatpush1.bf16.msra.mxu0 %v16806_v52  ;;  %v16871_v52 = vcombine.high %v11533_v43, %v11537_v21 }
 0x85f   : > { %14426 = vmatpush1.bf16.msra.mxu1 %v16808_v51  ;;  %14263 = vmatprep.subr.bf16.mxu0 %v16815_v2  ;;  %v16873_v51 = vcombine.high %v11534_v35, %v11538_v42  ;;  %v11541_v2 = vld [vmem:[#allocation6 + $0xc50] sm:$0xff]  ;;  %v11590_v42 = vld [vmem:[#allocation6 + $0xdd8] sm:$0xff] }
 0x860   : > { %14427 = vmatprep.subr.bf16.mxu1 %v16817_v54  ;;  %v11545_v54 = vld [vmem:[#allocation6 + $0xc70] sm:$0xff] }
 0x861   : > { %v16878_v16 = vcombine.low %v11541_v2, %v11545_v54 }
 0x862   : > { %14264 = vmatpush1.bf16.msra.mxu0 %v16814_v59  ;;  %v16879_v59 = vcombine.high %v11541_v2, %v11545_v54 }
 0x863   : > { %14428 = vmatpush1.bf16.msra.mxu1 %v16816_v44  ;;  %14265 = vmatprep.subr.bf16.mxu0 %v16823_v23  ;;  %v16881_v44 = vcombine.high %v11542_v3, %v11546_v26  ;;  %v11549_v23 = vld [vmem:[#allocation6 + $0xc90] sm:$0xff] }
 0x864   : > { %14429 = vmatprep.subr.bf16.mxu1 %v16825_v4  ;;  %v11553_v4 = vld [vmem:[#allocation6 + $0xcb0] sm:$0xff] }
 0x865   : > { %v16886_v24 = vcombine.low %v11549_v23, %v11553_v4 }
 0x866   : > { %14266 = vmatpush1.bf16.msra.mxu0 %v16822_v6  ;;  %v16887_v6 = vcombine.high %v11549_v23, %v11553_v4  ;;  %v19436_v23 = vld [vmem:[#allocation9 + $0x40] sm:$0xff]  }
 0x867   : > { %14430 = vmatpush1.bf16.msra.mxu1 %v16824_v18  ;;  %14267 = vmatprep.subr.bf16.mxu0 %v16831_v46  ;;  %v16889_v18 = vcombine.high %v11550_v25, %v11554_v61  ;;  %v11557_v46 = vld [vmem:[#allocation6 + $0xcd0] sm:$0xff]  ;;  %v19437_v4 = vld [vmem:[#allocation9] sm:$0xff]  }
 0x868   : > { %14431 = vmatprep.subr.bf16.mxu1 %v16833_v9  ;;  %v11561_v9 = vld [vmem:[#allocation6 + $0xcf0] sm:$0xff] }
 0x869   : > { %v16895_v12 = vcombine.high %v11557_v46, %v11561_v9  ;;  %v16894_v7 = vcombine.low %v11557_v46, %v11561_v9  ;;  %v19444_v46 = vld [vmem:[#allocation9 + $0x60] sm:$0xff]  }
 0x86a   : > { %14268 = vmatpush1.bf16.msra.mxu0 %v16830_v36  ;;  %v16897_v36 = vcombine.high %v11558_v11, %v11562_v57  ;;  %v19445_v9 = vld [vmem:[#allocation9 + $0x20] sm:$0xff]   ;;  %v19446_v11 = vld [vmem:[#allocation9 + $0x68] sm:$0xff]  }
 0x86b   : > { %14432 = vmatpush1.bf16.msra.mxu1 %v16832_v13  ;;  %14269 = vmatprep.subr.bf16.mxu0 %v16839_v15  ;;  %v11565_v13 = vld [vmem:[#allocation6 + $0xd10] sm:$0xff] }
 0x86c   : > { %14433 = vmatprep.subr.bf16.mxu1 %v16841_v17  ;;  %v11569_v15 = vld [vmem:[#allocation6 + $0xd30] sm:$0xff]  ;;  %v11566_v17 = vld [vmem:[#allocation6 + $0xd18] sm:$0xff] }
 0x86d   : > { %v16903_v30 = vcombine.high %v11565_v13, %v11569_v15  ;;  %v16902_v32 = vcombine.low %v11565_v13, %v11569_v15  ;;  %v16904_v60 = vcombine.low %v11566_v17, %v11570_v10  ;;  %v19447_v57 = vld [vmem:[#allocation9 + $0x28] sm:$0xff]   ;;  %v19798_v13 = vmov 0.0  }
 0x86e   : > { %14270 = vmatpush1.bf16.msra.mxu0 %v16838_v58  ;;  %v11573_v58 = vld [vmem:[#allocation6 + $0xd50] sm:$0xff] }
 0x86f   : > { %14434 = vmatpush1.bf16.msra.mxu1 %v16840_v8  ;;  %14271 = vmatprep.subr.bf16.mxu0 %v16847_v48  ;;  %v11577_v8 = vld [vmem:[#allocation6 + $0xd70] sm:$0xff]  ;;  %v11574_v48 = vld [vmem:[#allocation6 + $0xd58] sm:$0xff] }
 0x870   : > { %14435 = vmatprep.subr.bf16.mxu1 %v16849_v29  ;;  %v11578_v29 = vld [vmem:[#allocation6 + $0xd78] sm:$0xff]  ;;  %v16911_v56 = vcombine.high %v11573_v58, %v11577_v8  ;;  %v16910_v19 = vcombine.low %v11573_v58, %v11577_v8  ;;  %v19453_v15 = vld [vmem:[#allocation12 + $0x8] sm:$0xff]  }
 0x871   : > { %v16913_v14 = vcombine.high %v11574_v48, %v11578_v29  ;;  %v16912_v41 = vcombine.low %v11574_v48, %v11578_v29 }
 0x872   : > { %14272 = vmatpush1.bf16.msra.mxu0 %v16846_v34  ;;  %v11581_v34 = vld [vmem:[#allocation6 + $0xd90] sm:$0xff] }
 0x873   : > { %14436 = vmatpush1.bf16.msra.mxu1 %v16848_v39  ;;  %14273 = vmatprep.subr.bf16.mxu0 %v16855_v49  ;;  %v11585_v39 = vld [vmem:[#allocation6 + $0xdb0] sm:$0xff]  ;;  %v11582_v49 = vld [vmem:[#allocation6 + $0xd98] sm:$0xff] }
 0x874   : > { %14437 = vmatprep.subr.bf16.mxu1 %v16857_v40  ;;  %v11586_v40 = vld [vmem:[#allocation6 + $0xdb8] sm:$0xff]  ;;  %v16919_v45 = vcombine.high %v11581_v34, %v11585_v39  ;;  %v16918_v2 = vcombine.low %v11581_v34, %v11585_v39 }
 0x875   : > { %v16920_v26 = vcombine.low %v11582_v49, %v11586_v40 }
 0x876   : > { %14274 = vmatpush1.bf16.msra.mxu0 %v16854_v47 }
 0x877   : > { %14438 = vmatpush1.bf16.msra.mxu1 %v16856_v50  ;;  %14275 = vmatprep.subr.bf16.mxu0 %v16863_v28  ;;  %v16921_v50 = vcombine.high %v11582_v49, %v11586_v40  ;;  %v11589_v28 = vld [vmem:[#allocation6 + $0xdd0] sm:$0xff] }
 0x878   : > { %14439 = vmatprep.subr.bf16.mxu1 %v16865_v33  ;;  %v11593_v33 = vld [vmem:[#allocation6 + $0xdf0] sm:$0xff] }
 0x87a   : > { %14276 = vmatpush1.bf16.msra.mxu0 %v16862_v53  ;;  %v11594_v53 = vld [vmem:[#allocation6 + $0xdf8] sm:$0xff] }
 0x87b   : > { %14440 = vmatpush1.bf16.msra.mxu1 %v16864_v37  ;;  %14286 = vmatprep.subr.bf16.mxu0 %v16871_v52 }
 0x87c   : > { %14450 = vmatprep.subr.bf16.mxu1 %v16873_v51 }
 0x87d   : > { %14278 = vmatmul.mubr.bf16.vlgmr.msra.gmra.mrb[32].mxu0 %v20459_v55 }
 0x87e   : > { %14442 = vmatmul.mubr.bf16.vlgmr.msra.gmra.mrb[40].mxu1 %v20459_v55  ;;  %14287 = vmatpush1.bf16.msra.mxu0 %v16870_v63  ;;  %v16888_v55 = vcombine.low %v11550_v25, %v11554_v61  ;;  %v16927_v63 = vcombine.high %v11589_v28, %v11593_v33  ;;  %v19438_v25 = vld [vmem:[#allocation9 + $0x48] sm:$0xff]  }
 0x87f   : > { %14451 = vmatpush1.bf16.msra.mxu1 %v16872_v38  ;;  %14288 = vmatprep.subr.bf16.mxu0 %v16879_v59  ;;  %v16929_v38 = vcombine.high %v11590_v42, %v11594_v53  ;;  %v16926_v59 = vcombine.low %v11589_v28, %v11593_v33  ;;  %v19439_v61 = vld [vmem:[#allocation9 + $0x8] sm:$0xff]  }
 0x880   : > { %14452 = vmatprep.subr.bf16.mxu1 %v16881_v44  ;;  %14318 = vmatprep.mubr.bf16.mxu0 %v19797_v0  ;;  %v16928_v44 = vcombine.low %v11590_v42, %v11594_v53  ;;  %v19465_v42 = vld [vmem:[#allocation15 + $0x28] sm:$0xff]  }
 0x881   : > { %14482 = vmatprep.mubr.bf16.mxu1 %v19797_v0  ;;  %v16905_v0 = vcombine.high %v11566_v17, %v11570_v10  ;;  %v19454_v17 = vld [vmem:[#allocation12 + $0x10] sm:$0xff]   ;;  %v19455_v10 = vld [vmem:[#allocation12 + $0x18] sm:$0xff]  }
 0x882   : > { %14289 = vmatpush1.bf16.msra.mxu0 %v16878_v16  ;;  %v19440_v16 = vld [vmem:[#allocation9 + $0x50] sm:$0xff]  }
 0x883   : > { %14453 = vmatpush1.bf16.msra.mxu1 %v16880_v27  ;;  %14290 = vmatprep.subr.bf16.mxu0 %v16887_v6  ;;  %v19441_v27 = vld [vmem:[#allocation9 + $0x10] sm:$0xff]   ;;  %v19442_v6 = vld [vmem:[#allocation9 + $0x58] sm:$0xff]  }
 0x884   : > { %14454 = vmatprep.subr.bf16.mxu1 %v16889_v18  ;;  %v19443_v18 = vld [vmem:[#allocation9 + $0x18] sm:$0xff]  }
 0x886   : > { %14291 = vmatpush1.bf16.msra.mxu0 %v16886_v24  ;;  %v19449_v24 = vld [vmem:[#allocation9 + $0x30] sm:$0xff]  }
 0x887   : > { %14455 = vmatpush1.bf16.msra.mxu1 %v16888_v55  ;;  %14292 = vmatprep.subr.bf16.mxu0 %v16895_v12  ;;  %v19450_v55 = vld [vmem:[#allocation9 + $0x78] sm:$0xff]  }
 0x888   : > { %14456 = vmatprep.subr.bf16.mxu1 %v16897_v36  ;;  %v19451_v12 = vld [vmem:[#allocation9 + $0x38] sm:$0xff]   ;;  %v19452_v36 = vld [vmem:[#allocation12] sm:$0xff]  }
 0x88a   : > { %14293 = vmatpush1.bf16.msra.mxu0 %v16894_v7  ;;  %v19456_v7 = vld [vmem:[#allocation12 + $0x20] sm:$0xff]  }
 0x88b   : > { %14457 = vmatpush1.bf16.msra.mxu1 %v16896_v22  ;;  %14294 = vmatprep.subr.bf16.mxu0 %v16903_v30  ;;  %v19457_v22 = vld [vmem:[#allocation12 + $0x28] sm:$0xff]   ;;  %v14497_v30 = vld [vmem:[#allocation7] sm:$0x3] }
 0x88c   : > { %14458 = vmatprep.subr.bf16.mxu1 %v16905_v0  ;;  %v14502_v29 = vrot.slane %v14497_v30, %v11093_v20 }
 0x88e   : > { %14295 = vmatpush1.bf16.msra.mxu0 %v16902_v32 }
 0x88f   : > { %14459 = vmatpush1.bf16.msra.mxu1 %v16904_v60  ;;  %14296 = vmatprep.subr.bf16.mxu0 %v16911_v56 }
 0x890   : > { %v20486_v62 = vpop.f32.mrb[28].mxu0  ;;  %v20488_v47 = vpop.f32.mrb[36].mxu1  ;;  %14460 = vmatprep.subr.bf16.mxu1 %v16913_v14  ;;  %v14506_v14 = vrot.slane %v14497_v30, %v11097_v5  ;;  %v19459_v5 = vld [vmem:[#allocation12 + $0x38] sm:$0xff]  }
 0x891   : > { %v14491_v43 = vmax.f32 %v20486_v62, %v20488_v47  ;;  %v20492_v21 = vpop.f32.mrb[29].mxu0  ;;  %v20494_v35 = vpop.f32.mrb[37].mxu1  ;;  %v19460_v62 = vld [vmem:[#allocation15] sm:$0xff]   ;;  %v19461_v47 = vld [vmem:[#allocation15 + $0x8] sm:$0xff]  }
 0x892   : > { %v14492_v37 = vmax.f32 %v20492_v21, %v20494_v35  ;;  %v13996_v52 = vpop.f32.mrb[30].mxu0  ;;  %v14160_v51 = vpop.f32.mrb[38].mxu1  ;;  %14297 = vmatpush1.bf16.msra.mxu0 %v16910_v19  ;;  %v19463_v21 = vld [vmem:[#allocation15 + $0x18] sm:$0xff]   ;;  %v19464_v35 = vld [vmem:[#allocation15 + $0x20] sm:$0xff]  }
 0x893   : > { %14461 = vmatpush1.bf16.msra.mxu1 %v16912_v41  ;;  %v13997_v54 = vpop.f32.mrb[31].mxu0  ;;  %v14161_v3 = vpop.f32.mrb[39].mxu1  ;;  %14298 = vmatprep.subr.bf16.mxu0 %v16919_v45 }
 0x894   : > { %14462 = vmatprep.subr.bf16.mxu1 %v16921_v50 }
 0x896   : > { %14299 = vmatpush1.bf16.msra.mxu0 %v16918_v2 }
 0x897   : > { %14463 = vmatpush1.bf16.msra.mxu1 %v16920_v26  ;;  %14300 = vmatprep.subr.bf16.mxu0 %v16927_v63 }
 0x898   : > { %14464 = vmatprep.subr.bf16.mxu1 %v16929_v38  ;;  %v19466_v38 = vld [vmem:[#allocation15 + $0x30] sm:$0xff]  }
 0x89a   : > { %14301 = vmatpush1.bf16.msra.mxu0 %v16926_v59  ;;  %v19467_v59 = vld [vmem:[#allocation15 + $0x38] sm:$0xff]  }
 0x89b   : > { %14465 = vmatpush1.bf16.msra.mxu1 %v16928_v44  ;;  %16967 = vmatprep.subr.bf16.mxu0 %v19436_v23  ;;  %v16947_v44 = vld [vmem:[#allocation13] ss:$0 sm:$0xff] }
 0x89c   : > { %17007 = vmatprep.subr.bf16.mxu1 %v19798_v13 }
 0x89d   : > { %14319 = vmatmul.mubr.bf16.vlgmr.msra.gmra.mrb[32].mxu0 %v20468_v31 }
 0x89e   : > { %14483 = vmatmul.mubr.bf16.vlgmr.msra.gmra.mrb[40].mxu1 %v20468_v31  ;;  %16968 = vmatpush3.bf16.msra.mxu0 %v19437_v4  ;;  %v19448_v31 = vld [vmem:[#allocation9 + $0x70] sm:$0xff]  }
 0x89f   : > { %16969 = vmatprep.subr.bf16.mxu0 %v19438_v25  ;;  %17008 = vmatpush3.bf16.msra.mxu1 %v19452_v36 }
 0x8a0   : > { %17009 = vmatprep.subr.bf16.mxu1 %v19798_v13  ;;  %17023 = vmatprep.mubr.msk.bf16.mxu1 %vm19799_vm1, %v19798_v13 }
 0x8a2   : > { %16970 = vmatpush3.bf16.msra.mxu0 %v19439_v61 }
 0x8a3   : > { %16971 = vmatprep.subr.bf16.mxu0 %v19440_v16  ;;  %17010 = vmatpush3.bf16.msra.mxu1 %v19453_v15 }
 0x8a4   : > { %17011 = vmatprep.subr.bf16.mxu1 %v19798_v13 }
 0x8a6   : > { %16972 = vmatpush3.bf16.msra.mxu0 %v19441_v27 }
 0x8a7   : > { %16973 = vmatprep.subr.bf16.mxu0 %v19442_v6  ;;  %17012 = vmatpush3.bf16.msra.mxu1 %v19454_v17 }
 0x8a8   : > { %17013 = vmatprep.subr.bf16.mxu1 %v19798_v13 }
 0x8aa   : > { %16974 = vmatpush3.bf16.msra.mxu0 %v19443_v18  ;;  %v16956_v18 = vld [vmem:[#allocation16] ss:$0 sm:$0xff] }
 0x8ab   : > { %16975 = vmatprep.subr.bf16.mxu0 %v19444_v46  ;;  %17014 = vmatpush3.bf16.msra.mxu1 %v19455_v10 }
 0x8ac   : > { %17015 = vmatprep.subr.bf16.mxu1 %v19798_v13 }
 0x8ae   : > { %16976 = vmatpush3.bf16.msra.mxu0 %v19445_v9 }
 0x8af   : > { %16977 = vmatprep.subr.bf16.mxu0 %v19446_v11  ;;  %17016 = vmatpush3.bf16.msra.mxu1 %v19456_v7 }
 0x8b0   : > { %17017 = vmatprep.subr.bf16.mxu1 %v19798_v13 }
 0x8b2   : > { %16978 = vmatpush3.bf16.msra.mxu0 %v19447_v57 }
 0x8b3   : > { %16979 = vmatprep.subr.bf16.mxu0 %v19448_v31  ;;  %17018 = vmatpush3.bf16.msra.mxu1 %v19457_v22 }
 0x8b4   : > { %17019 = vmatprep.subr.bf16.mxu1 %v19798_v13 }
 0x8b6   : > { %16980 = vmatpush3.bf16.msra.mxu0 %v19449_v24 }
 0x8b7   : > { %16981 = vmatprep.subr.bf16.mxu0 %v19450_v55  ;;  %17020 = vmatpush3.bf16.msra.mxu1 %v19458_v1 }
 0x8b8   : > { %17021 = vmatprep.subr.bf16.mxu1 %v19798_v13 }
 0x8ba   : > { %16982 = vmatpush3.bf16.msra.mxu0 %v19451_v12 }
 0x8bb   : > { %17027 = vmatprep.subr.bf16.mxu0 %v19798_v13  ;;  %17022 = vmatpush3.bf16.msra.mxu1 %v19459_v5 }
 0x970   : > { %v14320_v0 = vpop.f32.mrb[32].mxu0 }
 0x971   : > { %v14484_v58 = vpop.f32.mrb[40].mxu1  ;;  %v14322_v8 = vpop.f32.mrb[33].mxu0 }
 0x972   : > { %v14493_v48 = vmax.f32 %v14320_v0, %v14484_v58  ;;  %v14486_v32 = vpop.f32.mrb[41].mxu1  ;;  %v14324_v60 = vpop.f32.mrb[34].mxu0 }
 0x973   : > { %v14494_v56 = vmax.f32 %v14322_v8, %v14486_v32  ;;  %v14488_v34 = vpop.f32.mrb[42].mxu1  ;;  %v14325_v39 = vpop.f32.mrb[35].mxu0 }
 0x974   : > { %v14495_v49 = vmax.f32 %v14491_v43, %v14493_v48  ;;  %v14489_v40 = vpop.f32.mrb[43].mxu1  ;;  %v19462_v43 = vld [vmem:[#allocation15 + $0x10] sm:$0xff]  }
 0x975   : > { %v14496_v19 = vmax.f32 %v14492_v37, %v14494_v56  ;;  %v16930_v37 = vld [vmem:[#allocation10] ss:$0 sm:$0xff] }
 0x976   : > { %v14509_v41 = vadd.f32 %v14502_v29, %v14495_v49 }
 0x977   : > { %v14510_v45 = vadd.f32 %v14506_v14, %v14496_v19 }
 0x978   : > { %v14511_v20 = vmax.f32 %v14509_v41, 0.0 }
 0x979   : > { %v14512_v50 = vmax.f32 %v14510_v45, 0.0 }
 0x97a   : > { %v14513_v33 = vpack.c.bf16 %v14511_v20, %v14511_v20 }
 0x97b   : > { %v14514_v28 = vpack.c.bf16 %v14512_v50, %v14512_v50 }
 0x97d   : > { %14682 = vmatprep.mubr.bf16.mxu0 %v14514_v28 }
 0x97e   : > { %14683 = vmatmul.mubr.bf16.vlgmr.msra.gmra.mrb[36].mxu0 %v14513_v33 }
 0x97f   : > { %17043 = vmatprep.mubr.msk.bf16.mxu0 %vm19799_vm1, %v19798_v13  ;;  %17028 = vmatpush3.bf16.msra.mxu0 %v19460_v62 }
 0x980   : > { %17029 = vmatprep.subr.bf16.mxu0 %v19798_v13 }
 0x983   : > { %17030 = vmatpush3.bf16.msra.mxu0 %v19461_v47 }
 0x984   : > { %17031 = vmatprep.subr.bf16.mxu0 %v19798_v13 }
 0x987   : > { %17032 = vmatpush3.bf16.msra.mxu0 %v19462_v43 }
 0x988   : > { %17033 = vmatprep.subr.bf16.mxu0 %v19798_v13 }
 0x98b   : > { %17034 = vmatpush3.bf16.msra.mxu0 %v19463_v21 }
 0x98c   : > { %17035 = vmatprep.subr.bf16.mxu0 %v19798_v13 }
 0x98f   : > { %17036 = vmatpush3.bf16.msra.mxu0 %v19464_v35 }
 0x990   : > { %17037 = vmatprep.subr.bf16.mxu0 %v19798_v13 }
 0x993   : > { %17038 = vmatpush3.bf16.msra.mxu0 %v19465_v42 }
 0x994   : > { %17039 = vmatprep.subr.bf16.mxu0 %v19798_v13 }
 0x997   : > { %17040 = vmatpush3.bf16.msra.mxu0 %v19466_v38 }
 0x998   : > { %17041 = vmatprep.subr.bf16.mxu0 %v19798_v13 }
 0x99b   : > { %17042 = vmatpush3.bf16.msra.mxu0 %v19467_v59 }
 0xa51   : > { %v16983_v53 = vpop.f32.mrb[36].mxu0 }
 0xa52   : > { %v16984_v52 = vpop.f32.mrb[37].mxu0 }
 0xa53   : > { %v16985_v51 = vadd.f32 %v16984_v52, %v16983_v53  ;;  %v16986_v2 = vpop.f32.mrb[38].mxu0 }
 0xa54   : > { %v16987_v54 = vpop.f32.mrb[39].mxu0 }
 0xa55   : > { %v14685_v3 = vadd.f32 %v16985_v51, %v16930_v37 }
 0xa57   : > { %v14690_v26 = vmax.f32 %v14685_v3, 0.0 }
 0xa59   : > { %v14691_v63 = vpack.c.bf16 %v14690_v26, %v14690_v26 }
 0xa5b   : > { %17024 = vmatmul.mubr.bf16.vlgmr.msra.gmra.mrb[44].mxu1 %v14691_v63 }
 0xb2e   : > { %v14797_v23 = vpop.f32.mrb[44].mxu1 }
 0xb2f   : > { %v14798_v4 = vadd.f32 %v16947_v44, %v14797_v23  ;;  %v17025_v25 = vpop.f32.mrb[45].mxu1 }
 0xb30   : > { %v14800_v61 = vpop.f32.mrb[46].mxu1 }
 0xb31   : > { %v14803_v16 = vmax.f32 %v14798_v4, 0.0  ;;  %v17026_v27 = vpop.f32.mrb[47].mxu1 }
 0xb33   : > { %v14804_v6 = vpack.c.bf16 %v14803_v16, %v14803_v16 }
 0xb35   : > { %17044 = vmatmul.mubr.bf16.vlgmr.msra.gmra.mrb[40].mxu0 %v14804_v6 }
 0xc08   : > { %v14910_v46 = vpop.f32.mrb[40].mxu0 }
 0xc09   : > { %v14911_v9 = vadd.f32 %v16956_v18, %v14910_v46  ;;  %v17045_v11 = vpop.f32.mrb[41].mxu0 }
 0xc0a   : > { %v14913_v57 = vpop.f32.mrb[42].mxu0 }
 0xc0b   : > { %v14916_v31 = vmax.f32 %v14911_v9, 0.0  ;;  %v17046_v24 = vpop.f32.mrb[43].mxu0 }
 0xc0d   : > { %14917 = vst [vmem:[%s520_s28] sm:$0xff] %v14916_v31 }
 0xc0e PF: > { %s27_s17 = sadd.s32 1, %s19779_s17  }
 0xc0f   : > { %p24_p2 = scmp.ge.s32.totalorder %s27_s17, 4  }
 0xc11   :  { %26 = sbr.rel (!%p24_p2) target bundleno = 6 (0x6), region = 135 }
 0xc18   :  { %14937 = vsyncpa [#allocation3], 1 }
 0xc19   :  { %14939 = vsyncpa [#allocation3 + $0x1], 1 }
 0xc1a   :  { %14940 = vsyncpa [#allocation5], 1 }
 0xc1b   :  { %14941 = vsyncpa [#allocation8], 1 }
 0xc1c   :  { %14942 = vsyncpa [#allocation11], 1 }
 0xc1d   :  { %14943 = vsyncpa [#allocation14], 1 }
 0xc1e   :  { %14944 = vsyncpa [#allocation17], 1 }

</bundles_post_ra>
